<compile_context>
chip_gen: v7x
topology: tpu7x:2x2x1
jax: 0.10.0
libtpu: 0.0.40
codegen_flags: <defaults>
</compile_context>

<pallas_src>
import functools

import jax
import jax.numpy as jnp
from jax import lax
from jax.experimental import pallas as pl
from jax.experimental.pallas import tpu as pltpu

_BN_EPS = 1e-5
_CIN_PAD = 8                            # pad the 2-channel input so the MXU handles it
_ROW_TILE = 2048                        # amortizes the ~0.35 us per-grid-step overhead
_VMEM_LIMIT = 48 * 1024 * 1024          # <= ~48 MiB: safe on v7x (64 MiB/TC), fine on v5e/v6e


def _round_up(n, m):
    return (n + m - 1) // m * m


def _choose_tiling(n, target=_ROW_TILE):
    """Return (tile, padded_n).  tile is a multiple of 16 (bf16 sublane packing) and
    padded_n a multiple of tile.  Prefers multiple-of-256 divisors of n; otherwise the
    wrapper zero-pads the point axis and the kernels mask the tail rows."""
    if n <= target:
        t = max(16, _round_up(n, 16))
        return t, t
    for t in range(target, 255, -256):
        if n % t == 0:
            return t, n
    return target, _round_up(n, target)


def _pad_cin(w, cin_pad=_CIN_PAD):
    """Zero-pad the input-channel axis (-2) of a (cin, cout) or (B, cin, cout) weight."""
    pad = [(0, 0)] * w.ndim
    pad[-2] = (0, cin_pad - w.shape[-2])
    return jnp.pad(w, pad)


# ----------------------------------------------------------------------------- kernels
def _stats_kernel(n_true, tn, need_mask, two_layers, x_ref, w1_ref, b1_ref, *rest):
    """Stats-only pass over one (1, tn, 8) point tile: recompute h1 = tanh(x @ W1' + b1')
    (and optionally h2 = tanh(h1 @ W2' + b2')), accumulate the per-batch column-sum and
    Gram of the last activation (resident in VMEM across the point-tile axis).  BN is
    already folded into W', b'.  Nothing wide is written to HBM."""
    if two_layers:
        w2_ref, b2_ref, sum_ref, gram_ref = rest
    else:
        sum_ref, gram_ref = rest

    h = jnp.tanh(jnp.dot(x_ref[0], w1_ref[0], preferred_element_type=jnp.float32)
                 + b1_ref[...])
    hb = h.astype(jnp.bfloat16)
    if two_layers:
        h = jnp.tanh(jnp.dot(hb, w2_ref[...], preferred_element_type=jnp.float32)
                     + b2_ref[...])
        hb = h.astype(jnp.bfloat16)
    if need_mask:
        rows = pl.program_id(1) * tn + lax.broadcasted_iota(jnp.int32, (tn, 1), 0)
        hb = jnp.where(rows < n_true, hb, jnp.zeros_like(hb))

    @pl.when(pl.program_id(1) == 0)
    def _init():
        sum_ref[...] = jnp.zeros(sum_ref.shape, sum_ref.dtype)
        gram_ref[...] = jnp.zeros(gram_ref.shape, gram_ref.dtype)

    sum_ref[0] += jnp.sum(hb.astype(jnp.float32), axis=0, keepdims=True)
    # bf16 x bf16 -> f32 Gram on the MXU (bf16 products are exact in f32); the stats
    # describe exactly the bf16-rounded activation the next layer's matmul consumes.
    gram_ref[0] += lax.dot_general(hb, hb, (((0,), (0,)), ((), ())),
                                   preferred_element_type=jnp.float32)


def _maxpool_kernel(n_true, tn, need_mask, x_ref, w1_ref, b1_ref, w2_ref, b2_ref,
                    w3_ref, b3_ref, g_ref):
    """Fused conv1+conv2+conv3 (BN pre-folded) + per-batch max over points.  h1/h2/z3
    live only in VMEM; the running max stays resident across the point-tile axis."""
    h1 = jnp.tanh(jnp.dot(x_ref[0], w1_ref[0], preferred_element_type=jnp.float32)
                  + b1_ref[...])
    h2 = jnp.tanh(jnp.dot(h1.astype(jnp.bfloat16), w2_ref[...],
                          preferred_element_type=jnp.float32) + b2_ref[...])
    z3 = jnp.dot(h2.astype(jnp.bfloat16), w3_ref[...],
                 preferred_element_type=jnp.float32) + b3_ref[...]
    if need_mask:
        rows = pl.program_id(1) * tn + lax.broadcasted_iota(jnp.int32, (tn, 1), 0)
        z3 = jnp.where(rows < n_true, z3, -jnp.inf)
    tile_max = jnp.max(z3, axis=0, keepdims=True)            # (1, 1024)

    @pl.when(pl.program_id(1) == 0)
    def _init():
        g_ref[...] = jnp.full(g_ref.shape, -jnp.inf, g_ref.dtype)

    g_ref[0] = jnp.maximum(g_ref[0], tile_max)


def _stn_head_kernel(g_ref, w1_ref, b1_ref, w2_ref, b2_ref, w3_ref, b3_ref, o_ref):
    # g is the pooled max of bn3(conv3); tanh commutes with max, so apply it here.
    h = jnp.tanh(g_ref[...])
    h = jnp.tanh(jnp.dot(h.astype(jnp.bfloat16), w1_ref[...],
                         preferred_element_type=jnp.float32) + b1_ref[...])
    h = jnp.tanh(jnp.dot(h.astype(jnp.bfloat16), w2_ref[...],
                         preferred_element_type=jnp.float32) + b2_ref[...])
    # b3 already has the flattened k x k identity folded in.
    o_ref[...] = jnp.dot(h.astype(jnp.bfloat16), w3_ref[...],
                         preferred_element_type=jnp.float32) + b3_ref[...]


def _cls_head_kernel(eps, g_ref, w1_ref, b1_ref, gm1_ref, bt1_ref,
                     w2_ref, b2_ref, gm2_ref, bt2_ref, w3_ref, b3_ref, o_ref):
    def bn_tanh(z, gm, bt):
        mu = jnp.mean(z, axis=0, keepdims=True)
        var = jnp.mean((z - mu) * (z - mu), axis=0, keepdims=True)  # biased, torch BN train
        return jnp.tanh((z - mu) * lax.rsqrt(var + eps) * gm + bt)

    x = g_ref[...]
    z = jnp.dot(x.astype(jnp.bfloat16), w1_ref[...],
                preferred_element_type=jnp.float32) + b1_ref[...]
    x = bn_tanh(z, gm1_ref[...], bt1_ref[...])
    z = jnp.dot(x.astype(jnp.bfloat16), w2_ref[...],
                preferred_element_type=jnp.float32) + b2_ref[...]
    # TODO(synk): nn.Dropout(p=0.3) before bn2 is stochastic; applied as identity here.
    x = bn_tanh(z, gm2_ref[...], bt2_ref[...])
    z = jnp.dot(x.astype(jnp.bfloat16), w3_ref[...],
                preferred_element_type=jnp.float32) + b3_ref[...]        # (B, k)
    zmax = jnp.max(z, axis=1, keepdims=True)
    lse = zmax + jnp.log(jnp.sum(jnp.exp(z - zmax), axis=1, keepdims=True))
    o_ref[...] = z - lse                                     # log_softmax(dim=1)


# ---------------------------------------------------------------------------- wrappers
def stats_pass(x8, tn, n_true, w1, b1, w2=None, b2=None):
    """One or two per-point dense layers (BN pre-folded), stats only.
    Returns (colsum (C,), gram (C, C)) of the last activation over all B*N points."""
    B, n_pad, cin = x8.shape
    two = w2 is not None
    c1 = w1.shape[-1]
    cout = w2.shape[-1] if two else c1
    need_mask = n_pad != n_true
    w_idx = (lambda bi, ti: (bi, 0, 0)) if w1.shape[0] != 1 else (lambda bi, ti: (0, 0, 0))

    in_specs = [pl.BlockSpec((1, tn, cin), lambda bi, ti: (bi, ti, 0)),
                pl.BlockSpec((1, cin, c1), w_idx),
                pl.BlockSpec((1, c1), lambda bi, ti: (0, 0))]
    args = [x8, w1, b1]
    if two:
        in_specs += [pl.BlockSpec((c1, cout), lambda bi, ti: (0, 0)),
                     pl.BlockSpec((1, cout), lambda bi, ti: (0, 0))]
        args += [w2, b2]

    s_b, g_b = pl.pallas_call(
        functools.partial(_stats_kernel, n_true, tn, need_mask, two),
        grid=(B, n_pad // tn),
        in_specs=in_specs,
        out_specs=[pl.BlockSpec((1, 1, cout), lambda bi, ti: (bi, 0, 0)),
                   pl.BlockSpec((1, cout, cout), lambda bi, ti: (bi, 0, 0))],
        out_shape=[jax.ShapeDtypeStruct((B, 1, cout), jnp.float32),
                   jax.ShapeDtypeStruct((B, cout, cout), jnp.float32)],
        compiler_params=pltpu.CompilerParams(
            dimension_semantics=("parallel", "arbitrary"),
            vmem_limit_bytes=_VMEM_LIMIT),
    )(*args)
    return jnp.sum(s_b[:, 0, :], axis=0), jnp.sum(g_b, axis=0)


def maxpool_pass(x8, tn, n_true, w1, b1, w2, b2, w3, b3):
    """Fused conv1+conv2+conv3 (BN pre-folded) + max over points: (B,Np,8) -> (B, 1024)."""
    B, n_pad, cin = x8.shape
    c1, c2, c3 = w1.shape[-1], w2.shape[-1], w3.shape[-1]
    need_mask = n_pad != n_true
    w_idx = (lambda bi, ti: (bi, 0, 0)) if w1.shape[0] != 1 else (lambda bi, ti: (0, 0, 0))

    g = pl.pallas_call(
        functools.partial(_maxpool_kernel, n_true, tn, need_mask),
        grid=(B, n_pad // tn),
        in_specs=[pl.BlockSpec((1, tn, cin), lambda bi, ti: (bi, ti, 0)),
                  pl.BlockSpec((1, cin, c1), w_idx),
                  pl.BlockSpec((1, c1), lambda bi, ti: (0, 0)),
                  pl.BlockSpec((c1, c2), lambda bi, ti: (0, 0)),
                  pl.BlockSpec((1, c2), lambda bi, ti: (0, 0)),
                  pl.BlockSpec((c2, c3), lambda bi, ti: (0, 0)),
                  pl.BlockSpec((1, c3), lambda bi, ti: (0, 0))],
        out_specs=pl.BlockSpec((1, 1, c3), lambda bi, ti: (bi, 0, 0)),
        out_shape=jax.ShapeDtypeStruct((B, 1, c3), jnp.float32),
        compiler_params=pltpu.CompilerParams(
            dimension_semantics=("parallel", "arbitrary"),
            vmem_limit_bytes=_VMEM_LIMIT),
    )(x8, w1, b1, w2, b2, w3, b3)
    return g[:, 0, :]


def stn_head(g_max, f1, f2, f3, k=2):
    B = g_max.shape[0]
    w1, b1 = f1
    w2, b2 = f2
    w3, b3 = f3
    iden = jnp.eye(k, dtype=jnp.float32).reshape(1, k * k)   # identity add folded into b3
    out = pl.pallas_call(
        _stn_head_kernel,
        out_shape=jax.ShapeDtypeStruct((B, k * k), jnp.float32),
    )(g_max, w1.astype(jnp.bfloat16), b1.reshape(1, -1),
      w2.astype(jnp.bfloat16), b2.reshape(1, -1),
      w3.astype(jnp.bfloat16), b3.reshape(1, -1) + iden)
    return out.reshape(B, k, k)


def cls_head(g, fc1, fc2, fc3):
    B = g.shape[0]
    w1, b1, gm1, bt1 = fc1
    w2, b2, gm2, bt2 = fc2
    w3, b3 = fc3
    k = w3.shape[1]
    return pl.pallas_call(
        functools.partial(_cls_head_kernel, _BN_EPS),
        out_shape=jax.ShapeDtypeStruct((B, k), jnp.float32),
    )(g, w1.astype(jnp.bfloat16), b1.reshape(1, -1), gm1.reshape(1, -1), bt1.reshape(1, -1),
      w2.astype(jnp.bfloat16), b2.reshape(1, -1), gm2.reshape(1, -1), bt2.reshape(1, -1),
      w3.astype(jnp.bfloat16), b3.reshape(1, -1))


# ------------------------------------------------------------------------- BN folding
def _fold_bn(colsum, gram, count, w, gamma, beta, eps=_BN_EPS):
    """Fold training-mode BatchNorm1d (stats over all B*N points) into the conv weight.
    z = h @ w (+ conv bias, which cancels inside train-mode BN); bn(z) == h @ W' + b'.
    mean/var of z are exact functions of colsum(h) and h^T h."""
    m = colsum @ w / count                               # E[h @ w] per output channel
    q = jnp.sum(w * (gram @ w), axis=0) / count          # E[(h @ w)^2]
    var = jnp.maximum(q - m * m, 0.0)
    scale = gamma * lax.rsqrt(var + eps)
    return w * scale[None, :], (beta - m * scale).reshape(1, -1)


def _fold_bn_per_batch(colsum_b, gram_b, count, w_b, gamma, beta, eps=_BN_EPS):
    """Same as _fold_bn for a per-batch weight (STN transform folded into feat conv1)."""
    m = jnp.einsum("bi,bic->c", colsum_b, w_b) / count
    gw = jnp.einsum("bij,bjc->bic", gram_b, w_b)
    q = jnp.einsum("bic,bic->c", w_b, gw) / count
    var = jnp.maximum(q - m * m, 0.0)
    scale = gamma * lax.rsqrt(var + eps)
    return w_b * scale[None, None, :], (beta - m * scale).reshape(1, -1)


# -------------------------------------------------------------------------- parameters
def _init_conv_bn(key, cin, cout):
    k1, k2, k3, k4 = jax.random.split(key, 4)
    w = jax.random.normal(k1, (cin, cout), jnp.float32) / jnp.sqrt(float(cin))
    b = 0.1 * jax.random.normal(k2, (cout,), jnp.float32)   # cancels inside train-mode BN
    gamma = jax.random.uniform(k3, (cout,), jnp.float32, 0.5, 1.5)
    beta = 0.1 * jax.random.normal(k4, (cout,), jnp.float32)
    return (w, b, gamma, beta)


def _init_linear(key, cin, cout):
    k1, k2 = jax.random.split(key, 2)
    w = jax.random.normal(k1, (cin, cout), jnp.float32) / jnp.sqrt(float(cin))
    b = 0.1 * jax.random.normal(k2, (cout,), jnp.float32)
    return (w, b)


def init_params(key):
    ks = jax.random.split(key, 12)
    stn = {                       # STNkd(k=2)  (bn4/bn5 exist in the module but are unused)
        "c1": _init_conv_bn(ks[0], 2, 64),
        "c2": _init_conv_bn(ks[1], 64, 128),
        "c3": _init_conv_bn(ks[2], 128, 1024),
        "f1": _init_linear(ks[3], 1024, 512),
        "f2": _init_linear(ks[4], 512, 256),
        "f3": _init_linear(ks[5], 256, 4),
    }
    feat = {                      # PointNetfeat_v2(global_feat=True, feature_transform=False)
        "stn": stn,
        "c1": _init_conv_bn(ks[6], 2, 64),
        "c2": _init_conv_bn(ks[7], 64, 128),
        "c3": _init_conv_bn(ks[8], 128, 1024),
    }
    return {                      # PointNetCls(k=2)
        "feat": feat,
        "fc1": _init_conv_bn(ks[9], 1024, 512),    # Linear + BatchNorm1d(512)
        "fc2": _init_conv_bn(ks[10], 512, 256),    # Linear + BatchNorm1d(256)
        "fc3": _init_linear(ks[11], 256, 2),
    }


# ------------------------------------------------------------------------ forward pass
def pointnet_cls_forward(params, x_bcn):
    """PointNetCls(k=2).forward: x (B, 2, N) -> (log_softmax logits (B, 2), trans (B, 2, 2)).
    (trans_feat is None since feature_transform=False.)"""
    B, _, N = x_bcn.shape
    M = B * N
    x = jnp.transpose(x_bcn, (0, 2, 1)).astype(jnp.float32)       # channels-last (B, N, 2)

    # bf16-rounded input is what the kernels consume; compute the tiny per-batch input
    # moments (drive the analytic BN folds and the bmm fusion) on the same values.
    x_bf = x.astype(jnp.bfloat16)
    x_f = x_bf.astype(jnp.float32)
    colsum_b = jnp.sum(x_f, axis=1)                               # (B, 2)
    gram_b = jnp.einsum("bni,bnj->bij", x_f, x_f)                 # (B, 2, 2)
    colsum, gram = jnp.sum(colsum_b, axis=0), jnp.sum(gram_b, axis=0)

    # Row tiling: pad N to a multiple of the tile (kernels mask the tail), pad Cin 2->8
    # so the first contraction runs on the MXU.  x8 is the only per-point HBM tensor.
    tn, n_pad = _choose_tiling(N)
    x8 = jnp.zeros((B, n_pad, _CIN_PAD), jnp.bfloat16).at[:, :N, :2].set(x_bf)

    # ------------------------------- STNkd(k=2) --------------------------------------
    p = params["feat"]["stn"]
    w1p, b1p = _fold_bn(colsum, gram, M, p["c1"][0], p["c1"][2], p["c1"][3])
    w1p = _pad_cin(w1p)[None].astype(jnp.bfloat16)                # (1, 8, 64) shared
    s1, G1 = stats_pass(x8, tn, N, w1p, b1p)                      # stats of tanh(bn1(conv1))
    w2p, b2p = _fold_bn(s1, G1, M, p["c2"][0], p["c2"][2], p["c2"][3])
    w2p = w2p.astype(jnp.bfloat16)
    s2, G2 = stats_pass(x8, tn, N, w1p, b1p, w2p, b2p)            # stats of tanh(bn2(conv2))
    w3p, b3p = _fold_bn(s2, G2, M, p["c3"][0], p["c3"][2], p["c3"][3])
    g_max = maxpool_pass(x8, tn, N, w1p, b1p, w2p, b2p,
                         w3p.astype(jnp.bfloat16), b3p)           # max_n bn3(conv3) (B, 1024)
    trans = stn_head(g_max, p["f1"], p["f2"], p["f3"], k=2)       # (B, 2, 2), tanh inside

    # -------------- PointNetfeat_v2 (global_feat=True); bmm fused into conv1 ---------
    f = params["feat"]
    w_pb = jnp.einsum("bij,jc->bic", trans, f["c1"][0])           # (x @ T) @ W == x @ (T @ W)
    w_pb, b1p = _fold_bn_per_batch(colsum_b, gram_b, M, w_pb, f["c1"][2], f["c1"][3])
    w1p_b = _pad_cin(w_pb).astype(jnp.bfloat16)                   # (B, 8, 64) per-batch
    s1, G1 = stats_pass(x8, tn, N, w1p_b, b1p)
    w2p, b2p = _fold_bn(s1, G1, M, f["c2"][0], f["c2"][2], f["c2"][3])
    w2p = w2p.astype(jnp.bfloat16)
    s2, G2 = stats_pass(x8, tn, N, w1p_b, b1p, w2p, b2p)
    w3p, b3p = _fold_bn(s2, G2, M, f["c3"][0], f["c3"][2], f["c3"][3])
    g = maxpool_pass(x8, tn, N, w1p_b, b1p, w2p, b2p,
                     w3p.astype(jnp.bfloat16), b3p)               # (B, 1024) global feature

    # ------------------------------ classifier head ----------------------------------
    logp = cls_head(g, params["fc1"], params["fc2"], params["fc3"])
    return logp, trans


if __name__ == "__main__":
    key = jax.random.PRNGKey(0)
    kp, kx = jax.random.split(key)
    params = init_params(kp)

    B, N = 2, 16
    x = jax.random.normal(kx, (B, 2, N), jnp.float32)

    fwd = jax.jit(pointnet_cls_forward)
    logp, trans = fwd(params, x)
    jax.block_until_ready((logp, trans))

    assert logp.shape == (B, 2), logp.shape
    assert trans.shape == (B, 2, 2), trans.shape
    assert logp.dtype == jnp.float32 and trans.dtype == jnp.float32
    assert bool(jnp.all(jnp.isfinite(logp))) and bool(jnp.all(jnp.isfinite(trans)))
    # log_softmax rows must exponentiate-sum to 1
    assert bool(jnp.all(jnp.abs(jnp.sum(jnp.exp(logp), axis=1) - 1.0) < 1e-3))
    print("KERNEL_OK")
</pallas_src>

<mosaic_0001>
module attributes {stable_mosaic.version = 11 : i64} {
  func.func @_stats_kernel(%arg0: i32, %arg1: i32, %arg2: memref<1x16x8xbf16, #tpu.memory_space<vmem>>, %arg3: memref<1x8x64xbf16, #tpu.memory_space<vmem>>, %arg4: memref<1x64xf32, #tpu.memory_space<vmem>>, %arg5: memref<64x128xbf16, #tpu.memory_space<vmem>>, %arg6: memref<1x128xf32, #tpu.memory_space<vmem>>, %arg7: memref<1x1x128xf32, #tpu.memory_space<vmem>>, %arg8: memref<1x128x128xf32, #tpu.memory_space<vmem>>) attributes {dimension_semantics = [#tpu.dimension_semantics<parallel>, #tpu.dimension_semantics<arbitrary>], iteration_bounds = array<i64: 2, 1>, scalar_prefetch = 0 : i64, scratch_operands = 0 : i64, tpu.core_type = #tpu.core_type<tc>, window_params = [{transform_indices = @transform_0, window_bounds = array<i64: 1, 16, 8>}, {pipeline_mode = #tpu.pipeline_mode<synchronous>, transform_indices = @transform_1, window_bounds = array<i64: 1, 8, 64>}, {pipeline_mode = #tpu.pipeline_mode<synchronous>, transform_indices = @transform_2, window_bounds = array<i64: 1, 64>}, {pipeline_mode = #tpu.pipeline_mode<synchronous>, transform_indices = @transform_3, window_bounds = array<i64: 64, 128>}, {pipeline_mode = #tpu.pipeline_mode<synchronous>, transform_indices = @transform_4, window_bounds = array<i64: 1, 128>}, {transform_indices = @transform_5, window_bounds = array<i64: 1, 1, 128>}, {transform_indices = @transform_6, window_bounds = array<i64: 1, 128, 128>}]} {
    %c0 = arith.constant 0 : index
    %c0_0 = arith.constant 0 : index
    %c0_1 = arith.constant 0 : index
    %0 = vector.load %arg2[%c0, %c0_0, %c0_1] : memref<1x16x8xbf16, #tpu.memory_space<vmem>>, vector<1x16x8xbf16>
    %1 = vector.shape_cast %0 : vector<1x16x8xbf16> to vector<16x8xbf16>
    %c0_2 = arith.constant 0 : index
    %c0_3 = arith.constant 0 : index
    %c0_4 = arith.constant 0 : index
    %2 = vector.load %arg3[%c0_2, %c0_3, %c0_4] : memref<1x8x64xbf16, #tpu.memory_space<vmem>>, vector<1x8x64xbf16>
    %3 = vector.shape_cast %2 : vector<1x8x64xbf16> to vector<8x64xbf16>
    %cst = arith.constant dense<0.000000e+00> : vector<16x64xf32>
    %4 = tpu.matmul %1, %3, %cst {dimension_numbers = #tpu.dot_dimension_numbers<[1], [0], [0], [1], [0, 0, 1, 1], [], []>} : vector<16x8xbf16>, vector<8x64xbf16>, vector<16x64xf32> -> vector<16x64xf32>
    %c0_5 = arith.constant 0 : index
    %c0_6 = arith.constant 0 : index
    %5 = vector.load %arg4[%c0_5, %c0_6] : memref<1x64xf32, #tpu.memory_space<vmem>>, vector<1x64xf32>
    %6 = vector.broadcast %5 : vector<1x64xf32> to vector<16x64xf32>
    %7 = arith.addf %4, %6 : vector<16x64xf32>
    %8 = math.tanh %7 : vector<16x64xf32>
    %9 = arith.truncf %8 : vector<16x64xf32> to vector<16x64xbf16>
    %c0_7 = arith.constant 0 : index
    %c0_8 = arith.constant 0 : index
    %10 = vector.load %arg5[%c0_7, %c0_8] : memref<64x128xbf16, #tpu.memory_space<vmem>>, vector<64x128xbf16>
    %cst_9 = arith.constant dense<0.000000e+00> : vector<16x128xf32>
    %11 = tpu.matmul %9, %10, %cst_9 {dimension_numbers = #tpu.dot_dimension_numbers<[1], [0], [0], [1], [0, 0, 1, 1], [], []>} : vector<16x64xbf16>, vector<64x128xbf16>, vector<16x128xf32> -> vector<16x128xf32>
    %c0_10 = arith.constant 0 : index
    %c0_11 = arith.constant 0 : index
    %12 = vector.load %arg6[%c0_10, %c0_11] : memref<1x128xf32, #tpu.memory_space<vmem>>, vector<1x128xf32>
    %13 = vector.broadcast %12 : vector<1x128xf32> to vector<16x128xf32>
    %14 = arith.addf %11, %13 : vector<16x128xf32>
    %15 = math.tanh %14 : vector<16x128xf32>
    %16 = arith.truncf %15 : vector<16x128xf32> to vector<16x128xbf16>
    %c0_i32 = arith.constant 0 : i32
    %17 = arith.cmpi eq, %arg1, %c0_i32 : i32
    %18 = arith.extui %17 : i1 to i32
    %c0_i32_12 = arith.constant 0 : i32
    %19 = arith.cmpi ne, %18, %c0_i32_12 : i32
    scf.if %19 {
      %cst_27 = arith.constant 0.000000e+00 : f32
      %36 = vector.broadcast %cst_27 : f32 to vector<1x1x128xf32>
      %c0_28 = arith.constant 0 : index
      %c0_29 = arith.constant 0 : index
      %c0_30 = arith.constant 0 : index
      %37 = vector.load %arg7[%c0_28, %c0_29, %c0_30] : memref<1x1x128xf32, #tpu.memory_space<vmem>>, vector<1x1x128xf32>
      tpu.vector_store %arg7[%c0_28, %c0_29, %c0_30], %36 {strides = array<i32>} : memref<1x1x128xf32, #tpu.memory_space<vmem>>, vector<1x1x128xf32>,
      %cst_31 = arith.constant 0.000000e+00 : f32
      %38 = vector.broadcast %cst_31 : f32 to vector<1x128x128xf32>
      %c0_32 = arith.constant 0 : index
      %c0_33 = arith.constant 0 : index
      %c0_34 = arith.constant 0 : index
      %39 = vector.load %arg8[%c0_32, %c0_33, %c0_34] : memref<1x128x128xf32, #tpu.memory_space<vmem>>, vector<1x128x128xf32>
      tpu.vector_store %arg8[%c0_32, %c0_33, %c0_34], %38 {strides = array<i32>} : memref<1x128x128xf32, #tpu.memory_space<vmem>>, vector<1x128x128xf32>,
    } else {
    }
    %c0_13 = arith.constant 0 : index
    %c0_14 = arith.constant 0 : index
    %c0_15 = arith.constant 0 : index
    %20 = vector.load %arg7[%c0_13, %c0_14, %c0_15] : memref<1x1x128xf32, #tpu.memory_space<vmem>>, vector<1x1x128xf32>
    %21 = vector.shape_cast %20 : vector<1x1x128xf32> to vector<1x128xf32>
    %22 = arith.extf %16 : vector<16x128xbf16> to vector<16x128xf32>
    %cst_16 = arith.constant dense<0.000000e+00> : vector<128xf32>
    %23 = vector.multi_reduction <add>, %22, %cst_16 [0] : vector<16x128xf32> to vector<128xf32>
    %24 = vector.shape_cast %23 : vector<128xf32> to vector<1x128xf32>
    %25 = arith.addf %21, %24 : vector<1x128xf32>
    %c0_17 = arith.constant 0 : index
    %c0_18 = arith.constant 0 : index
    %c0_19 = arith.constant 0 : index
    %26 = vector.load %arg7[%c0_17, %c0_18, %c0_19] : memref<1x1x128xf32, #tpu.memory_space<vmem>>, vector<1x1x128xf32>
    %27 = vector.shape_cast %26 : vector<1x1x128xf32> to vector<1x128xf32>
    %28 = vector.shape_cast %25 : vector<1x128xf32> to vector<1x1x128xf32>
    tpu.vector_store %arg7[%c0_17, %c0_18, %c0_19], %28 {strides = array<i32>} : memref<1x1x128xf32, #tpu.memory_space<vmem>>, vector<1x1x128xf32>,
    %c0_20 = arith.constant 0 : index
    %c0_21 = arith.constant 0 : index
    %c0_22 = arith.constant 0 : index
    %29 = vector.load %arg8[%c0_20, %c0_21, %c0_22] : memref<1x128x128xf32, #tpu.memory_space<vmem>>, vector<1x128x128xf32>
    %30 = vector.shape_cast %29 : vector<1x128x128xf32> to vector<128x128xf32>
    %cst_23 = arith.constant dense<0.000000e+00> : vector<128x128xf32>
    %31 = tpu.matmul %16, %16, %cst_23 {dimension_numbers = #tpu.dot_dimension_numbers<[0], [0], [1], [1], [0, 1, 1, 1], [], []>} : vector<16x128xbf16>, vector<16x128xbf16>, vector<128x128xf32> -> vector<128x128xf32>
    %32 = arith.addf %30, %31 : vector<128x128xf32>
    %c0_24 = arith.constant 0 : index
    %c0_25 = arith.constant 0 : index
    %c0_26 = arith.constant 0 : index
    %33 = vector.load %arg8[%c0_24, %c0_25, %c0_26] : memref<1x128x128xf32, #tpu.memory_space<vmem>>, vector<1x128x128xf32>
    %34 = vector.shape_cast %33 : vector<1x128x128xf32> to vector<128x128xf32>
    %35 = vector.shape_cast %32 : vector<128x128xf32> to vector<1x128x128xf32>
    tpu.vector_store %arg8[%c0_24, %c0_25, %c0_26], %35 {strides = array<i32>} : memref<1x128x128xf32, #tpu.memory_space<vmem>>, vector<1x128x128xf32>,
    return
  }
  func.func @transform_0(%arg0: i32, %arg1: i32) -> (i32, i32, i32) {
    %c0_i32 = arith.constant 0 : i32
    %c0_i32_0 = arith.constant 0 : i32
    return %arg0, %arg1, %c0_i32 : i32, i32, i32
  }
  func.func @transform_1(%arg0: i32, %arg1: i32) -> (i32, i32, i32) {
    %c0_i32 = arith.constant 0 : i32
    %c0_i32_0 = arith.constant 0 : i32
    %c0_i32_1 = arith.constant 0 : i32
    %c0_i32_2 = arith.constant 0 : i32
    return %c0_i32, %c0_i32_0, %c0_i32_1 : i32, i32, i32
  }
  func.func @transform_2(%arg0: i32, %arg1: i32) -> (i32, i32) {
    %c0_i32 = arith.constant 0 : i32
    %c0_i32_0 = arith.constant 0 : i32
    %c0_i32_1 = arith.constant 0 : i32
    return %c0_i32, %c0_i32_0 : i32, i32
  }
  func.func @transform_3(%arg0: i32, %arg1: i32) -> (i32, i32) {
    %c0_i32 = arith.constant 0 : i32
    %c0_i32_0 = arith.constant 0 : i32
    %c0_i32_1 = arith.constant 0 : i32
    return %c0_i32, %c0_i32_0 : i32, i32
  }
  func.func @transform_4(%arg0: i32, %arg1: i32) -> (i32, i32) {
    %c0_i32 = arith.constant 0 : i32
    %c0_i32_0 = arith.constant 0 : i32
    %c0_i32_1 = arith.constant 0 : i32
    return %c0_i32, %c0_i32_0 : i32, i32
  }
  func.func @transform_5(%arg0: i32, %arg1: i32) -> (i32, i32, i32) {
    %c0_i32 = arith.constant 0 : i32
    %c0_i32_0 = arith.constant 0 : i32
    %c0_i32_1 = arith.constant 0 : i32
    return %arg0, %c0_i32, %c0_i32_0 : i32, i32, i32
  }
  func.func @transform_6(%arg0: i32, %arg1: i32) -> (i32, i32, i32) {
    %c0_i32 = arith.constant 0 : i32
    %c0_i32_0 = arith.constant 0 : i32
    %c0_i32_1 = arith.constant 0 : i32
    return %arg0, %c0_i32, %c0_i32_0 : i32, i32, i32
  }
}

module attributes {stable_mosaic.version = 11 : i64} {
  func.func @_stats_kernel(%arg0: i32, %arg1: i32, %arg2: memref<1x16x8xbf16, #tpu.memory_space<vmem>>, %arg3: memref<1x8x64xbf16, #tpu.memory_space<vmem>>, %arg4: memref<1x64xf32, #tpu.memory_space<vmem>>, %arg5: memref<1x1x64xf32, #tpu.memory_space<vmem>>, %arg6: memref<1x64x64xf32, #tpu.memory_space<vmem>>) attributes {dimension_semantics = [#tpu.dimension_semantics<parallel>, #tpu.dimension_semantics<arbitrary>], iteration_bounds = array<i64: 2, 1>, scalar_prefetch = 0 : i64, scratch_operands = 0 : i64, tpu.core_type = #tpu.core_type<tc>, window_params = [{transform_indices = @transform_0, window_bounds = array<i64: 1, 16, 8>}, {pipeline_mode = #tpu.pipeline_mode<synchronous>, transform_indices = @transform_1, window_bounds = array<i64: 1, 8, 64>}, {pipeline_mode = #tpu.pipeline_mode<synchronous>, transform_indices = @transform_2, window_bounds = array<i64: 1, 64>}, {transform_indices = @transform_3, window_bounds = array<i64: 1, 1, 64>}, {transform_indices = @transform_4, window_bounds = array<i64: 1, 64, 64>}]} {
    %c0 = arith.constant 0 : index
    %c0_0 = arith.constant 0 : index
    %c0_1 = arith.constant 0 : index
    %0 = vector.load %arg2[%c0, %c0_0, %c0_1] : memref<1x16x8xbf16, #tpu.memory_space<vmem>>, vector<1x16x8xbf16>
    %1 = vector.shape_cast %0 : vector<1x16x8xbf16> to vector<16x8xbf16>
    %c0_2 = arith.constant 0 : index
    %c0_3 = arith.constant 0 : index
    %c0_4 = arith.constant 0 : index
    %2 = vector.load %arg3[%c0_2, %c0_3, %c0_4] : memref<1x8x64xbf16, #tpu.memory_space<vmem>>, vector<1x8x64xbf16>
    %3 = vector.shape_cast %2 : vector<1x8x64xbf16> to vector<8x64xbf16>
    %cst = arith.constant dense<0.000000e+00> : vector<16x64xf32>
    %4 = tpu.matmul %1, %3, %cst {dimension_numbers = #tpu.dot_dimension_numbers<[1], [0], [0], [1], [0, 0, 1, 1], [], []>} : vector<16x8xbf16>, vector<8x64xbf16>, vector<16x64xf32> -> vector<16x64xf32>
    %c0_5 = arith.constant 0 : index
    %c0_6 = arith.constant 0 : index
    %5 = vector.load %arg4[%c0_5, %c0_6] : memref<1x64xf32, #tpu.memory_space<vmem>>, vector<1x64xf32>
    %6 = vector.broadcast %5 : vector<1x64xf32> to vector<16x64xf32>
    %7 = arith.addf %4, %6 : vector<16x64xf32>
    %8 = math.tanh %7 : vector<16x64xf32>
    %9 = arith.truncf %8 : vector<16x64xf32> to vector<16x64xbf16>
    %c0_i32 = arith.constant 0 : i32
    %10 = arith.cmpi eq, %arg1, %c0_i32 : i32
    %11 = arith.extui %10 : i1 to i32
    %c0_i32_7 = arith.constant 0 : i32
    %12 = arith.cmpi ne, %11, %c0_i32_7 : i32
    scf.if %12 {
      %cst_22 = arith.constant 0.000000e+00 : f32
      %29 = vector.broadcast %cst_22 : f32 to vector<1x1x64xf32>
      %c0_23 = arith.constant 0 : index
      %c0_24 = arith.constant 0 : index
      %c0_25 = arith.constant 0 : index
      %30 = vector.load %arg5[%c0_23, %c0_24, %c0_25] : memref<1x1x64xf32, #tpu.memory_space<vmem>>, vector<1x1x64xf32>
      tpu.vector_store %arg5[%c0_23, %c0_24, %c0_25], %29 {strides = array<i32>} : memref<1x1x64xf32, #tpu.memory_space<vmem>>, vector<1x1x64xf32>,
      %cst_26 = arith.constant 0.000000e+00 : f32
      %31 = vector.broadcast %cst_26 : f32 to vector<1x64x64xf32>
      %c0_27 = arith.constant 0 : index
      %c0_28 = arith.constant 0 : index
      %c0_29 = arith.constant 0 : index
      %32 = vector.load %arg6[%c0_27, %c0_28, %c0_29] : memref<1x64x64xf32, #tpu.memory_space<vmem>>, vector<1x64x64xf32>
      tpu.vector_store %arg6[%c0_27, %c0_28, %c0_29], %31 {strides = array<i32>} : memref<1x64x64xf32, #tpu.memory_space<vmem>>, vector<1x64x64xf32>,
    } else {
    }
    %c0_8 = arith.constant 0 : index
    %c0_9 = arith.constant 0 : index
    %c0_10 = arith.constant 0 : index
    %13 = vector.load %arg5[%c0_8, %c0_9, %c0_10] : memref<1x1x64xf32, #tpu.memory_space<vmem>>, vector<1x1x64xf32>
    %14 = vector.shape_cast %13 : vector<1x1x64xf32> to vector<1x64xf32>
    %15 = arith.extf %9 : vector<16x64xbf16> to vector<16x64xf32>
    %cst_11 = arith.constant dense<0.000000e+00> : vector<64xf32>
    %16 = vector.multi_reduction <add>, %15, %cst_11 [0] : vector<16x64xf32> to vector<64xf32>
    %17 = vector.shape_cast %16 : vector<64xf32> to vector<1x64xf32>
    %18 = arith.addf %14, %17 : vector<1x64xf32>
    %c0_12 = arith.constant 0 : index
    %c0_13 = arith.constant 0 : index
    %c0_14 = arith.constant 0 : index
    %19 = vector.load %arg5[%c0_12, %c0_13, %c0_14] : memref<1x1x64xf32, #tpu.memory_space<vmem>>, vector<1x1x64xf32>
    %20 = vector.shape_cast %19 : vector<1x1x64xf32> to vector<1x64xf32>
    %21 = vector.shape_cast %18 : vector<1x64xf32> to vector<1x1x64xf32>
    tpu.vector_store %arg5[%c0_12, %c0_13, %c0_14], %21 {strides = array<i32>} : memref<1x1x64xf32, #tpu.memory_space<vmem>>, vector<1x1x64xf32>,
    %c0_15 = arith.constant 0 : index
    %c0_16 = arith.constant 0 : index
    %c0_17 = arith.constant 0 : index
    %22 = vector.load %arg6[%c0_15, %c0_16, %c0_17] : memref<1x64x64xf32, #tpu.memory_space<vmem>>, vector<1x64x64xf32>
    %23 = vector.shape_cast %22 : vector<1x64x64xf32> to vector<64x64xf32>
    %cst_18 = arith.constant dense<0.000000e+00> : vector<64x64xf32>
    %24 = tpu.matmul %9, %9, %cst_18 {dimension_numbers = #tpu.dot_dimension_numbers<[0], [0], [1], [1], [0, 1, 1, 1], [], []>} : vector<16x64xbf16>, vector<16x64xbf16>, vector<64x64xf32> -> vector<64x64xf32>
    %25 = arith.addf %23, %24 : vector<64x64xf32>
    %c0_19 = arith.constant 0 : index
    %c0_20 = arith.constant 0 : index
    %c0_21 = arith.constant 0 : index
    %26 = vector.load %arg6[%c0_19, %c0_20, %c0_21] : memref<1x64x64xf32, #tpu.memory_space<vmem>>, vector<1x64x64xf32>
    %27 = vector.shape_cast %26 : vector<1x64x64xf32> to vector<64x64xf32>
    %28 = vector.shape_cast %25 : vector<64x64xf32> to vector<1x64x64xf32>
    tpu.vector_store %arg6[%c0_19, %c0_20, %c0_21], %28 {strides = array<i32>} : memref<1x64x64xf32, #tpu.memory_space<vmem>>, vector<1x64x64xf32>,
    return
  }
  func.func @transform_0(%arg0: i32, %arg1: i32) -> (i32, i32, i32) {
    %c0_i32 = arith.constant 0 : i32
    %c0_i32_0 = arith.constant 0 : i32
    return %arg0, %arg1, %c0_i32 : i32, i32, i32
  }
  func.func @transform_1(%arg0: i32, %arg1: i32) -> (i32, i32, i32) {
    %c0_i32 = arith.constant 0 : i32
    %c0_i32_0 = arith.constant 0 : i32
    %c0_i32_1 = arith.constant 0 : i32
    %c0_i32_2 = arith.constant 0 : i32
    return %c0_i32, %c0_i32_0, %c0_i32_1 : i32, i32, i32
  }
  func.func @transform_2(%arg0: i32, %arg1: i32) -> (i32, i32) {
    %c0_i32 = arith.constant 0 : i32
    %c0_i32_0 = arith.constant 0 : i32
    %c0_i32_1 = arith.constant 0 : i32
    return %c0_i32, %c0_i32_0 : i32, i32
  }
  func.func @transform_3(%arg0: i32, %arg1: i32) -> (i32, i32, i32) {
    %c0_i32 = arith.constant 0 : i32
    %c0_i32_0 = arith.constant 0 : i32
    %c0_i32_1 = arith.constant 0 : i32
    return %arg0, %c0_i32, %c0_i32_0 : i32, i32, i32
  }
  func.func @transform_4(%arg0: i32, %arg1: i32) -> (i32, i32, i32) {
    %c0_i32 = arith.constant 0 : i32
    %c0_i32_0 = arith.constant 0 : i32
    %c0_i32_1 = arith.constant 0 : i32
    return %arg0, %c0_i32, %c0_i32_0 : i32, i32, i32
  }
}

module attributes {stable_mosaic.version = 11 : i64} {
  func.func @_maxpool_kernel(%arg0: i32, %arg1: i32, %arg2: memref<1x16x8xbf16, #tpu.memory_space<vmem>>, %arg3: memref<1x8x64xbf16, #tpu.memory_space<vmem>>, %arg4: memref<1x64xf32, #tpu.memory_space<vmem>>, %arg5: memref<64x128xbf16, #tpu.memory_space<vmem>>, %arg6: memref<1x128xf32, #tpu.memory_space<vmem>>, %arg7: memref<128x1024xbf16, #tpu.memory_space<vmem>>, %arg8: memref<1x1024xf32, #tpu.memory_space<vmem>>, %arg9: memref<1x1x1024xf32, #tpu.memory_space<vmem>>) attributes {dimension_semantics = [#tpu.dimension_semantics<parallel>, #tpu.dimension_semantics<arbitrary>], iteration_bounds = array<i64: 2, 1>, scalar_prefetch = 0 : i64, scratch_operands = 0 : i64, tpu.core_type = #tpu.core_type<tc>, window_params = [{transform_indices = @transform_0, window_bounds = array<i64: 1, 16, 8>}, {pipeline_mode = #tpu.pipeline_mode<synchronous>, transform_indices = @transform_1, window_bounds = array<i64: 1, 8, 64>}, {pipeline_mode = #tpu.pipeline_mode<synchronous>, transform_indices = @transform_2, window_bounds = array<i64: 1, 64>}, {pipeline_mode = #tpu.pipeline_mode<synchronous>, transform_indices = @transform_3, window_bounds = array<i64: 64, 128>}, {pipeline_mode = #tpu.pipeline_mode<synchronous>, transform_indices = @transform_4, window_bounds = array<i64: 1, 128>}, {pipeline_mode = #tpu.pipeline_mode<synchronous>, transform_indices = @transform_5, window_bounds = array<i64: 128, 1024>}, {pipeline_mode = #tpu.pipeline_mode<synchronous>, transform_indices = @transform_6, window_bounds = array<i64: 1, 1024>}, {transform_indices = @transform_7, window_bounds = array<i64: 1, 1, 1024>}]} {
    %c0 = arith.constant 0 : index
    %c0_0 = arith.constant 0 : index
    %c0_1 = arith.constant 0 : index
    %0 = vector.load %arg2[%c0, %c0_0, %c0_1] : memref<1x16x8xbf16, #tpu.memory_space<vmem>>, vector<1x16x8xbf16>
    %1 = vector.shape_cast %0 : vector<1x16x8xbf16> to vector<16x8xbf16>
    %c0_2 = arith.constant 0 : index
    %c0_3 = arith.constant 0 : index
    %c0_4 = arith.constant 0 : index
    %2 = vector.load %arg3[%c0_2, %c0_3, %c0_4] : memref<1x8x64xbf16, #tpu.memory_space<vmem>>, vector<1x8x64xbf16>
    %3 = vector.shape_cast %2 : vector<1x8x64xbf16> to vector<8x64xbf16>
    %cst = arith.constant dense<0.000000e+00> : vector<16x64xf32>
    %4 = tpu.matmul %1, %3, %cst {dimension_numbers = #tpu.dot_dimension_numbers<[1], [0], [0], [1], [0, 0, 1, 1], [], []>} : vector<16x8xbf16>, vector<8x64xbf16>, vector<16x64xf32> -> vector<16x64xf32>
    %c0_5 = arith.constant 0 : index
    %c0_6 = arith.constant 0 : index
    %5 = vector.load %arg4[%c0_5, %c0_6] : memref<1x64xf32, #tpu.memory_space<vmem>>, vector<1x64xf32>
    %6 = vector.broadcast %5 : vector<1x64xf32> to vector<16x64xf32>
    %7 = arith.addf %4, %6 : vector<16x64xf32>
    %8 = math.tanh %7 : vector<16x64xf32>
    %9 = arith.truncf %8 : vector<16x64xf32> to vector<16x64xbf16>
    %c0_7 = arith.constant 0 : index
    %c0_8 = arith.constant 0 : index
    %10 = vector.load %arg5[%c0_7, %c0_8] : memref<64x128xbf16, #tpu.memory_space<vmem>>, vector<64x128xbf16>
    %cst_9 = arith.constant dense<0.000000e+00> : vector<16x128xf32>
    %11 = tpu.matmul %9, %10, %cst_9 {dimension_numbers = #tpu.dot_dimension_numbers<[1], [0], [0], [1], [0, 0, 1, 1], [], []>} : vector<16x64xbf16>, vector<64x128xbf16>, vector<16x128xf32> -> vector<16x128xf32>
    %c0_10 = arith.constant 0 : index
    %c0_11 = arith.constant 0 : index
    %12 = vector.load %arg6[%c0_10, %c0_11] : memref<1x128xf32, #tpu.memory_space<vmem>>, vector<1x128xf32>
    %13 = vector.broadcast %12 : vector<1x128xf32> to vector<16x128xf32>
    %14 = arith.addf %11, %13 : vector<16x128xf32>
    %15 = math.tanh %14 : vector<16x128xf32>
    %16 = arith.truncf %15 : vector<16x128xf32> to vector<16x128xbf16>
    %c0_12 = arith.constant 0 : index
    %c0_13 = arith.constant 0 : index
    %17 = vector.load %arg7[%c0_12, %c0_13] : memref<128x1024xbf16, #tpu.memory_space<vmem>>, vector<128x1024xbf16>
    %cst_14 = arith.constant dense<0.000000e+00> : vector<16x1024xf32>
    %18 = tpu.matmul %16, %17, %cst_14 {dimension_numbers = #tpu.dot_dimension_numbers<[1], [0], [0], [1], [0, 0, 1, 1], [], []>} : vector<16x128xbf16>, vector<128x1024xbf16>, vector<16x1024xf32> -> vector<16x1024xf32>
    %c0_15 = arith.constant 0 : index
    %c0_16 = arith.constant 0 : index
    %19 = vector.load %arg8[%c0_15, %c0_16] : memref<1x1024xf32, #tpu.memory_space<vmem>>, vector<1x1024xf32>
    %20 = vector.broadcast %19 : vector<1x1024xf32> to vector<16x1024xf32>
    %21 = arith.addf %18, %20 : vector<16x1024xf32>
    %cst_17 = arith.constant dense<0xFF800000> : vector<1024xf32>
    %22 = vector.multi_reduction <maximumf>, %21, %cst_17 [0] : vector<16x1024xf32> to vector<1024xf32>
    %23 = vector.shape_cast %22 : vector<1024xf32> to vector<1x1024xf32>
    %c0_i32 = arith.constant 0 : i32
    %24 = arith.cmpi eq, %arg1, %c0_i32 : i32
    %25 = arith.extui %24 : i1 to i32
    %c0_i32_18 = arith.constant 0 : i32
    %26 = arith.cmpi ne, %25, %c0_i32_18 : i32
    scf.if %26 {
      %cst_25 = arith.constant 0xFF800000 : f32
      %33 = vector.broadcast %cst_25 : f32 to vector<1x1x1024xf32>
      %c0_26 = arith.constant 0 : index
      %c0_27 = arith.constant 0 : index
      %c0_28 = arith.constant 0 : index
      %34 = vector.load %arg9[%c0_26, %c0_27, %c0_28] : memref<1x1x1024xf32, #tpu.memory_space<vmem>>, vector<1x1x1024xf32>
      tpu.vector_store %arg9[%c0_26, %c0_27, %c0_28], %33 {strides = array<i32>} : memref<1x1x1024xf32, #tpu.memory_space<vmem>>, vector<1x1x1024xf32>,
    } else {
    }
    %c0_19 = arith.constant 0 : index
    %c0_20 = arith.constant 0 : index
    %c0_21 = arith.constant 0 : index
    %27 = vector.load %arg9[%c0_19, %c0_20, %c0_21] : memref<1x1x1024xf32, #tpu.memory_space<vmem>>, vector<1x1x1024xf32>
    %28 = vector.shape_cast %27 : vector<1x1x1024xf32> to vector<1x1024xf32>
    %29 = arith.maximumf %28, %23 : vector<1x1024xf32>
    %c0_22 = arith.constant 0 : index
    %c0_23 = arith.constant 0 : index
    %c0_24 = arith.constant 0 : index
    %30 = vector.load %arg9[%c0_22, %c0_23, %c0_24] : memref<1x1x1024xf32, #tpu.memory_space<vmem>>, vector<1x1x1024xf32>
    %31 = vector.shape_cast %30 : vector<1x1x1024xf32> to vector<1x1024xf32>
    %32 = vector.shape_cast %29 : vector<1x1024xf32> to vector<1x1x1024xf32>
    tpu.vector_store %arg9[%c0_22, %c0_23, %c0_24], %32 {strides = array<i32>} : memref<1x1x1024xf32, #tpu.memory_space<vmem>>, vector<1x1x1024xf32>,
    return
  }
  func.func @transform_0(%arg0: i32, %arg1: i32) -> (i32, i32, i32) {
    %c0_i32 = arith.constant 0 : i32
    %c0_i32_0 = arith.constant 0 : i32
    return %arg0, %arg1, %c0_i32 : i32, i32, i32
  }
  func.func @transform_1(%arg0: i32, %arg1: i32) -> (i32, i32, i32) {
    %c0_i32 = arith.constant 0 : i32
    %c0_i32_0 = arith.constant 0 : i32
    %c0_i32_1 = arith.constant 0 : i32
    %c0_i32_2 = arith.constant 0 : i32
    return %c0_i32, %c0_i32_0, %c0_i32_1 : i32, i32, i32
  }
  func.func @transform_2(%arg0: i32, %arg1: i32) -> (i32, i32) {
    %c0_i32 = arith.constant 0 : i32
    %c0_i32_0 = arith.constant 0 : i32
    %c0_i32_1 = arith.constant 0 : i32
    return %c0_i32, %c0_i32_0 : i32, i32
  }
  func.func @transform_3(%arg0: i32, %arg1: i32) -> (i32, i32) {
    %c0_i32 = arith.constant 0 : i32
    %c0_i32_0 = arith.constant 0 : i32
    %c0_i32_1 = arith.constant 0 : i32
    return %c0_i32, %c0_i32_0 : i32, i32
  }
  func.func @transform_4(%arg0: i32, %arg1: i32) -> (i32, i32) {
    %c0_i32 = arith.constant 0 : i32
    %c0_i32_0 = arith.constant 0 : i32
    %c0_i32_1 = arith.constant 0 : i32
    return %c0_i32, %c0_i32_0 : i32, i32
  }
  func.func @transform_5(%arg0: i32, %arg1: i32) -> (i32, i32) {
    %c0_i32 = arith.constant 0 : i32
    %c0_i32_0 = arith.constant 0 : i32
    %c0_i32_1 = arith.constant 0 : i32
    return %c0_i32, %c0_i32_0 : i32, i32
  }
  func.func @transform_6(%arg0: i32, %arg1: i32) -> (i32, i32) {
    %c0_i32 = arith.constant 0 : i32
    %c0_i32_0 = arith.constant 0 : i32
    %c0_i32_1 = arith.constant 0 : i32
    return %c0_i32, %c0_i32_0 : i32, i32
  }
  func.func @transform_7(%arg0: i32, %arg1: i32) -> (i32, i32, i32) {
    %c0_i32 = arith.constant 0 : i32
    %c0_i32_0 = arith.constant 0 : i32
    %c0_i32_1 = arith.constant 0 : i32
    return %arg0, %c0_i32, %c0_i32_0 : i32, i32, i32
  }
}

module attributes {stable_mosaic.version = 11 : i64} {
  func.func @_stn_head_kernel(%arg0: memref<2x1024xf32, #tpu.memory_space<vmem>>, %arg1: memref<1024x512xbf16, #tpu.memory_space<vmem>>, %arg2: memref<1x512xf32, #tpu.memory_space<vmem>>, %arg3: memref<512x256xbf16, #tpu.memory_space<vmem>>, %arg4: memref<1x256xf32, #tpu.memory_space<vmem>>, %arg5: memref<256x4xbf16, #tpu.memory_space<vmem>>, %arg6: memref<1x4xf32, #tpu.memory_space<vmem>>, %arg7: memref<2x4xf32, #tpu.memory_space<vmem>>) attributes {dimension_semantics = [], scalar_prefetch = 0 : i64, scratch_operands = 0 : i64, tpu.core_type = #tpu.core_type<tc>} {
    %c0 = arith.constant 0 : index
    %c0_0 = arith.constant 0 : index
    %0 = vector.load %arg0[%c0, %c0_0] : memref<2x1024xf32, #tpu.memory_space<vmem>>, vector<2x1024xf32>
    %1 = math.tanh %0 : vector<2x1024xf32>
    %2 = arith.truncf %1 : vector<2x1024xf32> to vector<2x1024xbf16>
    %c0_1 = arith.constant 0 : index
    %c0_2 = arith.constant 0 : index
    %3 = vector.load %arg1[%c0_1, %c0_2] : memref<1024x512xbf16, #tpu.memory_space<vmem>>, vector<1024x512xbf16>
    %cst = arith.constant dense<0.000000e+00> : vector<2x512xf32>
    %4 = tpu.matmul %2, %3, %cst {dimension_numbers = #tpu.dot_dimension_numbers<[1], [0], [0], [1], [0, 0, 1, 1], [], []>} : vector<2x1024xbf16>, vector<1024x512xbf16>, vector<2x512xf32> -> vector<2x512xf32>
    %c0_3 = arith.constant 0 : index
    %c0_4 = arith.constant 0 : index
    %5 = vector.load %arg2[%c0_3, %c0_4] : memref<1x512xf32, #tpu.memory_space<vmem>>, vector<1x512xf32>
    %6 = vector.broadcast %5 : vector<1x512xf32> to vector<2x512xf32>
    %7 = arith.addf %4, %6 : vector<2x512xf32>
    %8 = math.tanh %7 : vector<2x512xf32>
    %9 = arith.truncf %8 : vector<2x512xf32> to vector<2x512xbf16>
    %c0_5 = arith.constant 0 : index
    %c0_6 = arith.constant 0 : index
    %10 = vector.load %arg3[%c0_5, %c0_6] : memref<512x256xbf16, #tpu.memory_space<vmem>>, vector<512x256xbf16>
    %cst_7 = arith.constant dense<0.000000e+00> : vector<2x256xf32>
    %11 = tpu.matmul %9, %10, %cst_7 {dimension_numbers = #tpu.dot_dimension_numbers<[1], [0], [0], [1], [0, 0, 1, 1], [], []>} : vector<2x512xbf16>, vector<512x256xbf16>, vector<2x256xf32> -> vector<2x256xf32>
    %c0_8 = arith.constant 0 : index
    %c0_9 = arith.constant 0 : index
    %12 = vector.load %arg4[%c0_8, %c0_9] : memref<1x256xf32, #tpu.memory_space<vmem>>, vector<1x256xf32>
    %13 = vector.broadcast %12 : vector<1x256xf32> to vector<2x256xf32>
    %14 = arith.addf %11, %13 : vector<2x256xf32>
    %15 = math.tanh %14 : vector<2x256xf32>
    %16 = arith.truncf %15 : vector<2x256xf32> to vector<2x256xbf16>
    %c0_10 = arith.constant 0 : index
    %c0_11 = arith.constant 0 : index
    %17 = vector.load %arg5[%c0_10, %c0_11] : memref<256x4xbf16, #tpu.memory_space<vmem>>, vector<256x4xbf16>
    %cst_12 = arith.constant dense<0.000000e+00> : vector<2x4xf32>
    %18 = tpu.matmul %16, %17, %cst_12 {dimension_numbers = #tpu.dot_dimension_numbers<[1], [0], [0], [1], [0, 0, 1, 1], [], []>} : vector<2x256xbf16>, vector<256x4xbf16>, vector<2x4xf32> -> vector<2x4xf32>
    %c0_13 = arith.constant 0 : index
    %c0_14 = arith.constant 0 : index
    %19 = vector.load %arg6[%c0_13, %c0_14] : memref<1x4xf32, #tpu.memory_space<vmem>>, vector<1x4xf32>
    %20 = vector.broadcast %19 : vector<1x4xf32> to vector<2x4xf32>
    %21 = arith.addf %18, %20 : vector<2x4xf32>
    %c0_15 = arith.constant 0 : index
    %c0_16 = arith.constant 0 : index
    %22 = vector.load %arg7[%c0_15, %c0_16] : memref<2x4xf32, #tpu.memory_space<vmem>>, vector<2x4xf32>
    tpu.vector_store %arg7[%c0_15, %c0_16], %21 {strides = array<i32>} : memref<2x4xf32, #tpu.memory_space<vmem>>, vector<2x4xf32>,
    return
  }
}

module attributes {stable_mosaic.version = 11 : i64} {
  func.func @_stats_kernel(%arg0: i32, %arg1: i32, %arg2: memref<1x16x8xbf16, #tpu.memory_space<vmem>>, %arg3: memref<1x8x64xbf16, #tpu.memory_space<vmem>>, %arg4: memref<1x64xf32, #tpu.memory_space<vmem>>, %arg5: memref<1x1x64xf32, #tpu.memory_space<vmem>>, %arg6: memref<1x64x64xf32, #tpu.memory_space<vmem>>) attributes {dimension_semantics = [#tpu.dimension_semantics<parallel>, #tpu.dimension_semantics<arbitrary>], iteration_bounds = array<i64: 2, 1>, scalar_prefetch = 0 : i64, scratch_operands = 0 : i64, tpu.core_type = #tpu.core_type<tc>, window_params = [{transform_indices = @transform_0, window_bounds = array<i64: 1, 16, 8>}, {transform_indices = @transform_1, window_bounds = array<i64: 1, 8, 64>}, {pipeline_mode = #tpu.pipeline_mode<synchronous>, transform_indices = @transform_2, window_bounds = array<i64: 1, 64>}, {transform_indices = @transform_3, window_bounds = array<i64: 1, 1, 64>}, {transform_indices = @transform_4, window_bounds = array<i64: 1, 64, 64>}]} {
    %c0 = arith.constant 0 : index
    %c0_0 = arith.constant 0 : index
    %c0_1 = arith.constant 0 : index
    %0 = vector.load %arg2[%c0, %c0_0, %c0_1] : memref<1x16x8xbf16, #tpu.memory_space<vmem>>, vector<1x16x8xbf16>
    %1 = vector.shape_cast %0 : vector<1x16x8xbf16> to vector<16x8xbf16>
    %c0_2 = arith.constant 0 : index
    %c0_3 = arith.constant 0 : index
    %c0_4 = arith.constant 0 : index
    %2 = vector.load %arg3[%c0_2, %c0_3, %c0_4] : memref<1x8x64xbf16, #tpu.memory_space<vmem>>, vector<1x8x64xbf16>
    %3 = vector.shape_cast %2 : vector<1x8x64xbf16> to vector<8x64xbf16>
    %cst = arith.constant dense<0.000000e+00> : vector<16x64xf32>
    %4 = tpu.matmul %1, %3, %cst {dimension_numbers = #tpu.dot_dimension_numbers<[1], [0], [0], [1], [0, 0, 1, 1], [], []>} : vector<16x8xbf16>, vector<8x64xbf16>, vector<16x64xf32> -> vector<16x64xf32>
    %c0_5 = arith.constant 0 : index
    %c0_6 = arith.constant 0 : index
    %5 = vector.load %arg4[%c0_5, %c0_6] : memref<1x64xf32, #tpu.memory_space<vmem>>, vector<1x64xf32>
    %6 = vector.broadcast %5 : vector<1x64xf32> to vector<16x64xf32>
    %7 = arith.addf %4, %6 : vector<16x64xf32>
    %8 = math.tanh %7 : vector<16x64xf32>
    %9 = arith.truncf %8 : vector<16x64xf32> to vector<16x64xbf16>
    %c0_i32 = arith.constant 0 : i32
    %10 = arith.cmpi eq, %arg1, %c0_i32 : i32
    %11 = arith.extui %10 : i1 to i32
    %c0_i32_7 = arith.constant 0 : i32
    %12 = arith.cmpi ne, %11, %c0_i32_7 : i32
    scf.if %12 {
      %cst_22 = arith.constant 0.000000e+00 : f32
      %29 = vector.broadcast %cst_22 : f32 to vector<1x1x64xf32>
      %c0_23 = arith.constant 0 : index
      %c0_24 = arith.constant 0 : index
      %c0_25 = arith.constant 0 : index
      %30 = vector.load %arg5[%c0_23, %c0_24, %c0_25] : memref<1x1x64xf32, #tpu.memory_space<vmem>>, vector<1x1x64xf32>
      tpu.vector_store %arg5[%c0_23, %c0_24, %c0_25], %29 {strides = array<i32>} : memref<1x1x64xf32, #tpu.memory_space<vmem>>, vector<1x1x64xf32>,
      %cst_26 = arith.constant 0.000000e+00 : f32
      %31 = vector.broadcast %cst_26 : f32 to vector<1x64x64xf32>
      %c0_27 = arith.constant 0 : index
      %c0_28 = arith.constant 0 : index
      %c0_29 = arith.constant 0 : index
      %32 = vector.load %arg6[%c0_27, %c0_28, %c0_29] : memref<1x64x64xf32, #tpu.memory_space<vmem>>, vector<1x64x64xf32>
      tpu.vector_store %arg6[%c0_27, %c0_28, %c0_29], %31 {strides = array<i32>} : memref<1x64x64xf32, #tpu.memory_space<vmem>>, vector<1x64x64xf32>,
    } else {
    }
    %c0_8 = arith.constant 0 : index
    %c0_9 = arith.constant 0 : index
    %c0_10 = arith.constant 0 : index
    %13 = vector.load %arg5[%c0_8, %c0_9, %c0_10] : memref<1x1x64xf32, #tpu.memory_space<vmem>>, vector<1x1x64xf32>
    %14 = vector.shape_cast %13 : vector<1x1x64xf32> to vector<1x64xf32>
    %15 = arith.extf %9 : vector<16x64xbf16> to vector<16x64xf32>
    %cst_11 = arith.constant dense<0.000000e+00> : vector<64xf32>
    %16 = vector.multi_reduction <add>, %15, %cst_11 [0] : vector<16x64xf32> to vector<64xf32>
    %17 = vector.shape_cast %16 : vector<64xf32> to vector<1x64xf32>
    %18 = arith.addf %14, %17 : vector<1x64xf32>
    %c0_12 = arith.constant 0 : index
    %c0_13 = arith.constant 0 : index
    %c0_14 = arith.constant 0 : index
    %19 = vector.load %arg5[%c0_12, %c0_13, %c0_14] : memref<1x1x64xf32, #tpu.memory_space<vmem>>, vector<1x1x64xf32>
    %20 = vector.shape_cast %19 : vector<1x1x64xf32> to vector<1x64xf32>
    %21 = vector.shape_cast %18 : vector<1x64xf32> to vector<1x1x64xf32>
    tpu.vector_store %arg5[%c0_12, %c0_13, %c0_14], %21 {strides = array<i32>} : memref<1x1x64xf32, #tpu.memory_space<vmem>>, vector<1x1x64xf32>,
    %c0_15 = arith.constant 0 : index
    %c0_16 = arith.constant 0 : index
    %c0_17 = arith.constant 0 : index
    %22 = vector.load %arg6[%c0_15, %c0_16, %c0_17] : memref<1x64x64xf32, #tpu.memory_space<vmem>>, vector<1x64x64xf32>
    %23 = vector.shape_cast %22 : vector<1x64x64xf32> to vector<64x64xf32>
    %cst_18 = arith.constant dense<0.000000e+00> : vector<64x64xf32>
    %24 = tpu.matmul %9, %9, %cst_18 {dimension_numbers = #tpu.dot_dimension_numbers<[0], [0], [1], [1], [0, 1, 1, 1], [], []>} : vector<16x64xbf16>, vector<16x64xbf16>, vector<64x64xf32> -> vector<64x64xf32>
    %25 = arith.addf %23, %24 : vector<64x64xf32>
    %c0_19 = arith.constant 0 : index
    %c0_20 = arith.constant 0 : index
    %c0_21 = arith.constant 0 : index
    %26 = vector.load %arg6[%c0_19, %c0_20, %c0_21] : memref<1x64x64xf32, #tpu.memory_space<vmem>>, vector<1x64x64xf32>
    %27 = vector.shape_cast %26 : vector<1x64x64xf32> to vector<64x64xf32>
    %28 = vector.shape_cast %25 : vector<64x64xf32> to vector<1x64x64xf32>
    tpu.vector_store %arg6[%c0_19, %c0_20, %c0_21], %28 {strides = array<i32>} : memref<1x64x64xf32, #tpu.memory_space<vmem>>, vector<1x64x64xf32>,
    return
  }
  func.func @transform_0(%arg0: i32, %arg1: i32) -> (i32, i32, i32) {
    %c0_i32 = arith.constant 0 : i32
    %c0_i32_0 = arith.constant 0 : i32
    return %arg0, %arg1, %c0_i32 : i32, i32, i32
  }
  func.func @transform_1(%arg0: i32, %arg1: i32) -> (i32, i32, i32) {
    %c0_i32 = arith.constant 0 : i32
    %c0_i32_0 = arith.constant 0 : i32
    %c0_i32_1 = arith.constant 0 : i32
    return %arg0, %c0_i32, %c0_i32_0 : i32, i32, i32
  }
  func.func @transform_2(%arg0: i32, %arg1: i32) -> (i32, i32) {
    %c0_i32 = arith.constant 0 : i32
    %c0_i32_0 = arith.constant 0 : i32
    %c0_i32_1 = arith.constant 0 : i32
    return %c0_i32, %c0_i32_0 : i32, i32
  }
  func.func @transform_3(%arg0: i32, %arg1: i32) -> (i32, i32, i32) {
    %c0_i32 = arith.constant 0 : i32
    %c0_i32_0 = arith.constant 0 : i32
    %c0_i32_1 = arith.constant 0 : i32
    return %arg0, %c0_i32, %c0_i32_0 : i32, i32, i32
  }
  func.func @transform_4(%arg0: i32, %arg1: i32) -> (i32, i32, i32) {
    %c0_i32 = arith.constant 0 : i32
    %c0_i32_0 = arith.constant 0 : i32
    %c0_i32_1 = arith.constant 0 : i32
    return %arg0, %c0_i32, %c0_i32_0 : i32, i32, i32
  }
}

module attributes {stable_mosaic.version = 11 : i64} {
  func.func @_stats_kernel(%arg0: i32, %arg1: i32, %arg2: memref<1x16x8xbf16, #tpu.memory_space<vmem>>, %arg3: memref<1x8x64xbf16, #tpu.memory_space<vmem>>, %arg4: memref<1x64xf32, #tpu.memory_space<vmem>>, %arg5: memref<64x128xbf16, #tpu.memory_space<vmem>>, %arg6: memref<1x128xf32, #tpu.memory_space<vmem>>, %arg7: memref<1x1x128xf32, #tpu.memory_space<vmem>>, %arg8: memref<1x128x128xf32, #tpu.memory_space<vmem>>) attributes {dimension_semantics = [#tpu.dimension_semantics<parallel>, #tpu.dimension_semantics<arbitrary>], iteration_bounds = array<i64: 2, 1>, scalar_prefetch = 0 : i64, scratch_operands = 0 : i64, tpu.core_type = #tpu.core_type<tc>, window_params = [{transform_indices = @transform_0, window_bounds = array<i64: 1, 16, 8>}, {transform_indices = @transform_1, window_bounds = array<i64: 1, 8, 64>}, {pipeline_mode = #tpu.pipeline_mode<synchronous>, transform_indices = @transform_2, window_bounds = array<i64: 1, 64>}, {pipeline_mode = #tpu.pipeline_mode<synchronous>, transform_indices = @transform_3, window_bounds = array<i64: 64, 128>}, {pipeline_mode = #tpu.pipeline_mode<synchronous>, transform_indices = @transform_4, window_bounds = array<i64: 1, 128>}, {transform_indices = @transform_5, window_bounds = array<i64: 1, 1, 128>}, {transform_indices = @transform_6, window_bounds = array<i64: 1, 128, 128>}]} {
    %c0 = arith.constant 0 : index
    %c0_0 = arith.constant 0 : index
    %c0_1 = arith.constant 0 : index
    %0 = vector.load %arg2[%c0, %c0_0, %c0_1] : memref<1x16x8xbf16, #tpu.memory_space<vmem>>, vector<1x16x8xbf16>
    %1 = vector.shape_cast %0 : vector<1x16x8xbf16> to vector<16x8xbf16>
    %c0_2 = arith.constant 0 : index
    %c0_3 = arith.constant 0 : index
    %c0_4 = arith.constant 0 : index
    %2 = vector.load %arg3[%c0_2, %c0_3, %c0_4] : memref<1x8x64xbf16, #tpu.memory_space<vmem>>, vector<1x8x64xbf16>
    %3 = vector.shape_cast %2 : vector<1x8x64xbf16> to vector<8x64xbf16>
    %cst = arith.constant dense<0.000000e+00> : vector<16x64xf32>
    %4 = tpu.matmul %1, %3, %cst {dimension_numbers = #tpu.dot_dimension_numbers<[1], [0], [0], [1], [0, 0, 1, 1], [], []>} : vector<16x8xbf16>, vector<8x64xbf16>, vector<16x64xf32> -> vector<16x64xf32>
    %c0_5 = arith.constant 0 : index
    %c0_6 = arith.constant 0 : index
    %5 = vector.load %arg4[%c0_5, %c0_6] : memref<1x64xf32, #tpu.memory_space<vmem>>, vector<1x64xf32>
    %6 = vector.broadcast %5 : vector<1x64xf32> to vector<16x64xf32>
    %7 = arith.addf %4, %6 : vector<16x64xf32>
    %8 = math.tanh %7 : vector<16x64xf32>
    %9 = arith.truncf %8 : vector<16x64xf32> to vector<16x64xbf16>
    %c0_7 = arith.constant 0 : index
    %c0_8 = arith.constant 0 : index
    %10 = vector.load %arg5[%c0_7, %c0_8] : memref<64x128xbf16, #tpu.memory_space<vmem>>, vector<64x128xbf16>
    %cst_9 = arith.constant dense<0.000000e+00> : vector<16x128xf32>
    %11 = tpu.matmul %9, %10, %cst_9 {dimension_numbers = #tpu.dot_dimension_numbers<[1], [0], [0], [1], [0, 0, 1, 1], [], []>} : vector<16x64xbf16>, vector<64x128xbf16>, vector<16x128xf32> -> vector<16x128xf32>
    %c0_10 = arith.constant 0 : index
    %c0_11 = arith.constant 0 : index
    %12 = vector.load %arg6[%c0_10, %c0_11] : memref<1x128xf32, #tpu.memory_space<vmem>>, vector<1x128xf32>
    %13 = vector.broadcast %12 : vector<1x128xf32> to vector<16x128xf32>
    %14 = arith.addf %11, %13 : vector<16x128xf32>
    %15 = math.tanh %14 : vector<16x128xf32>
    %16 = arith.truncf %15 : vector<16x128xf32> to vector<16x128xbf16>
    %c0_i32 = arith.constant 0 : i32
    %17 = arith.cmpi eq, %arg1, %c0_i32 : i32
    %18 = arith.extui %17 : i1 to i32
    %c0_i32_12 = arith.constant 0 : i32
    %19 = arith.cmpi ne, %18, %c0_i32_12 : i32
    scf.if %19 {
      %cst_27 = arith.constant 0.000000e+00 : f32
      %36 = vector.broadcast %cst_27 : f32 to vector<1x1x128xf32>
      %c0_28 = arith.constant 0 : index
      %c0_29 = arith.constant 0 : index
      %c0_30 = arith.constant 0 : index
      %37 = vector.load %arg7[%c0_28, %c0_29, %c0_30] : memref<1x1x128xf32, #tpu.memory_space<vmem>>, vector<1x1x128xf32>
      tpu.vector_store %arg7[%c0_28, %c0_29, %c0_30], %36 {strides = array<i32>} : memref<1x1x128xf32, #tpu.memory_space<vmem>>, vector<1x1x128xf32>,
      %cst_31 = arith.constant 0.000000e+00 : f32
      %38 = vector.broadcast %cst_31 : f32 to vector<1x128x128xf32>
      %c0_32 = arith.constant 0 : index
      %c0_33 = arith.constant 0 : index
      %c0_34 = arith.constant 0 : index
      %39 = vector.load %arg8[%c0_32, %c0_33, %c0_34] : memref<1x128x128xf32, #tpu.memory_space<vmem>>, vector<1x128x128xf32>
      tpu.vector_store %arg8[%c0_32, %c0_33, %c0_34], %38 {strides = array<i32>} : memref<1x128x128xf32, #tpu.memory_space<vmem>>, vector<1x128x128xf32>,
    } else {
    }
    %c0_13 = arith.constant 0 : index
    %c0_14 = arith.constant 0 : index
    %c0_15 = arith.constant 0 : index
    %20 = vector.load %arg7[%c0_13, %c0_14, %c0_15] : memref<1x1x128xf32, #tpu.memory_space<vmem>>, vector<1x1x128xf32>
    %21 = vector.shape_cast %20 : vector<1x1x128xf32> to vector<1x128xf32>
    %22 = arith.extf %16 : vector<16x128xbf16> to vector<16x128xf32>
    %cst_16 = arith.constant dense<0.000000e+00> : vector<128xf32>
    %23 = vector.multi_reduction <add>, %22, %cst_16 [0] : vector<16x128xf32> to vector<128xf32>
    %24 = vector.shape_cast %23 : vector<128xf32> to vector<1x128xf32>
    %25 = arith.addf %21, %24 : vector<1x128xf32>
    %c0_17 = arith.constant 0 : index
    %c0_18 = arith.constant 0 : index
    %c0_19 = arith.constant 0 : index
    %26 = vector.load %arg7[%c0_17, %c0_18, %c0_19] : memref<1x1x128xf32, #tpu.memory_space<vmem>>, vector<1x1x128xf32>
    %27 = vector.shape_cast %26 : vector<1x1x128xf32> to vector<1x128xf32>
    %28 = vector.shape_cast %25 : vector<1x128xf32> to vector<1x1x128xf32>
    tpu.vector_store %arg7[%c0_17, %c0_18, %c0_19], %28 {strides = array<i32>} : memref<1x1x128xf32, #tpu.memory_space<vmem>>, vector<1x1x128xf32>,
    %c0_20 = arith.constant 0 : index
    %c0_21 = arith.constant 0 : index
    %c0_22 = arith.constant 0 : index
    %29 = vector.load %arg8[%c0_20, %c0_21, %c0_22] : memref<1x128x128xf32, #tpu.memory_space<vmem>>, vector<1x128x128xf32>
    %30 = vector.shape_cast %29 : vector<1x128x128xf32> to vector<128x128xf32>
    %cst_23 = arith.constant dense<0.000000e+00> : vector<128x128xf32>
    %31 = tpu.matmul %16, %16, %cst_23 {dimension_numbers = #tpu.dot_dimension_numbers<[0], [0], [1], [1], [0, 1, 1, 1], [], []>} : vector<16x128xbf16>, vector<16x128xbf16>, vector<128x128xf32> -> vector<128x128xf32>
    %32 = arith.addf %30, %31 : vector<128x128xf32>
    %c0_24 = arith.constant 0 : index
    %c0_25 = arith.constant 0 : index
    %c0_26 = arith.constant 0 : index
    %33 = vector.load %arg8[%c0_24, %c0_25, %c0_26] : memref<1x128x128xf32, #tpu.memory_space<vmem>>, vector<1x128x128xf32>
    %34 = vector.shape_cast %33 : vector<1x128x128xf32> to vector<128x128xf32>
    %35 = vector.shape_cast %32 : vector<128x128xf32> to vector<1x128x128xf32>
    tpu.vector_store %arg8[%c0_24, %c0_25, %c0_26], %35 {strides = array<i32>} : memref<1x128x128xf32, #tpu.memory_space<vmem>>, vector<1x128x128xf32>,
    return
  }
  func.func @transform_0(%arg0: i32, %arg1: i32) -> (i32, i32, i32) {
    %c0_i32 = arith.constant 0 : i32
    %c0_i32_0 = arith.constant 0 : i32
    return %arg0, %arg1, %c0_i32 : i32, i32, i32
  }
  func.func @transform_1(%arg0: i32, %arg1: i32) -> (i32, i32, i32) {
    %c0_i32 = arith.constant 0 : i32
    %c0_i32_0 = arith.constant 0 : i32
    %c0_i32_1 = arith.constant 0 : i32
    return %arg0, %c0_i32, %c0_i32_0 : i32, i32, i32
  }
  func.func @transform_2(%arg0: i32, %arg1: i32) -> (i32, i32) {
    %c0_i32 = arith.constant 0 : i32
    %c0_i32_0 = arith.constant 0 : i32
    %c0_i32_1 = arith.constant 0 : i32
    return %c0_i32, %c0_i32_0 : i32, i32
  }
  func.func @transform_3(%arg0: i32, %arg1: i32) -> (i32, i32) {
    %c0_i32 = arith.constant 0 : i32
    %c0_i32_0 = arith.constant 0 : i32
    %c0_i32_1 = arith.constant 0 : i32
    return %c0_i32, %c0_i32_0 : i32, i32
  }
  func.func @transform_4(%arg0: i32, %arg1: i32) -> (i32, i32) {
    %c0_i32 = arith.constant 0 : i32
    %c0_i32_0 = arith.constant 0 : i32
    %c0_i32_1 = arith.constant 0 : i32
    return %c0_i32, %c0_i32_0 : i32, i32
  }
  func.func @transform_5(%arg0: i32, %arg1: i32) -> (i32, i32, i32) {
    %c0_i32 = arith.constant 0 : i32
    %c0_i32_0 = arith.constant 0 : i32
    %c0_i32_1 = arith.constant 0 : i32
    return %arg0, %c0_i32, %c0_i32_0 : i32, i32, i32
  }
  func.func @transform_6(%arg0: i32, %arg1: i32) -> (i32, i32, i32) {
    %c0_i32 = arith.constant 0 : i32
    %c0_i32_0 = arith.constant 0 : i32
    %c0_i32_1 = arith.constant 0 : i32
    return %arg0, %c0_i32, %c0_i32_0 : i32, i32, i32
  }
}

module attributes {stable_mosaic.version = 11 : i64} {
  func.func @_maxpool_kernel(%arg0: i32, %arg1: i32, %arg2: memref<1x16x8xbf16, #tpu.memory_space<vmem>>, %arg3: memref<1x8x64xbf16, #tpu.memory_space<vmem>>, %arg4: memref<1x64xf32, #tpu.memory_space<vmem>>, %arg5: memref<64x128xbf16, #tpu.memory_space<vmem>>, %arg6: memref<1x128xf32, #tpu.memory_space<vmem>>, %arg7: memref<128x1024xbf16, #tpu.memory_space<vmem>>, %arg8: memref<1x1024xf32, #tpu.memory_space<vmem>>, %arg9: memref<1x1x1024xf32, #tpu.memory_space<vmem>>) attributes {dimension_semantics = [#tpu.dimension_semantics<parallel>, #tpu.dimension_semantics<arbitrary>], iteration_bounds = array<i64: 2, 1>, scalar_prefetch = 0 : i64, scratch_operands = 0 : i64, tpu.core_type = #tpu.core_type<tc>, window_params = [{transform_indices = @transform_0, window_bounds = array<i64: 1, 16, 8>}, {transform_indices = @transform_1, window_bounds = array<i64: 1, 8, 64>}, {pipeline_mode = #tpu.pipeline_mode<synchronous>, transform_indices = @transform_2, window_bounds = array<i64: 1, 64>}, {pipeline_mode = #tpu.pipeline_mode<synchronous>, transform_indices = @transform_3, window_bounds = array<i64: 64, 128>}, {pipeline_mode = #tpu.pipeline_mode<synchronous>, transform_indices = @transform_4, window_bounds = array<i64: 1, 128>}, {pipeline_mode = #tpu.pipeline_mode<synchronous>, transform_indices = @transform_5, window_bounds = array<i64: 128, 1024>}, {pipeline_mode = #tpu.pipeline_mode<synchronous>, transform_indices = @transform_6, window_bounds = array<i64: 1, 1024>}, {transform_indices = @transform_7, window_bounds = array<i64: 1, 1, 1024>}]} {
    %c0 = arith.constant 0 : index
    %c0_0 = arith.constant 0 : index
    %c0_1 = arith.constant 0 : index
    %0 = vector.load %arg2[%c0, %c0_0, %c0_1] : memref<1x16x8xbf16, #tpu.memory_space<vmem>>, vector<1x16x8xbf16>
    %1 = vector.shape_cast %0 : vector<1x16x8xbf16> to vector<16x8xbf16>
    %c0_2 = arith.constant 0 : index
    %c0_3 = arith.constant 0 : index
    %c0_4 = arith.constant 0 : index
    %2 = vector.load %arg3[%c0_2, %c0_3, %c0_4] : memref<1x8x64xbf16, #tpu.memory_space<vmem>>, vector<1x8x64xbf16>
    %3 = vector.shape_cast %2 : vector<1x8x64xbf16> to vector<8x64xbf16>
    %cst = arith.constant dense<0.000000e+00> : vector<16x64xf32>
    %4 = tpu.matmul %1, %3, %cst {dimension_numbers = #tpu.dot_dimension_numbers<[1], [0], [0], [1], [0, 0, 1, 1], [], []>} : vector<16x8xbf16>, vector<8x64xbf16>, vector<16x64xf32> -> vector<16x64xf32>
    %c0_5 = arith.constant 0 : index
    %c0_6 = arith.constant 0 : index
    %5 = vector.load %arg4[%c0_5, %c0_6] : memref<1x64xf32, #tpu.memory_space<vmem>>, vector<1x64xf32>
    %6 = vector.broadcast %5 : vector<1x64xf32> to vector<16x64xf32>
    %7 = arith.addf %4, %6 : vector<16x64xf32>
    %8 = math.tanh %7 : vector<16x64xf32>
    %9 = arith.truncf %8 : vector<16x64xf32> to vector<16x64xbf16>
    %c0_7 = arith.constant 0 : index
    %c0_8 = arith.constant 0 : index
    %10 = vector.load %arg5[%c0_7, %c0_8] : memref<64x128xbf16, #tpu.memory_space<vmem>>, vector<64x128xbf16>
    %cst_9 = arith.constant dense<0.000000e+00> : vector<16x128xf32>
    %11 = tpu.matmul %9, %10, %cst_9 {dimension_numbers = #tpu.dot_dimension_numbers<[1], [0], [0], [1], [0, 0, 1, 1], [], []>} : vector<16x64xbf16>, vector<64x128xbf16>, vector<16x128xf32> -> vector<16x128xf32>
    %c0_10 = arith.constant 0 : index
    %c0_11 = arith.constant 0 : index
    %12 = vector.load %arg6[%c0_10, %c0_11] : memref<1x128xf32, #tpu.memory_space<vmem>>, vector<1x128xf32>
    %13 = vector.broadcast %12 : vector<1x128xf32> to vector<16x128xf32>
    %14 = arith.addf %11, %13 : vector<16x128xf32>
    %15 = math.tanh %14 : vector<16x128xf32>
    %16 = arith.truncf %15 : vector<16x128xf32> to vector<16x128xbf16>
    %c0_12 = arith.constant 0 : index
    %c0_13 = arith.constant 0 : index
    %17 = vector.load %arg7[%c0_12, %c0_13] : memref<128x1024xbf16, #tpu.memory_space<vmem>>, vector<128x1024xbf16>
    %cst_14 = arith.constant dense<0.000000e+00> : vector<16x1024xf32>
    %18 = tpu.matmul %16, %17, %cst_14 {dimension_numbers = #tpu.dot_dimension_numbers<[1], [0], [0], [1], [0, 0, 1, 1], [], []>} : vector<16x128xbf16>, vector<128x1024xbf16>, vector<16x1024xf32> -> vector<16x1024xf32>
    %c0_15 = arith.constant 0 : index
    %c0_16 = arith.constant 0 : index
    %19 = vector.load %arg8[%c0_15, %c0_16] : memref<1x1024xf32, #tpu.memory_space<vmem>>, vector<1x1024xf32>
    %20 = vector.broadcast %19 : vector<1x1024xf32> to vector<16x1024xf32>
    %21 = arith.addf %18, %20 : vector<16x1024xf32>
    %cst_17 = arith.constant dense<0xFF800000> : vector<1024xf32>
    %22 = vector.multi_reduction <maximumf>, %21, %cst_17 [0] : vector<16x1024xf32> to vector<1024xf32>
    %23 = vector.shape_cast %22 : vector<1024xf32> to vector<1x1024xf32>
    %c0_i32 = arith.constant 0 : i32
    %24 = arith.cmpi eq, %arg1, %c0_i32 : i32
    %25 = arith.extui %24 : i1 to i32
    %c0_i32_18 = arith.constant 0 : i32
    %26 = arith.cmpi ne, %25, %c0_i32_18 : i32
    scf.if %26 {
      %cst_25 = arith.constant 0xFF800000 : f32
      %33 = vector.broadcast %cst_25 : f32 to vector<1x1x1024xf32>
      %c0_26 = arith.constant 0 : index
      %c0_27 = arith.constant 0 : index
      %c0_28 = arith.constant 0 : index
      %34 = vector.load %arg9[%c0_26, %c0_27, %c0_28] : memref<1x1x1024xf32, #tpu.memory_space<vmem>>, vector<1x1x1024xf32>
      tpu.vector_store %arg9[%c0_26, %c0_27, %c0_28], %33 {strides = array<i32>} : memref<1x1x1024xf32, #tpu.memory_space<vmem>>, vector<1x1x1024xf32>,
    } else {
    }
    %c0_19 = arith.constant 0 : index
    %c0_20 = arith.constant 0 : index
    %c0_21 = arith.constant 0 : index
    %27 = vector.load %arg9[%c0_19, %c0_20, %c0_21] : memref<1x1x1024xf32, #tpu.memory_space<vmem>>, vector<1x1x1024xf32>
    %28 = vector.shape_cast %27 : vector<1x1x1024xf32> to vector<1x1024xf32>
    %29 = arith.maximumf %28, %23 : vector<1x1024xf32>
    %c0_22 = arith.constant 0 : index
    %c0_23 = arith.constant 0 : index
    %c0_24 = arith.constant 0 : index
    %30 = vector.load %arg9[%c0_22, %c0_23, %c0_24] : memref<1x1x1024xf32, #tpu.memory_space<vmem>>, vector<1x1x1024xf32>
    %31 = vector.shape_cast %30 : vector<1x1x1024xf32> to vector<1x1024xf32>
    %32 = vector.shape_cast %29 : vector<1x1024xf32> to vector<1x1x1024xf32>
    tpu.vector_store %arg9[%c0_22, %c0_23, %c0_24], %32 {strides = array<i32>} : memref<1x1x1024xf32, #tpu.memory_space<vmem>>, vector<1x1x1024xf32>,
    return
  }
  func.func @transform_0(%arg0: i32, %arg1: i32) -> (i32, i32, i32) {
    %c0_i32 = arith.constant 0 : i32
    %c0_i32_0 = arith.constant 0 : i32
    return %arg0, %arg1, %c0_i32 : i32, i32, i32
  }
  func.func @transform_1(%arg0: i32, %arg1: i32) -> (i32, i32, i32) {
    %c0_i32 = arith.constant 0 : i32
    %c0_i32_0 = arith.constant 0 : i32
    %c0_i32_1 = arith.constant 0 : i32
    return %arg0, %c0_i32, %c0_i32_0 : i32, i32, i32
  }
  func.func @transform_2(%arg0: i32, %arg1: i32) -> (i32, i32) {
    %c0_i32 = arith.constant 0 : i32
    %c0_i32_0 = arith.constant 0 : i32
    %c0_i32_1 = arith.constant 0 : i32
    return %c0_i32, %c0_i32_0 : i32, i32
  }
  func.func @transform_3(%arg0: i32, %arg1: i32) -> (i32, i32) {
    %c0_i32 = arith.constant 0 : i32
    %c0_i32_0 = arith.constant 0 : i32
    %c0_i32_1 = arith.constant 0 : i32
    return %c0_i32, %c0_i32_0 : i32, i32
  }
  func.func @transform_4(%arg0: i32, %arg1: i32) -> (i32, i32) {
    %c0_i32 = arith.constant 0 : i32
    %c0_i32_0 = arith.constant 0 : i32
    %c0_i32_1 = arith.constant 0 : i32
    return %c0_i32, %c0_i32_0 : i32, i32
  }
  func.func @transform_5(%arg0: i32, %arg1: i32) -> (i32, i32) {
    %c0_i32 = arith.constant 0 : i32
    %c0_i32_0 = arith.constant 0 : i32
    %c0_i32_1 = arith.constant 0 : i32
    return %c0_i32, %c0_i32_0 : i32, i32
  }
  func.func @transform_6(%arg0: i32, %arg1: i32) -> (i32, i32) {
    %c0_i32 = arith.constant 0 : i32
    %c0_i32_0 = arith.constant 0 : i32
    %c0_i32_1 = arith.constant 0 : i32
    return %c0_i32, %c0_i32_0 : i32, i32
  }
  func.func @transform_7(%arg0: i32, %arg1: i32) -> (i32, i32, i32) {
    %c0_i32 = arith.constant 0 : i32
    %c0_i32_0 = arith.constant 0 : i32
    %c0_i32_1 = arith.constant 0 : i32
    return %arg0, %c0_i32, %c0_i32_0 : i32, i32, i32
  }
}

module attributes {stable_mosaic.version = 11 : i64} {
  func.func @_cls_head_kernel(%arg0: memref<2x1024xf32, #tpu.memory_space<vmem>>, %arg1: memref<1024x512xbf16, #tpu.memory_space<vmem>>, %arg2: memref<1x512xf32, #tpu.memory_space<vmem>>, %arg3: memref<1x512xf32, #tpu.memory_space<vmem>>, %arg4: memref<1x512xf32, #tpu.memory_space<vmem>>, %arg5: memref<512x256xbf16, #tpu.memory_space<vmem>>, %arg6: memref<1x256xf32, #tpu.memory_space<vmem>>, %arg7: memref<1x256xf32, #tpu.memory_space<vmem>>, %arg8: memref<1x256xf32, #tpu.memory_space<vmem>>, %arg9: memref<256x2xbf16, #tpu.memory_space<vmem>>, %arg10: memref<1x2xf32, #tpu.memory_space<vmem>>, %arg11: memref<2x2xf32, #tpu.memory_space<vmem>>) attributes {dimension_semantics = [], scalar_prefetch = 0 : i64, scratch_operands = 0 : i64, tpu.core_type = #tpu.core_type<tc>} {
    %c0 = arith.constant 0 : index
    %c0_0 = arith.constant 0 : index
    %0 = vector.load %arg0[%c0, %c0_0] : memref<2x1024xf32, #tpu.memory_space<vmem>>, vector<2x1024xf32>
    %1 = arith.truncf %0 : vector<2x1024xf32> to vector<2x1024xbf16>
    %c0_1 = arith.constant 0 : index
    %c0_2 = arith.constant 0 : index
    %2 = vector.load %arg1[%c0_1, %c0_2] : memref<1024x512xbf16, #tpu.memory_space<vmem>>, vector<1024x512xbf16>
    %cst = arith.constant dense<0.000000e+00> : vector<2x512xf32>
    %3 = tpu.matmul %1, %2, %cst {dimension_numbers = #tpu.dot_dimension_numbers<[1], [0], [0], [1], [0, 0, 1, 1], [], []>} : vector<2x1024xbf16>, vector<1024x512xbf16>, vector<2x512xf32> -> vector<2x512xf32>
    %c0_3 = arith.constant 0 : index
    %c0_4 = arith.constant 0 : index
    %4 = vector.load %arg2[%c0_3, %c0_4] : memref<1x512xf32, #tpu.memory_space<vmem>>, vector<1x512xf32>
    %5 = vector.broadcast %4 : vector<1x512xf32> to vector<2x512xf32>
    %6 = arith.addf %3, %5 : vector<2x512xf32>
    %c0_5 = arith.constant 0 : index
    %c0_6 = arith.constant 0 : index
    %7 = vector.load %arg3[%c0_5, %c0_6] : memref<1x512xf32, #tpu.memory_space<vmem>>, vector<1x512xf32>
    %c0_7 = arith.constant 0 : index
    %c0_8 = arith.constant 0 : index
    %8 = vector.load %arg4[%c0_7, %c0_8] : memref<1x512xf32, #tpu.memory_space<vmem>>, vector<1x512xf32>
    %cst_9 = arith.constant dense<0.000000e+00> : vector<512xf32>
    %9 = vector.multi_reduction <add>, %6, %cst_9 [0] : vector<2x512xf32> to vector<512xf32>
    %10 = vector.shape_cast %9 : vector<512xf32> to vector<1x512xf32>
    %cst_10 = arith.constant 2.000000e+00 : f32
    %11 = vector.broadcast %cst_10 : f32 to vector<1x512xf32>
    %12 = arith.divf %10, %11 : vector<1x512xf32>
    %13 = vector.broadcast %12 : vector<1x512xf32> to vector<2x512xf32>
    %14 = arith.subf %6, %13 : vector<2x512xf32>
    %15 = vector.broadcast %12 : vector<1x512xf32> to vector<2x512xf32>
    %16 = arith.subf %6, %15 : vector<2x512xf32>
    %17 = arith.mulf %14, %16 : vector<2x512xf32>
    %cst_11 = arith.constant dense<0.000000e+00> : vector<512xf32>
    %18 = vector.multi_reduction <add>, %17, %cst_11 [0] : vector<2x512xf32> to vector<512xf32>
    %19 = vector.shape_cast %18 : vector<512xf32> to vector<1x512xf32>
    %cst_12 = arith.constant 2.000000e+00 : f32
    %20 = vector.broadcast %cst_12 : f32 to vector<1x512xf32>
    %21 = arith.divf %19, %20 : vector<1x512xf32>
    %22 = vector.broadcast %12 : vector<1x512xf32> to vector<2x512xf32>
    %23 = arith.subf %6, %22 : vector<2x512xf32>
    %cst_13 = arith.constant 9.99999974E-6 : f32
    %24 = vector.broadcast %cst_13 : f32 to vector<1x512xf32>
    %25 = arith.addf %21, %24 : vector<1x512xf32>
    %26 = math.rsqrt %25 : vector<1x512xf32>
    %27 = vector.broadcast %26 : vector<1x512xf32> to vector<2x512xf32>
    %28 = arith.mulf %23, %27 : vector<2x512xf32>
    %29 = vector.broadcast %7 : vector<1x512xf32> to vector<2x512xf32>
    %30 = arith.mulf %28, %29 : vector<2x512xf32>
    %31 = vector.broadcast %8 : vector<1x512xf32> to vector<2x512xf32>
    %32 = arith.addf %30, %31 : vector<2x512xf32>
    %33 = math.tanh %32 : vector<2x512xf32>
    %34 = arith.truncf %33 : vector<2x512xf32> to vector<2x512xbf16>
    %c0_14 = arith.constant 0 : index
    %c0_15 = arith.constant 0 : index
    %35 = vector.load %arg5[%c0_14, %c0_15] : memref<512x256xbf16, #tpu.memory_space<vmem>>, vector<512x256xbf16>
    %cst_16 = arith.constant dense<0.000000e+00> : vector<2x256xf32>
    %36 = tpu.matmul %34, %35, %cst_16 {dimension_numbers = #tpu.dot_dimension_numbers<[1], [0], [0], [1], [0, 0, 1, 1], [], []>} : vector<2x512xbf16>, vector<512x256xbf16>, vector<2x256xf32> -> vector<2x256xf32>
    %c0_17 = arith.constant 0 : index
    %c0_18 = arith.constant 0 : index
    %37 = vector.load %arg6[%c0_17, %c0_18] : memref<1x256xf32, #tpu.memory_space<vmem>>, vector<1x256xf32>
    %38 = vector.broadcast %37 : vector<1x256xf32> to vector<2x256xf32>
    %39 = arith.addf %36, %38 : vector<2x256xf32>
    %c0_19 = arith.constant 0 : index
    %c0_20 = arith.constant 0 : index
    %40 = vector.load %arg7[%c0_19, %c0_20] : memref<1x256xf32, #tpu.memory_space<vmem>>, vector<1x256xf32>
    %c0_21 = arith.constant 0 : index
    %c0_22 = arith.constant 0 : index
    %41 = vector.load %arg8[%c0_21, %c0_22] : memref<1x256xf32, #tpu.memory_space<vmem>>, vector<1x256xf32>
    %cst_23 = arith.constant dense<0.000000e+00> : vector<256xf32>
    %42 = vector.multi_reduction <add>, %39, %cst_23 [0] : vector<2x256xf32> to vector<256xf32>
    %43 = vector.shape_cast %42 : vector<256xf32> to vector<1x256xf32>
    %cst_24 = arith.constant 2.000000e+00 : f32
    %44 = vector.broadcast %cst_24 : f32 to vector<1x256xf32>
    %45 = arith.divf %43, %44 : vector<1x256xf32>
    %46 = vector.broadcast %45 : vector<1x256xf32> to vector<2x256xf32>
    %47 = arith.subf %39, %46 : vector<2x256xf32>
    %48 = vector.broadcast %45 : vector<1x256xf32> to vector<2x256xf32>
    %49 = arith.subf %39, %48 : vector<2x256xf32>
    %50 = arith.mulf %47, %49 : vector<2x256xf32>
    %cst_25 = arith.constant dense<0.000000e+00> : vector<256xf32>
    %51 = vector.multi_reduction <add>, %50, %cst_25 [0] : vector<2x256xf32> to vector<256xf32>
    %52 = vector.shape_cast %51 : vector<256xf32> to vector<1x256xf32>
    %cst_26 = arith.constant 2.000000e+00 : f32
    %53 = vector.broadcast %cst_26 : f32 to vector<1x256xf32>
    %54 = arith.divf %52, %53 : vector<1x256xf32>
    %55 = vector.broadcast %45 : vector<1x256xf32> to vector<2x256xf32>
    %56 = arith.subf %39, %55 : vector<2x256xf32>
    %cst_27 = arith.constant 9.99999974E-6 : f32
    %57 = vector.broadcast %cst_27 : f32 to vector<1x256xf32>
    %58 = arith.addf %54, %57 : vector<1x256xf32>
    %59 = math.rsqrt %58 : vector<1x256xf32>
    %60 = vector.broadcast %59 : vector<1x256xf32> to vector<2x256xf32>
    %61 = arith.mulf %56, %60 : vector<2x256xf32>
    %62 = vector.broadcast %40 : vector<1x256xf32> to vector<2x256xf32>
    %63 = arith.mulf %61, %62 : vector<2x256xf32>
    %64 = vector.broadcast %41 : vector<1x256xf32> to vector<2x256xf32>
    %65 = arith.addf %63, %64 : vector<2x256xf32>
    %66 = math.tanh %65 : vector<2x256xf32>
    %67 = arith.truncf %66 : vector<2x256xf32> to vector<2x256xbf16>
    %c0_28 = arith.constant 0 : index
    %c0_29 = arith.constant 0 : index
    %68 = vector.load %arg9[%c0_28, %c0_29] : memref<256x2xbf16, #tpu.memory_space<vmem>>, vector<256x2xbf16>
    %cst_30 = arith.constant dense<0.000000e+00> : vector<2x2xf32>
    %69 = tpu.matmul %67, %68, %cst_30 {dimension_numbers = #tpu.dot_dimension_numbers<[1], [0], [0], [1], [0, 0, 1, 1], [], []>} : vector<2x256xbf16>, vector<256x2xbf16>, vector<2x2xf32> -> vector<2x2xf32>
    %c0_31 = arith.constant 0 : index
    %c0_32 = arith.constant 0 : index
    %70 = vector.load %arg10[%c0_31, %c0_32] : memref<1x2xf32, #tpu.memory_space<vmem>>, vector<1x2xf32>
    %71 = vector.broadcast %70 : vector<1x2xf32> to vector<2x2xf32>
    %72 = arith.addf %69, %71 : vector<2x2xf32>
    %cst_33 = arith.constant dense<0xFF800000> : vector<2xf32>
    %73 = vector.multi_reduction <maximumf>, %72, %cst_33 [1] : vector<2x2xf32> to vector<2xf32>
    %74 = vector.shape_cast %73 : vector<2xf32> to vector<2x1xf32>
    %75 = vector.broadcast %74 : vector<2x1xf32> to vector<2x2xf32>
    %76 = arith.subf %72, %75 : vector<2x2xf32>
    %77 = math.exp %76 : vector<2x2xf32>
    %cst_34 = arith.constant dense<0.000000e+00> : vector<2xf32>
    %78 = vector.multi_reduction <add>, %77, %cst_34 [1] : vector<2x2xf32> to vector<2xf32>
    %79 = vector.shape_cast %78 : vector<2xf32> to vector<2x1xf32>
    %80 = math.log %79 : vector<2x1xf32>
    %81 = arith.addf %74, %80 : vector<2x1xf32>
    %82 = vector.broadcast %81 : vector<2x1xf32> to vector<2x2xf32>
    %83 = arith.subf %72, %82 : vector<2x2xf32>
    %c0_35 = arith.constant 0 : index
    %c0_36 = arith.constant 0 : index
    %84 = vector.load %arg11[%c0_35, %c0_36] : memref<2x2xf32, #tpu.memory_space<vmem>>, vector<2x2xf32>
    tpu.vector_store %arg11[%c0_35, %c0_36], %83 {strides = array<i32>} : memref<2x2xf32, #tpu.memory_space<vmem>>, vector<2x2xf32>,
    return
  }
}

</mosaic_0001>

<bundles_post_ra>
// kernel: pointnet_cls_forward.8
= control target key start
LH: loop header
LB: loop body
LE: loop exit
PB: predicated region body
PF: predicated region fallthrough
CT: control target
= control target key end

     0   :  { %s672_s15 = smov 0   ;;  %s674_s16 = smov 0   ;;  %s765_s0 = inlined_call_operand.vmem [shape: bf16[2,16,8], index: 0, kind: input, shape index: {}]   ;;  %s766_s1 = inlined_call_operand.vmem [shape: bf16[1,8,64], index: 1, kind: input, shape index: {}]   ;;  %s767_s2 = inlined_call_operand.vmem [shape: f32[1,64], index: 2, kind: input, shape index: {}]   ;;  %s768_s3 = inlined_call_operand.vmem [shape: f32[2,1,64], index: 3, kind: output, shape index: {0}]   ;;  %s769_s4 = inlined_call_operand.vmem [shape: f32[2,64,64], index: 4, kind: output, shape index: {1}]  }
   0x1   :  { %s676_s17 = smov 0  }
   0x2 LB: > { %s27_s18 = sadd.s32 1, %s639_s16  ;;  %p550_p0 = scmp.ge.s32.totalorder %s643_s17, 1  ;;  %s643_s17 = sphi %s676_s17, %s15_s17   ;;  %s639_s16 = sphi %s674_s16, %s771_s16   ;;  %s635_s15 = sphi %s672_s15, %s770_s15  }
   0x3   : > { %p29_p1 = scmp.ge.s32.totalorder %s27_s18, 2  ;;  %p184_p2 = scmp.lt.s32.totalorder %s643_s17, 3 }
   0x5   : > { %s773_s18 = smov (%p29_p1, %s27_s18), 0  ;;  %p185_p3 = pnand %p550_p0, %p184_p2 }
   0x6   : > { %v238_v0 = vld [vmem:[%s766_s1] sm:$0xf] (!%p185_p3)  ;;  %vm255_vm0 = vcmask (!%p185_p3), 1043456   ;;  %p218_p4 = scmp.lt.s32.totalorder (!%p185_p3), %s635_s15, 1  ;;  %v645_v1 = vmov (!%p185_p3), 0.0   ;;  %vm646_vm1 = vmmov (!%p185_p3), 0  }
   0x7   : > { %188 = sbr.rel (%p185_p3) target bundleno = 580 (0x244), region = 32  ;;  %573 = vmatprep.subr.bf16.mxu0 (!%p185_p3), %v645_v1  ;;  %v257_v2 = vsel (!%p185_p3), %vm255_vm0, %v238_v0, 0  ;;  %575 = vmatprep.mubr.msk.bf16.mxu0 (!%p185_p3), %vm646_vm1, %v645_v1  ;;  %vm307_vm2 = vcmask (!%p185_p3), 516096   ;;  %vm251_vm3 = vcmask (!%p185_p3), 64512   ;;  %vm309_vm4 = vcmask (!%p185_p3), 523264  }
   0x8   : > { %574 = vmatpush3.bf16.msra.mxu0 (!%p185_p3), %v257_v2  ;;  %v555_v4 = vld [vmem:[%s767_s2] ss:$0 sm:$0xff] (!%p185_p3)  ;;  %vm358_vm5 = vcmask (!%p185_p3), 130048  }
   0xe   : > { %s775_s15 = smov (!%p218_p4, %s635_s15), 1 }
   0xf   : > { %s564_s21 = sshll.u32 %s775_s15, 3  ;;  %s696_s24 = scalar_lea.vmem %s768_s3, %s775_s15 }
  0x10   : > { %s225_s27 = scalar_lea.vmem %s765_s0, %s564_s21  ;;  %308 = vst.msk [vmem:[%s696_s24] sm:$0x1] %vm307_vm2, %v645_v1  ;;  %s565_s28 = sshll.u32 %s775_s15, 6 }
  0x11   : > { %v616_v3 = vld [vmem:[%s225_s27] sm:$0xff]   ;;  %s706_s5 = scalar_lea.vmem %s769_s4, %s565_s28 }
  0x12   : > { %576 = vmatmul.mubr.msk.bf16.vlgmr.msra.gmra.mrb[0].mxu0 %vm251_vm3, %v616_v3  ;;  %310 = vst.msk [vmem:[%s706_s5] sm:$0xff] %vm309_vm4, %v645_v1  ;;  %311 = vst.msk [vmem:[%s706_s5 + $0x8] sm:$0xff] %vm309_vm4, %v645_v1 }
  0x13   : > { %312 = vst.msk [vmem:[%s706_s5 + $0x10] sm:$0xff] %vm309_vm4, %v645_v1  ;;  %313 = vst.msk [vmem:[%s706_s5 + $0x18] sm:$0xff] %vm309_vm4, %v645_v1 }
  0x14   : > { %314 = vst.msk [vmem:[%s706_s5 + $0x20] sm:$0xff] %vm309_vm4, %v645_v1  ;;  %315 = vst.msk [vmem:[%s706_s5 + $0x28] sm:$0xff] %vm309_vm4, %v645_v1 }
  0x15   : > { %316 = vst.msk [vmem:[%s706_s5 + $0x30] sm:$0xff] %vm309_vm4, %v645_v1  ;;  %317 = vst.msk [vmem:[%s706_s5 + $0x38] sm:$0xff] %vm309_vm4, %v645_v1 }
  0x17   : > { %v318_v24 = vld [vmem:[%s696_s24] sm:$0x1] }
  0x19   : > { %v334_v32 = vld [vmem:[%s706_s5] sm:$0xff]  ;;  %v335_v37 = vld [vmem:[%s706_s5 + $0x8] sm:$0xff] }
  0x1a   : > { %v336_v31 = vld [vmem:[%s706_s5 + $0x10] sm:$0xff]  ;;  %v337_v34 = vld [vmem:[%s706_s5 + $0x18] sm:$0xff] }
  0x1b   : > { %v338_v44 = vld [vmem:[%s706_s5 + $0x20] sm:$0xff]  ;;  %v339_v49 = vld [vmem:[%s706_s5 + $0x28] sm:$0xff] }
  0x1c   : > { %v340_v43 = vld [vmem:[%s706_s5 + $0x30] sm:$0xff]  ;;  %v341_v46 = vld [vmem:[%s706_s5 + $0x38] sm:$0xff] }
  0xe5   : > { %v293_v5 = vpop.f32.mrb[0].mxu0 }
  0xe6   : > { %v294_v6 = vadd.f32 %v555_v4, %v293_v5  ;;  %v577_v7 = vpop.f32.mrb[1].mxu0 }
  0xe7   : > { %v296_v8 = vpop.f32.mrb[2].mxu0 }
  0xe8   : > { %v297_v9 = vadd.f32 %v555_v4, %v296_v8  ;;  %v578_v10 = vpop.f32.mrb[3].mxu0  ;;  %617 = vtanh.f32 %v294_v6 }
  0xea   : > { %619 = vtanh.f32 %v297_v9 }
  0xf2   : > { %v618_v11 = vpop.eup %617 }
  0xf4   : > { %v620_v12 = vpop.eup %619 }
  0xf5   : > { %v302_v13 = vpack.c.bf16 %v620_v12, %v618_v11 }
  0xf7   : > { %342 = vxpose.xlu0.c.b16.start.end [1/1] (short) (narrow) %v302_v13, 64  ;;  %v319_v14 = vunpack.c.l.bf16 %v302_v13  ;;  %v320_v15 = vunpack.c.h.bf16 %v302_v13  ;;  %579 = vmatprep.subr.bf16.mxu1 %v302_v13 }
  0xf8   : > { %580 = vmatpush3.bf16.msra.mxu1 %v302_v13 }
  0xf9   : > { %v322_v16 = vsel %vm309_vm4, %v319_v14, 0.0  ;;  %v323_v17 = vsel %vm309_vm4, %v320_v15, 0.0 }
  0xfa   : > { %v324_v18 = vadd.f32 %v323_v17, %v322_v16 }
  0xfc   : > { %v325_v19 = vrot.slane %v324_v18, 4 }
  0xfe   : > { %v326_v20 = vadd.f32 %v325_v19, %v324_v18 }
 0x100   : > { %v327_v21 = vrot.slane %v326_v20, 2 }
 0x102   : > { %v328_v22 = vadd.f32 %v327_v21, %v326_v20 }
 0x104   : > { %v329_v23 = vrot.slane %v328_v22, 1 }
 0x106   : > { %v330_v25 = vadd.f32 %v329_v23, %v328_v22 }
 0x108   : > { %v331_v26 = vadd.f32 %v330_v25, %v318_v24 }
 0x10a   : > { %333 = vst.msk [vmem:[%s696_s24] sm:$0x1] %vm307_vm2, %v331_v26 }
 0x15d   : > { %v350_v27 = vpop.trf.xlu0 }
 0x15e   : > { %581 = vmatprep.mubr.msk.bf16.mxu1 %vm358_vm5, %v350_v27 }
 0x161   : > { %v351_v28 = vpop.trf.xlu0 }
 0x162   : > { %582 = vmatmul.mubr.msk.bf16.vlgmr.msra.gmra.mrb[0].mxu1 %vm358_vm5, %v351_v28 }
 0x165   : > { %v352_v29 = vpop.trf.xlu0 }
 0x166   : > { %585 = vmatprep.mubr.msk.bf16.mxu1 %vm358_vm5, %v352_v29 }
 0x169   : > { %v353_v30 = vpop.trf.xlu0 }
 0x16a   : > { %586 = vmatmul.mubr.msk.bf16.gmra.mrb[4].mxu1 %vm358_vm5, %v353_v30 }
 0x235   : > { %v583_v33 = vpop.f32.mrb[0].mxu1 }
 0x236   : > { %v438_v35 = vadd.f32 %v583_v33, %v336_v31  ;;  %v405_v36 = vpop.f32.mrb[1].mxu1 }
 0x237   : > { %v436_v38 = vadd.f32 %v405_v36, %v334_v32  ;;  %v584_v39 = vpop.f32.mrb[2].mxu1 }
 0x238   : > { %446 = vst.msk [vmem:[%s706_s5 + $0x10] sm:$0xff] %vm309_vm4, %v438_v35  ;;  %v439_v40 = vadd.f32 %v584_v39, %v337_v34  ;;  %v408_v41 = vpop.f32.mrb[3].mxu1 }
 0x239   : > { %444 = vst.msk [vmem:[%s706_s5] sm:$0xff] %vm309_vm4, %v436_v38  ;;  %v437_v42 = vadd.f32 %v408_v41, %v335_v37 }
 0x23a   : > { %447 = vst.msk [vmem:[%s706_s5 + $0x18] sm:$0xff] %vm309_vm4, %v439_v40 }
 0x23b   : > { %445 = vst.msk [vmem:[%s706_s5 + $0x8] sm:$0xff] %vm309_vm4, %v437_v42 }
 0x23d   : > { %v587_v45 = vpop.f32.mrb[4].mxu1 }
 0x23e   : > { %v442_v47 = vadd.f32 %v587_v45, %v340_v43  ;;  %v421_v48 = vpop.f32.mrb[5].mxu1 }
 0x23f   : > { %v440_v50 = vadd.f32 %v421_v48, %v338_v44  ;;  %v588_v51 = vpop.f32.mrb[6].mxu1 }
 0x240   : > { %450 = vst.msk [vmem:[%s706_s5 + $0x30] sm:$0xff] %vm309_vm4, %v442_v47  ;;  %v443_v52 = vadd.f32 %v588_v51, %v341_v46  ;;  %v424_v53 = vpop.f32.mrb[7].mxu1 }
 0x241   : > { %448 = vst.msk [vmem:[%s706_s5 + $0x20] sm:$0xff] %vm309_vm4, %v440_v50  ;;  %v441_v54 = vadd.f32 %v424_v53, %v339_v49 }
 0x242   : > { %451 = vst.msk [vmem:[%s706_s5 + $0x38] sm:$0xff] %vm309_vm4, %v443_v52 }
 0x243   : > { %449 = vst.msk [vmem:[%s706_s5 + $0x28] sm:$0xff] %vm309_vm4, %v441_v54 }
 0x244 PF: > { %s15_s17 = sadd.s32 1, %s643_s17   ;;  %s770_s15 = smov %s639_s16 }
 0x245   : > { %p12_p5 = scmp.ge.s32.totalorder %s15_s17, 4   ;;  %s771_s16 = smov %s773_s18 }
 0x247   :  { %14 = sbr.rel (!%p12_p5) target bundleno = 2 (0x2), region = 78 }

// kernel: pointnet_cls_forward.9
= control target key start
LH: loop header
LB: loop body
LE: loop exit
PB: predicated region body
PF: predicated region fallthrough
CT: control target
= control target key end

     0   :  { %s940_s21 = smov 0   ;;  %s942_s22 = smov 0   ;;  %s1033_s0 = inlined_call_operand.vmem [shape: bf16[2,16,8], index: 0, kind: input, shape index: {}]   ;;  %s1034_s1 = inlined_call_operand.vmem [shape: bf16[1,8,64], index: 1, kind: input, shape index: {}]   ;;  %s1035_s2 = inlined_call_operand.vmem [shape: f32[1,64], index: 2, kind: input, shape index: {}]   ;;  %s1036_s3 = inlined_call_operand.vmem [shape: bf16[64,128], index: 3, kind: input, shape index: {}]   ;;  %s1037_s4 = inlined_call_operand.vmem [shape: f32[1,128], index: 4, kind: input, shape index: {}]   ;;  %s1038_s5 = inlined_call_operand.vmem [shape: f32[2,1,128], index: 5, kind: output, shape index: {0}]   ;;  %s1039_s6 = inlined_call_operand.vmem [shape: f32[2,128,128], index: 6, kind: output, shape index: {1}]  }
   0x1   :  { %s944_s23 = smov 0  }
   0x2 LB: > { %s29_s24 = sadd.s32 1, %s897_s22  ;;  %p761_p0 = scmp.ge.s32.totalorder %s901_s23, 1  ;;  %s901_s23 = sphi %s944_s23, %s17_s23   ;;  %s897_s22 = sphi %s942_s22, %s1041_s22   ;;  %s893_s21 = sphi %s940_s21, %s1040_s21  }
   0x3   : > { %p31_p1 = scmp.ge.s32.totalorder %s29_s24, 2  ;;  %p234_p2 = scmp.lt.s32.totalorder %s901_s23, 3 }
   0x5   : > { %s1043_s24 = smov (%p31_p1, %s29_s24), 0  ;;  %p235_p3 = pnand %p761_p0, %p234_p2 }
   0x6   : > { %v292_v0 = vld [vmem:[%s1034_s1] sm:$0xf] (!%p235_p3)  ;;  %vm309_vm0 = vcmask (!%p235_p3), 1043456   ;;  %p272_p4 = scmp.lt.s32.totalorder (!%p235_p3), %s893_s21, 1  ;;  %v903_v1 = vmov (!%p235_p3), 0.0   ;;  %vm904_vm1 = vmmov (!%p235_p3), 0  }
   0x7   : > { %238 = sbr.rel (%p235_p3) target bundleno = 823 (0x337), region = 40  ;;  %803 = vmatprep.subr.bf16.mxu1 (!%p235_p3), %v903_v1  ;;  %v311_v2 = vsel (!%p235_p3), %vm309_vm0, %v292_v0, 0  ;;  %805 = vmatprep.mubr.msk.bf16.mxu1 (!%p235_p3), %vm904_vm1, %v903_v1  ;;  %vm305_vm2 = vcmask (!%p235_p3), 64512   ;;  %v867_v4 = vld [vmem:[%s1036_s3] sm:$0xff] (!%p235_p3)   ;;  %v868_v5 = vld [vmem:[%s1036_s3 + $0x8] sm:$0xff] (!%p235_p3)   ;;  %v869_v6 = vld [vmem:[%s1036_s3 + $0x10] sm:$0xff] (!%p235_p3)  }
   0x8   : > { %804 = vmatpush3.bf16.msra.mxu1 (!%p235_p3), %v311_v2  ;;  %v870_v7 = vld [vmem:[%s1036_s3 + $0x18] sm:$0xff] (!%p235_p3)   ;;  %v766_v8 = vld [vmem:[%s1035_s2] ss:$0 sm:$0xff] (!%p235_p3)  ;;  %vm396_vm3 = vcmask (!%p235_p3), 523264   ;;  %vm509_vm4 = vcmask (!%p235_p3), 130048  }
   0x9   : > { %809 = vmatprep.subr.bf16.mxu1 (!%p235_p3), %v903_v1  ;;  %v769_v18 = vld [vmem:[%s1037_s4] ss:$0 sm:$0xff] (!%p235_p3) }
   0xe   : > { %s1045_s21 = smov (!%p272_p4, %s893_s21), 1 }
   0xf   : > { %s785_s27 = sshll.u32 %s1045_s21, 3  ;;  %s968_s30 = scalar_lea.vmem %s1038_s5, %s1045_s21 }
  0x10   : > { %s279_s9 = scalar_lea.vmem %s1033_s0, %s785_s27  ;;  %448 = vst [vmem:[%s968_s30] sm:$0x1] %v903_v1  ;;  %s786_s26 = sshll.u32 %s1045_s21, 7 }
  0x11   : > { %v866_v3 = vld [vmem:[%s279_s9] sm:$0xff]   ;;  %s1006_s29 = scalar_lea.vmem %s1039_s6, %s786_s26 }
  0x12   : > { %806 = vmatmul.mubr.msk.bf16.vlgmr.msra.gmra.mrb[0].mxu1 %vm305_vm2, %v866_v3 }
  0x13   : > { %817 = vmatprep.mubr.msk.bf16.mxu1 %vm904_vm1, %v903_v1  ;;  %810 = vmatpush3.bf16.msra.mxu1 %v867_v4 }
  0x14   : > { %811 = vmatprep.subr.bf16.mxu1 %v903_v1 }
  0x17   : > { %812 = vmatpush3.bf16.msra.mxu1 %v868_v5  ;;  %v465_v36 = vld [vmem:[%s968_s30] sm:$0x1] }
  0x18   : > { %813 = vmatprep.subr.bf16.mxu1 %v903_v1 }
  0x1b   : > { %814 = vmatpush3.bf16.msra.mxu1 %v869_v6 }
  0x1c   : > { %815 = vmatprep.subr.bf16.mxu1 %v903_v1 }
  0x1f   : > { %816 = vmatpush3.bf16.msra.mxu1 %v870_v7 }
  0xe5   : > { %v347_v9 = vpop.f32.mrb[0].mxu1 }
  0xe6   : > { %v348_v10 = vadd.f32 %v766_v8, %v347_v9  ;;  %v807_v11 = vpop.f32.mrb[1].mxu1 }
  0xe7   : > { %v350_v12 = vpop.f32.mrb[2].mxu1 }
  0xe8   : > { %v351_v13 = vadd.f32 %v766_v8, %v350_v12  ;;  %v808_v14 = vpop.f32.mrb[3].mxu1  ;;  %871 = vtanh.f32 %v348_v10 }
  0xea   : > { %873 = vtanh.f32 %v351_v13 }
  0xf2   : > { %v872_v15 = vpop.eup %871 }
  0xf4   : > { %v874_v16 = vpop.eup %873 }
  0xf5   : > { %v356_v17 = vpack.c.bf16 %v874_v16, %v872_v15 }
  0xf7   : > { %818 = vmatmul.mubr.msk.bf16.vlgmr.msra.gmra.mrb[4].mxu1 %vm396_vm3, %v356_v17 }
 0x1ca   : > { %v434_v19 = vpop.f32.mrb[4].mxu1 }
 0x1cb   : > { %v435_v20 = vadd.f32 %v769_v18, %v434_v19  ;;  %v819_v21 = vpop.f32.mrb[5].mxu1 }
 0x1cc   : > { %v437_v22 = vpop.f32.mrb[6].mxu1 }
 0x1cd   : > { %v438_v23 = vadd.f32 %v769_v18, %v437_v22  ;;  %v820_v24 = vpop.f32.mrb[7].mxu1  ;;  %875 = vtanh.f32 %v435_v20 }
 0x1cf   : > { %877 = vtanh.f32 %v438_v23 }
 0x1d7   : > { %v876_v25 = vpop.eup %875 }
 0x1d9   : > { %v878_v26 = vpop.eup %877 }
 0x1da   : > { %v443_v27 = vpack.c.bf16 %v878_v26, %v876_v25 }
 0x1dc   : > { %493 = vxpose.xlu0.c.b16.start.end [1/1] (short) %v443_v27, 128  ;;  %v466_v28 = vunpack.c.l.bf16 %v443_v27  ;;  %v467_v29 = vunpack.c.h.bf16 %v443_v27  ;;  %821 = vmatprep.subr.bf16.mxu0 %v443_v27 }
 0x1dd   : > { %822 = vmatpush3.bf16.msra.mxu0 %v443_v27 }
 0x1de   : > { %v468_v30 = vadd.f32 %v467_v29, %v466_v28 }
 0x1e0   : > { %v469_v31 = vrot.slane %v468_v30, 4 }
 0x1e2   : > { %v470_v32 = vadd.f32 %v469_v31, %v468_v30 }
 0x1e4   : > { %v471_v33 = vrot.slane %v470_v32, 2 }
 0x1e6   : > { %v472_v34 = vadd.f32 %v471_v33, %v470_v32 }
 0x1e8   : > { %v473_v35 = vrot.slane %v472_v34, 1 }
 0x1ea   : > { %v474_v37 = vadd.f32 %v473_v35, %v472_v34 }
 0x1ec   : > { %v475_v38 = vadd.f32 %v474_v37, %v465_v36 }
 0x1ee   : > { %476 = vst [vmem:[%s968_s30] sm:$0x1] %v475_v38 }
 0x242   : > { %v501_v39 = vpop.trf.xlu0 }
 0x243   : > { %823 = vmatprep.mubr.msk.bf16.mxu0 %vm509_vm4, %v501_v39 }
 0x246   : > { %v502_v40 = vpop.trf.xlu0 }
 0x247   : > { %824 = vmatmul.mubr.msk.bf16.vlgmr.msra.gmra.mrb[0].mxu0 %vm509_vm4, %v502_v40 }
 0x24a   : > { %v503_v41 = vpop.trf.xlu0 }
 0x24b   : > { %827 = vmatprep.mubr.msk.bf16.mxu0 %vm509_vm4, %v503_v41 }
 0x24e   : > { %v504_v42 = vpop.trf.xlu0 }
 0x24f   : > { %828 = vmatmul.mubr.msk.bf16.gmra.mrb[4].mxu0 %vm509_vm4, %v504_v42 }
 0x252   : > { %v505_v43 = vpop.trf.xlu0 }
 0x253   : > { %831 = vmatprep.mubr.msk.bf16.mxu0 %vm509_vm4, %v505_v43 }
 0x256   : > { %v506_v44 = vpop.trf.xlu0 }
 0x257   : > { %832 = vmatmul.mubr.msk.bf16.gmra.mrb[8].mxu0 %vm509_vm4, %v506_v44 }
 0x25a   : > { %v507_v45 = vpop.trf.xlu0 }
 0x25b   : > { %835 = vmatprep.mubr.msk.bf16.mxu0 %vm509_vm4, %v507_v45 }
 0x25e   : > { %v508_v46 = vpop.trf.xlu0 }
 0x25f   : > { %836 = vmatmul.mubr.msk.bf16.gmra.mrb[12].mxu0 %vm509_vm4, %v508_v46 }
 0x31a   : > { %v825_v47 = vpop.f32.mrb[0].mxu0 }
 0x31b   : > { %v568_v48 = vpop.f32.mrb[1].mxu0  ;;  %649 = vst [vmem:[%s1006_s29 + $0x10] sm:$0xff] %v825_v47 }
 0x31c   : > { %v826_v49 = vpop.f32.mrb[2].mxu0  ;;  %647 = vst [vmem:[%s1006_s29] sm:$0xff] %v568_v48 }
 0x31d   : > { %v571_v50 = vpop.f32.mrb[3].mxu0  ;;  %650 = vst [vmem:[%s1006_s29 + $0x18] sm:$0xff] %v826_v49 }
 0x31e   : > { %648 = vst [vmem:[%s1006_s29 + $0x8] sm:$0xff] %v571_v50 }
 0x322   : > { %v829_v51 = vpop.f32.mrb[4].mxu0 }
 0x323   : > { %v584_v52 = vpop.f32.mrb[5].mxu0  ;;  %653 = vst [vmem:[%s1006_s29 + $0x30] sm:$0xff] %v829_v51 }
 0x324   : > { %v830_v53 = vpop.f32.mrb[6].mxu0  ;;  %651 = vst [vmem:[%s1006_s29 + $0x20] sm:$0xff] %v584_v52 }
 0x325   : > { %v587_v54 = vpop.f32.mrb[7].mxu0  ;;  %654 = vst [vmem:[%s1006_s29 + $0x38] sm:$0xff] %v830_v53 }
 0x326   : > { %652 = vst [vmem:[%s1006_s29 + $0x28] sm:$0xff] %v587_v54 }
 0x32a   : > { %v833_v55 = vpop.f32.mrb[8].mxu0 }
 0x32b   : > { %v600_v56 = vpop.f32.mrb[9].mxu0  ;;  %657 = vst [vmem:[%s1006_s29 + $0x50] sm:$0xff] %v833_v55 }
 0x32c   : > { %v834_v57 = vpop.f32.mrb[10].mxu0  ;;  %655 = vst [vmem:[%s1006_s29 + $0x40] sm:$0xff] %v600_v56 }
 0x32d   : > { %v603_v58 = vpop.f32.mrb[11].mxu0  ;;  %658 = vst [vmem:[%s1006_s29 + $0x58] sm:$0xff] %v834_v57 }
 0x32e   : > { %656 = vst [vmem:[%s1006_s29 + $0x48] sm:$0xff] %v603_v58 }
 0x332   : > { %v837_v59 = vpop.f32.mrb[12].mxu0 }
 0x333   : > { %v616_v60 = vpop.f32.mrb[13].mxu0  ;;  %661 = vst [vmem:[%s1006_s29 + $0x70] sm:$0xff] %v837_v59 }
 0x334   : > { %v838_v61 = vpop.f32.mrb[14].mxu0  ;;  %659 = vst [vmem:[%s1006_s29 + $0x60] sm:$0xff] %v616_v60 }
 0x335   : > { %v619_v62 = vpop.f32.mrb[15].mxu0  ;;  %662 = vst [vmem:[%s1006_s29 + $0x78] sm:$0xff] %v838_v61 }
 0x336   : > { %660 = vst [vmem:[%s1006_s29 + $0x68] sm:$0xff] %v619_v62 }
 0x337 PF: > { %s17_s23 = sadd.s32 1, %s901_s23   ;;  %s1040_s21 = smov %s897_s22 }
 0x338   : > { %p14_p5 = scmp.ge.s32.totalorder %s17_s23, 4   ;;  %s1041_s22 = smov %s1043_s24 }
 0x33a   :  { %16 = sbr.rel (!%p14_p5) target bundleno = 2 (0x2), region = 86 }

// kernel: pointnet_cls_forward.10
= control target key start
LH: loop header
LB: loop body
LE: loop exit
PB: predicated region body
PF: predicated region fallthrough
CT: control target
= control target key end

     0   :  { %s1466_s24 = smov 0   ;;  %s1468_s25 = smov 0   ;;  %s1757_s0 = inlined_call_operand.vmem [shape: bf16[2,16,8], index: 0, kind: input, shape index: {}]   ;;  %s1758_s1 = inlined_call_operand.vmem [shape: bf16[1,8,64], index: 1, kind: input, shape index: {}]   ;;  %s1759_s2 = inlined_call_operand.vmem [shape: f32[1,64], index: 2, kind: input, shape index: {}]   ;;  %s1760_s3 = inlined_call_operand.vmem [shape: bf16[64,128], index: 3, kind: input, shape index: {}]   ;;  %s1761_s4 = inlined_call_operand.vmem [shape: f32[1,128], index: 4, kind: input, shape index: {}]   ;;  %s1762_s5 = inlined_call_operand.vmem [shape: bf16[128,1024], index: 5, kind: input, shape index: {}]   ;;  %s1763_s6 = inlined_call_operand.vmem [shape: f32[1,1024], index: 6, kind: input, shape index: {}]   ;;  %s1764_s7 = inlined_call_operand.vmem [shape: f32[2,1,1024], index: 7, kind: output, shape index: {}]  }
   0x1   :  { %s1470_s26 = smov 0  }
   0x2 LB: > { %s29_s27 = sadd.s32 1, %s1416_s25  ;;  %p1251_p0 = scmp.ge.s32.totalorder %s1420_s26, 1  ;;  %s1420_s26 = sphi %s1470_s26, %s17_s26   ;;  %s1416_s25 = sphi %s1468_s25, %s1766_s25   ;;  %s1412_s24 = sphi %s1466_s24, %s1765_s24  }
   0x3   : > { %p31_p1 = scmp.ge.s32.totalorder %s29_s27, 2  ;;  %p256_p2 = scmp.lt.s32.totalorder %s1420_s26, 3 }
   0x5   : > { %s1768_s27 = smov (%p31_p1, %s29_s27), 0  ;;  %p257_p3 = pnand %p1251_p0, %p256_p2 }
   0x6   : > { %v308_v0 = vld [vmem:[%s1758_s1] sm:$0xf] (!%p257_p3)  ;;  %vm325_vm0 = vcmask (!%p257_p3), 1043456   ;;  %p292_p4 = scmp.lt.s32.totalorder (!%p257_p3), %s1412_s24, 1  ;;  %v1422_v1 = vmov (!%p257_p3), 0.0   ;;  %vm1423_vm1 = vmmov (!%p257_p3), 0  }
   0x7   : > { %260 = sbr.rel (%p257_p3) target bundleno = 750 (0x2ee), region = 48  ;;  %1338 = vmatprep.subr.bf16.mxu0 (!%p257_p3), %v1422_v1  ;;  %v327_v2 = vsel (!%p257_p3), %vm325_vm0, %v308_v0, 0  ;;  %1340 = vmatprep.mubr.msk.bf16.mxu0 (!%p257_p3), %vm1423_vm1, %v1422_v1  ;;  %vm321_vm2 = vcmask (!%p257_p3), 64512   ;;  %v1386_v4 = vld [vmem:[%s1760_s3] sm:$0xff] (!%p257_p3)   ;;  %v1387_v5 = vld [vmem:[%s1760_s3 + $0x8] sm:$0xff] (!%p257_p3)   ;;  %v1388_v6 = vld [vmem:[%s1760_s3 + $0x10] sm:$0xff] (!%p257_p3)  }
   0x8   : > { %1339 = vmatpush3.bf16.msra.mxu0 (!%p257_p3), %v327_v2  ;;  %1344 = vmatprep.subr.bf16.mxu1 (!%p257_p3), %v1422_v1  ;;  %v1389_v7 = vld [vmem:[%s1760_s3 + $0x18] sm:$0xff] (!%p257_p3)   ;;  %v460_v8 = vld [vmem:[%s1762_s5] sm:$0xff] (!%p257_p3)  ;;  %v461_v10 = vld [vmem:[%s1762_s5 + $0x8] sm:$0xff] (!%p257_p3)  ;;  %vm412_vm3 = vcmask (!%p257_p3), 523264  }
   0x9   : > { %1352 = vmatprep.mubr.msk.bf16.mxu1 (!%p257_p3), %vm1423_vm1, %v1422_v1  ;;  %1345 = vmatpush3.bf16.msra.mxu1 (!%p257_p3), %v1386_v4  ;;  %v464_v9 = vld [vmem:[%s1762_s5 + $0x20] sm:$0xff] (!%p257_p3)  ;;  %v465_v13 = vld [vmem:[%s1762_s5 + $0x28] sm:$0xff] (!%p257_p3) }
   0xa   : > { %1346 = vmatprep.subr.bf16.mxu1 (!%p257_p3), %v1422_v1  ;;  %v1264_v11 = vcombine.low (!%p257_p3), %v460_v8, %v464_v9  ;;  %v1265_v12 = vcombine.high (!%p257_p3), %v460_v8, %v464_v9  ;;  %v468_v14 = vld [vmem:[%s1762_s5 + $0x40] sm:$0xff] (!%p257_p3)  ;;  %v1266_v16 = vcombine.low (!%p257_p3), %v461_v10, %v465_v13  ;;  %v1267_v17 = vcombine.high (!%p257_p3), %v461_v10, %v465_v13  ;;  %v469_v35 = vld [vmem:[%s1762_s5 + $0x48] sm:$0xff] (!%p257_p3) }
   0xb   : > { %v472_v15 = vld [vmem:[%s1762_s5 + $0x60] sm:$0xff] (!%p257_p3)  ;;  %v473_v36 = vld [vmem:[%s1762_s5 + $0x68] sm:$0xff] (!%p257_p3) }
   0xc   : > { %v1273_v18 = vcombine.high (!%p257_p3), %v468_v14, %v472_v15  ;;  %886 = vmatprep.subr.bf16.mxu0 (!%p257_p3), %v1265_v12  ;;  %v1272_v19 = vcombine.low (!%p257_p3), %v468_v14, %v472_v15  ;;  %v476_v20 = vld [vmem:[%s1762_s5 + $0x80] sm:$0xff] (!%p257_p3)  ;;  %v1275_v40 = vcombine.high (!%p257_p3), %v469_v35, %v473_v36  ;;  %v477_v41 = vld [vmem:[%s1762_s5 + $0x88] sm:$0xff] (!%p257_p3)  ;;  %v1274_v43 = vcombine.low (!%p257_p3), %v469_v35, %v473_v36  ;;  %v462_v15 = vld [vmem:[%s1762_s5 + $0x10] sm:$0xff] (!%p257_p3) }
   0xd   : > { %1347 = vmatpush3.bf16.msra.mxu1 (!%p257_p3), %v1387_v5  ;;  %v480_v21 = vld [vmem:[%s1762_s5 + $0xa0] sm:$0xff] (!%p257_p3)  ;;  %v481_v42 = vld [vmem:[%s1762_s5 + $0xa8] sm:$0xff] (!%p257_p3)  ;;  %v474_v35 = vld [vmem:[%s1762_s5 + $0x70] sm:$0xff] (!%p257_p3) }
   0xe   : > { %s1770_s24 = smov (!%p292_p4, %s1412_s24), 1  ;;  %1348 = vmatprep.subr.bf16.mxu1 %v1422_v1  ;;  %v1281_v22 = vcombine.high %v476_v20, %v480_v21  ;;  %v1280_v23 = vcombine.low %v476_v20, %v480_v21  ;;  %v484_v24 = vld [vmem:[%s1762_s5 + $0xc0] sm:$0xff]  ;;  %v1283_v44 = vcombine.high %v477_v41, %v481_v42  ;;  %v485_v45 = vld [vmem:[%s1762_s5 + $0xc8] sm:$0xff]  ;;  %v1282_v47 = vcombine.low %v477_v41, %v481_v42  ;;  %v467_v20 = vld [vmem:[%s1762_s5 + $0x38] sm:$0xff] }
   0xf   : > { %s1330_s30 = sshll.u32 %s1770_s24, 3  ;;  %v488_v25 = vld [vmem:[%s1762_s5 + $0xe0] sm:$0xff]  ;;  %v489_v46 = vld [vmem:[%s1762_s5 + $0xe8] sm:$0xff]  ;;  %v471_v36 = vld [vmem:[%s1762_s5 + $0x58] sm:$0xff] }
  0x10   : > { %s299_s10 = scalar_lea.vmem %s1757_s0, %s1330_s30  ;;  %v1289_v26 = vcombine.high %v484_v24, %v488_v25  ;;  %v1288_v27 = vcombine.low %v484_v24, %v488_v25  ;;  %v1255_v28 = vld [vmem:[%s1759_s2] ss:$0 sm:$0xff]  ;;  %v1291_v48 = vcombine.high %v485_v45, %v489_v46  ;;  %v1290_v49 = vcombine.low %v485_v45, %v489_v46  ;;  %v493_v52 = vld [vmem:[%s1762_s5 + $0x108] sm:$0xff]  ;;  %v479_v45 = vld [vmem:[%s1762_s5 + $0x98] sm:$0xff]  ;;  %s304_s11 = scalar_lea.vmem %s1764_s7, %s1330_s30 }
  0x11   : > { %v1385_v3 = vld [vmem:[%s299_s10] sm:$0xff]   ;;  %1349 = vmatpush3.bf16.msra.mxu1 %v1388_v6  ;;  %v497_v54 = vld [vmem:[%s1762_s5 + $0x128] sm:$0xff]  ;;  %v483_v46 = vld [vmem:[%s1762_s5 + $0xb8] sm:$0xff] }
  0x12   : > { %1341 = vmatmul.mubr.msk.bf16.vlgmr.msra.gmra.mrb[0].mxu0 %vm321_vm2, %v1385_v3  ;;  %1350 = vmatprep.subr.bf16.mxu1 %v1422_v1  ;;  %v492_v50 = vld [vmem:[%s1762_s5 + $0x100] sm:$0xff]  ;;  %v1298_v56 = vcombine.low %v493_v52, %v497_v54  ;;  %v1299_v57 = vcombine.high %v493_v52, %v497_v54  ;;  %v501_v60 = vld [vmem:[%s1762_s5 + $0x148] sm:$0xff]  ;;  %v490_v52 = vld [vmem:[%s1762_s5 + $0xf0] sm:$0xff] }
  0x13   : > { %887 = vmatpush1.bf16.msra.mxu0 %v1264_v11  ;;  %v496_v51 = vld [vmem:[%s1762_s5 + $0x120] sm:$0xff]  ;;  %v505_v62 = vld [vmem:[%s1762_s5 + $0x168] sm:$0xff]  ;;  %v491_v54 = vld [vmem:[%s1762_s5 + $0xf8] sm:$0xff] }
  0x14   : > { %888 = vmatprep.subr.bf16.mxu0 %v1273_v18  ;;  %v1297_v53 = vcombine.high %v492_v50, %v496_v51  ;;  %v1296_v55 = vcombine.low %v492_v50, %v496_v51  ;;  %v500_v58 = vld [vmem:[%s1762_s5 + $0x140] sm:$0xff]  ;;  %v1306_v0 = vcombine.low %v501_v60, %v505_v62  ;;  %v1307_v1 = vcombine.high %v501_v60, %v505_v62  ;;  %v509_v4 = vld [vmem:[%s1762_s5 + $0x188] sm:$0xff]  ;;  %v466_v18 = vld [vmem:[%s1762_s5 + $0x30] sm:$0xff] }
  0x15   : > { %1351 = vmatpush3.bf16.msra.mxu1 %v1389_v7  ;;  %v504_v59 = vld [vmem:[%s1762_s5 + $0x160] sm:$0xff]  ;;  %v513_v7 = vld [vmem:[%s1762_s5 + $0x1a8] sm:$0xff]  ;;  %v1268_v21 = vcombine.low %v462_v15, %v466_v18  ;;  %v1269_v25 = vcombine.high %v462_v15, %v466_v18  ;;  %v1287_v50 = vcombine.high %v479_v45, %v483_v46  ;;  %v486_v51 = vld [vmem:[%s1762_s5 + $0xd0] sm:$0xff] }
  0x16   : > { %929 = vmatprep.subr.bf16.mxu1 %v1267_v17  ;;  %v1305_v61 = vcombine.high %v500_v58, %v504_v59  ;;  %v1304_v63 = vcombine.low %v500_v58, %v504_v59  ;;  %v508_v2 = vld [vmem:[%s1762_s5 + $0x180] sm:$0xff]  ;;  %v1314_v10 = vcombine.low %v509_v4, %v513_v7  ;;  %v1315_v11 = vcombine.high %v509_v4, %v513_v7  ;;  %v517_v13 = vld [vmem:[%s1762_s5 + $0x1c8] sm:$0xff]  ;;  %v494_v59 = vld [vmem:[%s1762_s5 + $0x110] sm:$0xff] }
  0x17   : > { %889 = vmatpush1.bf16.msra.mxu0 %v1272_v19  ;;  %v512_v3 = vld [vmem:[%s1762_s5 + $0x1a0] sm:$0xff]  ;;  %v521_v14 = vld [vmem:[%s1762_s5 + $0x1e8] sm:$0xff]  ;;  %v1424_v17 = vmov 0   ;;  %v463_v19 = vld [vmem:[%s1762_s5 + $0x18] sm:$0xff] }
  0x18   : > { %890 = vmatprep.subr.bf16.mxu0 %v1281_v22  ;;  %v1312_v5 = vcombine.low %v508_v2, %v512_v3  ;;  %v1313_v6 = vcombine.high %v508_v2, %v512_v3  ;;  %v516_v8 = vld [vmem:[%s1762_s5 + $0x1c0] sm:$0xff]  ;;  %918 = vmatprep.mubr.bf16.mxu0 %v1424_v17  ;;  %v1270_v22 = vcombine.low %v463_v19, %v467_v20  ;;  %v498_v60 = vld [vmem:[%s1762_s5 + $0x130] sm:$0xff]  ;;  %v499_v62 = vld [vmem:[%s1762_s5 + $0x138] sm:$0xff] }
  0x19   : > { %v520_v9 = vld [vmem:[%s1762_s5 + $0x1e0] sm:$0xff]  ;;  %v1322_v24 = vcombine.low %v517_v13, %v521_v14  ;;  %v502_v3 = vld [vmem:[%s1762_s5 + $0x150] sm:$0xff]  ;;  %v1300_v7 = vcombine.low %v494_v59, %v498_v60 }
  0x1a   : > { %v1321_v12 = vcombine.high %v516_v8, %v520_v9  ;;  %v506_v4 = vld [vmem:[%s1762_s5 + $0x170] sm:$0xff] }
  0x1b   : > { %891 = vmatpush1.bf16.msra.mxu0 %v1280_v23  ;;  %v1320_v23 = vcombine.low %v516_v8, %v520_v9  ;;  %v1309_v9 = vcombine.high %v502_v3, %v506_v4  ;;  %v1308_v15 = vcombine.low %v502_v3, %v506_v4  ;;  %v1425_v3 = vmov 1966171168  }
  0x1c   : > { %892 = vmatprep.subr.bf16.mxu0 %v1289_v26  ;;  %v1271_v26 = vcombine.high %v463_v19, %v467_v20  ;;  %v518_v19 = vld [vmem:[%s1762_s5 + $0x1d0] sm:$0xff]  ;;  %v1133_v4 = vunpack.c.l.s4 %v1425_v3 }
  0x1d   : > { %v522_v20 = vld [vmem:[%s1762_s5 + $0x1f0] sm:$0xff] }
  0x1f   : > { %893 = vmatpush1.bf16.msra.mxu0 %v1288_v27  ;;  %v1258_v27 = vld [vmem:[%s1761_s4] ss:$0 sm:$0xff] }
  0x20   : > { %894 = vmatprep.subr.bf16.mxu0 %v1297_v53  ;;  %v487_v53 = vld [vmem:[%s1762_s5 + $0xd8] sm:$0xff] }
  0x21   : > { %v1295_v58 = vcombine.high %v487_v53, %v491_v54 }
  0x23   : > { %895 = vmatpush1.bf16.msra.mxu0 %v1296_v55 }
  0x24   : > { %896 = vmatprep.subr.bf16.mxu0 %v1305_v61  ;;  %v495_v61 = vld [vmem:[%s1762_s5 + $0x118] sm:$0xff] }
  0x25   : > { %v1303_v2 = vcombine.high %v495_v61, %v499_v62  ;;  %v1302_v8 = vcombine.low %v495_v61, %v499_v62 }
  0x27   : > { %897 = vmatpush1.bf16.msra.mxu0 %v1304_v63  ;;  %v1292_v63 = vcombine.low %v486_v51, %v490_v52 }
  0x28   : > { %898 = vmatprep.subr.bf16.mxu0 %v1313_v6  ;;  %v507_v6 = vld [vmem:[%s1762_s5 + $0x178] sm:$0xff] }
  0x2b   : > { %899 = vmatpush1.bf16.msra.mxu0 %v1312_v5  ;;  %v503_v5 = vld [vmem:[%s1762_s5 + $0x158] sm:$0xff] }
  0x2c   : > { %900 = vmatprep.subr.bf16.mxu0 %v1321_v12  ;;  %v514_v12 = vld [vmem:[%s1762_s5 + $0x1b0] sm:$0xff] }
  0x2f   : > { %901 = vmatpush1.bf16.msra.mxu0 %v1320_v23 }
  0x30   : > { %972 = vmatprep.subr.bf16.mxu0 %v1269_v25  ;;  %v1325_v25 = vcombine.high %v518_v19, %v522_v20 }
  0xe5   : > { %v363_v29 = vpop.f32.mrb[0].mxu0 }
  0xe6   : > { %v364_v30 = vadd.f32 %v1255_v28, %v363_v29  ;;  %v1342_v31 = vpop.f32.mrb[1].mxu0 }
  0xe7   : > { %v366_v32 = vpop.f32.mrb[2].mxu0 }
  0xe8   : > { %v367_v33 = vadd.f32 %v1255_v28, %v366_v32  ;;  %v1343_v34 = vpop.f32.mrb[3].mxu0  ;;  %1390 = vtanh.f32 %v364_v30 }
  0xe9   : > { %v470_v34 = vld [vmem:[%s1762_s5 + $0x50] sm:$0xff] }
  0xea   : > { %1392 = vtanh.f32 %v367_v33  ;;  %v1277_v41 = vcombine.high %v470_v34, %v474_v35 }
  0xf2   : > { %v1391_v37 = vpop.eup %1390 }
  0xf4   : > { %v1393_v38 = vpop.eup %1392 }
  0xf5   : > { %v372_v39 = vpack.c.bf16 %v1393_v38, %v1391_v37  ;;  %v475_v37 = vld [vmem:[%s1762_s5 + $0x78] sm:$0xff] }
  0xf6   : > { %v1279_v42 = vcombine.high %v471_v36, %v475_v37 }
  0xf7   : > { %1353 = vmatmul.mubr.msk.bf16.vlgmr.msra.gmra.mrb[0].mxu1 %vm412_vm3, %v372_v39 }
  0xf8   : > { %930 = vmatpush1.bf16.msra.mxu1 %v1266_v16  ;;  %v1323_v16 = vcombine.high %v517_v13, %v521_v14  ;;  %961 = vmatprep.mubr.bf16.mxu1 %v1424_v17  ;;  %v511_v13 = vld [vmem:[%s1762_s5 + $0x198] sm:$0xff] }
  0xf9   : > { %931 = vmatprep.subr.bf16.mxu1 %v1275_v40  ;;  %v515_v14 = vld [vmem:[%s1762_s5 + $0x1b8] sm:$0xff] }
  0xfa   : > { %v1319_v18 = vcombine.high %v511_v13, %v515_v14 }
  0xfc   : > { %932 = vmatpush1.bf16.msra.mxu1 %v1274_v43  ;;  %v478_v43 = vld [vmem:[%s1762_s5 + $0x90] sm:$0xff] }
  0xfd   : > { %933 = vmatprep.subr.bf16.mxu1 %v1283_v44  ;;  %v482_v44 = vld [vmem:[%s1762_s5 + $0xb0] sm:$0xff] }
  0xfe   : > { %v1284_v55 = vcombine.low %v478_v43, %v482_v44 }
 0x100   : > { %934 = vmatpush1.bf16.msra.mxu1 %v1282_v47  ;;  %v1276_v47 = vcombine.low %v470_v34, %v474_v35 }
 0x101   : > { %935 = vmatprep.subr.bf16.mxu1 %v1291_v48  ;;  %v1278_v48 = vcombine.low %v471_v36, %v475_v37 }
 0x104   : > { %936 = vmatpush1.bf16.msra.mxu1 %v1290_v49  ;;  %v1285_v49 = vcombine.high %v478_v43, %v482_v44 }
 0x105   : > { %937 = vmatprep.subr.bf16.mxu1 %v1299_v57  ;;  %v1293_v57 = vcombine.high %v486_v51, %v490_v52 }
 0x108   : > { %938 = vmatpush1.bf16.msra.mxu1 %v1298_v56  ;;  %v1286_v56 = vcombine.low %v479_v45, %v483_v46 }
 0x109   : > { %939 = vmatprep.subr.bf16.mxu1 %v1307_v1  ;;  %v1301_v1 = vcombine.high %v494_v59, %v498_v60 }
 0x10c   : > { %940 = vmatpush1.bf16.msra.mxu1 %v1306_v0  ;;  %v1294_v0 = vcombine.low %v487_v53, %v491_v54 }
 0x10d   : > { %941 = vmatprep.subr.bf16.mxu1 %v1315_v11  ;;  %v510_v11 = vld [vmem:[%s1762_s5 + $0x190] sm:$0xff] }
 0x10e   : > { %v1316_v23 = vcombine.low %v510_v11, %v514_v12 }
 0x110   : > { %942 = vmatpush1.bf16.msra.mxu1 %v1314_v10  ;;  %v1311_v10 = vcombine.high %v503_v5, %v507_v6 }
 0x111   : > { %943 = vmatprep.subr.bf16.mxu1 %v1323_v16  ;;  %v1310_v16 = vcombine.low %v503_v5, %v507_v6 }
 0x114   : > { %944 = vmatpush1.bf16.msra.mxu1 %v1322_v24  ;;  %v1318_v24 = vcombine.low %v511_v13, %v515_v14  ;;  %v1134_v13 = vunpack.c.0.s8 %v1133_v4 }
 0x115   : > { %1015 = vmatprep.subr.bf16.mxu1 %v1271_v26 }
 0x1ca   : > { %v450_v28 = vpop.f32.mrb[0].mxu1 }
 0x1cb   : > { %v451_v29 = vadd.f32 %v1258_v27, %v450_v28  ;;  %v1354_v30 = vpop.f32.mrb[1].mxu1 }
 0x1cc   : > { %v453_v31 = vpop.f32.mrb[2].mxu1 }
 0x1cd   : > { %v454_v32 = vadd.f32 %v1258_v27, %v453_v31  ;;  %v1355_v33 = vpop.f32.mrb[3].mxu1  ;;  %1394 = vtanh.f32 %v451_v29  ;;  %v1324_v27 = vcombine.low %v518_v19, %v522_v20  ;;  %v526_v29 = vlaneseq }
 0x1ce   : > { %v1718_v33 = vld [vmem:[%s1763_s6] sm:$0xff] }
 0x1cf   : > { %1396 = vtanh.f32 %v454_v32  ;;  %v1711_v30 = vshrl.u32 %v526_v29, 7 }
 0x1d1   : > { %v528_v31 = vsub.s32 0, %v1711_v30  ;;  %v536_v32 = vsub.s32 2, %v1711_v30  ;;  %v532_v34 = vsub.s32 1, %v1711_v30  ;;  %v540_v35 = vsub.s32 3, %v1711_v30 }
 0x1d2   : > { %v544_v29 = vsub.s32 4, %v1711_v30 }
 0x1d3   : > { %v529_v36 = vrot.slane %v1718_v33, %v528_v31  ;;  %v537_v37 = vrot.slane %v1718_v33, %v536_v32  ;;  %v552_v31 = vsub.s32 6, %v1711_v30  ;;  %v548_v32 = vsub.s32 5, %v1711_v30 }
 0x1d7   : > { %v1395_v38 = vpop.eup %1394 }
 0x1d9   : > { %v1397_v39 = vpop.eup %1396 }
 0x1da   : > { %v1633_v40 = vpack.c.bf16 %v1397_v39, %v1395_v38 }
 0x1dc   : > { %919 = vmatmul.mubr.bf16.vlgmr.msra.gmra.mrb[4].mxu0 %v1633_v40  ;;  %962 = vmatmul.mubr.bf16.vlgmr.msra.gmra.mrb[4].mxu1 %v1633_v40 }
 0x1dd   : > { %973 = vmatpush1.bf16.msra.mxu0 %v1268_v21  ;;  %1016 = vmatpush1.bf16.msra.mxu1 %v1270_v22  ;;  %v519_v21 = vld [vmem:[%s1762_s5 + $0x1d8] sm:$0xff] }
 0x1de   : > { %974 = vmatprep.subr.bf16.mxu0 %v1277_v41  ;;  %1017 = vmatprep.subr.bf16.mxu1 %v1279_v42  ;;  %v523_v22 = vld [vmem:[%s1762_s5 + $0x1f8] sm:$0xff]  ;;  %v541_v41 = vrot.slane %v1718_v33, %v540_v35  ;;  %v545_v35 = vrot.slane %v1718_v33, %v544_v29 }
 0x1df   : > { %1004 = vmatprep.mubr.bf16.mxu0 %v1424_v17  ;;  %1047 = vmatprep.mubr.bf16.mxu1 %v1424_v17  ;;  %v1317_v17 = vcombine.high %v510_v11, %v514_v12  ;;  %v1327_v26 = vcombine.high %v519_v21, %v523_v22  ;;  %v1326_v28 = vcombine.low %v519_v21, %v523_v22 }
 0x1e0   : > { %v1727_v22 = vsub.s32 %v1134_v13, %v1711_v30 }
 0x1e1   : > { %975 = vmatpush1.bf16.msra.mxu0 %v1276_v47  ;;  %1018 = vmatpush1.bf16.msra.mxu1 %v1278_v48 }
 0x1e2   : > { %976 = vmatprep.subr.bf16.mxu0 %v1285_v49  ;;  %1019 = vmatprep.subr.bf16.mxu1 %v1287_v50 }
 0x1e5   : > { %977 = vmatpush1.bf16.msra.mxu0 %v1284_v55  ;;  %1020 = vmatpush1.bf16.msra.mxu1 %v1286_v56 }
 0x1e6   : > { %978 = vmatprep.subr.bf16.mxu0 %v1293_v57  ;;  %1021 = vmatprep.subr.bf16.mxu1 %v1295_v58 }
 0x1e9   : > { %979 = vmatpush1.bf16.msra.mxu0 %v1292_v63  ;;  %1022 = vmatpush1.bf16.msra.mxu1 %v1294_v0 }
 0x1ea   : > { %980 = vmatprep.subr.bf16.mxu0 %v1301_v1  ;;  %1023 = vmatprep.subr.bf16.mxu1 %v1303_v2 }
 0x1ed   : > { %981 = vmatpush1.bf16.msra.mxu0 %v1300_v7  ;;  %1024 = vmatpush1.bf16.msra.mxu1 %v1302_v8 }
 0x1ee   : > { %982 = vmatprep.subr.bf16.mxu0 %v1309_v9  ;;  %1025 = vmatprep.subr.bf16.mxu1 %v1311_v10 }
 0x1f1   : > { %983 = vmatpush1.bf16.msra.mxu0 %v1308_v15  ;;  %1026 = vmatpush1.bf16.msra.mxu1 %v1310_v16 }
 0x1f2   : > { %984 = vmatprep.subr.bf16.mxu0 %v1317_v17  ;;  %1027 = vmatprep.subr.bf16.mxu1 %v1319_v18 }
 0x1f5   : > { %985 = vmatpush1.bf16.msra.mxu0 %v1316_v23  ;;  %1028 = vmatpush1.bf16.msra.mxu1 %v1318_v24 }
 0x1f6   : > { %986 = vmatprep.subr.bf16.mxu0 %v1325_v25  ;;  %1029 = vmatprep.subr.bf16.mxu1 %v1327_v26 }
 0x1f9   : > { %987 = vmatpush1.bf16.msra.mxu0 %v1324_v27  ;;  %1030 = vmatpush1.bf16.msra.mxu1 %v1326_v28 }
 0x1fc   : > { %1005 = vmatmul.mubr.bf16.vlgmr.msra.gmra.mrb[8].mxu0 %v1633_v40  ;;  %1048 = vmatmul.mubr.bf16.vlgmr.msra.gmra.mrb[8].mxu1 %v1633_v40  ;;  %v533_v40 = vrot.slane %v1718_v33, %v532_v34  ;;  %v556_v34 = vsub.s32 7, %v1711_v30 }
 0x2af   : > { %v920_v38 = vpop.f32.mrb[4].mxu0  ;;  %v963_v39 = vpop.f32.mrb[4].mxu1 }
 0x2b0   : > { %v922_v42 = vpop.f32.mrb[5].mxu0  ;;  %v965_v43 = vpop.f32.mrb[5].mxu1  ;;  %v921_v46 = vadd.f32 %v920_v38, %v529_v36  ;;  %v964_v47 = vadd.f32 %v963_v39, %v537_v37  ;;  %v549_v39 = vrot.slane %v1718_v33, %v548_v32 }
 0x2b1   : > { %v924_v44 = vpop.f32.mrb[6].mxu0  ;;  %v967_v45 = vpop.f32.mrb[6].mxu1  ;;  %v923_v52 = vadd.f32 %v922_v42, %v533_v40  ;;  %v966_v53 = vadd.f32 %v965_v43, %v541_v41 }
 0x2b2   : > { %v925_v48 = vadd.f32 %v924_v44, %v529_v36  ;;  %v968_v49 = vadd.f32 %v967_v45, %v537_v37  ;;  %v926_v50 = vpop.f32.mrb[7].mxu0  ;;  %v969_v51 = vpop.f32.mrb[7].mxu1  ;;  %v553_v36 = vrot.slane %v1718_v33, %v552_v31 }
 0x2b3   : > { %v927_v54 = vadd.f32 %v926_v50, %v533_v40  ;;  %v970_v55 = vadd.f32 %v969_v51, %v541_v41  ;;  %v557_v40 = vrot.slane %v1718_v33, %v556_v34 }
 0x2b4   : > { %v1058_v56 = vmax.f32 %v921_v46, %v925_v48  ;;  %v1072_v57 = vmax.f32 %v964_v47, %v968_v49 }
 0x2b5   : > { %v1065_v58 = vmax.f32 %v923_v52, %v927_v54  ;;  %v1079_v59 = vmax.f32 %v966_v53, %v970_v55 }
 0x2b6   : > { %v1059_v60 = vrot.slane %v1058_v56, 4  ;;  %v1073_v61 = vrot.slane %v1072_v57, 4 }
 0x2b7   : > { %v1066_v62 = vrot.slane %v1065_v58, 4  ;;  %v1080_v63 = vrot.slane %v1079_v59, 4 }
 0x2b8   : > { %v1060_v0 = vmax.f32 %v1058_v56, %v1059_v60  ;;  %v1074_v1 = vmax.f32 %v1072_v57, %v1073_v61 }
 0x2b9   : > { %v1067_v2 = vmax.f32 %v1065_v58, %v1066_v62  ;;  %v1081_v5 = vmax.f32 %v1079_v59, %v1080_v63 }
 0x2ba   : > { %v1061_v6 = vrot.slane %v1060_v0, 2  ;;  %v1075_v7 = vrot.slane %v1074_v1, 2 }
 0x2bb   : > { %v1068_v8 = vrot.slane %v1067_v2, 2  ;;  %v1082_v9 = vrot.slane %v1081_v5, 2 }
 0x2bc   : > { %v1062_v10 = vmax.f32 %v1060_v0, %v1061_v6  ;;  %v1076_v11 = vmax.f32 %v1074_v1, %v1075_v7 }
 0x2bd   : > { %v1069_v12 = vmax.f32 %v1067_v2, %v1068_v8  ;;  %v1083_v14 = vmax.f32 %v1081_v5, %v1082_v9 }
 0x2be   : > { %v1063_v15 = vrot.slane %v1062_v10, 1  ;;  %v1077_v16 = vrot.slane %v1076_v11, 1 }
 0x2bf   : > { %v1070_v17 = vrot.slane %v1069_v12, 1  ;;  %v1084_v18 = vrot.slane %v1083_v14, 1 }
 0x2c0   : > { %v1064_v19 = vmax.f32 %v1062_v10, %v1063_v15  ;;  %v1078_v20 = vmax.f32 %v1076_v11, %v1077_v16 }
 0x2c1   : > { %v1071_v21 = vmax.f32 %v1069_v12, %v1070_v17  ;;  %v1085_v23 = vmax.f32 %v1083_v14, %v1084_v18 }
 0x2c3   : > { %v1128_v24 = vcombine.low %v1064_v19, %v1071_v21  ;;  %v1129_v25 = vcombine.low %v1078_v20, %v1085_v23 }
 0x2c5   : > { %v1138_v26 = vrot.slane %v1128_v24, %v1727_v22  ;;  %v1145_v27 = vrot.slane %v1129_v25, %v1727_v22 }
 0x2c7   : > { %v1160_v28 = vcombine.low %v1138_v26, %v1145_v27 }
 0x2c9   : > { %v1168_v23 = vrot.slane %v1160_v28, %v1727_v22 }
 0x2cf   : > { %v1006_v37 = vpop.f32.mrb[8].mxu0  ;;  %v1049_v38 = vpop.f32.mrb[8].mxu1 }
 0x2d0   : > { %v1008_v41 = vpop.f32.mrb[9].mxu0  ;;  %v1051_v42 = vpop.f32.mrb[9].mxu1  ;;  %v1007_v45 = vadd.f32 %v1006_v37, %v545_v35  ;;  %v1050_v46 = vadd.f32 %v1049_v38, %v553_v36 }
 0x2d1   : > { %v1010_v43 = vpop.f32.mrb[10].mxu0  ;;  %v1053_v44 = vpop.f32.mrb[10].mxu1  ;;  %v1009_v50 = vadd.f32 %v1008_v41, %v549_v39  ;;  %v1052_v51 = vadd.f32 %v1051_v42, %v557_v40 }
 0x2d2   : > { %v1011_v47 = vadd.f32 %v1010_v43, %v545_v35  ;;  %v1054_v48 = vadd.f32 %v1053_v44, %v553_v36  ;;  %v1012_v49 = vpop.f32.mrb[11].mxu0  ;;  %v1055_v30 = vpop.f32.mrb[11].mxu1 }
 0x2d3   : > { %v1013_v52 = vadd.f32 %v1012_v49, %v549_v39  ;;  %v1056_v53 = vadd.f32 %v1055_v30, %v557_v40 }
 0x2d4   : > { %v1086_v54 = vmax.f32 %v1007_v45, %v1011_v47  ;;  %v1100_v55 = vmax.f32 %v1050_v46, %v1054_v48 }
 0x2d5   : > { %v1093_v56 = vmax.f32 %v1009_v50, %v1013_v52  ;;  %v1107_v57 = vmax.f32 %v1052_v51, %v1056_v53 }
 0x2d6   : > { %v1087_v58 = vrot.slane %v1086_v54, 4  ;;  %v1101_v33 = vrot.slane %v1100_v55, 4 }
 0x2d7   : > { %v1094_v59 = vrot.slane %v1093_v56, 4  ;;  %v1108_v60 = vrot.slane %v1107_v57, 4 }
 0x2d8   : > { %v1088_v61 = vmax.f32 %v1086_v54, %v1087_v58  ;;  %v1102_v62 = vmax.f32 %v1100_v55, %v1101_v33 }
 0x2d9   : > { %v1095_v63 = vmax.f32 %v1093_v56, %v1094_v59  ;;  %v1109_v0 = vmax.f32 %v1107_v57, %v1108_v60 }
 0x2da   : > { %v1089_v1 = vrot.slane %v1088_v61, 2  ;;  %v1103_v2 = vrot.slane %v1102_v62, 2 }
 0x2db   : > { %v1096_v3 = vrot.slane %v1095_v63, 2  ;;  %v1110_v4 = vrot.slane %v1109_v0, 2 }
 0x2dc   : > { %v1090_v5 = vmax.f32 %v1088_v61, %v1089_v1  ;;  %v1104_v6 = vmax.f32 %v1102_v62, %v1103_v2 }
 0x2dd   : > { %v1097_v7 = vmax.f32 %v1095_v63, %v1096_v3  ;;  %v1111_v8 = vmax.f32 %v1109_v0, %v1110_v4 }
 0x2de   : > { %v1091_v9 = vrot.slane %v1090_v5, 1  ;;  %v1105_v10 = vrot.slane %v1104_v6, 1 }
 0x2df   : > { %v1098_v11 = vrot.slane %v1097_v7, 1  ;;  %v1112_v12 = vrot.slane %v1111_v8, 1 }
 0x2e0   : > { %v1092_v13 = vmax.f32 %v1090_v5, %v1091_v9  ;;  %v1106_v14 = vmax.f32 %v1104_v6, %v1105_v10 }
 0x2e1   : > { %v1099_v15 = vmax.f32 %v1097_v7, %v1098_v11  ;;  %v1113_v16 = vmax.f32 %v1111_v8, %v1112_v12 }
 0x2e3   : > { %v1130_v17 = vcombine.low %v1092_v13, %v1099_v15  ;;  %v1131_v18 = vcombine.low %v1106_v14, %v1113_v16 }
 0x2e5   : > { %v1152_v19 = vrot.slane %v1130_v17, %v1727_v22  ;;  %v1159_v20 = vrot.slane %v1131_v18, %v1727_v22 }
 0x2e7   : > { %v1161_v21 = vcombine.low %v1152_v19, %v1159_v20 }
 0x2e9   : > { %v1175_v24 = vrot.slane %v1161_v21, %v1727_v22 }
 0x2eb   : > { %v1176_v25 = vcombine.low %v1168_v23, %v1175_v24 }
 0x2ed   : > { %1179 = vst [vmem:[%s304_s11] sm:$0xff] %v1176_v25 }
 0x2ee PF: > { %s17_s26 = sadd.s32 1, %s1420_s26   ;;  %s1765_s24 = smov %s1416_s25 }
 0x2ef   : > { %p14_p5 = scmp.ge.s32.totalorder %s17_s26, 4   ;;  %s1766_s25 = smov %s1768_s27 }
 0x2f1   :  { %16 = sbr.rel (!%p14_p5) target bundleno = 2 (0x2), region = 82 }

// kernel: pointnet_cls_forward.12
= control target key start
LH: loop header
LB: loop body
LE: loop exit
PB: predicated region body
PF: predicated region fallthrough
CT: control target
= control target key end

     0   :  { %s702_s15 = smov 0   ;;  %s704_s16 = smov 0   ;;  %s795_s0 = inlined_call_operand.vmem [shape: bf16[2,16,8], index: 0, kind: input, shape index: {}]   ;;  %s796_s1 = inlined_call_operand.vmem [shape: bf16[2,8,64], index: 1, kind: input, shape index: {}]   ;;  %s797_s2 = inlined_call_operand.vmem [shape: f32[1,64], index: 2, kind: input, shape index: {}]   ;;  %s798_s3 = inlined_call_operand.vmem [shape: f32[2,1,64], index: 3, kind: output, shape index: {0}]   ;;  %s799_s4 = inlined_call_operand.vmem [shape: f32[2,64,64], index: 4, kind: output, shape index: {1}]  }
   0x1   :  { %s706_s17 = smov 0  }
   0x2 LB: > { %s27_s18 = sadd.s32 1, %s669_s16  ;;  %p579_p0 = scmp.ge.s32.totalorder %s673_s17, 1  ;;  %s673_s17 = sphi %s706_s17, %s15_s17   ;;  %s669_s16 = sphi %s704_s16, %s801_s16   ;;  %s665_s15 = sphi %s702_s15, %s800_s15  }
   0x3   : > { %p29_p1 = scmp.ge.s32.totalorder %s27_s18, 2  ;;  %p193_p2 = scmp.lt.s32.totalorder %s673_s17, 3 }
   0x5   : > { %s803_s18 = smov (%p29_p1, %s27_s18), 0  ;;  %p194_p3 = pnand %p579_p0, %p193_p2 }
   0x6   : > { %p231_p4 = scmp.lt.s32.totalorder (!%p194_p3), %s665_s15, 1  ;;  %v675_v0 = vmov (!%p194_p3), 0.0   ;;  %vm676_vm0 = vmmov (!%p194_p3), 0   ;;  %vm324_vm1 = vcmask (!%p194_p3), 516096   ;;  %vm272_vm2 = vcmask (!%p194_p3), 1043456  }
   0x7   : > { %197 = sbr.rel (%p194_p3) target bundleno = 584 (0x248), region = 32  ;;  %603 = vmatprep.subr.bf16.mxu0 (!%p194_p3), %v675_v0  ;;  %605 = vmatprep.mubr.msk.bf16.mxu0 (!%p194_p3), %vm676_vm0, %v675_v0  ;;  %vm268_vm3 = vcmask (!%p194_p3), 64512   ;;  %vm326_vm4 = vcmask (!%p194_p3), 523264   ;;  %v585_v4 = vld [vmem:[%s797_s2] ss:$0 sm:$0xff] (!%p194_p3)  ;;  %vm375_vm5 = vcmask (!%p194_p3), 130048  }
   0xe   : > { %s805_s15 = smov (!%p231_p4, %s665_s15), 1 }
   0xf   : > { %s582_s19 = sshll.u32 %s805_s15, 2  ;;  %s723_s22 = scalar_lea.vmem %s798_s3, %s805_s15 }
  0x10   : > { %s243_s25 = scalar_lea.vmem %s796_s1, %s582_s19  ;;  %325 = vst.msk [vmem:[%s723_s22] sm:$0x1] %vm324_vm1, %v675_v0  ;;  %s594_s26 = sshll.u32 %s805_s15, 3 }
  0x11   : > { %v255_v1 = vld [vmem:[%s243_s25] sm:$0xf]  ;;  %s238_s29 = scalar_lea.vmem %s795_s0, %s594_s26  ;;  %s595_s30 = sshll.u32 %s805_s15, 6 }
  0x12   : > { %v274_v2 = vsel %vm272_vm2, %v255_v1, 0  ;;  %v646_v3 = vld [vmem:[%s238_s29] sm:$0xff]   ;;  %s736_s7 = scalar_lea.vmem %s799_s4, %s595_s30 }
  0x13   : > { %604 = vmatpush3.bf16.msra.mxu0 %v274_v2  ;;  %327 = vst.msk [vmem:[%s736_s7] sm:$0xff] %vm326_vm4, %v675_v0  ;;  %328 = vst.msk [vmem:[%s736_s7 + $0x8] sm:$0xff] %vm326_vm4, %v675_v0 }
  0x14   : > { %329 = vst.msk [vmem:[%s736_s7 + $0x10] sm:$0xff] %vm326_vm4, %v675_v0  ;;  %330 = vst.msk [vmem:[%s736_s7 + $0x18] sm:$0xff] %vm326_vm4, %v675_v0 }
  0x15   : > { %331 = vst.msk [vmem:[%s736_s7 + $0x20] sm:$0xff] %vm326_vm4, %v675_v0  ;;  %332 = vst.msk [vmem:[%s736_s7 + $0x28] sm:$0xff] %vm326_vm4, %v675_v0 }
  0x16   : > { %606 = vmatmul.mubr.msk.bf16.vlgmr.msra.gmra.mrb[0].mxu0 %vm268_vm3, %v646_v3  ;;  %333 = vst.msk [vmem:[%s736_s7 + $0x30] sm:$0xff] %vm326_vm4, %v675_v0  ;;  %334 = vst.msk [vmem:[%s736_s7 + $0x38] sm:$0xff] %vm326_vm4, %v675_v0 }
  0x17   : > { %v335_v24 = vld [vmem:[%s723_s22] sm:$0x1] }
  0x1a   : > { %v351_v32 = vld [vmem:[%s736_s7] sm:$0xff]  ;;  %v352_v37 = vld [vmem:[%s736_s7 + $0x8] sm:$0xff] }
  0x1b   : > { %v353_v31 = vld [vmem:[%s736_s7 + $0x10] sm:$0xff]  ;;  %v354_v34 = vld [vmem:[%s736_s7 + $0x18] sm:$0xff] }
  0x1c   : > { %v355_v44 = vld [vmem:[%s736_s7 + $0x20] sm:$0xff]  ;;  %v356_v49 = vld [vmem:[%s736_s7 + $0x28] sm:$0xff] }
  0x1d   : > { %v357_v43 = vld [vmem:[%s736_s7 + $0x30] sm:$0xff]  ;;  %v358_v46 = vld [vmem:[%s736_s7 + $0x38] sm:$0xff] }
  0xe9   : > { %v310_v5 = vpop.f32.mrb[0].mxu0 }
  0xea   : > { %v311_v6 = vadd.f32 %v585_v4, %v310_v5  ;;  %v607_v7 = vpop.f32.mrb[1].mxu0 }
  0xeb   : > { %v313_v8 = vpop.f32.mrb[2].mxu0 }
  0xec   : > { %v314_v9 = vadd.f32 %v585_v4, %v313_v8  ;;  %v608_v10 = vpop.f32.mrb[3].mxu0  ;;  %647 = vtanh.f32 %v311_v6 }
  0xee   : > { %649 = vtanh.f32 %v314_v9 }
  0xf6   : > { %v648_v11 = vpop.eup %647 }
  0xf8   : > { %v650_v12 = vpop.eup %649 }
  0xf9   : > { %v319_v13 = vpack.c.bf16 %v650_v12, %v648_v11 }
  0xfb   : > { %359 = vxpose.xlu0.c.b16.start.end [1/1] (short) (narrow) %v319_v13, 64  ;;  %v336_v14 = vunpack.c.l.bf16 %v319_v13  ;;  %v337_v15 = vunpack.c.h.bf16 %v319_v13  ;;  %609 = vmatprep.subr.bf16.mxu1 %v319_v13 }
  0xfc   : > { %610 = vmatpush3.bf16.msra.mxu1 %v319_v13 }
  0xfd   : > { %v339_v16 = vsel %vm326_vm4, %v336_v14, 0.0  ;;  %v340_v17 = vsel %vm326_vm4, %v337_v15, 0.0 }
  0xfe   : > { %v341_v18 = vadd.f32 %v340_v17, %v339_v16 }
 0x100   : > { %v342_v19 = vrot.slane %v341_v18, 4 }
 0x102   : > { %v343_v20 = vadd.f32 %v342_v19, %v341_v18 }
 0x104   : > { %v344_v21 = vrot.slane %v343_v20, 2 }
 0x106   : > { %v345_v22 = vadd.f32 %v344_v21, %v343_v20 }
 0x108   : > { %v346_v23 = vrot.slane %v345_v22, 1 }
 0x10a   : > { %v347_v25 = vadd.f32 %v346_v23, %v345_v22 }
 0x10c   : > { %v348_v26 = vadd.f32 %v347_v25, %v335_v24 }
 0x10e   : > { %350 = vst.msk [vmem:[%s723_s22] sm:$0x1] %vm324_vm1, %v348_v26 }
 0x161   : > { %v367_v27 = vpop.trf.xlu0 }
 0x162   : > { %611 = vmatprep.mubr.msk.bf16.mxu1 %vm375_vm5, %v367_v27 }
 0x165   : > { %v368_v28 = vpop.trf.xlu0 }
 0x166   : > { %612 = vmatmul.mubr.msk.bf16.vlgmr.msra.gmra.mrb[0].mxu1 %vm375_vm5, %v368_v28 }
 0x169   : > { %v369_v29 = vpop.trf.xlu0 }
 0x16a   : > { %615 = vmatprep.mubr.msk.bf16.mxu1 %vm375_vm5, %v369_v29 }
 0x16d   : > { %v370_v30 = vpop.trf.xlu0 }
 0x16e   : > { %616 = vmatmul.mubr.msk.bf16.gmra.mrb[4].mxu1 %vm375_vm5, %v370_v30 }
 0x239   : > { %v613_v33 = vpop.f32.mrb[0].mxu1 }
 0x23a   : > { %v455_v35 = vadd.f32 %v613_v33, %v353_v31  ;;  %v422_v36 = vpop.f32.mrb[1].mxu1 }
 0x23b   : > { %v453_v38 = vadd.f32 %v422_v36, %v351_v32  ;;  %v614_v39 = vpop.f32.mrb[2].mxu1 }
 0x23c   : > { %463 = vst.msk [vmem:[%s736_s7 + $0x10] sm:$0xff] %vm326_vm4, %v455_v35  ;;  %v456_v40 = vadd.f32 %v614_v39, %v354_v34  ;;  %v425_v41 = vpop.f32.mrb[3].mxu1 }
 0x23d   : > { %461 = vst.msk [vmem:[%s736_s7] sm:$0xff] %vm326_vm4, %v453_v38  ;;  %v454_v42 = vadd.f32 %v425_v41, %v352_v37 }
 0x23e   : > { %464 = vst.msk [vmem:[%s736_s7 + $0x18] sm:$0xff] %vm326_vm4, %v456_v40 }
 0x23f   : > { %462 = vst.msk [vmem:[%s736_s7 + $0x8] sm:$0xff] %vm326_vm4, %v454_v42 }
 0x241   : > { %v617_v45 = vpop.f32.mrb[4].mxu1 }
 0x242   : > { %v459_v47 = vadd.f32 %v617_v45, %v357_v43  ;;  %v438_v48 = vpop.f32.mrb[5].mxu1 }
 0x243   : > { %v457_v50 = vadd.f32 %v438_v48, %v355_v44  ;;  %v618_v51 = vpop.f32.mrb[6].mxu1 }
 0x244   : > { %467 = vst.msk [vmem:[%s736_s7 + $0x30] sm:$0xff] %vm326_vm4, %v459_v47  ;;  %v460_v52 = vadd.f32 %v618_v51, %v358_v46  ;;  %v441_v53 = vpop.f32.mrb[7].mxu1 }
 0x245   : > { %465 = vst.msk [vmem:[%s736_s7 + $0x20] sm:$0xff] %vm326_vm4, %v457_v50  ;;  %v458_v54 = vadd.f32 %v441_v53, %v356_v49 }
 0x246   : > { %468 = vst.msk [vmem:[%s736_s7 + $0x38] sm:$0xff] %vm326_vm4, %v460_v52 }
 0x247   : > { %466 = vst.msk [vmem:[%s736_s7 + $0x28] sm:$0xff] %vm326_vm4, %v458_v54 }
 0x248 PF: > { %s15_s17 = sadd.s32 1, %s673_s17   ;;  %s800_s15 = smov %s669_s16 }
 0x249   : > { %p12_p5 = scmp.ge.s32.totalorder %s15_s17, 4   ;;  %s801_s16 = smov %s803_s18 }
 0x24b   :  { %14 = sbr.rel (!%p12_p5) target bundleno = 2 (0x2), region = 81 }

// kernel: pointnet_cls_forward.11
= control target key start
LH: loop header
LB: loop body
LE: loop exit
PB: predicated region body
PF: predicated region fallthrough
CT: control target
= control target key end

     0   :  { %v3544_v47 = vmov 1983009808   ;;  %v37_v49 = vlaneseq  ;;  %vm2634_vm0 = vcmask 25600   ;;  %s4678_s1 = inlined_call_operand.vmem [shape: bf16[1024,512], index: 1, kind: input, shape index: {}]   ;;  %s4679_s0 = inlined_call_operand.vmem [shape: f32[2,1024], index: 0, kind: input, shape index: {}]   ;;  %s4680_s3 = inlined_call_operand.vmem [shape: bf16[512,256], index: 3, kind: input, shape index: {}]   ;;  %s4681_s2 = inlined_call_operand.vmem [shape: f32[1,512], index: 2, kind: input, shape index: {}]   ;;  %s4682_s5 = inlined_call_operand.vmem [shape: bf16[256,4], index: 5, kind: input, shape index: {}]   ;;  %s4683_s4 = inlined_call_operand.vmem [shape: f32[1,256], index: 4, kind: input, shape index: {}]   ;;  %s4684_s6 = inlined_call_operand.vmem [shape: f32[1,4], index: 6, kind: input, shape index: {}]   ;;  %s4685_s7 = inlined_call_operand.vmem [shape: f32[2,4], index: 7, kind: output, shape index: {}]  }
   0x1   :  { %v3032_v0 = vld [vmem:[%s4678_s1 + $0x4] ss:$16 sps:$4 sm:$0xff]   ;;  %v3036_v2 = vld [vmem:[%s4678_s1] ss:$16 sps:$4 sm:$0xff]   ;;  %v35_v48 = vunpack.c.l.s4 %v3544_v47  ;;  %v28_v50 = vld [vmem:[%s4679_s0 + $0x8] sm:$0xff] }
   0x2   :  { %v3034_v1 = vld [vmem:[%s4678_s1 + $0x204] ss:$16 sps:$4 sm:$0xff]   ;;  %1641 = vmatprep.subr.bf16.mxu1 %v3032_v0  ;;  %v3037_v3 = vld [vmem:[%s4678_s1 + $0x200] ss:$16 sps:$4 sm:$0xff]   ;;  %v3741_v56 = vshrl.u32 %v37_v49, 7 }
   0x3   :  { %1682 = vmatprep.subr.bf16.mxu0 %v3034_v1  ;;  %v3038_v4 = vld [vmem:[%s4678_s1 + $0x24] ss:$16 sps:$4 sm:$0xff]   ;;  %1642 = vmatpush1.bf16.msra.mxu1 %v3036_v2  ;;  %v3042_v6 = vld [vmem:[%s4678_s1 + $0x20] ss:$16 sps:$4 sm:$0xff]   ;;  %v36_v55 = vunpack.c.0.s8 %v35_v48  ;;  %v3161_v47 = vld [vmem:[%s4678_s1 + $0xa8] ss:$16 sps:$4 sm:$0xff]  }
   0x4   :  { %1683 = vmatpush1.bf16.msra.mxu0 %v3037_v3  ;;  %v3040_v5 = vld [vmem:[%s4678_s1 + $0x224] ss:$16 sps:$4 sm:$0xff]   ;;  %1643 = vmatprep.subr.bf16.mxu1 %v3038_v4  ;;  %v3043_v7 = vld [vmem:[%s4678_s1 + $0x220] ss:$16 sps:$4 sm:$0xff]   ;;  %v3169_v49 = vld [vmem:[%s4678_s1 + $0xcc] ss:$16 sps:$4 sm:$0xff]  }
   0x5   :  { %1684 = vmatprep.subr.bf16.mxu0 %v3040_v5  ;;  %v3044_v8 = vld [vmem:[%s4678_s1 + $0x44] ss:$16 sps:$4 sm:$0xff]   ;;  %v3048_v10 = vld [vmem:[%s4678_s1 + $0x40] ss:$16 sps:$4 sm:$0xff]   ;;  %v39_v61 = vsub.s32 %v36_v55, %v3741_v56  ;;  %v3173_v55 = vld [vmem:[%s4678_s1 + $0xe8] ss:$16 sps:$4 sm:$0xff]  }
   0x6   :  { %v3046_v9 = vld [vmem:[%s4678_s1 + $0x244] ss:$16 sps:$4 sm:$0xff]   ;;  %v3049_v11 = vld [vmem:[%s4678_s1 + $0x240] ss:$16 sps:$4 sm:$0xff]  }
   0x7   :  { %1644 = vmatpush1.bf16.msra.mxu1 %v3042_v6  ;;  %v3050_v12 = vld [vmem:[%s4678_s1 + $0x64] ss:$16 sps:$4 sm:$0xff]   ;;  %v3054_v14 = vld [vmem:[%s4678_s1 + $0x60] ss:$16 sps:$4 sm:$0xff]  }
   0x8   :  { %1685 = vmatpush1.bf16.msra.mxu0 %v3043_v7  ;;  %1645 = vmatprep.subr.bf16.mxu1 %v3044_v8  ;;  %v3052_v13 = vld [vmem:[%s4678_s1 + $0x264] ss:$16 sps:$4 sm:$0xff]   ;;  %v3055_v15 = vld [vmem:[%s4678_s1 + $0x260] ss:$16 sps:$4 sm:$0xff]  }
   0x9   :  { %1686 = vmatprep.subr.bf16.mxu0 %v3046_v9  ;;  %v3056_v16 = vld [vmem:[%s4678_s1 + $0x84] ss:$16 sps:$4 sm:$0xff]   ;;  %v3060_v18 = vld [vmem:[%s4678_s1 + $0x80] ss:$16 sps:$4 sm:$0xff]  }
   0xa   :  { %v3058_v17 = vld [vmem:[%s4678_s1 + $0x284] ss:$16 sps:$4 sm:$0xff]   ;;  %v3061_v19 = vld [vmem:[%s4678_s1 + $0x280] ss:$16 sps:$4 sm:$0xff]  }
   0xb   :  { %1646 = vmatpush1.bf16.msra.mxu1 %v3048_v10  ;;  %v3062_v20 = vld [vmem:[%s4678_s1 + $0xa4] ss:$16 sps:$4 sm:$0xff]   ;;  %v3066_v22 = vld [vmem:[%s4678_s1 + $0xa0] ss:$16 sps:$4 sm:$0xff]  }
   0xc   :  { %1687 = vmatpush1.bf16.msra.mxu0 %v3049_v11  ;;  %1647 = vmatprep.subr.bf16.mxu1 %v3050_v12  ;;  %v3064_v21 = vld [vmem:[%s4678_s1 + $0x2a4] ss:$16 sps:$4 sm:$0xff]   ;;  %v3067_v23 = vld [vmem:[%s4678_s1 + $0x2a0] ss:$16 sps:$4 sm:$0xff]  }
   0xd   :  { %1688 = vmatprep.subr.bf16.mxu0 %v3052_v13  ;;  %v3068_v24 = vld [vmem:[%s4678_s1 + $0xc4] ss:$16 sps:$4 sm:$0xff]   ;;  %v3072_v26 = vld [vmem:[%s4678_s1 + $0xc0] ss:$16 sps:$4 sm:$0xff]  }
   0xe   :  { %v3070_v25 = vld [vmem:[%s4678_s1 + $0x2c4] ss:$16 sps:$4 sm:$0xff]   ;;  %v3073_v27 = vld [vmem:[%s4678_s1 + $0x2c0] ss:$16 sps:$4 sm:$0xff]  }
   0xf   :  { %1648 = vmatpush1.bf16.msra.mxu1 %v3054_v14  ;;  %v3074_v28 = vld [vmem:[%s4678_s1 + $0xe4] ss:$16 sps:$4 sm:$0xff]   ;;  %v3078_v30 = vld [vmem:[%s4678_s1 + $0xe0] ss:$16 sps:$4 sm:$0xff]  }
  0x10   :  { %1689 = vmatpush1.bf16.msra.mxu0 %v3055_v15  ;;  %1649 = vmatprep.subr.bf16.mxu1 %v3056_v16  ;;  %v3076_v29 = vld [vmem:[%s4678_s1 + $0x2e4] ss:$16 sps:$4 sm:$0xff]   ;;  %v3079_v31 = vld [vmem:[%s4678_s1 + $0x2e0] ss:$16 sps:$4 sm:$0xff]  }
  0x11   :  { %1690 = vmatprep.subr.bf16.mxu0 %v3058_v17  ;;  %v3080_v32 = vld [vmem:[%s4678_s1 + $0x104] ss:$16 sps:$4 sm:$0xff]   ;;  %v3084_v34 = vld [vmem:[%s4678_s1 + $0x100] ss:$16 sps:$4 sm:$0xff]  }
  0x12   :  { %v3082_v33 = vld [vmem:[%s4678_s1 + $0x304] ss:$16 sps:$4 sm:$0xff]   ;;  %v3085_v35 = vld [vmem:[%s4678_s1 + $0x300] ss:$16 sps:$4 sm:$0xff]  }
  0x13   :  { %1650 = vmatpush1.bf16.msra.mxu1 %v3060_v18  ;;  %v3086_v36 = vld [vmem:[%s4678_s1 + $0x124] ss:$16 sps:$4 sm:$0xff]   ;;  %v3090_v38 = vld [vmem:[%s4678_s1 + $0x120] ss:$16 sps:$4 sm:$0xff]  }
  0x14   :  { %1691 = vmatpush1.bf16.msra.mxu0 %v3061_v19  ;;  %1651 = vmatprep.subr.bf16.mxu1 %v3062_v20  ;;  %v3088_v37 = vld [vmem:[%s4678_s1 + $0x324] ss:$16 sps:$4 sm:$0xff]   ;;  %v3091_v39 = vld [vmem:[%s4678_s1 + $0x320] ss:$16 sps:$4 sm:$0xff]  }
  0x15   :  { %1692 = vmatprep.subr.bf16.mxu0 %v3064_v21  ;;  %v3092_v40 = vld [vmem:[%s4678_s1 + $0x144] ss:$16 sps:$4 sm:$0xff]   ;;  %v3096_v42 = vld [vmem:[%s4678_s1 + $0x140] ss:$16 sps:$4 sm:$0xff]   ;;  %v3133_v21 = vld [vmem:[%s4678_s1 + $0xc] ss:$16 sps:$4 sm:$0xff]  }
  0x16   :  { %v3094_v41 = vld [vmem:[%s4678_s1 + $0x344] ss:$16 sps:$4 sm:$0xff]   ;;  %v3097_v43 = vld [vmem:[%s4678_s1 + $0x340] ss:$16 sps:$4 sm:$0xff]  }
  0x17   :  { %1652 = vmatpush1.bf16.msra.mxu1 %v3066_v22  ;;  %v3098_v44 = vld [vmem:[%s4678_s1 + $0x164] ss:$16 sps:$4 sm:$0xff]   ;;  %v3102_v51 = vld [vmem:[%s4678_s1 + $0x160] ss:$16 sps:$4 sm:$0xff]  }
  0x18   :  { %1693 = vmatpush1.bf16.msra.mxu0 %v3067_v23  ;;  %1653 = vmatprep.subr.bf16.mxu1 %v3068_v24  ;;  %v3100_v45 = vld [vmem:[%s4678_s1 + $0x364] ss:$16 sps:$4 sm:$0xff]   ;;  %v3103_v52 = vld [vmem:[%s4678_s1 + $0x360] ss:$16 sps:$4 sm:$0xff]  }
  0x19   :  { %1694 = vmatprep.subr.bf16.mxu0 %v3070_v25  ;;  %v27_v46 = vld [vmem:[%s4679_s0] sm:$0xff] }
  0x1a   :  { %3528 = vtanh.f32 %v27_v46  ;;  %v3104_v53 = vld [vmem:[%s4678_s1 + $0x184] ss:$16 sps:$4 sm:$0xff]   ;;  %v3108_v57 = vld [vmem:[%s4678_s1 + $0x180] ss:$16 sps:$4 sm:$0xff]  }
  0x1b   :  { %1654 = vmatpush1.bf16.msra.mxu1 %v3072_v26  ;;  %v3106_v54 = vld [vmem:[%s4678_s1 + $0x384] ss:$16 sps:$4 sm:$0xff]   ;;  %3530 = vtanh.f32 %v28_v50  ;;  %v3109_v58 = vld [vmem:[%s4678_s1 + $0x380] ss:$16 sps:$4 sm:$0xff]   ;;  %v3131_v26 = vld [vmem:[%s4678_s1 + $0x8] ss:$16 sps:$4 sm:$0xff]  }
  0x1c   :  { %1695 = vmatpush1.bf16.msra.mxu0 %v3073_v27  ;;  %1655 = vmatprep.subr.bf16.mxu1 %v3074_v28  ;;  %v3110_v59 = vld [vmem:[%s4678_s1 + $0x1a4] ss:$16 sps:$4 sm:$0xff]   ;;  %v3114_v62 = vld [vmem:[%s4678_s1 + $0x1a0] ss:$16 sps:$4 sm:$0xff]   ;;  %v3139_v28 = vld [vmem:[%s4678_s1 + $0x2c] ss:$16 sps:$4 sm:$0xff]  }
  0x1d   :  { %1696 = vmatprep.subr.bf16.mxu0 %v3076_v29  ;;  %v3112_v60 = vld [vmem:[%s4678_s1 + $0x3a4] ss:$16 sps:$4 sm:$0xff]   ;;  %v3115_v63 = vld [vmem:[%s4678_s1 + $0x3a0] ss:$16 sps:$4 sm:$0xff]  }
  0x1e   :  { %v3116_v1 = vld [vmem:[%s4678_s1 + $0x1c4] ss:$16 sps:$4 sm:$0xff]   ;;  %v3120_v6 = vld [vmem:[%s4678_s1 + $0x1c0] ss:$16 sps:$4 sm:$0xff]  }
  0x1f   :  { %1656 = vmatpush1.bf16.msra.mxu1 %v3078_v30  ;;  %v3118_v2 = vld [vmem:[%s4678_s1 + $0x3c4] ss:$16 sps:$4 sm:$0xff]   ;;  %v3121_v7 = vld [vmem:[%s4678_s1 + $0x3c0] ss:$16 sps:$4 sm:$0xff]  }
  0x20   :  { %1697 = vmatpush1.bf16.msra.mxu0 %v3079_v31  ;;  %1657 = vmatprep.subr.bf16.mxu1 %v3080_v32  ;;  %v3122_v10 = vld [vmem:[%s4678_s1 + $0x1e4] ss:$16 sps:$4 sm:$0xff]   ;;  %v3126_v16 = vld [vmem:[%s4678_s1 + $0x1e0] ss:$16 sps:$4 sm:$0xff]   ;;  %v3137_v31 = vld [vmem:[%s4678_s1 + $0x28] ss:$16 sps:$4 sm:$0xff]  }
  0x21   :  { %1698 = vmatprep.subr.bf16.mxu0 %v3082_v33  ;;  %v3124_v11 = vld [vmem:[%s4678_s1 + $0x3e4] ss:$16 sps:$4 sm:$0xff]   ;;  %v3127_v17 = vld [vmem:[%s4678_s1 + $0x3e0] ss:$16 sps:$4 sm:$0xff]   ;;  %v3145_v33 = vld [vmem:[%s4678_s1 + $0x4c] ss:$16 sps:$4 sm:$0xff]  }
  0x22   :  { %v3130_v20 = vld [vmem:[%s4678_s1 + $0x404] ss:$16 sps:$4 sm:$0xff]   ;;  %v3128_v25 = vld [vmem:[%s4678_s1 + $0x400] ss:$16 sps:$4 sm:$0xff]  }
  0x23   :  { %1658 = vmatpush1.bf16.msra.mxu1 %v3084_v34  ;;  %v3136_v27 = vld [vmem:[%s4678_s1 + $0x424] ss:$16 sps:$4 sm:$0xff]   ;;  %v3134_v30 = vld [vmem:[%s4678_s1 + $0x420] ss:$16 sps:$4 sm:$0xff]  }
  0x24   :  { %1699 = vmatpush1.bf16.msra.mxu0 %v3085_v35  ;;  %1659 = vmatprep.subr.bf16.mxu1 %v3086_v36  ;;  %v3529_v0 = vpop.eup %3528  ;;  %v3142_v32 = vld [vmem:[%s4678_s1 + $0x444] ss:$16 sps:$4 sm:$0xff]   ;;  %v3140_v34 = vld [vmem:[%s4678_s1 + $0x440] ss:$16 sps:$4 sm:$0xff]   ;;  %v3143_v35 = vld [vmem:[%s4678_s1 + $0x48] ss:$16 sps:$4 sm:$0xff]  }
  0x25   :  { %1700 = vmatprep.subr.bf16.mxu0 %v3088_v37  ;;  %v40_v3 = vrot.slane %v3529_v0, %v39_v61  ;;  %v33_v4 = vcombine.high %v3529_v0, %v3529_v0  ;;  %v3531_v5 = vpop.eup %3530  ;;  %v3148_v36 = vld [vmem:[%s4678_s1 + $0x464] ss:$16 sps:$4 sm:$0xff]   ;;  %v3151_v37 = vld [vmem:[%s4678_s1 + $0x6c] ss:$16 sps:$4 sm:$0xff]   ;;  %v3158_v46 = vld [vmem:[%s4678_s1 + $0x4a0] ss:$16 sps:$4 sm:$0xff]  }
  0x26   :  { %v3780_v14 = vrot.slane %v3531_v5, %v39_v61  ;;  %v50_v15 = vcombine.high %v3531_v5, %v3531_v5  ;;  %v3166_v48 = vld [vmem:[%s4678_s1 + $0x4c4] ss:$16 sps:$4 sm:$0xff]   ;;  %v3164_v50 = vld [vmem:[%s4678_s1 + $0x4c0] ss:$16 sps:$4 sm:$0xff]   ;;  %v3185_v0 = vld [vmem:[%s4678_s1 + $0x128] ss:$16 sps:$4 sm:$0xff]  }
  0x27   :  { %1660 = vmatpush1.bf16.msra.mxu1 %v3090_v38  ;;  %v48_v8 = vcombine.high %v40_v3, %v40_v3  ;;  %v47_v9 = vrot.slane %v33_v4, %v39_v61  ;;  %v3801_v23 = vpack.c.bf16 %v40_v3, %v40_v3  ;;  %v3146_v38 = vld [vmem:[%s4678_s1 + $0x460] ss:$16 sps:$4 sm:$0xff]   ;;  %v3191_v4 = vld [vmem:[%s4678_s1 + $0x148] ss:$16 sps:$4 sm:$0xff]   ;;  %v3196_v5 = vld [vmem:[%s4678_s1 + $0x564] ss:$16 sps:$4 sm:$0xff]  }
  0x28   :  { %1701 = vmatpush1.bf16.msra.mxu0 %v3091_v39  ;;  %1661 = vmatprep.subr.bf16.mxu1 %v3092_v40  ;;  %v3790_v19 = vrot.slane %v50_v15, %v39_v61  ;;  %v65_v22 = vcombine.high %v3780_v14, %v3780_v14  ;;  %v3149_v39 = vld [vmem:[%s4678_s1 + $0x68] ss:$16 sps:$4 sm:$0xff]   ;;  %v3154_v40 = vld [vmem:[%s4678_s1 + $0x484] ss:$16 sps:$4 sm:$0xff]   ;;  %v3188_v3 = vld [vmem:[%s4678_s1 + $0x540] ss:$16 sps:$4 sm:$0xff]  }
  0x29   :  { %1702 = vmatprep.subr.bf16.mxu0 %v3094_v41  ;;  %v76_v12 = vpack.c.bf16 %v48_v8, %v48_v8  ;;  %v49_v13 = vcombine.high %v47_v9, %v47_v9  ;;  %v3803_v24 = vpack.c.bf16 %v47_v9, %v47_v9  ;;  %v3157_v41 = vld [vmem:[%s4678_s1 + $0x8c] ss:$16 sps:$4 sm:$0xff]   ;;  %v3184_v61 = vld [vmem:[%s4678_s1 + $0x524] ss:$16 sps:$4 sm:$0xff]   ;;  %v3197_v8 = vld [vmem:[%s4678_s1 + $0x168] ss:$16 sps:$4 sm:$0xff]  }
  0x2a   :  { %v3817_v29 = vpack.c.bf16 %v65_v22, %v65_v22  ;;  %v3202_v9 = vld [vmem:[%s4678_s1 + $0x584] ss:$16 sps:$4 sm:$0xff]   ;;  %v3211_v15 = vld [vmem:[%s4678_s1 + $0x1ac] ss:$16 sps:$4 sm:$0xff]   ;;  %v3212_v22 = vld [vmem:[%s4678_s1 + $0x5c0] ss:$16 sps:$4 sm:$0xff]  }
  0x2b   :  { %1662 = vmatpush1.bf16.msra.mxu1 %v3096_v42  ;;  %v3788_v18 = vpack.c.bf16 %v49_v13, %v49_v13  ;;  %1673 = vmatprep.mubr.bf16.mxu1 %v76_v12  ;;  %v3152_v42 = vld [vmem:[%s4678_s1 + $0x480] ss:$16 sps:$4 sm:$0xff]   ;;  %v3208_v13 = vld [vmem:[%s4678_s1 + $0x5a4] ss:$16 sps:$4 sm:$0xff]  }
  0x2c   :  { %1703 = vmatpush1.bf16.msra.mxu0 %v3097_v43  ;;  %1663 = vmatprep.subr.bf16.mxu1 %v3098_v44  ;;  %v3155_v43 = vld [vmem:[%s4678_s1 + $0x88] ss:$16 sps:$4 sm:$0xff]   ;;  %v3160_v44 = vld [vmem:[%s4678_s1 + $0x4a4] ss:$16 sps:$4 sm:$0xff]  }
  0x2d   :  { %1704 = vmatprep.subr.bf16.mxu0 %v3100_v45  ;;  %1714 = vmatprep.mubr.bf16.mxu0 %v3788_v18  ;;  %v3163_v45 = vld [vmem:[%s4678_s1 + $0xac] ss:$16 sps:$4 sm:$0xff]  }
  0x2f   :  { %1664 = vmatpush1.bf16.msra.mxu1 %v3102_v51  ;;  %v3167_v51 = vld [vmem:[%s4678_s1 + $0xc8] ss:$16 sps:$4 sm:$0xff]  }
  0x30   :  { %1705 = vmatpush1.bf16.msra.mxu0 %v3103_v52  ;;  %1665 = vmatprep.subr.bf16.mxu1 %v3104_v53  ;;  %v3172_v52 = vld [vmem:[%s4678_s1 + $0x4e4] ss:$16 sps:$4 sm:$0xff]   ;;  %v3175_v53 = vld [vmem:[%s4678_s1 + $0xec] ss:$16 sps:$4 sm:$0xff]  }
  0x31   :  { %1706 = vmatprep.subr.bf16.mxu0 %v3106_v54  ;;  %v3170_v54 = vld [vmem:[%s4678_s1 + $0x4e0] ss:$16 sps:$4 sm:$0xff]  }
  0x33   :  { %1666 = vmatpush1.bf16.msra.mxu1 %v3108_v57  ;;  %v3178_v57 = vld [vmem:[%s4678_s1 + $0x504] ss:$16 sps:$4 sm:$0xff]  }
  0x34   :  { %1707 = vmatpush1.bf16.msra.mxu0 %v3109_v58  ;;  %1667 = vmatprep.subr.bf16.mxu1 %v3110_v59  ;;  %v3181_v58 = vld [vmem:[%s4678_s1 + $0x10c] ss:$16 sps:$4 sm:$0xff]   ;;  %v3176_v59 = vld [vmem:[%s4678_s1 + $0x500] ss:$16 sps:$4 sm:$0xff]  }
  0x35   :  { %1708 = vmatprep.subr.bf16.mxu0 %v3112_v60  ;;  %v3179_v60 = vld [vmem:[%s4678_s1 + $0x108] ss:$16 sps:$4 sm:$0xff]  }
  0x37   :  { %1668 = vmatpush1.bf16.msra.mxu1 %v3114_v62  ;;  %v3187_v62 = vld [vmem:[%s4678_s1 + $0x12c] ss:$16 sps:$4 sm:$0xff]  }
  0x38   :  { %1709 = vmatpush1.bf16.msra.mxu0 %v3115_v63  ;;  %1669 = vmatprep.subr.bf16.mxu1 %v3116_v1  ;;  %v3182_v63 = vld [vmem:[%s4678_s1 + $0x520] ss:$16 sps:$4 sm:$0xff]   ;;  %v3190_v1 = vld [vmem:[%s4678_s1 + $0x544] ss:$16 sps:$4 sm:$0xff]  }
  0x39   :  { %1710 = vmatprep.subr.bf16.mxu0 %v3118_v2  ;;  %v3193_v2 = vld [vmem:[%s4678_s1 + $0x14c] ss:$16 sps:$4 sm:$0xff]  }
  0x3b   :  { %1670 = vmatpush1.bf16.msra.mxu1 %v3120_v6  ;;  %v3199_v6 = vld [vmem:[%s4678_s1 + $0x16c] ss:$16 sps:$4 sm:$0xff]  }
  0x3c   :  { %1711 = vmatpush1.bf16.msra.mxu0 %v3121_v7  ;;  %1671 = vmatprep.subr.bf16.mxu1 %v3122_v10  ;;  %v3194_v7 = vld [vmem:[%s4678_s1 + $0x560] ss:$16 sps:$4 sm:$0xff]   ;;  %v3205_v10 = vld [vmem:[%s4678_s1 + $0x18c] ss:$16 sps:$4 sm:$0xff]  }
  0x3d   :  { %1712 = vmatprep.subr.bf16.mxu0 %v3124_v11  ;;  %v3200_v11 = vld [vmem:[%s4678_s1 + $0x580] ss:$16 sps:$4 sm:$0xff]  }
  0x3f   :  { %1672 = vmatpush1.bf16.msra.mxu1 %v3126_v16  ;;  %v3206_v16 = vld [vmem:[%s4678_s1 + $0x5a0] ss:$16 sps:$4 sm:$0xff]  }
  0x40   :  { %1713 = vmatpush1.bf16.msra.mxu0 %v3127_v17  ;;  %1805 = vmatprep.subr.bf16.mxu1 %v3133_v21  ;;  %v3209_v17 = vld [vmem:[%s4678_s1 + $0x1a8] ss:$16 sps:$4 sm:$0xff]   ;;  %v3217_v21 = vld [vmem:[%s4678_s1 + $0x1cc] ss:$16 sps:$4 sm:$0xff]  }
  0x41   :  { %1723 = vmatprep.subr.bf16.mxu0 %v3130_v20  ;;  %v3214_v20 = vld [vmem:[%s4678_s1 + $0x5c4] ss:$16 sps:$4 sm:$0xff]  }
  0x42   :  { %1674 = vmatmul.mubr.bf16.vlgmr.msra.gmra.mrb[0].mxu1 %v3801_v23 }
  0x43   :  { %1715 = vmatmul.mubr.bf16.vlgmr.msra.gmra.mrb[0].mxu0 %v3803_v24  ;;  %1806 = vmatpush1.bf16.msra.mxu1 %v3131_v26  ;;  %v3220_v26 = vld [vmem:[%s4678_s1 + $0x5e4] ss:$16 sps:$4 sm:$0xff]  }
  0x44   :  { %1724 = vmatpush1.bf16.msra.mxu0 %v3128_v25  ;;  %1807 = vmatprep.subr.bf16.mxu1 %v3139_v28  ;;  %v3215_v25 = vld [vmem:[%s4678_s1 + $0x1c8] ss:$16 sps:$4 sm:$0xff]   ;;  %v3218_v28 = vld [vmem:[%s4678_s1 + $0x5e0] ss:$16 sps:$4 sm:$0xff]  }
  0x45   :  { %1725 = vmatprep.subr.bf16.mxu0 %v3136_v27  ;;  %1755 = vmatprep.mubr.bf16.mxu0 %v3817_v29  ;;  %v3223_v27 = vld [vmem:[%s4678_s1 + $0x1ec] ss:$16 sps:$4 sm:$0xff]  }
  0x46   :  { %1837 = vmatprep.mubr.bf16.mxu1 %v76_v12  ;;  %v3203_v12 = vld [vmem:[%s4678_s1 + $0x188] ss:$16 sps:$4 sm:$0xff]  }
  0x47   :  { %1808 = vmatpush1.bf16.msra.mxu1 %v3137_v31  ;;  %v3226_v31 = vld [vmem:[%s4678_s1 + $0x604] ss:$16 sps:$4 sm:$0xff]  }
  0x48   :  { %1726 = vmatpush1.bf16.msra.mxu0 %v3134_v30  ;;  %1809 = vmatprep.subr.bf16.mxu1 %v3145_v33  ;;  %v3221_v30 = vld [vmem:[%s4678_s1 + $0x1e8] ss:$16 sps:$4 sm:$0xff]   ;;  %v66_v33 = vcombine.high %v3790_v19, %v3790_v19 }
  0x49   :  { %1727 = vmatprep.subr.bf16.mxu0 %v3142_v32  ;;  %v3229_v32 = vld [vmem:[%s4678_s1 + $0x20c] ss:$16 sps:$4 sm:$0xff]  }
  0x4b   :  { %1810 = vmatpush1.bf16.msra.mxu1 %v3143_v35  ;;  %v3224_v35 = vld [vmem:[%s4678_s1 + $0x600] ss:$16 sps:$4 sm:$0xff]  }
  0x4c   :  { %1728 = vmatpush1.bf16.msra.mxu0 %v3140_v34  ;;  %1811 = vmatprep.subr.bf16.mxu1 %v3151_v37  ;;  %v4006_v34 = vpack.c.bf16 %v3780_v14, %v3780_v14  ;;  %v3232_v37 = vld [vmem:[%s4678_s1 + $0x624] ss:$16 sps:$4 sm:$0xff]   ;;  %v3235_v14 = vld [vmem:[%s4678_s1 + $0x22c] ss:$16 sps:$4 sm:$0xff]  }
  0x4d   :  { %1729 = vmatprep.subr.bf16.mxu0 %v3148_v36  ;;  %v3227_v36 = vld [vmem:[%s4678_s1 + $0x208] ss:$16 sps:$4 sm:$0xff]  }
  0x4f   :  { %1812 = vmatpush1.bf16.msra.mxu1 %v3149_v39  ;;  %v3230_v39 = vld [vmem:[%s4678_s1 + $0x620] ss:$16 sps:$4 sm:$0xff]  }
  0x50   :  { %1730 = vmatpush1.bf16.msra.mxu0 %v3146_v38  ;;  %1813 = vmatprep.subr.bf16.mxu1 %v3157_v41  ;;  %v4020_v38 = vpack.c.bf16 %v66_v33, %v66_v33  ;;  %v3238_v41 = vld [vmem:[%s4678_s1 + $0x644] ss:$16 sps:$4 sm:$0xff]   ;;  %v3311_v33 = vld [vmem:[%s4678_s1 + $0x3c8] ss:$16 sps:$4 sm:$0xff]  }
  0x51   :  { %1731 = vmatprep.subr.bf16.mxu0 %v3154_v40  ;;  %v3233_v40 = vld [vmem:[%s4678_s1 + $0x228] ss:$16 sps:$4 sm:$0xff]  }
  0x53   :  { %1814 = vmatpush1.bf16.msra.mxu1 %v3155_v43  ;;  %v3239_v43 = vld [vmem:[%s4678_s1 + $0x248] ss:$16 sps:$4 sm:$0xff]  }
  0x54   :  { %1732 = vmatpush1.bf16.msra.mxu0 %v3152_v42  ;;  %1815 = vmatprep.subr.bf16.mxu1 %v3163_v45  ;;  %v3236_v42 = vld [vmem:[%s4678_s1 + $0x640] ss:$16 sps:$4 sm:$0xff]  }
  0x55   :  { %1733 = vmatprep.subr.bf16.mxu0 %v3160_v44  ;;  %v3244_v44 = vld [vmem:[%s4678_s1 + $0x664] ss:$16 sps:$4 sm:$0xff]   ;;  %v3242_v45 = vld [vmem:[%s4678_s1 + $0x660] ss:$16 sps:$4 sm:$0xff]  }
  0x57   :  { %1816 = vmatpush1.bf16.msra.mxu1 %v3161_v47  ;;  %v3250_v47 = vld [vmem:[%s4678_s1 + $0x684] ss:$16 sps:$4 sm:$0xff]  }
  0x58   :  { %1734 = vmatpush1.bf16.msra.mxu0 %v3158_v46  ;;  %1817 = vmatprep.subr.bf16.mxu1 %v3169_v49  ;;  %v3245_v46 = vld [vmem:[%s4678_s1 + $0x268] ss:$16 sps:$4 sm:$0xff]   ;;  %v3248_v49 = vld [vmem:[%s4678_s1 + $0x680] ss:$16 sps:$4 sm:$0xff]  }
  0x59   :  { %1735 = vmatprep.subr.bf16.mxu0 %v3166_v48  ;;  %v3253_v48 = vld [vmem:[%s4678_s1 + $0x28c] ss:$16 sps:$4 sm:$0xff]  }
  0x5b   :  { %1818 = vmatpush1.bf16.msra.mxu1 %v3167_v51  ;;  %v3256_v51 = vld [vmem:[%s4678_s1 + $0x6a4] ss:$16 sps:$4 sm:$0xff]  }
  0x5c   :  { %1736 = vmatpush1.bf16.msra.mxu0 %v3164_v50  ;;  %1819 = vmatprep.subr.bf16.mxu1 %v3175_v53  ;;  %v3251_v50 = vld [vmem:[%s4678_s1 + $0x288] ss:$16 sps:$4 sm:$0xff]   ;;  %v3254_v53 = vld [vmem:[%s4678_s1 + $0x6a0] ss:$16 sps:$4 sm:$0xff]  }
  0x5d   :  { %1737 = vmatprep.subr.bf16.mxu0 %v3172_v52  ;;  %v3259_v52 = vld [vmem:[%s4678_s1 + $0x2ac] ss:$16 sps:$4 sm:$0xff]  }
  0x5f   :  { %1820 = vmatpush1.bf16.msra.mxu1 %v3173_v55  ;;  %v3262_v55 = vld [vmem:[%s4678_s1 + $0x6c4] ss:$16 sps:$4 sm:$0xff]  }
  0x60   :  { %1738 = vmatpush1.bf16.msra.mxu0 %v3170_v54  ;;  %1821 = vmatprep.subr.bf16.mxu1 %v3181_v58  ;;  %v3257_v54 = vld [vmem:[%s4678_s1 + $0x2a8] ss:$16 sps:$4 sm:$0xff]   ;;  %v3260_v58 = vld [vmem:[%s4678_s1 + $0x6c0] ss:$16 sps:$4 sm:$0xff]  }
  0x61   :  { %1739 = vmatprep.subr.bf16.mxu0 %v3178_v57  ;;  %v3265_v57 = vld [vmem:[%s4678_s1 + $0x2cc] ss:$16 sps:$4 sm:$0xff]  }
  0x63   :  { %1822 = vmatpush1.bf16.msra.mxu1 %v3179_v60  ;;  %v3268_v60 = vld [vmem:[%s4678_s1 + $0x6e4] ss:$16 sps:$4 sm:$0xff]  }
  0x64   :  { %1740 = vmatpush1.bf16.msra.mxu0 %v3176_v59  ;;  %1823 = vmatprep.subr.bf16.mxu1 %v3187_v62  ;;  %v3263_v59 = vld [vmem:[%s4678_s1 + $0x2c8] ss:$16 sps:$4 sm:$0xff]   ;;  %v3266_v62 = vld [vmem:[%s4678_s1 + $0x6e0] ss:$16 sps:$4 sm:$0xff]  }
  0x65   :  { %1741 = vmatprep.subr.bf16.mxu0 %v3184_v61  ;;  %v3271_v61 = vld [vmem:[%s4678_s1 + $0x2ec] ss:$16 sps:$4 sm:$0xff]  }
  0x67   :  { %1824 = vmatpush1.bf16.msra.mxu1 %v3185_v0  ;;  %v3274_v0 = vld [vmem:[%s4678_s1 + $0x704] ss:$16 sps:$4 sm:$0xff]  }
  0x68   :  { %1742 = vmatpush1.bf16.msra.mxu0 %v3182_v63  ;;  %1825 = vmatprep.subr.bf16.mxu1 %v3193_v2  ;;  %v3269_v63 = vld [vmem:[%s4678_s1 + $0x2e8] ss:$16 sps:$4 sm:$0xff]   ;;  %v3272_v2 = vld [vmem:[%s4678_s1 + $0x700] ss:$16 sps:$4 sm:$0xff]  }
  0x69   :  { %1743 = vmatprep.subr.bf16.mxu0 %v3190_v1  ;;  %v3277_v1 = vld [vmem:[%s4678_s1 + $0x30c] ss:$16 sps:$4 sm:$0xff]  }
  0x6b   :  { %1826 = vmatpush1.bf16.msra.mxu1 %v3191_v4  ;;  %v3280_v4 = vld [vmem:[%s4678_s1 + $0x724] ss:$16 sps:$4 sm:$0xff]  }
  0x6c   :  { %1744 = vmatpush1.bf16.msra.mxu0 %v3188_v3  ;;  %1827 = vmatprep.subr.bf16.mxu1 %v3199_v6  ;;  %v3275_v3 = vld [vmem:[%s4678_s1 + $0x308] ss:$16 sps:$4 sm:$0xff]   ;;  %v3278_v6 = vld [vmem:[%s4678_s1 + $0x720] ss:$16 sps:$4 sm:$0xff]  }
  0x6d   :  { %1745 = vmatprep.subr.bf16.mxu0 %v3196_v5  ;;  %v3283_v5 = vld [vmem:[%s4678_s1 + $0x32c] ss:$16 sps:$4 sm:$0xff]  }
  0x6f   :  { %1828 = vmatpush1.bf16.msra.mxu1 %v3197_v8  ;;  %v3286_v8 = vld [vmem:[%s4678_s1 + $0x744] ss:$16 sps:$4 sm:$0xff]  }
  0x70   :  { %1746 = vmatpush1.bf16.msra.mxu0 %v3194_v7  ;;  %1829 = vmatprep.subr.bf16.mxu1 %v3205_v10  ;;  %v3281_v7 = vld [vmem:[%s4678_s1 + $0x328] ss:$16 sps:$4 sm:$0xff]   ;;  %v3284_v10 = vld [vmem:[%s4678_s1 + $0x740] ss:$16 sps:$4 sm:$0xff]  }
  0x71   :  { %1747 = vmatprep.subr.bf16.mxu0 %v3202_v9  ;;  %v3289_v9 = vld [vmem:[%s4678_s1 + $0x34c] ss:$16 sps:$4 sm:$0xff]  }
  0x73   :  { %1830 = vmatpush1.bf16.msra.mxu1 %v3203_v12  ;;  %v3292_v12 = vld [vmem:[%s4678_s1 + $0x764] ss:$16 sps:$4 sm:$0xff]  }
  0x74   :  { %1748 = vmatpush1.bf16.msra.mxu0 %v3200_v11  ;;  %1831 = vmatprep.subr.bf16.mxu1 %v3211_v15  ;;  %v3287_v11 = vld [vmem:[%s4678_s1 + $0x348] ss:$16 sps:$4 sm:$0xff]   ;;  %v3290_v15 = vld [vmem:[%s4678_s1 + $0x760] ss:$16 sps:$4 sm:$0xff]  }
  0x75   :  { %1749 = vmatprep.subr.bf16.mxu0 %v3208_v13  ;;  %v3295_v13 = vld [vmem:[%s4678_s1 + $0x36c] ss:$16 sps:$4 sm:$0xff]  }
  0x77   :  { %1832 = vmatpush1.bf16.msra.mxu1 %v3209_v17  ;;  %v3298_v17 = vld [vmem:[%s4678_s1 + $0x784] ss:$16 sps:$4 sm:$0xff]  }
  0x78   :  { %1750 = vmatpush1.bf16.msra.mxu0 %v3206_v16  ;;  %1833 = vmatprep.subr.bf16.mxu1 %v3217_v21  ;;  %v3293_v16 = vld [vmem:[%s4678_s1 + $0x368] ss:$16 sps:$4 sm:$0xff]   ;;  %v3296_v21 = vld [vmem:[%s4678_s1 + $0x780] ss:$16 sps:$4 sm:$0xff]  }
  0x79   :  { %1751 = vmatprep.subr.bf16.mxu0 %v3214_v20  ;;  %v3301_v20 = vld [vmem:[%s4678_s1 + $0x38c] ss:$16 sps:$4 sm:$0xff]  }
  0x7b   :  { %1834 = vmatpush1.bf16.msra.mxu1 %v3215_v25  ;;  %v3304_v25 = vld [vmem:[%s4678_s1 + $0x7a4] ss:$16 sps:$4 sm:$0xff]  }
  0x7c   :  { %1752 = vmatpush1.bf16.msra.mxu0 %v3212_v22  ;;  %1835 = vmatprep.subr.bf16.mxu1 %v3223_v27  ;;  %v3299_v22 = vld [vmem:[%s4678_s1 + $0x388] ss:$16 sps:$4 sm:$0xff]   ;;  %v3302_v27 = vld [vmem:[%s4678_s1 + $0x7a0] ss:$16 sps:$4 sm:$0xff]  }
  0x7d   :  { %1753 = vmatprep.subr.bf16.mxu0 %v3220_v26  ;;  %v3307_v26 = vld [vmem:[%s4678_s1 + $0x3ac] ss:$16 sps:$4 sm:$0xff]  }
  0x7f   :  { %1836 = vmatpush1.bf16.msra.mxu1 %v3221_v30  ;;  %v3310_v30 = vld [vmem:[%s4678_s1 + $0x7c4] ss:$16 sps:$4 sm:$0xff]  }
  0x80   :  { %1754 = vmatpush1.bf16.msra.mxu0 %v3218_v28  ;;  %1846 = vmatprep.subr.bf16.mxu1 %v3229_v32  ;;  %v3305_v28 = vld [vmem:[%s4678_s1 + $0x3a8] ss:$16 sps:$4 sm:$0xff]   ;;  %v3308_v32 = vld [vmem:[%s4678_s1 + $0x7c0] ss:$16 sps:$4 sm:$0xff]  }
  0x81   :  { %1764 = vmatprep.subr.bf16.mxu0 %v3226_v31  ;;  %v3313_v31 = vld [vmem:[%s4678_s1 + $0x3cc] ss:$16 sps:$4 sm:$0xff]  }
  0x82   :  { %1838 = vmatmul.mubr.bf16.vlgmr.msra.gmra.mrb[4].mxu1 %v3801_v23  ;;  %v3241_v23 = vld [vmem:[%s4678_s1 + $0x24c] ss:$16 sps:$4 sm:$0xff]  }
  0x83   :  { %1756 = vmatmul.mubr.bf16.vlgmr.msra.gmra.mrb[0].mxu0 %v4006_v34  ;;  %1847 = vmatpush1.bf16.msra.mxu1 %v3227_v36  ;;  %v3319_v36 = vld [vmem:[%s4678_s1 + $0x3ec] ss:$16 sps:$4 sm:$0xff]  }
  0x84   :  { %1765 = vmatpush1.bf16.msra.mxu0 %v3224_v35  ;;  %1848 = vmatprep.subr.bf16.mxu1 %v3235_v14  ;;  %v3316_v35 = vld [vmem:[%s4678_s1 + $0x7e4] ss:$16 sps:$4 sm:$0xff]   ;;  %v3317_v14 = vld [vmem:[%s4678_s1 + $0x3e8] ss:$16 sps:$4 sm:$0xff]  }
  0x85   :  { %1766 = vmatprep.subr.bf16.mxu0 %v3232_v37  ;;  %1796 = vmatprep.mubr.bf16.mxu0 %v4020_v38  ;;  %v3314_v37 = vld [vmem:[%s4678_s1 + $0x7e0] ss:$16 sps:$4 sm:$0xff]  }
  0x86   :  { %1878 = vmatprep.mubr.bf16.mxu1 %v3788_v18  ;;  %v3247_v18 = vld [vmem:[%s4678_s1 + $0x26c] ss:$16 sps:$4 sm:$0xff]  }
  0x87   :  { %1849 = vmatpush1.bf16.msra.mxu1 %v3233_v40  ;;  %v4205_v40 = vpack.c.bf16 %v3790_v19, %v3790_v19  ;;  %v3323_v19 = vld [vmem:[%s4678_s1 + $0x428] ss:$16 sps:$4 sm:$0xff]  }
  0x88   :  { %1767 = vmatpush1.bf16.msra.mxu0 %v3230_v39  ;;  %1850 = vmatprep.subr.bf16.mxu1 %v3241_v23  ;;  %v3322_v39 = vld [vmem:[%s4678_s1 + $0x40c] ss:$16 sps:$4 sm:$0xff]  }
  0x89   :  { %1768 = vmatprep.subr.bf16.mxu0 %v3238_v41  ;;  %v3320_v41 = vld [vmem:[%s4678_s1 + $0x408] ss:$16 sps:$4 sm:$0xff]   ;;  %v3325_v23 = vld [vmem:[%s4678_s1 + $0x42c] ss:$16 sps:$4 sm:$0xff]  }
  0x8b   :  { %1851 = vmatpush1.bf16.msra.mxu1 %v3239_v43  ;;  %v3416_v43 = vld [vmem:[%s4680_s3] ss:$8 sps:$4 sm:$0xff]  }
  0x8c   :  { %1769 = vmatpush1.bf16.msra.mxu0 %v3236_v42  ;;  %1852 = vmatprep.subr.bf16.mxu1 %v3247_v18  ;;  %v3328_v42 = vld [vmem:[%s4678_s1 + $0x44c] ss:$16 sps:$4 sm:$0xff]   ;;  %v3326_v18 = vld [vmem:[%s4678_s1 + $0x448] ss:$16 sps:$4 sm:$0xff]  }
  0x8d   :  { %1770 = vmatprep.subr.bf16.mxu0 %v3244_v44  ;;  %v3421_v44 = vld [vmem:[%s4680_s3 + $0x14] ss:$8 sps:$4 sm:$0xff]  }
  0x8f   :  { %1853 = vmatpush1.bf16.msra.mxu1 %v3245_v46  ;;  %v3424_v46 = vld [vmem:[%s4680_s3 + $0x24] ss:$8 sps:$4 sm:$0xff]  }
  0x90   :  { %1771 = vmatpush1.bf16.msra.mxu0 %v3242_v45  ;;  %1854 = vmatprep.subr.bf16.mxu1 %v3253_v48  ;;  %v3419_v45 = vld [vmem:[%s4680_s3 + $0x10] ss:$8 sps:$4 sm:$0xff]   ;;  %v3334_v48 = vld [vmem:[%s4678_s1 + $0x48c] ss:$16 sps:$4 sm:$0xff]  }
  0x91   :  { %1772 = vmatprep.subr.bf16.mxu0 %v3250_v47  ;;  %v3329_v47 = vld [vmem:[%s4678_s1 + $0x468] ss:$16 sps:$4 sm:$0xff]  }
  0x93   :  { %1855 = vmatpush1.bf16.msra.mxu1 %v3251_v50  ;;  %v3427_v50 = vld [vmem:[%s4680_s3 + $0x34] ss:$8 sps:$4 sm:$0xff]  }
  0x94   :  { %1773 = vmatpush1.bf16.msra.mxu0 %v3248_v49  ;;  %1856 = vmatprep.subr.bf16.mxu1 %v3259_v52  ;;  %v3422_v49 = vld [vmem:[%s4680_s3 + $0x20] ss:$8 sps:$4 sm:$0xff]   ;;  %v3337_v52 = vld [vmem:[%s4678_s1 + $0x4ac] ss:$16 sps:$4 sm:$0xff]  }
  0x95   :  { %1774 = vmatprep.subr.bf16.mxu0 %v3256_v51  ;;  %v3332_v51 = vld [vmem:[%s4678_s1 + $0x488] ss:$16 sps:$4 sm:$0xff]  }
  0x97   :  { %1857 = vmatpush1.bf16.msra.mxu1 %v3257_v54  ;;  %v3430_v54 = vld [vmem:[%s4680_s3 + $0x44] ss:$8 sps:$4 sm:$0xff]  }
  0x98   :  { %1775 = vmatpush1.bf16.msra.mxu0 %v3254_v53  ;;  %1858 = vmatprep.subr.bf16.mxu1 %v3265_v57  ;;  %v3425_v53 = vld [vmem:[%s4680_s3 + $0x30] ss:$8 sps:$4 sm:$0xff]   ;;  %v3340_v57 = vld [vmem:[%s4678_s1 + $0x4cc] ss:$16 sps:$4 sm:$0xff]  }
  0x99   :  { %1776 = vmatprep.subr.bf16.mxu0 %v3262_v55  ;;  %v3335_v55 = vld [vmem:[%s4678_s1 + $0x4a8] ss:$16 sps:$4 sm:$0xff]  }
  0x9b   :  { %1859 = vmatpush1.bf16.msra.mxu1 %v3263_v59  ;;  %v3433_v59 = vld [vmem:[%s4680_s3 + $0x54] ss:$8 sps:$4 sm:$0xff]  }
  0x9c   :  { %1777 = vmatpush1.bf16.msra.mxu0 %v3260_v58  ;;  %1860 = vmatprep.subr.bf16.mxu1 %v3271_v61  ;;  %v3428_v58 = vld [vmem:[%s4680_s3 + $0x40] ss:$8 sps:$4 sm:$0xff]   ;;  %v3431_v61 = vld [vmem:[%s4680_s3 + $0x50] ss:$8 sps:$4 sm:$0xff]  }
  0x9d   :  { %1778 = vmatprep.subr.bf16.mxu0 %v3268_v60  ;;  %v3338_v60 = vld [vmem:[%s4678_s1 + $0x4c8] ss:$16 sps:$4 sm:$0xff]  }
  0x9f   :  { %1861 = vmatpush1.bf16.msra.mxu1 %v3269_v63  ;;  %v3436_v63 = vld [vmem:[%s4680_s3 + $0x64] ss:$8 sps:$4 sm:$0xff]  }
  0xa0   :  { %1779 = vmatpush1.bf16.msra.mxu0 %v3266_v62  ;;  %1862 = vmatprep.subr.bf16.mxu1 %v3277_v1  ;;  %v3343_v62 = vld [vmem:[%s4678_s1 + $0x4ec] ss:$16 sps:$4 sm:$0xff]   ;;  %v3434_v1 = vld [vmem:[%s4680_s3 + $0x60] ss:$8 sps:$4 sm:$0xff]  }
  0xa1   :  { %1780 = vmatprep.subr.bf16.mxu0 %v3274_v0  ;;  %v3341_v0 = vld [vmem:[%s4678_s1 + $0x4e8] ss:$16 sps:$4 sm:$0xff]  }
  0xa3   :  { %1863 = vmatpush1.bf16.msra.mxu1 %v3275_v3  ;;  %v3439_v3 = vld [vmem:[%s4680_s3 + $0x74] ss:$8 sps:$4 sm:$0xff]  }
  0xa4   :  { %1781 = vmatpush1.bf16.msra.mxu0 %v3272_v2  ;;  %1864 = vmatprep.subr.bf16.mxu1 %v3283_v5  ;;  %v3346_v2 = vld [vmem:[%s4678_s1 + $0x50c] ss:$16 sps:$4 sm:$0xff]   ;;  %v3437_v5 = vld [vmem:[%s4680_s3 + $0x70] ss:$8 sps:$4 sm:$0xff]  }
  0xa5   :  { %1782 = vmatprep.subr.bf16.mxu0 %v3280_v4  ;;  %v3344_v4 = vld [vmem:[%s4678_s1 + $0x508] ss:$16 sps:$4 sm:$0xff]  }
  0xa7   :  { %1865 = vmatpush1.bf16.msra.mxu1 %v3281_v7  ;;  %v3442_v7 = vld [vmem:[%s4680_s3 + $0x84] ss:$8 sps:$4 sm:$0xff]  }
  0xa8   :  { %1783 = vmatpush1.bf16.msra.mxu0 %v3278_v6  ;;  %1866 = vmatprep.subr.bf16.mxu1 %v3289_v9  ;;  %v3349_v6 = vld [vmem:[%s4678_s1 + $0x52c] ss:$16 sps:$4 sm:$0xff]   ;;  %v3440_v9 = vld [vmem:[%s4680_s3 + $0x80] ss:$8 sps:$4 sm:$0xff]  }
  0xa9   :  { %1784 = vmatprep.subr.bf16.mxu0 %v3286_v8  ;;  %v3347_v8 = vld [vmem:[%s4678_s1 + $0x528] ss:$16 sps:$4 sm:$0xff]  }
  0xab   :  { %1867 = vmatpush1.bf16.msra.mxu1 %v3287_v11  ;;  %v3445_v11 = vld [vmem:[%s4680_s3 + $0x94] ss:$8 sps:$4 sm:$0xff]  }
  0xac   :  { %1785 = vmatpush1.bf16.msra.mxu0 %v3284_v10  ;;  %1868 = vmatprep.subr.bf16.mxu1 %v3295_v13  ;;  %v3352_v10 = vld [vmem:[%s4678_s1 + $0x54c] ss:$16 sps:$4 sm:$0xff]   ;;  %v3443_v13 = vld [vmem:[%s4680_s3 + $0x90] ss:$8 sps:$4 sm:$0xff]  }
  0xad   :  { %1786 = vmatprep.subr.bf16.mxu0 %v3292_v12  ;;  %v3350_v12 = vld [vmem:[%s4678_s1 + $0x548] ss:$16 sps:$4 sm:$0xff]  }
  0xaf   :  { %1869 = vmatpush1.bf16.msra.mxu1 %v3293_v16  ;;  %v3448_v16 = vld [vmem:[%s4680_s3 + $0xa4] ss:$8 sps:$4 sm:$0xff]  }
  0xb0   :  { %1787 = vmatpush1.bf16.msra.mxu0 %v3290_v15  ;;  %1870 = vmatprep.subr.bf16.mxu1 %v3301_v20  ;;  %v3355_v15 = vld [vmem:[%s4678_s1 + $0x56c] ss:$16 sps:$4 sm:$0xff]   ;;  %v3446_v20 = vld [vmem:[%s4680_s3 + $0xa0] ss:$8 sps:$4 sm:$0xff]  }
  0xb1   :  { %1788 = vmatprep.subr.bf16.mxu0 %v3298_v17  ;;  %v3353_v17 = vld [vmem:[%s4678_s1 + $0x568] ss:$16 sps:$4 sm:$0xff]  }
  0xb3   :  { %1871 = vmatpush1.bf16.msra.mxu1 %v3299_v22  ;;  %v3451_v22 = vld [vmem:[%s4680_s3 + $0xb4] ss:$8 sps:$4 sm:$0xff]  }
  0xb4   :  { %1789 = vmatpush1.bf16.msra.mxu0 %v3296_v21  ;;  %1872 = vmatprep.subr.bf16.mxu1 %v3307_v26  ;;  %v3358_v21 = vld [vmem:[%s4678_s1 + $0x58c] ss:$16 sps:$4 sm:$0xff]   ;;  %v3449_v26 = vld [vmem:[%s4680_s3 + $0xb0] ss:$8 sps:$4 sm:$0xff]  }
  0xb5   :  { %1790 = vmatprep.subr.bf16.mxu0 %v3304_v25  ;;  %v3356_v25 = vld [vmem:[%s4678_s1 + $0x588] ss:$16 sps:$4 sm:$0xff]  }
  0xb7   :  { %1873 = vmatpush1.bf16.msra.mxu1 %v3305_v28  ;;  %v3359_v28 = vld [vmem:[%s4678_s1 + $0x5a8] ss:$16 sps:$4 sm:$0xff]  }
  0xb8   :  { %1791 = vmatpush1.bf16.msra.mxu0 %v3302_v27  ;;  %1874 = vmatprep.subr.bf16.mxu1 %v3313_v31  ;;  %v3361_v27 = vld [vmem:[%s4678_s1 + $0x5ac] ss:$16 sps:$4 sm:$0xff]   ;;  %v3362_v31 = vld [vmem:[%s4678_s1 + $0x5c8] ss:$16 sps:$4 sm:$0xff]  }
  0xb9   :  { %1792 = vmatprep.subr.bf16.mxu0 %v3310_v30  ;;  %v3364_v30 = vld [vmem:[%s4678_s1 + $0x5cc] ss:$16 sps:$4 sm:$0xff]  }
  0xbb   :  { %1875 = vmatpush1.bf16.msra.mxu1 %v3311_v33  ;;  %v3365_v33 = vld [vmem:[%s4678_s1 + $0x5e8] ss:$16 sps:$4 sm:$0xff]  }
  0xbc   :  { %1793 = vmatpush1.bf16.msra.mxu0 %v3308_v32  ;;  %1876 = vmatprep.subr.bf16.mxu1 %v3319_v36  ;;  %v3367_v32 = vld [vmem:[%s4678_s1 + $0x5ec] ss:$16 sps:$4 sm:$0xff]   ;;  %v3368_v36 = vld [vmem:[%s4678_s1 + $0x608] ss:$16 sps:$4 sm:$0xff]  }
  0xbd   :  { %1794 = vmatprep.subr.bf16.mxu0 %v3316_v35  ;;  %v3370_v35 = vld [vmem:[%s4678_s1 + $0x60c] ss:$16 sps:$4 sm:$0xff]  }
  0xbf   :  { %1877 = vmatpush1.bf16.msra.mxu1 %v3317_v14  ;;  %v3371_v14 = vld [vmem:[%s4678_s1 + $0x628] ss:$16 sps:$4 sm:$0xff]  }
  0xc0   :  { %1795 = vmatpush1.bf16.msra.mxu0 %v3314_v37  ;;  %1887 = vmatprep.subr.bf16.mxu1 %v3322_v39  ;;  %v3373_v37 = vld [vmem:[%s4678_s1 + $0x62c] ss:$16 sps:$4 sm:$0xff]  }
  0xc1   :  { %v3376_v39 = vld [vmem:[%s4678_s1 + $0x64c] ss:$16 sps:$4 sm:$0xff]  }
  0xc2   :  { %1879 = vmatmul.mubr.bf16.vlgmr.msra.gmra.mrb[4].mxu1 %v3803_v24  ;;  %v3418_v24 = vld [vmem:[%s4680_s3 + $0x4] ss:$8 sps:$4 sm:$0xff]  }
  0xc3   :  { %1797 = vmatmul.mubr.bf16.vlgmr.msra.gmra.mrb[0].mxu0 %v4205_v40  ;;  %1888 = vmatpush1.bf16.msra.mxu1 %v3320_v41  ;;  %v3374_v41 = vld [vmem:[%s4678_s1 + $0x648] ss:$16 sps:$4 sm:$0xff]  }
  0xc4   :  { %1919 = vmatprep.mubr.bf16.mxu1 %v3817_v29  ;;  %1889 = vmatprep.subr.bf16.mxu1 %v3325_v23  ;;  %v3331_v29 = vld [vmem:[%s4678_s1 + $0x46c] ss:$16 sps:$4 sm:$0xff]  }
  0xc5   :  { %2373 = vmatprep.subr.bf16.mxu0 %v3418_v24  ;;  %v3382_v23 = vld [vmem:[%s4678_s1 + $0x68c] ss:$16 sps:$4 sm:$0xff]  }
  0xc6   :  { %2374 = vmatpush1.bf16.msra.mxu0 %v3416_v43  ;;  %v3383_v43 = vld [vmem:[%s4678_s1 + $0x6a8] ss:$16 sps:$4 sm:$0xff]   ;;  %v3388_v24 = vld [vmem:[%s4678_s1 + $0x6cc] ss:$16 sps:$4 sm:$0xff]  }
  0xc7   :  { %1890 = vmatpush1.bf16.msra.mxu1 %v3323_v19  ;;  %2375 = vmatprep.subr.bf16.mxu0 %v3421_v44  ;;  %v3380_v19 = vld [vmem:[%s4678_s1 + $0x688] ss:$16 sps:$4 sm:$0xff]  }
  0xc8   :  { %1891 = vmatprep.subr.bf16.mxu1 %v3328_v42  ;;  %v3385_v42 = vld [vmem:[%s4678_s1 + $0x6ac] ss:$16 sps:$4 sm:$0xff]  }
  0xca   :  { %2376 = vmatpush1.bf16.msra.mxu0 %v3419_v45  ;;  %v3452_v45 = vld [vmem:[%s4680_s3 + $0xc0] ss:$8 sps:$4 sm:$0xff]  }
  0xcb   :  { %1892 = vmatpush1.bf16.msra.mxu1 %v3326_v18  ;;  %2377 = vmatprep.subr.bf16.mxu0 %v3424_v46  ;;  %v3454_v18 = vld [vmem:[%s4680_s3 + $0xc4] ss:$8 sps:$4 sm:$0xff]  }
  0xcc   :  { %1893 = vmatprep.subr.bf16.mxu1 %v3331_v29 }
  0xce   :  { %2378 = vmatpush1.bf16.msra.mxu0 %v3422_v49  ;;  %v3391_v49 = vld [vmem:[%s4678_s1 + $0x6ec] ss:$16 sps:$4 sm:$0xff]  }
  0xcf   :  { %1894 = vmatpush1.bf16.msra.mxu1 %v3329_v47  ;;  %2379 = vmatprep.subr.bf16.mxu0 %v3427_v50  ;;  %v3386_v47 = vld [vmem:[%s4678_s1 + $0x6c8] ss:$16 sps:$4 sm:$0xff]   ;;  %v3457_v50 = vld [vmem:[%s4680_s3 + $0xd4] ss:$8 sps:$4 sm:$0xff]  }
  0xd0   :  { %1895 = vmatprep.subr.bf16.mxu1 %v3334_v48 }
  0xd2   :  { %2380 = vmatpush1.bf16.msra.mxu0 %v3425_v53  ;;  %v3394_v53 = vld [vmem:[%s4678_s1 + $0x70c] ss:$16 sps:$4 sm:$0xff]  }
  0xd3   :  { %1896 = vmatpush1.bf16.msra.mxu1 %v3332_v51  ;;  %2381 = vmatprep.subr.bf16.mxu0 %v3430_v54  ;;  %v3455_v51 = vld [vmem:[%s4680_s3 + $0xd0] ss:$8 sps:$4 sm:$0xff]   ;;  %v3460_v54 = vld [vmem:[%s4680_s3 + $0xe4] ss:$8 sps:$4 sm:$0xff]  }
  0xd4   :  { %1897 = vmatprep.subr.bf16.mxu1 %v3337_v52  ;;  %v3389_v52 = vld [vmem:[%s4678_s1 + $0x6e8] ss:$16 sps:$4 sm:$0xff]  }
  0xd6   :  { %2382 = vmatpush1.bf16.msra.mxu0 %v3428_v58  ;;  %v3397_v58 = vld [vmem:[%s4678_s1 + $0x72c] ss:$16 sps:$4 sm:$0xff]  }
  0xd7   :  { %1898 = vmatpush1.bf16.msra.mxu1 %v3335_v55  ;;  %2383 = vmatprep.subr.bf16.mxu0 %v3433_v59  ;;  %v3458_v55 = vld [vmem:[%s4680_s3 + $0xe0] ss:$8 sps:$4 sm:$0xff]   ;;  %v3463_v59 = vld [vmem:[%s4680_s3 + $0xf4] ss:$8 sps:$4 sm:$0xff]  }
  0xd8   :  { %1899 = vmatprep.subr.bf16.mxu1 %v3340_v57  ;;  %v3392_v57 = vld [vmem:[%s4678_s1 + $0x708] ss:$16 sps:$4 sm:$0xff]  }
  0xda   :  { %2384 = vmatpush1.bf16.msra.mxu0 %v3431_v61  ;;  %v3395_v61 = vld [vmem:[%s4678_s1 + $0x728] ss:$16 sps:$4 sm:$0xff]  }
  0xdb   :  { %1900 = vmatpush1.bf16.msra.mxu1 %v3338_v60  ;;  %2385 = vmatprep.subr.bf16.mxu0 %v3436_v63  ;;  %v3461_v60 = vld [vmem:[%s4680_s3 + $0xf0] ss:$8 sps:$4 sm:$0xff]  }
  0xdc   :  { %1901 = vmatprep.subr.bf16.mxu1 %v3343_v62  ;;  %v3400_v62 = vld [vmem:[%s4678_s1 + $0x74c] ss:$16 sps:$4 sm:$0xff]   ;;  %v3398_v63 = vld [vmem:[%s4678_s1 + $0x748] ss:$16 sps:$4 sm:$0xff]  }
  0xde   :  { %2386 = vmatpush1.bf16.msra.mxu0 %v3434_v1  ;;  %v3403_v1 = vld [vmem:[%s4678_s1 + $0x76c] ss:$16 sps:$4 sm:$0xff]  }
  0xdf   :  { %1902 = vmatpush1.bf16.msra.mxu1 %v3341_v0  ;;  %2387 = vmatprep.subr.bf16.mxu0 %v3439_v3  ;;  %v3466_v0 = vld [vmem:[%s4680_s3 + $0x104] ss:$8 sps:$4 sm:$0xff]  }
  0xe0   :  { %1903 = vmatprep.subr.bf16.mxu1 %v3346_v2  ;;  %v3401_v2 = vld [vmem:[%s4678_s1 + $0x768] ss:$16 sps:$4 sm:$0xff]   ;;  %v3406_v3 = vld [vmem:[%s4678_s1 + $0x78c] ss:$16 sps:$4 sm:$0xff]  }
  0xe2   :  { %2388 = vmatpush1.bf16.msra.mxu0 %v3437_v5  ;;  %v3409_v5 = vld [vmem:[%s4678_s1 + $0x7ac] ss:$16 sps:$4 sm:$0xff]  }
  0xe3   :  { %1904 = vmatpush1.bf16.msra.mxu1 %v3344_v4  ;;  %2389 = vmatprep.subr.bf16.mxu0 %v3442_v7  ;;  %v3404_v4 = vld [vmem:[%s4678_s1 + $0x788] ss:$16 sps:$4 sm:$0xff]   ;;  %v3412_v7 = vld [vmem:[%s4678_s1 + $0x7cc] ss:$16 sps:$4 sm:$0xff]  }
  0xe4   :  { %1905 = vmatprep.subr.bf16.mxu1 %v3349_v6  ;;  %v3407_v6 = vld [vmem:[%s4678_s1 + $0x7a8] ss:$16 sps:$4 sm:$0xff]  }
  0xe6   :  { %2390 = vmatpush1.bf16.msra.mxu0 %v3440_v9  ;;  %v3415_v9 = vld [vmem:[%s4678_s1 + $0x7ec] ss:$16 sps:$4 sm:$0xff]  }
  0xe7   :  { %1906 = vmatpush1.bf16.msra.mxu1 %v3347_v8  ;;  %2391 = vmatprep.subr.bf16.mxu0 %v3445_v11  ;;  %v3410_v8 = vld [vmem:[%s4678_s1 + $0x7c8] ss:$16 sps:$4 sm:$0xff]   ;;  %v343_v11 = vsub.s32 0, %v3741_v56 }
  0xe8   :  { %1907 = vmatprep.subr.bf16.mxu1 %v3352_v10  ;;  %v3413_v10 = vld [vmem:[%s4678_s1 + $0x7e8] ss:$16 sps:$4 sm:$0xff]  }
  0xea   :  { %2392 = vmatpush1.bf16.msra.mxu0 %v3443_v13  ;;  %v347_v13 = vsub.s32 1, %v3741_v56 }
  0xeb   :  { %1908 = vmatpush1.bf16.msra.mxu1 %v3350_v12  ;;  %2393 = vmatprep.subr.bf16.mxu0 %v3448_v16  ;;  %v4509_v12 = vld [vmem:[%s4681_s2] sm:$0xf] }
  0xec   :  { %1909 = vmatprep.subr.bf16.mxu1 %v3355_v15  ;;  %v344_v15 = vrot.slane %v4509_v12, %v343_v11  ;;  %v348_v16 = vrot.slane %v4509_v12, %v347_v13 }
  0xee   :  { %2394 = vmatpush1.bf16.msra.mxu0 %v3446_v20 }
  0xef   :  { %1910 = vmatpush1.bf16.msra.mxu1 %v3353_v17  ;;  %2395 = vmatprep.subr.bf16.mxu0 %v3451_v22 }
  0xf0   :  { %1911 = vmatprep.subr.bf16.mxu1 %v3358_v21 }
  0xf2   :  { %2396 = vmatpush1.bf16.msra.mxu0 %v3449_v26 }
  0xf3   :  { %1912 = vmatpush1.bf16.msra.mxu1 %v3356_v25  ;;  %2397 = vmatprep.subr.bf16.mxu0 %v3454_v18  ;;  %v3519_v18 = vld [vmem:[%s4682_s5 + $0x18] sm:$0xff]  }
  0xf4   :  { %1913 = vmatprep.subr.bf16.mxu1 %v3361_v27 }
  0xf6   :  { %2398 = vmatpush1.bf16.msra.mxu0 %v3452_v45  ;;  %v3481_v45 = vld [vmem:[%s4680_s3 + $0x154] ss:$8 sps:$4 sm:$0xff]  }
  0xf7   :  { %1914 = vmatpush1.bf16.msra.mxu1 %v3359_v28  ;;  %2399 = vmatprep.subr.bf16.mxu0 %v3457_v50  ;;  %v3485_v50 = vld [vmem:[%s4680_s3 + $0x170] ss:$8 sps:$4 sm:$0xff]  }
  0xf8   :  { %1915 = vmatprep.subr.bf16.mxu1 %v3364_v30 }
  0xfa   :  { %2400 = vmatpush1.bf16.msra.mxu0 %v3455_v51  ;;  %v3490_v51 = vld [vmem:[%s4680_s3 + $0x184] ss:$8 sps:$4 sm:$0xff]  }
  0xfb   :  { %1916 = vmatpush1.bf16.msra.mxu1 %v3362_v31  ;;  %2401 = vmatprep.subr.bf16.mxu0 %v3460_v54  ;;  %v3491_v54 = vld [vmem:[%s4680_s3 + $0x190] ss:$8 sps:$4 sm:$0xff]  }
  0xfc   :  { %1917 = vmatprep.subr.bf16.mxu1 %v3367_v32  ;;  %v3464_v32 = vld [vmem:[%s4680_s3 + $0x100] ss:$8 sps:$4 sm:$0xff]  }
  0xfe   :  { %2402 = vmatpush1.bf16.msra.mxu0 %v3458_v55  ;;  %v3496_v55 = vld [vmem:[%s4680_s3 + $0x1a4] ss:$8 sps:$4 sm:$0xff]  }
  0xff   :  { %1918 = vmatpush1.bf16.msra.mxu1 %v3365_v33  ;;  %2403 = vmatprep.subr.bf16.mxu0 %v3463_v59  ;;  %v3497_v59 = vld [vmem:[%s4680_s3 + $0x1b0] ss:$8 sps:$4 sm:$0xff]  }
 0x100   :  { %1928 = vmatprep.subr.bf16.mxu1 %v3370_v35  ;;  %v3469_v35 = vld [vmem:[%s4680_s3 + $0x114] ss:$8 sps:$4 sm:$0xff]  }
 0x102   :  { %1920 = vmatmul.mubr.bf16.vlgmr.msra.gmra.mrb[4].mxu1 %v4006_v34  ;;  %v3379_v34 = vld [vmem:[%s4678_s1 + $0x66c] ss:$16 sps:$4 sm:$0xff]   ;;  %2404 = vmatpush1.bf16.msra.mxu0 %v3461_v60 }
 0x103   :  { %1929 = vmatpush1.bf16.msra.mxu1 %v3368_v36  ;;  %1960 = vmatprep.mubr.bf16.mxu1 %v4020_v38  ;;  %v3377_v38 = vld [vmem:[%s4678_s1 + $0x668] ss:$16 sps:$4 sm:$0xff]   ;;  %v3502_v60 = vld [vmem:[%s4680_s3 + $0x1c4] ss:$8 sps:$4 sm:$0xff]  }
 0x104   :  { %1930 = vmatprep.subr.bf16.mxu1 %v3373_v37  ;;  %2414 = vmatprep.subr.bf16.mxu0 %v3466_v0  ;;  %v3467_v36 = vld [vmem:[%s4680_s3 + $0x110] ss:$8 sps:$4 sm:$0xff]   ;;  %v3472_v37 = vld [vmem:[%s4680_s3 + $0x124] ss:$8 sps:$4 sm:$0xff]  }
 0x105   :  { %v3508_v0 = vld [vmem:[%s4680_s3 + $0x1e4] ss:$8 sps:$4 sm:$0xff]  }
 0x107   :  { %1931 = vmatpush1.bf16.msra.mxu1 %v3371_v14  ;;  %v3512_v14 = vld [vmem:[%s4682_s5 + $0x40] sm:$0xff]  }
 0x108   :  { %1932 = vmatprep.subr.bf16.mxu1 %v3376_v39  ;;  %v3513_v39 = vld [vmem:[%s4682_s5] sm:$0xff]  }
 0x10b   :  { %1933 = vmatpush1.bf16.msra.mxu1 %v3374_v41  ;;  %v3470_v41 = vld [vmem:[%s4680_s3 + $0x120] ss:$8 sps:$4 sm:$0xff]  }
 0x10c   :  { %1934 = vmatprep.subr.bf16.mxu1 %v3379_v34  ;;  %v3514_v34 = vld [vmem:[%s4682_s5 + $0x48] sm:$0xff]  }
 0x10f   :  { %1935 = vmatpush1.bf16.msra.mxu1 %v3377_v38  ;;  %v3515_v38 = vld [vmem:[%s4682_s5 + $0x8] sm:$0xff]  }
 0x110   :  { %1936 = vmatprep.subr.bf16.mxu1 %v3382_v23  ;;  %v3516_v23 = vld [vmem:[%s4682_s5 + $0x50] sm:$0xff]  }
 0x113   :  { %1937 = vmatpush1.bf16.msra.mxu1 %v3380_v19  ;;  %v3475_v19 = vld [vmem:[%s4680_s3 + $0x134] ss:$8 sps:$4 sm:$0xff]  }
 0x114   :  { %1938 = vmatprep.subr.bf16.mxu1 %v3385_v42  ;;  %v3473_v42 = vld [vmem:[%s4680_s3 + $0x130] ss:$8 sps:$4 sm:$0xff]  }
 0x115   :  { %v4416_v44 = vpop.f32.mrb[0].mxu1 }
 0x116   :  { %v4421_v29 = vpop.f32.mrb[1].mxu1  ;;  %v1676_v17 = vadd.f32 %v4416_v44, %v344_v15  ;;  %v3518_v44 = vld [vmem:[%s4682_s5 + $0x58] sm:$0xff]  }
 0x117   :  { %v1679_v46 = vpop.f32.mrb[2].mxu1  ;;  %1939 = vmatpush1.bf16.msra.mxu1 %v3383_v43  ;;  %v3478_v43 = vld [vmem:[%s4680_s3 + $0x144] ss:$8 sps:$4 sm:$0xff]  }
 0x118   :  { %v1680_v48 = vpop.f32.mrb[3].mxu1  ;;  %1940 = vmatprep.subr.bf16.mxu1 %v3388_v24  ;;  %v3517_v24 = vld [vmem:[%s4682_s5 + $0x10] sm:$0xff]  }
 0x119   :  { %v3479_v46 = vld [vmem:[%s4680_s3 + $0x150] ss:$8 sps:$4 sm:$0xff]   ;;  %v3482_v48 = vld [vmem:[%s4680_s3 + $0x160] ss:$8 sps:$4 sm:$0xff]  }
 0x11b   :  { %1941 = vmatpush1.bf16.msra.mxu1 %v3386_v47  ;;  %v3484_v47 = vld [vmem:[%s4680_s3 + $0x164] ss:$8 sps:$4 sm:$0xff]  }
 0x11c   :  { %1942 = vmatprep.subr.bf16.mxu1 %v3391_v49  ;;  %v3487_v49 = vld [vmem:[%s4680_s3 + $0x174] ss:$8 sps:$4 sm:$0xff]  }
 0x11f   :  { %1943 = vmatpush1.bf16.msra.mxu1 %v3389_v52  ;;  %v3488_v52 = vld [vmem:[%s4680_s3 + $0x180] ss:$8 sps:$4 sm:$0xff]  }
 0x120   :  { %1944 = vmatprep.subr.bf16.mxu1 %v3394_v53  ;;  %v3493_v53 = vld [vmem:[%s4680_s3 + $0x194] ss:$8 sps:$4 sm:$0xff]  }
 0x123   :  { %1945 = vmatpush1.bf16.msra.mxu1 %v3392_v57  ;;  %v3494_v57 = vld [vmem:[%s4680_s3 + $0x1a0] ss:$8 sps:$4 sm:$0xff]  }
 0x124   :  { %1946 = vmatprep.subr.bf16.mxu1 %v3397_v58  ;;  %v3499_v58 = vld [vmem:[%s4680_s3 + $0x1b4] ss:$8 sps:$4 sm:$0xff]  }
 0x127   :  { %1947 = vmatpush1.bf16.msra.mxu1 %v3395_v61  ;;  %v3500_v61 = vld [vmem:[%s4680_s3 + $0x1c0] ss:$8 sps:$4 sm:$0xff]  }
 0x128   :  { %1948 = vmatprep.subr.bf16.mxu1 %v3400_v62  ;;  %v3505_v62 = vld [vmem:[%s4680_s3 + $0x1d4] ss:$8 sps:$4 sm:$0xff]  }
 0x12b   :  { %1949 = vmatpush1.bf16.msra.mxu1 %v3398_v63  ;;  %v3503_v63 = vld [vmem:[%s4680_s3 + $0x1d0] ss:$8 sps:$4 sm:$0xff]  }
 0x12c   :  { %1950 = vmatprep.subr.bf16.mxu1 %v3403_v1  ;;  %v3506_v1 = vld [vmem:[%s4680_s3 + $0x1e0] ss:$8 sps:$4 sm:$0xff]  }
 0x12f   :  { %1951 = vmatpush1.bf16.msra.mxu1 %v3401_v2  ;;  %v3511_v2 = vld [vmem:[%s4680_s3 + $0x1f4] ss:$8 sps:$4 sm:$0xff]  }
 0x130   :  { %1952 = vmatprep.subr.bf16.mxu1 %v3406_v3  ;;  %v3509_v3 = vld [vmem:[%s4680_s3 + $0x1f0] ss:$8 sps:$4 sm:$0xff]  }
 0x133   :  { %1953 = vmatpush1.bf16.msra.mxu1 %v3404_v4  ;;  %v351_v4 = vsub.s32 2, %v3741_v56 }
 0x134   :  { %1954 = vmatprep.subr.bf16.mxu1 %v3409_v5  ;;  %v355_v5 = vsub.s32 3, %v3741_v56  ;;  %v2960_v56 = vld [vmem:[%s4684_s6] ss:$0 sm:$0xff] }
 0x137   :  { %1955 = vmatpush1.bf16.msra.mxu1 %v3407_v6  ;;  %v352_v6 = vrot.slane %v4509_v12, %v351_v4 }
 0x138   :  { %1956 = vmatprep.subr.bf16.mxu1 %v3412_v7  ;;  %v356_v7 = vrot.slane %v4509_v12, %v355_v5  ;;  %v3521_v12 = vld [vmem:[%s4682_s5 + $0x20] sm:$0xff]  }
 0x13b   :  { %1957 = vmatpush1.bf16.msra.mxu1 %v3410_v8 }
 0x13c   :  { %1958 = vmatprep.subr.bf16.mxu1 %v3415_v9 }
 0x13f   :  { %1959 = vmatpush1.bf16.msra.mxu1 %v3413_v10 }
 0x140   :  { %2977 = vmatprep.subr.bf16.mxu1 %v3512_v14 }
 0x142   :  { %1961 = vmatmul.mubr.bf16.vlgmr.msra.gmra.mrb[4].mxu1 %v4205_v40  ;;  %v1678_v40 = vadd.f32 %v4421_v29, %v348_v16  ;;  %v3476_v29 = vld [vmem:[%s4680_s3 + $0x140] ss:$8 sps:$4 sm:$0xff]  }
 0x143   :  { %2978 = vmatpush3.bf16.msra.mxu1 %v3513_v39 }
 0x144   :  { %2979 = vmatprep.subr.bf16.mxu1 %v3514_v34 }
 0x147   :  { %2980 = vmatpush3.bf16.msra.mxu1 %v3515_v38 }
 0x148   :  { %2981 = vmatprep.subr.bf16.mxu1 %v3516_v23 }
 0x14b   :  { %2982 = vmatpush3.bf16.msra.mxu1 %v3517_v24 }
 0x14c   :  { %2983 = vmatprep.subr.bf16.mxu1 %v3518_v44 }
 0x14f   :  { %2984 = vmatpush3.bf16.msra.mxu1 %v3519_v18 }
 0x196   :  { %v1798_v20 = vpop.f32.mrb[0].mxu0 }
 0x197   :  { %v3000_v21 = vadd.f32 %v1798_v20, %v1676_v17  ;;  %v1800_v22 = vpop.f32.mrb[1].mxu0 }
 0x198   :  { %v3002_v25 = vadd.f32 %v1800_v22, %v1678_v40  ;;  %v1802_v26 = vpop.f32.mrb[2].mxu0 }
 0x199   :  { %3532 = vtanh.f32 %v3000_v21  ;;  %v1803_v27 = vpop.f32.mrb[3].mxu0  ;;  %v3522_v26 = vld [vmem:[%s4682_s5 + $0x68] sm:$0xff]  }
 0x19a   :  { %3534 = vtanh.f32 %v3002_v25  ;;  %v3520_v25 = vld [vmem:[%s4682_s5 + $0x60] sm:$0xff]   ;;  %v3523_v27 = vld [vmem:[%s4682_s5 + $0x28] sm:$0xff]  }
 0x19b   :  { %2985 = vmatprep.subr.bf16.mxu1 %v3520_v25 }
 0x19c   :  { %2986 = vmatpush3.bf16.msra.mxu1 %v3521_v12 }
 0x19d   :  { %2987 = vmatprep.subr.bf16.mxu1 %v3522_v26 }
 0x1a0   :  { %2988 = vmatpush3.bf16.msra.mxu1 %v3523_v27 }
 0x1a3   :  { %v3533_v28 = vpop.eup %3532 }
 0x1a4   :  { %v3535_v30 = vpop.eup %3534  ;;  %v1973_v33 = vpack.c.bf16 %v3533_v28, %v3533_v28  ;;  %v3524_v28 = vld [vmem:[%s4682_s5 + $0x70] sm:$0xff]  }
 0x1a5   :  { %v1974_v31 = vpack.c.bf16 %v3535_v30, %v3535_v30  ;;  %v3525_v30 = vld [vmem:[%s4682_s5 + $0x30] sm:$0xff]   ;;  %2989 = vmatprep.subr.bf16.mxu1 %v3524_v28 }
 0x1a6   :  { %2990 = vmatpush3.bf16.msra.mxu1 %v3525_v30 }
 0x1a7   :  { %2405 = vmatprep.mubr.bf16.mxu0 %v1974_v31  ;;  %v3526_v31 = vld [vmem:[%s4682_s5 + $0x78] sm:$0xff]  }
 0x1a8   :  { %2406 = vmatmul.mubr.bf16.vlgmr.msra.gmra.mrb[4].mxu0 %v1973_v33  ;;  %2991 = vmatprep.subr.bf16.mxu1 %v3526_v31  ;;  %v2041_v33 = vld [vmem:[%s4683_s4] sm:$0x3] }
 0x1a9   :  { %2415 = vmatpush1.bf16.msra.mxu0 %v3464_v32  ;;  %v3527_v32 = vld [vmem:[%s4682_s5 + $0x38] sm:$0xff]  }
 0x1aa   :  { %2416 = vmatprep.subr.bf16.mxu0 %v3469_v35  ;;  %2992 = vmatpush3.bf16.msra.mxu1 %v3527_v32  ;;  %v2046_v35 = vrot.slane %v2041_v33, %v343_v11 }
 0x1ad   :  { %2417 = vmatpush1.bf16.msra.mxu0 %v3467_v36  ;;  %v2050_v36 = vrot.slane %v2041_v33, %v347_v13 }
 0x1ae   :  { %2418 = vmatprep.subr.bf16.mxu0 %v3472_v37 }
 0x1b1   :  { %2419 = vmatpush1.bf16.msra.mxu0 %v3470_v41 }
 0x1b2   :  { %2420 = vmatprep.subr.bf16.mxu0 %v3475_v19 }
 0x1b5   :  { %2421 = vmatpush1.bf16.msra.mxu0 %v3473_v42 }
 0x1b6   :  { %2422 = vmatprep.subr.bf16.mxu0 %v3478_v43 }
 0x1b9   :  { %2423 = vmatpush1.bf16.msra.mxu0 %v3476_v29 }
 0x1ba   :  { %2424 = vmatprep.subr.bf16.mxu0 %v3481_v45 }
 0x1bd   :  { %2425 = vmatpush1.bf16.msra.mxu0 %v3479_v46 }
 0x1be   :  { %2426 = vmatprep.subr.bf16.mxu0 %v3484_v47 }
 0x1c1   :  { %2427 = vmatpush1.bf16.msra.mxu0 %v3482_v48 }
 0x1c2   :  { %2428 = vmatprep.subr.bf16.mxu0 %v3487_v49 }
 0x1c5   :  { %2429 = vmatpush1.bf16.msra.mxu0 %v3485_v50 }
 0x1c6   :  { %2430 = vmatprep.subr.bf16.mxu0 %v3490_v51 }
 0x1c9   :  { %2431 = vmatpush1.bf16.msra.mxu0 %v3488_v52 }
 0x1ca   :  { %2432 = vmatprep.subr.bf16.mxu0 %v3493_v53 }
 0x1cd   :  { %2433 = vmatpush1.bf16.msra.mxu0 %v3491_v54 }
 0x1ce   :  { %2434 = vmatprep.subr.bf16.mxu0 %v3496_v55 }
 0x1d1   :  { %2435 = vmatpush1.bf16.msra.mxu0 %v3494_v57 }
 0x1d2   :  { %2436 = vmatprep.subr.bf16.mxu0 %v3499_v58 }
 0x1d5   :  { %2437 = vmatpush1.bf16.msra.mxu0 %v3497_v59 }
 0x1d6   :  { %2438 = vmatprep.subr.bf16.mxu0 %v3502_v60 }
 0x1d9   :  { %2439 = vmatpush1.bf16.msra.mxu0 %v3500_v61 }
 0x1da   :  { %2440 = vmatprep.subr.bf16.mxu0 %v3505_v62 }
 0x1dd   :  { %2441 = vmatpush1.bf16.msra.mxu0 %v3503_v63 }
 0x1de   :  { %2442 = vmatprep.subr.bf16.mxu0 %v3508_v0 }
 0x1e1   :  { %2443 = vmatpush1.bf16.msra.mxu0 %v3506_v1 }
 0x1e2   :  { %2444 = vmatprep.subr.bf16.mxu0 %v3511_v2 }
 0x1e5   :  { %2445 = vmatpush1.bf16.msra.mxu0 %v3509_v3 }
 0x215   :  { %v1962_v8 = vpop.f32.mrb[4].mxu1 }
 0x216   :  { %v3003_v9 = vadd.f32 %v1962_v8, %v352_v6  ;;  %v1964_v10 = vpop.f32.mrb[5].mxu1 }
 0x217   :  { %v3004_v15 = vadd.f32 %v1964_v10, %v356_v7  ;;  %v1966_v16 = vpop.f32.mrb[6].mxu1 }
 0x218   :  { %3536 = vtanh.f32 %v3003_v9  ;;  %v1967_v17 = vpop.f32.mrb[7].mxu1 }
 0x219   :  { %3538 = vtanh.f32 %v3004_v15 }
 0x222   :  { %v3537_v40 = vpop.eup %3536 }
 0x223   :  { %v3539_v20 = vpop.eup %3538  ;;  %v1975_v22 = vpack.c.bf16 %v3537_v40, %v3537_v40 }
 0x224   :  { %v1976_v21 = vpack.c.bf16 %v3539_v20, %v3539_v20 }
 0x226   :  { %2446 = vmatprep.mubr.bf16.mxu0 %v1976_v21 }
 0x227   :  { %2447 = vmatmul.mubr.bf16.vlgmr.msra.gmra.mrb[4].mxu0 %v1975_v22 }
 0x2fa   :  { %v2448_v37 = vpop.f32.mrb[4].mxu0 }
 0x2fb   :  { %v3005_v14 = vadd.f32 %v2448_v37, %v2046_v35  ;;  %v2450_v39 = vpop.f32.mrb[5].mxu0 }
 0x2fc   :  { %v3006_v41 = vadd.f32 %v2450_v39, %v2050_v36  ;;  %v2452_v34 = vpop.f32.mrb[6].mxu0 }
 0x2fd   :  { %3540 = vtanh.f32 %v3005_v14  ;;  %v2453_v38 = vpop.f32.mrb[7].mxu0 }
 0x2fe   :  { %3542 = vtanh.f32 %v3006_v41 }
 0x307   :  { %v3541_v23 = vpop.eup %3540 }
 0x308   :  { %v3543_v19 = vpop.eup %3542  ;;  %v2457_v43 = vpack.c.bf16 %v3541_v23, %v3541_v23 }
 0x309   :  { %v2458_v42 = vpack.c.bf16 %v3543_v19, %v3543_v19 }
 0x30b   :  { %2626 = vmatprep.mubr.bf16.mxu1 %v2458_v42 }
 0x30c   :  { %2627 = vmatmul.mubr.bf16.vlgmr.msra.gmra.mrb[8].mxu1 %v2457_v43 }
 0x3df   :  { %v2993_v24 = vpop.f32.mrb[8].mxu1 }
 0x3e0   :  { %v2994_v11 = vpop.f32.mrb[9].mxu1 }
 0x3e1   :  { %v2995_v13 = vadd.f32 %v2994_v11, %v2993_v24  ;;  %v2996_v44 = vpop.f32.mrb[10].mxu1 }
 0x3e2   :  { %v2997_v18 = vpop.f32.mrb[11].mxu1 }
 0x3e3   :  { %v2629_v29 = vadd.f32 %v2995_v13, %v2960_v56 }
 0x3e5   :  { %2635 = vst.msk [vmem:[%s4685_s7] sm:$0x3] %vm2634_vm0, %v2629_v29 }

// kernel: pointnet_cls_forward.13
= control target key start
LH: loop header
LB: loop body
LE: loop exit
PB: predicated region body
PF: predicated region fallthrough
CT: control target
= control target key end

     0   :  { %s970_s21 = smov 0   ;;  %s972_s22 = smov 0   ;;  %s1066_s0 = inlined_call_operand.vmem [shape: bf16[2,16,8], index: 0, kind: input, shape index: {}]   ;;  %s1067_s1 = inlined_call_operand.vmem [shape: bf16[2,8,64], index: 1, kind: input, shape index: {}]   ;;  %s1068_s2 = inlined_call_operand.vmem [shape: f32[1,64], index: 2, kind: input, shape index: {}]   ;;  %s1069_s3 = inlined_call_operand.vmem [shape: bf16[64,128], index: 3, kind: input, shape index: {}]   ;;  %s1070_s4 = inlined_call_operand.vmem [shape: f32[1,128], index: 4, kind: input, shape index: {}]   ;;  %s1071_s5 = inlined_call_operand.vmem [shape: f32[2,1,128], index: 5, kind: output, shape index: {0}]   ;;  %s1072_s6 = inlined_call_operand.vmem [shape: f32[2,128,128], index: 6, kind: output, shape index: {1}]  }
   0x1   :  { %s974_s23 = smov 0  }
   0x2 LB: > { %s29_s24 = sadd.s32 1, %s927_s22  ;;  %p790_p0 = scmp.ge.s32.totalorder %s931_s23, 1  ;;  %s931_s23 = sphi %s974_s23, %s17_s23   ;;  %s927_s22 = sphi %s972_s22, %s1074_s22   ;;  %s923_s21 = sphi %s970_s21, %s1073_s21  }
   0x3   : > { %p31_p1 = scmp.ge.s32.totalorder %s29_s24, 2  ;;  %p243_p2 = scmp.lt.s32.totalorder %s931_s23, 3 }
   0x5   : > { %s1076_s24 = smov (%p31_p1, %s29_s24), 0  ;;  %p244_p3 = pnand %p790_p0, %p243_p2 }
   0x6   : > { %p285_p4 = scmp.lt.s32.totalorder (!%p244_p3), %s923_s21, 1  ;;  %v933_v0 = vmov (!%p244_p3), 0.0   ;;  %vm934_vm0 = vmmov (!%p244_p3), 0   ;;  %vm326_vm1 = vcmask (!%p244_p3), 1043456   ;;  %vm322_vm2 = vcmask (!%p244_p3), 64512   ;;  %v897_v4 = vld [vmem:[%s1069_s3] sm:$0xff] (!%p244_p3)  }
   0x7   : > { %247 = sbr.rel (%p244_p3) target bundleno = 827 (0x33b), region = 40  ;;  %833 = vmatprep.subr.bf16.mxu1 (!%p244_p3), %v933_v0  ;;  %835 = vmatprep.mubr.msk.bf16.mxu1 (!%p244_p3), %vm934_vm0, %v933_v0  ;;  %v898_v5 = vld [vmem:[%s1069_s3 + $0x8] sm:$0xff] (!%p244_p3)   ;;  %v899_v6 = vld [vmem:[%s1069_s3 + $0x10] sm:$0xff] (!%p244_p3)   ;;  %v900_v7 = vld [vmem:[%s1069_s3 + $0x18] sm:$0xff] (!%p244_p3)   ;;  %vm413_vm3 = vcmask (!%p244_p3), 523264   ;;  %vm526_vm4 = vcmask (!%p244_p3), 130048  }
   0x8   : > { %v796_v8 = vld [vmem:[%s1068_s2] ss:$0 sm:$0xff] (!%p244_p3) }
   0x9   : > { %v799_v18 = vld [vmem:[%s1070_s4] ss:$0 sm:$0xff] (!%p244_p3) }
   0xe   : > { %s1078_s21 = smov (!%p285_p4, %s923_s21), 1 }
   0xf   : > { %s793_s25 = sshll.u32 %s1078_s21, 2  ;;  %s996_s28 = scalar_lea.vmem %s1071_s5, %s1078_s21 }
  0x10   : > { %s297_s7 = scalar_lea.vmem %s1067_s1, %s793_s25  ;;  %465 = vst [vmem:[%s996_s28] sm:$0x1] %v933_v0  ;;  %s815_s8 = sshll.u32 %s1078_s21, 3 }
  0x11   : > { %v309_v1 = vld [vmem:[%s297_s7] sm:$0xf]  ;;  %s292_s11 = scalar_lea.vmem %s1066_s0, %s815_s8 }
  0x12   : > { %v328_v2 = vsel %vm326_vm1, %v309_v1, 0  ;;  %v896_v3 = vld [vmem:[%s292_s11] sm:$0xff]  }
  0x13   : > { %834 = vmatpush3.bf16.msra.mxu1 %v328_v2 }
  0x14   : > { %839 = vmatprep.subr.bf16.mxu1 %v933_v0 }
  0x16   : > { %836 = vmatmul.mubr.msk.bf16.vlgmr.msra.gmra.mrb[0].mxu1 %vm322_vm2, %v896_v3 }
  0x17   : > { %847 = vmatprep.mubr.msk.bf16.mxu1 %vm934_vm0, %v933_v0  ;;  %840 = vmatpush3.bf16.msra.mxu1 %v897_v4  ;;  %v482_v36 = vld [vmem:[%s996_s28] sm:$0x1] }
  0x18   : > { %841 = vmatprep.subr.bf16.mxu1 %v933_v0 }
  0x1b   : > { %842 = vmatpush3.bf16.msra.mxu1 %v898_v5 }
  0x1c   : > { %843 = vmatprep.subr.bf16.mxu1 %v933_v0 }
  0x1f   : > { %844 = vmatpush3.bf16.msra.mxu1 %v899_v6 }
  0x20   : > { %845 = vmatprep.subr.bf16.mxu1 %v933_v0 }
  0x23   : > { %846 = vmatpush3.bf16.msra.mxu1 %v900_v7 }
  0xe9   : > { %v364_v9 = vpop.f32.mrb[0].mxu1 }
  0xea   : > { %v365_v10 = vadd.f32 %v796_v8, %v364_v9  ;;  %v837_v11 = vpop.f32.mrb[1].mxu1 }
  0xeb   : > { %v367_v12 = vpop.f32.mrb[2].mxu1 }
  0xec   : > { %v368_v13 = vadd.f32 %v796_v8, %v367_v12  ;;  %v838_v14 = vpop.f32.mrb[3].mxu1  ;;  %901 = vtanh.f32 %v365_v10 }
  0xee   : > { %903 = vtanh.f32 %v368_v13 }
  0xf6   : > { %v902_v15 = vpop.eup %901 }
  0xf8   : > { %v904_v16 = vpop.eup %903 }
  0xf9   : > { %v373_v17 = vpack.c.bf16 %v904_v16, %v902_v15 }
  0xfb   : > { %848 = vmatmul.mubr.msk.bf16.vlgmr.msra.gmra.mrb[4].mxu1 %vm413_vm3, %v373_v17 }
 0x1ce   : > { %v451_v19 = vpop.f32.mrb[4].mxu1 }
 0x1cf   : > { %v452_v20 = vadd.f32 %v799_v18, %v451_v19  ;;  %v849_v21 = vpop.f32.mrb[5].mxu1 }
 0x1d0   : > { %v454_v22 = vpop.f32.mrb[6].mxu1 }
 0x1d1   : > { %v455_v23 = vadd.f32 %v799_v18, %v454_v22  ;;  %v850_v24 = vpop.f32.mrb[7].mxu1  ;;  %905 = vtanh.f32 %v452_v20 }
 0x1d3   : > { %907 = vtanh.f32 %v455_v23 }
 0x1db   : > { %v906_v25 = vpop.eup %905 }
 0x1dd   : > { %v908_v26 = vpop.eup %907 }
 0x1de   : > { %v460_v27 = vpack.c.bf16 %v908_v26, %v906_v25 }
 0x1e0   : > { %510 = vxpose.xlu0.c.b16.start.end [1/1] (short) %v460_v27, 128  ;;  %v483_v28 = vunpack.c.l.bf16 %v460_v27  ;;  %v484_v29 = vunpack.c.h.bf16 %v460_v27  ;;  %851 = vmatprep.subr.bf16.mxu0 %v460_v27 }
 0x1e1   : > { %852 = vmatpush3.bf16.msra.mxu0 %v460_v27 }
 0x1e2   : > { %v485_v30 = vadd.f32 %v484_v29, %v483_v28 }
 0x1e4   : > { %v486_v31 = vrot.slane %v485_v30, 4 }
 0x1e6   : > { %v487_v32 = vadd.f32 %v486_v31, %v485_v30 }
 0x1e8   : > { %v488_v33 = vrot.slane %v487_v32, 2 }
 0x1ea   : > { %v489_v34 = vadd.f32 %v488_v33, %v487_v32 }
 0x1ec   : > { %v490_v35 = vrot.slane %v489_v34, 1 }
 0x1ee   : > { %v491_v37 = vadd.f32 %v490_v35, %v489_v34 }
 0x1f0   : > { %v492_v38 = vadd.f32 %v491_v37, %v482_v36 }
 0x1f2   : > { %493 = vst [vmem:[%s996_s28] sm:$0x1] %v492_v38  ;;  %s816_s28 = sshll.u32 %s1078_s21, 7 }
 0x1f3   : > { %s1039_s7 = scalar_lea.vmem %s1072_s6, %s816_s28 }
 0x246   : > { %v518_v39 = vpop.trf.xlu0 }
 0x247   : > { %853 = vmatprep.mubr.msk.bf16.mxu0 %vm526_vm4, %v518_v39 }
 0x24a   : > { %v519_v40 = vpop.trf.xlu0 }
 0x24b   : > { %854 = vmatmul.mubr.msk.bf16.vlgmr.msra.gmra.mrb[0].mxu0 %vm526_vm4, %v519_v40 }
 0x24e   : > { %v520_v41 = vpop.trf.xlu0 }
 0x24f   : > { %857 = vmatprep.mubr.msk.bf16.mxu0 %vm526_vm4, %v520_v41 }
 0x252   : > { %v521_v42 = vpop.trf.xlu0 }
 0x253   : > { %858 = vmatmul.mubr.msk.bf16.gmra.mrb[4].mxu0 %vm526_vm4, %v521_v42 }
 0x256   : > { %v522_v43 = vpop.trf.xlu0 }
 0x257   : > { %861 = vmatprep.mubr.msk.bf16.mxu0 %vm526_vm4, %v522_v43 }
 0x25a   : > { %v523_v44 = vpop.trf.xlu0 }
 0x25b   : > { %862 = vmatmul.mubr.msk.bf16.gmra.mrb[8].mxu0 %vm526_vm4, %v523_v44 }
 0x25e   : > { %v524_v45 = vpop.trf.xlu0 }
 0x25f   : > { %865 = vmatprep.mubr.msk.bf16.mxu0 %vm526_vm4, %v524_v45 }
 0x262   : > { %v525_v46 = vpop.trf.xlu0 }
 0x263   : > { %866 = vmatmul.mubr.msk.bf16.gmra.mrb[12].mxu0 %vm526_vm4, %v525_v46 }
 0x31e   : > { %v855_v47 = vpop.f32.mrb[0].mxu0 }
 0x31f   : > { %v585_v48 = vpop.f32.mrb[1].mxu0  ;;  %666 = vst [vmem:[%s1039_s7 + $0x10] sm:$0xff] %v855_v47 }
 0x320   : > { %v856_v49 = vpop.f32.mrb[2].mxu0  ;;  %664 = vst [vmem:[%s1039_s7] sm:$0xff] %v585_v48 }
 0x321   : > { %v588_v50 = vpop.f32.mrb[3].mxu0  ;;  %667 = vst [vmem:[%s1039_s7 + $0x18] sm:$0xff] %v856_v49 }
 0x322   : > { %665 = vst [vmem:[%s1039_s7 + $0x8] sm:$0xff] %v588_v50 }
 0x326   : > { %v859_v51 = vpop.f32.mrb[4].mxu0 }
 0x327   : > { %v601_v52 = vpop.f32.mrb[5].mxu0  ;;  %670 = vst [vmem:[%s1039_s7 + $0x30] sm:$0xff] %v859_v51 }
 0x328   : > { %v860_v53 = vpop.f32.mrb[6].mxu0  ;;  %668 = vst [vmem:[%s1039_s7 + $0x20] sm:$0xff] %v601_v52 }
 0x329   : > { %v604_v54 = vpop.f32.mrb[7].mxu0  ;;  %671 = vst [vmem:[%s1039_s7 + $0x38] sm:$0xff] %v860_v53 }
 0x32a   : > { %669 = vst [vmem:[%s1039_s7 + $0x28] sm:$0xff] %v604_v54 }
 0x32e   : > { %v863_v55 = vpop.f32.mrb[8].mxu0 }
 0x32f   : > { %v617_v56 = vpop.f32.mrb[9].mxu0  ;;  %674 = vst [vmem:[%s1039_s7 + $0x50] sm:$0xff] %v863_v55 }
 0x330   : > { %v864_v57 = vpop.f32.mrb[10].mxu0  ;;  %672 = vst [vmem:[%s1039_s7 + $0x40] sm:$0xff] %v617_v56 }
 0x331   : > { %v620_v58 = vpop.f32.mrb[11].mxu0  ;;  %675 = vst [vmem:[%s1039_s7 + $0x58] sm:$0xff] %v864_v57 }
 0x332   : > { %673 = vst [vmem:[%s1039_s7 + $0x48] sm:$0xff] %v620_v58 }
 0x336   : > { %v867_v59 = vpop.f32.mrb[12].mxu0 }
 0x337   : > { %v633_v60 = vpop.f32.mrb[13].mxu0  ;;  %678 = vst [vmem:[%s1039_s7 + $0x70] sm:$0xff] %v867_v59 }
 0x338   : > { %v868_v61 = vpop.f32.mrb[14].mxu0  ;;  %676 = vst [vmem:[%s1039_s7 + $0x60] sm:$0xff] %v633_v60 }
 0x339   : > { %v636_v62 = vpop.f32.mrb[15].mxu0  ;;  %679 = vst [vmem:[%s1039_s7 + $0x78] sm:$0xff] %v868_v61 }
 0x33a   : > { %677 = vst [vmem:[%s1039_s7 + $0x68] sm:$0xff] %v636_v62 }
 0x33b PF: > { %s17_s23 = sadd.s32 1, %s931_s23   ;;  %s1073_s21 = smov %s927_s22 }
 0x33c   : > { %p14_p5 = scmp.ge.s32.totalorder %s17_s23, 4   ;;  %s1074_s22 = smov %s1076_s24 }
 0x33e   :  { %16 = sbr.rel (!%p14_p5) target bundleno = 2 (0x2), region = 89 }

// kernel: pointnet_cls_forward.14
= control target key start
LH: loop header
LB: loop body
LE: loop exit
PB: predicated region body
PF: predicated region fallthrough
CT: control target
= control target key end

     0   :  { %s1496_s24 = smov 0   ;;  %s1498_s25 = smov 0   ;;  %s1788_s0 = inlined_call_operand.vmem [shape: bf16[2,16,8], index: 0, kind: input, shape index: {}]   ;;  %s1789_s1 = inlined_call_operand.vmem [shape: bf16[2,8,64], index: 1, kind: input, shape index: {}]   ;;  %s1790_s2 = inlined_call_operand.vmem [shape: f32[1,64], index: 2, kind: input, shape index: {}]   ;;  %s1791_s3 = inlined_call_operand.vmem [shape: bf16[64,128], index: 3, kind: input, shape index: {}]   ;;  %s1792_s4 = inlined_call_operand.vmem [shape: f32[1,128], index: 4, kind: input, shape index: {}]   ;;  %s1793_s5 = inlined_call_operand.vmem [shape: bf16[128,1024], index: 5, kind: input, shape index: {}]   ;;  %s1794_s6 = inlined_call_operand.vmem [shape: f32[1,1024], index: 6, kind: input, shape index: {}]   ;;  %s1795_s7 = inlined_call_operand.vmem [shape: f32[2,1,1024], index: 7, kind: output, shape index: {}]  }
   0x1   :  { %s1500_s26 = smov 0  }
   0x2 LB: > { %s29_s27 = sadd.s32 1, %s1446_s25  ;;  %p1280_p0 = scmp.ge.s32.totalorder %s1450_s26, 1  ;;  %s1450_s26 = sphi %s1500_s26, %s17_s26   ;;  %s1446_s25 = sphi %s1498_s25, %s1797_s25   ;;  %s1442_s24 = sphi %s1496_s24, %s1796_s24  }
   0x3   : > { %p31_p1 = scmp.ge.s32.totalorder %s29_s27, 2  ;;  %p265_p2 = scmp.lt.s32.totalorder %s1450_s26, 3 }
   0x5   : > { %s1799_s27 = smov (%p31_p1, %s29_s27), 0  ;;  %p266_p3 = pnand %p1280_p0, %p265_p2 }
   0x6   : > { %p305_p4 = scmp.lt.s32.totalorder (!%p266_p3), %s1442_s24, 1  ;;  %v1452_v0 = vmov (!%p266_p3), 0.0   ;;  %vm1453_vm0 = vmmov (!%p266_p3), 0   ;;  %vm342_vm1 = vcmask (!%p266_p3), 1043456   ;;  %vm338_vm2 = vcmask (!%p266_p3), 64512   ;;  %v1416_v4 = vld [vmem:[%s1791_s3] sm:$0xff] (!%p266_p3)  }
   0x7   : > { %269 = sbr.rel (%p266_p3) target bundleno = 754 (0x2f2), region = 48  ;;  %1368 = vmatprep.subr.bf16.mxu0 (!%p266_p3), %v1452_v0  ;;  %1370 = vmatprep.mubr.msk.bf16.mxu0 (!%p266_p3), %vm1453_vm0, %v1452_v0  ;;  %v1417_v5 = vld [vmem:[%s1791_s3 + $0x8] sm:$0xff] (!%p266_p3)   ;;  %v1418_v6 = vld [vmem:[%s1791_s3 + $0x10] sm:$0xff] (!%p266_p3)   ;;  %v1419_v7 = vld [vmem:[%s1791_s3 + $0x18] sm:$0xff] (!%p266_p3)   ;;  %vm429_vm3 = vcmask (!%p266_p3), 523264  }
   0x8   : > { %1374 = vmatprep.subr.bf16.mxu1 (!%p266_p3), %v1452_v0  ;;  %1382 = vmatprep.mubr.msk.bf16.mxu1 (!%p266_p3), %vm1453_vm0, %v1452_v0  ;;  %v477_v8 = vld [vmem:[%s1793_s5] sm:$0xff] (!%p266_p3)  ;;  %v478_v10 = vld [vmem:[%s1793_s5 + $0x8] sm:$0xff] (!%p266_p3) }
   0x9   : > { %1375 = vmatpush3.bf16.msra.mxu1 (!%p266_p3), %v1416_v4  ;;  %v481_v9 = vld [vmem:[%s1793_s5 + $0x20] sm:$0xff] (!%p266_p3)  ;;  %v482_v13 = vld [vmem:[%s1793_s5 + $0x28] sm:$0xff] (!%p266_p3) }
   0xa   : > { %1376 = vmatprep.subr.bf16.mxu1 (!%p266_p3), %v1452_v0  ;;  %v1294_v11 = vcombine.low (!%p266_p3), %v477_v8, %v481_v9  ;;  %v1295_v12 = vcombine.high (!%p266_p3), %v477_v8, %v481_v9  ;;  %v485_v14 = vld [vmem:[%s1793_s5 + $0x40] sm:$0xff] (!%p266_p3)  ;;  %v1296_v16 = vcombine.low (!%p266_p3), %v478_v10, %v482_v13  ;;  %v1297_v17 = vcombine.high (!%p266_p3), %v478_v10, %v482_v13  ;;  %v486_v35 = vld [vmem:[%s1793_s5 + $0x48] sm:$0xff] (!%p266_p3) }
   0xb   : > { %v489_v15 = vld [vmem:[%s1793_s5 + $0x60] sm:$0xff] (!%p266_p3)  ;;  %v490_v36 = vld [vmem:[%s1793_s5 + $0x68] sm:$0xff] (!%p266_p3) }
   0xc   : > { %v1303_v18 = vcombine.high (!%p266_p3), %v485_v14, %v489_v15  ;;  %v1302_v19 = vcombine.low (!%p266_p3), %v485_v14, %v489_v15  ;;  %v493_v20 = vld [vmem:[%s1793_s5 + $0x80] sm:$0xff] (!%p266_p3)  ;;  %v1305_v40 = vcombine.high (!%p266_p3), %v486_v35, %v490_v36  ;;  %v494_v41 = vld [vmem:[%s1793_s5 + $0x88] sm:$0xff] (!%p266_p3)  ;;  %v1304_v43 = vcombine.low (!%p266_p3), %v486_v35, %v490_v36  ;;  %v479_v15 = vld [vmem:[%s1793_s5 + $0x10] sm:$0xff] (!%p266_p3) }
   0xd   : > { %1377 = vmatpush3.bf16.msra.mxu1 (!%p266_p3), %v1417_v5  ;;  %v497_v21 = vld [vmem:[%s1793_s5 + $0xa0] sm:$0xff] (!%p266_p3)  ;;  %v498_v42 = vld [vmem:[%s1793_s5 + $0xa8] sm:$0xff] (!%p266_p3)  ;;  %v491_v35 = vld [vmem:[%s1793_s5 + $0x70] sm:$0xff] (!%p266_p3) }
   0xe   : > { %s1801_s24 = smov (!%p305_p4, %s1442_s24), 1  ;;  %1378 = vmatprep.subr.bf16.mxu1 %v1452_v0  ;;  %v1311_v22 = vcombine.high %v493_v20, %v497_v21  ;;  %v1310_v23 = vcombine.low %v493_v20, %v497_v21  ;;  %v501_v24 = vld [vmem:[%s1793_s5 + $0xc0] sm:$0xff]  ;;  %v1313_v44 = vcombine.high %v494_v41, %v498_v42  ;;  %v502_v45 = vld [vmem:[%s1793_s5 + $0xc8] sm:$0xff]  ;;  %v1312_v47 = vcombine.low %v494_v41, %v498_v42  ;;  %v484_v20 = vld [vmem:[%s1793_s5 + $0x38] sm:$0xff] }
   0xf   : > { %s1360_s28 = sshll.u32 %s1801_s24, 3  ;;  %s1283_s29 = sshll.u32 %s1801_s24, 2  ;;  %v505_v25 = vld [vmem:[%s1793_s5 + $0xe0] sm:$0xff]  ;;  %v506_v46 = vld [vmem:[%s1793_s5 + $0xe8] sm:$0xff]  ;;  %v488_v36 = vld [vmem:[%s1793_s5 + $0x58] sm:$0xff] }
  0x10   : > { %s312_s9 = scalar_lea.vmem %s1788_s0, %s1360_s28  ;;  %s317_s12 = scalar_lea.vmem %s1789_s1, %s1283_s29  ;;  %v1319_v26 = vcombine.high %v501_v24, %v505_v25  ;;  %v1318_v27 = vcombine.low %v501_v24, %v505_v25  ;;  %v1285_v28 = vld [vmem:[%s1790_s2] ss:$0 sm:$0xff]  ;;  %v1321_v48 = vcombine.high %v502_v45, %v506_v46  ;;  %v1320_v49 = vcombine.low %v502_v45, %v506_v46  ;;  %v510_v52 = vld [vmem:[%s1793_s5 + $0x108] sm:$0xff]  ;;  %v496_v45 = vld [vmem:[%s1793_s5 + $0x98] sm:$0xff] }
  0x11   : > { %v325_v1 = vld [vmem:[%s317_s12] sm:$0xf]  ;;  %1379 = vmatpush3.bf16.msra.mxu1 %v1418_v6  ;;  %v514_v54 = vld [vmem:[%s1793_s5 + $0x128] sm:$0xff]  ;;  %v500_v46 = vld [vmem:[%s1793_s5 + $0xb8] sm:$0xff]  ;;  %s321_s13 = scalar_lea.vmem %s1795_s7, %s1360_s28 }
  0x12   : > { %v344_v2 = vsel %vm342_vm1, %v325_v1, 0  ;;  %v1415_v3 = vld [vmem:[%s312_s9] sm:$0xff]   ;;  %1380 = vmatprep.subr.bf16.mxu1 %v1452_v0  ;;  %v1328_v56 = vcombine.low %v510_v52, %v514_v54  ;;  %v1329_v57 = vcombine.high %v510_v52, %v514_v54  ;;  %v518_v60 = vld [vmem:[%s1793_s5 + $0x148] sm:$0xff]  ;;  %v507_v52 = vld [vmem:[%s1793_s5 + $0xf0] sm:$0xff] }
  0x13   : > { %1369 = vmatpush3.bf16.msra.mxu0 %v344_v2  ;;  %v509_v50 = vld [vmem:[%s1793_s5 + $0x100] sm:$0xff]  ;;  %v522_v62 = vld [vmem:[%s1793_s5 + $0x168] sm:$0xff]  ;;  %v508_v54 = vld [vmem:[%s1793_s5 + $0xf8] sm:$0xff] }
  0x14   : > { %903 = vmatprep.subr.bf16.mxu0 %v1295_v12  ;;  %v513_v51 = vld [vmem:[%s1793_s5 + $0x120] sm:$0xff]  ;;  %v1336_v0 = vcombine.low %v518_v60, %v522_v62  ;;  %v1337_v1 = vcombine.high %v518_v60, %v522_v62  ;;  %v526_v4 = vld [vmem:[%s1793_s5 + $0x188] sm:$0xff]  ;;  %v515_v60 = vld [vmem:[%s1793_s5 + $0x130] sm:$0xff] }
  0x15   : > { %1381 = vmatpush3.bf16.msra.mxu1 %v1419_v7  ;;  %v1327_v53 = vcombine.high %v509_v50, %v513_v51  ;;  %v1326_v55 = vcombine.low %v509_v50, %v513_v51  ;;  %v517_v58 = vld [vmem:[%s1793_s5 + $0x140] sm:$0xff]  ;;  %v530_v7 = vld [vmem:[%s1793_s5 + $0x1a8] sm:$0xff]  ;;  %v1317_v50 = vcombine.high %v496_v45, %v500_v46  ;;  %v503_v51 = vld [vmem:[%s1793_s5 + $0xd0] sm:$0xff] }
  0x16   : > { %1371 = vmatmul.mubr.msk.bf16.vlgmr.msra.gmra.mrb[0].mxu0 %vm338_vm2, %v1415_v3  ;;  %946 = vmatprep.subr.bf16.mxu1 %v1297_v17  ;;  %v521_v59 = vld [vmem:[%s1793_s5 + $0x160] sm:$0xff]  ;;  %v1344_v10 = vcombine.low %v526_v4, %v530_v7  ;;  %v534_v13 = vld [vmem:[%s1793_s5 + $0x1c8] sm:$0xff]  ;;  %v1454_v17 = vmov 0   ;;  %v516_v62 = vld [vmem:[%s1793_s5 + $0x138] sm:$0xff] }
  0x17   : > { %904 = vmatpush1.bf16.msra.mxu0 %v1294_v11  ;;  %v1335_v61 = vcombine.high %v517_v58, %v521_v59  ;;  %v1334_v63 = vcombine.low %v517_v58, %v521_v59  ;;  %v525_v2 = vld [vmem:[%s1793_s5 + $0x180] sm:$0xff]  ;;  %v1345_v11 = vcombine.high %v526_v4, %v530_v7  ;;  %v538_v14 = vld [vmem:[%s1793_s5 + $0x1e8] sm:$0xff]  ;;  %935 = vmatprep.mubr.bf16.mxu0 %v1454_v17  ;;  %v511_v59 = vld [vmem:[%s1793_s5 + $0x110] sm:$0xff] }
  0x18   : > { %905 = vmatprep.subr.bf16.mxu0 %v1303_v18  ;;  %v529_v3 = vld [vmem:[%s1793_s5 + $0x1a0] sm:$0xff]  ;;  %v483_v18 = vld [vmem:[%s1793_s5 + $0x30] sm:$0xff]  ;;  %v1352_v24 = vcombine.low %v534_v13, %v538_v14  ;;  %v1330_v7 = vcombine.low %v511_v59, %v515_v60 }
  0x19   : > { %v1342_v5 = vcombine.low %v525_v2, %v529_v3  ;;  %v1343_v6 = vcombine.high %v525_v2, %v529_v3  ;;  %v533_v8 = vld [vmem:[%s1793_s5 + $0x1c0] sm:$0xff]  ;;  %v1298_v21 = vcombine.low %v479_v15, %v483_v18  ;;  %v1299_v25 = vcombine.high %v479_v15, %v483_v18  ;;  %v519_v3 = vld [vmem:[%s1793_s5 + $0x150] sm:$0xff] }
  0x1a   : > { %v537_v9 = vld [vmem:[%s1793_s5 + $0x1e0] sm:$0xff]  ;;  %v523_v4 = vld [vmem:[%s1793_s5 + $0x170] sm:$0xff] }
  0x1b   : > { %906 = vmatpush1.bf16.msra.mxu0 %v1302_v19  ;;  %v1351_v12 = vcombine.high %v533_v8, %v537_v9  ;;  %v480_v19 = vld [vmem:[%s1793_s5 + $0x18] sm:$0xff]  ;;  %v1338_v15 = vcombine.low %v519_v3, %v523_v4 }
  0x1c   : > { %907 = vmatprep.subr.bf16.mxu0 %v1311_v22  ;;  %v1300_v22 = vcombine.low %v480_v19, %v484_v20 }
  0x1f   : > { %908 = vmatpush1.bf16.msra.mxu0 %v1310_v23  ;;  %v1350_v23 = vcombine.low %v533_v8, %v537_v9  ;;  %v1339_v9 = vcombine.high %v519_v3, %v523_v4  ;;  %v1455_v3 = vmov 1966171168  }
  0x20   : > { %909 = vmatprep.subr.bf16.mxu0 %v1319_v26  ;;  %v1301_v26 = vcombine.high %v480_v19, %v484_v20  ;;  %v535_v19 = vld [vmem:[%s1793_s5 + $0x1d0] sm:$0xff]  ;;  %v1150_v4 = vunpack.c.l.s4 %v1455_v3 }
  0x21   : > { %v539_v20 = vld [vmem:[%s1793_s5 + $0x1f0] sm:$0xff] }
  0x23   : > { %910 = vmatpush1.bf16.msra.mxu0 %v1318_v27  ;;  %v1288_v27 = vld [vmem:[%s1792_s4] ss:$0 sm:$0xff] }
  0x24   : > { %911 = vmatprep.subr.bf16.mxu0 %v1327_v53  ;;  %v504_v53 = vld [vmem:[%s1793_s5 + $0xd8] sm:$0xff] }
  0x25   : > { %v1325_v58 = vcombine.high %v504_v53, %v508_v54 }
  0x27   : > { %912 = vmatpush1.bf16.msra.mxu0 %v1326_v55 }
  0x28   : > { %913 = vmatprep.subr.bf16.mxu0 %v1335_v61  ;;  %v512_v61 = vld [vmem:[%s1793_s5 + $0x118] sm:$0xff] }
  0x29   : > { %v1333_v2 = vcombine.high %v512_v61, %v516_v62  ;;  %v1332_v8 = vcombine.low %v512_v61, %v516_v62 }
  0x2b   : > { %914 = vmatpush1.bf16.msra.mxu0 %v1334_v63  ;;  %v1322_v63 = vcombine.low %v503_v51, %v507_v52 }
  0x2c   : > { %915 = vmatprep.subr.bf16.mxu0 %v1343_v6  ;;  %v524_v6 = vld [vmem:[%s1793_s5 + $0x178] sm:$0xff] }
  0x2f   : > { %916 = vmatpush1.bf16.msra.mxu0 %v1342_v5  ;;  %v520_v5 = vld [vmem:[%s1793_s5 + $0x158] sm:$0xff] }
  0x30   : > { %917 = vmatprep.subr.bf16.mxu0 %v1351_v12  ;;  %v531_v12 = vld [vmem:[%s1793_s5 + $0x1b0] sm:$0xff] }
  0x33   : > { %918 = vmatpush1.bf16.msra.mxu0 %v1350_v23 }
  0x34   : > { %989 = vmatprep.subr.bf16.mxu0 %v1299_v25  ;;  %v1355_v25 = vcombine.high %v535_v19, %v539_v20 }
  0xe9   : > { %v380_v29 = vpop.f32.mrb[0].mxu0 }
  0xea   : > { %v381_v30 = vadd.f32 %v1285_v28, %v380_v29  ;;  %v1372_v31 = vpop.f32.mrb[1].mxu0 }
  0xeb   : > { %v383_v32 = vpop.f32.mrb[2].mxu0 }
  0xec   : > { %v384_v33 = vadd.f32 %v1285_v28, %v383_v32  ;;  %v1373_v34 = vpop.f32.mrb[3].mxu0  ;;  %1420 = vtanh.f32 %v381_v30 }
  0xed   : > { %v487_v34 = vld [vmem:[%s1793_s5 + $0x50] sm:$0xff] }
  0xee   : > { %1422 = vtanh.f32 %v384_v33  ;;  %v1307_v41 = vcombine.high %v487_v34, %v491_v35 }
  0xf6   : > { %v1421_v37 = vpop.eup %1420 }
  0xf8   : > { %v1423_v38 = vpop.eup %1422 }
  0xf9   : > { %v389_v39 = vpack.c.bf16 %v1423_v38, %v1421_v37  ;;  %v492_v37 = vld [vmem:[%s1793_s5 + $0x78] sm:$0xff] }
  0xfa   : > { %v1309_v42 = vcombine.high %v488_v36, %v492_v37 }
  0xfb   : > { %1383 = vmatmul.mubr.msk.bf16.vlgmr.msra.gmra.mrb[0].mxu1 %vm429_vm3, %v389_v39 }
  0xfc   : > { %947 = vmatpush1.bf16.msra.mxu1 %v1296_v16  ;;  %v1353_v16 = vcombine.high %v534_v13, %v538_v14  ;;  %978 = vmatprep.mubr.bf16.mxu1 %v1454_v17  ;;  %v528_v13 = vld [vmem:[%s1793_s5 + $0x198] sm:$0xff] }
  0xfd   : > { %948 = vmatprep.subr.bf16.mxu1 %v1305_v40  ;;  %v532_v14 = vld [vmem:[%s1793_s5 + $0x1b8] sm:$0xff] }
  0xfe   : > { %v1349_v18 = vcombine.high %v528_v13, %v532_v14 }
 0x100   : > { %949 = vmatpush1.bf16.msra.mxu1 %v1304_v43  ;;  %v495_v43 = vld [vmem:[%s1793_s5 + $0x90] sm:$0xff] }
 0x101   : > { %950 = vmatprep.subr.bf16.mxu1 %v1313_v44  ;;  %v499_v44 = vld [vmem:[%s1793_s5 + $0xb0] sm:$0xff] }
 0x102   : > { %v1314_v55 = vcombine.low %v495_v43, %v499_v44 }
 0x104   : > { %951 = vmatpush1.bf16.msra.mxu1 %v1312_v47  ;;  %v1306_v47 = vcombine.low %v487_v34, %v491_v35 }
 0x105   : > { %952 = vmatprep.subr.bf16.mxu1 %v1321_v48  ;;  %v1308_v48 = vcombine.low %v488_v36, %v492_v37 }
 0x108   : > { %953 = vmatpush1.bf16.msra.mxu1 %v1320_v49  ;;  %v1315_v49 = vcombine.high %v495_v43, %v499_v44 }
 0x109   : > { %954 = vmatprep.subr.bf16.mxu1 %v1329_v57  ;;  %v1323_v57 = vcombine.high %v503_v51, %v507_v52 }
 0x10c   : > { %955 = vmatpush1.bf16.msra.mxu1 %v1328_v56  ;;  %v1316_v56 = vcombine.low %v496_v45, %v500_v46 }
 0x10d   : > { %956 = vmatprep.subr.bf16.mxu1 %v1337_v1  ;;  %v1331_v1 = vcombine.high %v511_v59, %v515_v60 }
 0x110   : > { %957 = vmatpush1.bf16.msra.mxu1 %v1336_v0  ;;  %v1324_v0 = vcombine.low %v504_v53, %v508_v54 }
 0x111   : > { %958 = vmatprep.subr.bf16.mxu1 %v1345_v11  ;;  %v527_v11 = vld [vmem:[%s1793_s5 + $0x190] sm:$0xff] }
 0x112   : > { %v1346_v23 = vcombine.low %v527_v11, %v531_v12 }
 0x114   : > { %959 = vmatpush1.bf16.msra.mxu1 %v1344_v10  ;;  %v1341_v10 = vcombine.high %v520_v5, %v524_v6 }
 0x115   : > { %960 = vmatprep.subr.bf16.mxu1 %v1353_v16  ;;  %v1340_v16 = vcombine.low %v520_v5, %v524_v6 }
 0x118   : > { %961 = vmatpush1.bf16.msra.mxu1 %v1352_v24  ;;  %v1348_v24 = vcombine.low %v528_v13, %v532_v14  ;;  %v1151_v13 = vunpack.c.0.s8 %v1150_v4 }
 0x119   : > { %1032 = vmatprep.subr.bf16.mxu1 %v1301_v26 }
 0x1ce   : > { %v467_v28 = vpop.f32.mrb[0].mxu1 }
 0x1cf   : > { %v468_v29 = vadd.f32 %v1288_v27, %v467_v28  ;;  %v1384_v30 = vpop.f32.mrb[1].mxu1 }
 0x1d0   : > { %v470_v31 = vpop.f32.mrb[2].mxu1 }
 0x1d1   : > { %v471_v32 = vadd.f32 %v1288_v27, %v470_v31  ;;  %v1385_v33 = vpop.f32.mrb[3].mxu1  ;;  %1424 = vtanh.f32 %v468_v29  ;;  %v1354_v27 = vcombine.low %v535_v19, %v539_v20  ;;  %v543_v29 = vlaneseq }
 0x1d2   : > { %v1749_v33 = vld [vmem:[%s1794_s6] sm:$0xff] }
 0x1d3   : > { %1426 = vtanh.f32 %v471_v32  ;;  %v1742_v30 = vshrl.u32 %v543_v29, 7 }
 0x1d5   : > { %v545_v31 = vsub.s32 0, %v1742_v30  ;;  %v553_v32 = vsub.s32 2, %v1742_v30  ;;  %v549_v34 = vsub.s32 1, %v1742_v30  ;;  %v557_v35 = vsub.s32 3, %v1742_v30 }
 0x1d6   : > { %v561_v29 = vsub.s32 4, %v1742_v30 }
 0x1d7   : > { %v546_v36 = vrot.slane %v1749_v33, %v545_v31  ;;  %v554_v37 = vrot.slane %v1749_v33, %v553_v32  ;;  %v569_v31 = vsub.s32 6, %v1742_v30  ;;  %v565_v32 = vsub.s32 5, %v1742_v30 }
 0x1db   : > { %v1425_v38 = vpop.eup %1424 }
 0x1dd   : > { %v1427_v39 = vpop.eup %1426 }
 0x1de   : > { %v1664_v40 = vpack.c.bf16 %v1427_v39, %v1425_v38 }
 0x1e0   : > { %936 = vmatmul.mubr.bf16.vlgmr.msra.gmra.mrb[4].mxu0 %v1664_v40  ;;  %979 = vmatmul.mubr.bf16.vlgmr.msra.gmra.mrb[4].mxu1 %v1664_v40 }
 0x1e1   : > { %990 = vmatpush1.bf16.msra.mxu0 %v1298_v21  ;;  %1033 = vmatpush1.bf16.msra.mxu1 %v1300_v22  ;;  %v536_v21 = vld [vmem:[%s1793_s5 + $0x1d8] sm:$0xff] }
 0x1e2   : > { %991 = vmatprep.subr.bf16.mxu0 %v1307_v41  ;;  %1034 = vmatprep.subr.bf16.mxu1 %v1309_v42  ;;  %v540_v22 = vld [vmem:[%s1793_s5 + $0x1f8] sm:$0xff]  ;;  %v558_v41 = vrot.slane %v1749_v33, %v557_v35  ;;  %v562_v35 = vrot.slane %v1749_v33, %v561_v29 }
 0x1e3   : > { %1021 = vmatprep.mubr.bf16.mxu0 %v1454_v17  ;;  %1064 = vmatprep.mubr.bf16.mxu1 %v1454_v17  ;;  %v1347_v17 = vcombine.high %v527_v11, %v531_v12  ;;  %v1357_v26 = vcombine.high %v536_v21, %v540_v22  ;;  %v1356_v28 = vcombine.low %v536_v21, %v540_v22 }
 0x1e4   : > { %v1758_v22 = vsub.s32 %v1151_v13, %v1742_v30 }
 0x1e5   : > { %992 = vmatpush1.bf16.msra.mxu0 %v1306_v47  ;;  %1035 = vmatpush1.bf16.msra.mxu1 %v1308_v48 }
 0x1e6   : > { %993 = vmatprep.subr.bf16.mxu0 %v1315_v49  ;;  %1036 = vmatprep.subr.bf16.mxu1 %v1317_v50 }
 0x1e9   : > { %994 = vmatpush1.bf16.msra.mxu0 %v1314_v55  ;;  %1037 = vmatpush1.bf16.msra.mxu1 %v1316_v56 }
 0x1ea   : > { %995 = vmatprep.subr.bf16.mxu0 %v1323_v57  ;;  %1038 = vmatprep.subr.bf16.mxu1 %v1325_v58 }
 0x1ed   : > { %996 = vmatpush1.bf16.msra.mxu0 %v1322_v63  ;;  %1039 = vmatpush1.bf16.msra.mxu1 %v1324_v0 }
 0x1ee   : > { %997 = vmatprep.subr.bf16.mxu0 %v1331_v1  ;;  %1040 = vmatprep.subr.bf16.mxu1 %v1333_v2 }
 0x1f1   : > { %998 = vmatpush1.bf16.msra.mxu0 %v1330_v7  ;;  %1041 = vmatpush1.bf16.msra.mxu1 %v1332_v8 }
 0x1f2   : > { %999 = vmatprep.subr.bf16.mxu0 %v1339_v9  ;;  %1042 = vmatprep.subr.bf16.mxu1 %v1341_v10 }
 0x1f5   : > { %1000 = vmatpush1.bf16.msra.mxu0 %v1338_v15  ;;  %1043 = vmatpush1.bf16.msra.mxu1 %v1340_v16 }
 0x1f6   : > { %1001 = vmatprep.subr.bf16.mxu0 %v1347_v17  ;;  %1044 = vmatprep.subr.bf16.mxu1 %v1349_v18 }
 0x1f9   : > { %1002 = vmatpush1.bf16.msra.mxu0 %v1346_v23  ;;  %1045 = vmatpush1.bf16.msra.mxu1 %v1348_v24 }
 0x1fa   : > { %1003 = vmatprep.subr.bf16.mxu0 %v1355_v25  ;;  %1046 = vmatprep.subr.bf16.mxu1 %v1357_v26 }
 0x1fd   : > { %1004 = vmatpush1.bf16.msra.mxu0 %v1354_v27  ;;  %1047 = vmatpush1.bf16.msra.mxu1 %v1356_v28 }
 0x200   : > { %1022 = vmatmul.mubr.bf16.vlgmr.msra.gmra.mrb[8].mxu0 %v1664_v40  ;;  %1065 = vmatmul.mubr.bf16.vlgmr.msra.gmra.mrb[8].mxu1 %v1664_v40  ;;  %v550_v40 = vrot.slane %v1749_v33, %v549_v34  ;;  %v573_v34 = vsub.s32 7, %v1742_v30 }
 0x2b3   : > { %v937_v38 = vpop.f32.mrb[4].mxu0  ;;  %v980_v39 = vpop.f32.mrb[4].mxu1 }
 0x2b4   : > { %v939_v42 = vpop.f32.mrb[5].mxu0  ;;  %v982_v43 = vpop.f32.mrb[5].mxu1  ;;  %v938_v46 = vadd.f32 %v937_v38, %v546_v36  ;;  %v981_v47 = vadd.f32 %v980_v39, %v554_v37  ;;  %v566_v39 = vrot.slane %v1749_v33, %v565_v32 }
 0x2b5   : > { %v941_v44 = vpop.f32.mrb[6].mxu0  ;;  %v984_v45 = vpop.f32.mrb[6].mxu1  ;;  %v940_v52 = vadd.f32 %v939_v42, %v550_v40  ;;  %v983_v53 = vadd.f32 %v982_v43, %v558_v41 }
 0x2b6   : > { %v942_v48 = vadd.f32 %v941_v44, %v546_v36  ;;  %v985_v49 = vadd.f32 %v984_v45, %v554_v37  ;;  %v943_v50 = vpop.f32.mrb[7].mxu0  ;;  %v986_v51 = vpop.f32.mrb[7].mxu1  ;;  %v570_v36 = vrot.slane %v1749_v33, %v569_v31 }
 0x2b7   : > { %v944_v54 = vadd.f32 %v943_v50, %v550_v40  ;;  %v987_v55 = vadd.f32 %v986_v51, %v558_v41  ;;  %v574_v40 = vrot.slane %v1749_v33, %v573_v34 }
 0x2b8   : > { %v1075_v56 = vmax.f32 %v938_v46, %v942_v48  ;;  %v1089_v57 = vmax.f32 %v981_v47, %v985_v49 }
 0x2b9   : > { %v1082_v58 = vmax.f32 %v940_v52, %v944_v54  ;;  %v1096_v59 = vmax.f32 %v983_v53, %v987_v55 }
 0x2ba   : > { %v1076_v60 = vrot.slane %v1075_v56, 4  ;;  %v1090_v61 = vrot.slane %v1089_v57, 4 }
 0x2bb   : > { %v1083_v62 = vrot.slane %v1082_v58, 4  ;;  %v1097_v63 = vrot.slane %v1096_v59, 4 }
 0x2bc   : > { %v1077_v0 = vmax.f32 %v1075_v56, %v1076_v60  ;;  %v1091_v1 = vmax.f32 %v1089_v57, %v1090_v61 }
 0x2bd   : > { %v1084_v2 = vmax.f32 %v1082_v58, %v1083_v62  ;;  %v1098_v5 = vmax.f32 %v1096_v59, %v1097_v63 }
 0x2be   : > { %v1078_v6 = vrot.slane %v1077_v0, 2  ;;  %v1092_v7 = vrot.slane %v1091_v1, 2 }
 0x2bf   : > { %v1085_v8 = vrot.slane %v1084_v2, 2  ;;  %v1099_v9 = vrot.slane %v1098_v5, 2 }
 0x2c0   : > { %v1079_v10 = vmax.f32 %v1077_v0, %v1078_v6  ;;  %v1093_v11 = vmax.f32 %v1091_v1, %v1092_v7 }
 0x2c1   : > { %v1086_v12 = vmax.f32 %v1084_v2, %v1085_v8  ;;  %v1100_v14 = vmax.f32 %v1098_v5, %v1099_v9 }
 0x2c2   : > { %v1080_v15 = vrot.slane %v1079_v10, 1  ;;  %v1094_v16 = vrot.slane %v1093_v11, 1 }
 0x2c3   : > { %v1087_v17 = vrot.slane %v1086_v12, 1  ;;  %v1101_v18 = vrot.slane %v1100_v14, 1 }
 0x2c4   : > { %v1081_v19 = vmax.f32 %v1079_v10, %v1080_v15  ;;  %v1095_v20 = vmax.f32 %v1093_v11, %v1094_v16 }
 0x2c5   : > { %v1088_v21 = vmax.f32 %v1086_v12, %v1087_v17  ;;  %v1102_v23 = vmax.f32 %v1100_v14, %v1101_v18 }
 0x2c7   : > { %v1145_v24 = vcombine.low %v1081_v19, %v1088_v21  ;;  %v1146_v25 = vcombine.low %v1095_v20, %v1102_v23 }
 0x2c9   : > { %v1155_v26 = vrot.slane %v1145_v24, %v1758_v22  ;;  %v1162_v27 = vrot.slane %v1146_v25, %v1758_v22 }
 0x2cb   : > { %v1177_v28 = vcombine.low %v1155_v26, %v1162_v27 }
 0x2cd   : > { %v1185_v23 = vrot.slane %v1177_v28, %v1758_v22 }
 0x2d3   : > { %v1023_v37 = vpop.f32.mrb[8].mxu0  ;;  %v1066_v38 = vpop.f32.mrb[8].mxu1 }
 0x2d4   : > { %v1025_v41 = vpop.f32.mrb[9].mxu0  ;;  %v1068_v42 = vpop.f32.mrb[9].mxu1  ;;  %v1024_v45 = vadd.f32 %v1023_v37, %v562_v35  ;;  %v1067_v46 = vadd.f32 %v1066_v38, %v570_v36 }
 0x2d5   : > { %v1027_v43 = vpop.f32.mrb[10].mxu0  ;;  %v1070_v44 = vpop.f32.mrb[10].mxu1  ;;  %v1026_v50 = vadd.f32 %v1025_v41, %v566_v39  ;;  %v1069_v51 = vadd.f32 %v1068_v42, %v574_v40 }
 0x2d6   : > { %v1028_v47 = vadd.f32 %v1027_v43, %v562_v35  ;;  %v1071_v48 = vadd.f32 %v1070_v44, %v570_v36  ;;  %v1029_v49 = vpop.f32.mrb[11].mxu0  ;;  %v1072_v30 = vpop.f32.mrb[11].mxu1 }
 0x2d7   : > { %v1030_v52 = vadd.f32 %v1029_v49, %v566_v39  ;;  %v1073_v53 = vadd.f32 %v1072_v30, %v574_v40 }
 0x2d8   : > { %v1103_v54 = vmax.f32 %v1024_v45, %v1028_v47  ;;  %v1117_v55 = vmax.f32 %v1067_v46, %v1071_v48 }
 0x2d9   : > { %v1110_v56 = vmax.f32 %v1026_v50, %v1030_v52  ;;  %v1124_v57 = vmax.f32 %v1069_v51, %v1073_v53 }
 0x2da   : > { %v1104_v58 = vrot.slane %v1103_v54, 4  ;;  %v1118_v33 = vrot.slane %v1117_v55, 4 }
 0x2db   : > { %v1111_v59 = vrot.slane %v1110_v56, 4  ;;  %v1125_v60 = vrot.slane %v1124_v57, 4 }
 0x2dc   : > { %v1105_v61 = vmax.f32 %v1103_v54, %v1104_v58  ;;  %v1119_v62 = vmax.f32 %v1117_v55, %v1118_v33 }
 0x2dd   : > { %v1112_v63 = vmax.f32 %v1110_v56, %v1111_v59  ;;  %v1126_v0 = vmax.f32 %v1124_v57, %v1125_v60 }
 0x2de   : > { %v1106_v1 = vrot.slane %v1105_v61, 2  ;;  %v1120_v2 = vrot.slane %v1119_v62, 2 }
 0x2df   : > { %v1113_v3 = vrot.slane %v1112_v63, 2  ;;  %v1127_v4 = vrot.slane %v1126_v0, 2 }
 0x2e0   : > { %v1107_v5 = vmax.f32 %v1105_v61, %v1106_v1  ;;  %v1121_v6 = vmax.f32 %v1119_v62, %v1120_v2 }
 0x2e1   : > { %v1114_v7 = vmax.f32 %v1112_v63, %v1113_v3  ;;  %v1128_v8 = vmax.f32 %v1126_v0, %v1127_v4 }
 0x2e2   : > { %v1108_v9 = vrot.slane %v1107_v5, 1  ;;  %v1122_v10 = vrot.slane %v1121_v6, 1 }
 0x2e3   : > { %v1115_v11 = vrot.slane %v1114_v7, 1  ;;  %v1129_v12 = vrot.slane %v1128_v8, 1 }
 0x2e4   : > { %v1109_v13 = vmax.f32 %v1107_v5, %v1108_v9  ;;  %v1123_v14 = vmax.f32 %v1121_v6, %v1122_v10 }
 0x2e5   : > { %v1116_v15 = vmax.f32 %v1114_v7, %v1115_v11  ;;  %v1130_v16 = vmax.f32 %v1128_v8, %v1129_v12 }
 0x2e7   : > { %v1147_v17 = vcombine.low %v1109_v13, %v1116_v15  ;;  %v1148_v18 = vcombine.low %v1123_v14, %v1130_v16 }
 0x2e9   : > { %v1169_v19 = vrot.slane %v1147_v17, %v1758_v22  ;;  %v1176_v20 = vrot.slane %v1148_v18, %v1758_v22 }
 0x2eb   : > { %v1178_v21 = vcombine.low %v1169_v19, %v1176_v20 }
 0x2ed   : > { %v1192_v24 = vrot.slane %v1178_v21, %v1758_v22 }
 0x2ef   : > { %v1193_v25 = vcombine.low %v1185_v23, %v1192_v24 }
 0x2f1   : > { %1196 = vst [vmem:[%s321_s13] sm:$0xff] %v1193_v25 }
 0x2f2 PF: > { %s17_s26 = sadd.s32 1, %s1450_s26   ;;  %s1796_s24 = smov %s1446_s25 }
 0x2f3   : > { %p14_p5 = scmp.ge.s32.totalorder %s17_s26, 4   ;;  %s1797_s25 = smov %s1799_s27 }
 0x2f5   :  { %16 = sbr.rel (!%p14_p5) target bundleno = 2 (0x2), region = 85 }

// kernel: pointnet_cls_forward.15
= control target key start
LH: loop header
LB: loop body
LE: loop exit
PB: predicated region body
PF: predicated region fallthrough
CT: control target
= control target key end

     0   :  { %v3825_v36 = vmov 1983009808   ;;  %v48_v38 = vlaneseq  ;;  %s5057_s0 = inlined_call_operand.vmem [shape: f32[2,1024], index: 0, kind: input, shape index: {}]   ;;  %s5058_s1 = inlined_call_operand.vmem [shape: bf16[1024,512], index: 1, kind: input, shape index: {}]   ;;  %s5059_s2 = inlined_call_operand.vmem [shape: f32[1,512], index: 2, kind: input, shape index: {}]   ;;  %s5060_s3 = inlined_call_operand.vmem [shape: f32[1,512], index: 3, kind: input, shape index: {}]   ;;  %s5061_s4 = inlined_call_operand.vmem [shape: f32[1,512], index: 4, kind: input, shape index: {}]   ;;  %s5062_s5 = inlined_call_operand.vmem [shape: bf16[512,256], index: 5, kind: input, shape index: {}]   ;;  %s5063_s6 = inlined_call_operand.vmem [shape: f32[1,256], index: 6, kind: input, shape index: {}]   ;;  %s5064_s7 = inlined_call_operand.vmem [shape: f32[1,256], index: 7, kind: input, shape index: {}]   ;;  %s5065_s8 = inlined_call_operand.vmem [shape: f32[1,256], index: 8, kind: input, shape index: {}]   ;;  %s5066_s9 = inlined_call_operand.vmem [shape: bf16[256,2], index: 9, kind: input, shape index: {}]   ;;  %s5067_s10 = inlined_call_operand.vmem [shape: f32[1,2], index: 10, kind: input, shape index: {}]   ;;  %s5068_s11 = inlined_call_operand.hbm [shape: f32[2,2], index: 11, kind: output, shape index: {}]  }
   0x1   :  { %v3275_v0 = vld [vmem:[%s5058_s1 + $0x4] ss:$16 sps:$4 sm:$0xff]   ;;  %v3279_v2 = vld [vmem:[%s5058_s1] ss:$16 sps:$4 sm:$0xff]   ;;  %v46_v37 = vunpack.c.l.s4 %v3825_v36 }
   0x2   :  { %v3277_v1 = vld [vmem:[%s5058_s1 + $0x204] ss:$16 sps:$4 sm:$0xff]   ;;  %1652 = vmatprep.subr.bf16.mxu1 %v3275_v0  ;;  %v3280_v3 = vld [vmem:[%s5058_s1 + $0x200] ss:$16 sps:$4 sm:$0xff]   ;;  %v4004_v43 = vshrl.u32 %v48_v38, 7 }
   0x3   :  { %1693 = vmatprep.subr.bf16.mxu0 %v3277_v1  ;;  %v3281_v4 = vld [vmem:[%s5058_s1 + $0x24] ss:$16 sps:$4 sm:$0xff]   ;;  %1653 = vmatpush1.bf16.msra.mxu1 %v3279_v2  ;;  %v3285_v6 = vld [vmem:[%s5058_s1 + $0x20] ss:$16 sps:$4 sm:$0xff]   ;;  %v47_v42 = vunpack.c.0.s8 %v46_v37  ;;  %v3407_v37 = vld [vmem:[%s5058_s1 + $0xac] ss:$16 sps:$4 sm:$0xff]  }
   0x4   :  { %1694 = vmatpush1.bf16.msra.mxu0 %v3280_v3  ;;  %v3283_v5 = vld [vmem:[%s5058_s1 + $0x224] ss:$16 sps:$4 sm:$0xff]   ;;  %1654 = vmatprep.subr.bf16.mxu1 %v3281_v4  ;;  %v3286_v7 = vld [vmem:[%s5058_s1 + $0x220] ss:$16 sps:$4 sm:$0xff]  }
   0x5   :  { %1695 = vmatprep.subr.bf16.mxu0 %v3283_v5  ;;  %v3287_v8 = vld [vmem:[%s5058_s1 + $0x44] ss:$16 sps:$4 sm:$0xff]   ;;  %v3291_v10 = vld [vmem:[%s5058_s1 + $0x40] ss:$16 sps:$4 sm:$0xff]   ;;  %v4022_v49 = vsub.s32 %v47_v42, %v4004_v43  ;;  %v4179_v42 = vld [vmem:[%s5057_s0 + $0x8] sm:$0xff] }
   0x6   :  { %v3289_v9 = vld [vmem:[%s5058_s1 + $0x244] ss:$16 sps:$4 sm:$0xff]   ;;  %v3292_v11 = vld [vmem:[%s5058_s1 + $0x240] ss:$16 sps:$4 sm:$0xff]  }
   0x7   :  { %1655 = vmatpush1.bf16.msra.mxu1 %v3285_v6  ;;  %v3293_v12 = vld [vmem:[%s5058_s1 + $0x64] ss:$16 sps:$4 sm:$0xff]   ;;  %v3297_v14 = vld [vmem:[%s5058_s1 + $0x60] ss:$16 sps:$4 sm:$0xff]  }
   0x8   :  { %1696 = vmatpush1.bf16.msra.mxu0 %v3286_v7  ;;  %1656 = vmatprep.subr.bf16.mxu1 %v3287_v8  ;;  %v3295_v13 = vld [vmem:[%s5058_s1 + $0x264] ss:$16 sps:$4 sm:$0xff]   ;;  %v3298_v15 = vld [vmem:[%s5058_s1 + $0x260] ss:$16 sps:$4 sm:$0xff]  }
   0x9   :  { %1697 = vmatprep.subr.bf16.mxu0 %v3289_v9  ;;  %v3299_v16 = vld [vmem:[%s5058_s1 + $0x84] ss:$16 sps:$4 sm:$0xff]   ;;  %v3303_v18 = vld [vmem:[%s5058_s1 + $0x80] ss:$16 sps:$4 sm:$0xff]  }
   0xa   :  { %v3301_v17 = vld [vmem:[%s5058_s1 + $0x284] ss:$16 sps:$4 sm:$0xff]   ;;  %v3304_v19 = vld [vmem:[%s5058_s1 + $0x280] ss:$16 sps:$4 sm:$0xff]  }
   0xb   :  { %1657 = vmatpush1.bf16.msra.mxu1 %v3291_v10  ;;  %v3305_v20 = vld [vmem:[%s5058_s1 + $0xa4] ss:$16 sps:$4 sm:$0xff]   ;;  %v3309_v22 = vld [vmem:[%s5058_s1 + $0xa0] ss:$16 sps:$4 sm:$0xff]  }
   0xc   :  { %1698 = vmatpush1.bf16.msra.mxu0 %v3292_v11  ;;  %1658 = vmatprep.subr.bf16.mxu1 %v3293_v12  ;;  %v3307_v21 = vld [vmem:[%s5058_s1 + $0x2a4] ss:$16 sps:$4 sm:$0xff]   ;;  %v3310_v23 = vld [vmem:[%s5058_s1 + $0x2a0] ss:$16 sps:$4 sm:$0xff]  }
   0xd   :  { %1699 = vmatprep.subr.bf16.mxu0 %v3295_v13  ;;  %v3311_v24 = vld [vmem:[%s5058_s1 + $0xc4] ss:$16 sps:$4 sm:$0xff]   ;;  %v3315_v26 = vld [vmem:[%s5058_s1 + $0xc0] ss:$16 sps:$4 sm:$0xff]  }
   0xe   :  { %v3313_v25 = vld [vmem:[%s5058_s1 + $0x2c4] ss:$16 sps:$4 sm:$0xff]   ;;  %v3316_v27 = vld [vmem:[%s5058_s1 + $0x2c0] ss:$16 sps:$4 sm:$0xff]  }
   0xf   :  { %1659 = vmatpush1.bf16.msra.mxu1 %v3297_v14  ;;  %v3317_v28 = vld [vmem:[%s5058_s1 + $0xe4] ss:$16 sps:$4 sm:$0xff]   ;;  %v3321_v30 = vld [vmem:[%s5058_s1 + $0xe0] ss:$16 sps:$4 sm:$0xff]  }
  0x10   :  { %1700 = vmatpush1.bf16.msra.mxu0 %v3298_v15  ;;  %1660 = vmatprep.subr.bf16.mxu1 %v3299_v16  ;;  %v3319_v29 = vld [vmem:[%s5058_s1 + $0x2e4] ss:$16 sps:$4 sm:$0xff]   ;;  %v3322_v31 = vld [vmem:[%s5058_s1 + $0x2e0] ss:$16 sps:$4 sm:$0xff]   ;;  %v3377_v15 = vld [vmem:[%s5058_s1 + $0xc] ss:$16 sps:$4 sm:$0xff]  }
  0x11   :  { %1701 = vmatprep.subr.bf16.mxu0 %v3301_v17  ;;  %v3323_v32 = vld [vmem:[%s5058_s1 + $0x104] ss:$16 sps:$4 sm:$0xff]   ;;  %v3327_v34 = vld [vmem:[%s5058_s1 + $0x100] ss:$16 sps:$4 sm:$0xff]  }
  0x12   :  { %v3325_v33 = vld [vmem:[%s5058_s1 + $0x304] ss:$16 sps:$4 sm:$0xff]   ;;  %v3328_v35 = vld [vmem:[%s5058_s1 + $0x300] ss:$16 sps:$4 sm:$0xff]  }
  0x13   :  { %1661 = vmatpush1.bf16.msra.mxu1 %v3303_v18  ;;  %v3329_v39 = vld [vmem:[%s5058_s1 + $0x124] ss:$16 sps:$4 sm:$0xff]   ;;  %v3333_v41 = vld [vmem:[%s5058_s1 + $0x120] ss:$16 sps:$4 sm:$0xff]  }
  0x14   :  { %1702 = vmatpush1.bf16.msra.mxu0 %v3304_v19  ;;  %1662 = vmatprep.subr.bf16.mxu1 %v3305_v20  ;;  %v3331_v40 = vld [vmem:[%s5058_s1 + $0x324] ss:$16 sps:$4 sm:$0xff]   ;;  %v3334_v44 = vld [vmem:[%s5058_s1 + $0x320] ss:$16 sps:$4 sm:$0xff]   ;;  %v3375_v19 = vld [vmem:[%s5058_s1 + $0x8] ss:$16 sps:$4 sm:$0xff]  }
  0x15   :  { %1703 = vmatprep.subr.bf16.mxu0 %v3307_v21  ;;  %v3335_v45 = vld [vmem:[%s5058_s1 + $0x144] ss:$16 sps:$4 sm:$0xff]   ;;  %v3339_v47 = vld [vmem:[%s5058_s1 + $0x140] ss:$16 sps:$4 sm:$0xff]   ;;  %v3383_v21 = vld [vmem:[%s5058_s1 + $0x2c] ss:$16 sps:$4 sm:$0xff]  }
  0x16   :  { %v3337_v46 = vld [vmem:[%s5058_s1 + $0x344] ss:$16 sps:$4 sm:$0xff]   ;;  %v3340_v48 = vld [vmem:[%s5058_s1 + $0x340] ss:$16 sps:$4 sm:$0xff]  }
  0x17   :  { %1663 = vmatpush1.bf16.msra.mxu1 %v3309_v22  ;;  %v3341_v50 = vld [vmem:[%s5058_s1 + $0x164] ss:$16 sps:$4 sm:$0xff]   ;;  %v3345_v53 = vld [vmem:[%s5058_s1 + $0x160] ss:$16 sps:$4 sm:$0xff]  }
  0x18   :  { %1704 = vmatpush1.bf16.msra.mxu0 %v3310_v23  ;;  %1664 = vmatprep.subr.bf16.mxu1 %v3311_v24  ;;  %v3343_v51 = vld [vmem:[%s5058_s1 + $0x364] ss:$16 sps:$4 sm:$0xff]   ;;  %v3346_v56 = vld [vmem:[%s5058_s1 + $0x360] ss:$16 sps:$4 sm:$0xff]   ;;  %v3381_v23 = vld [vmem:[%s5058_s1 + $0x28] ss:$16 sps:$4 sm:$0xff]  }
  0x19   :  { %1705 = vmatprep.subr.bf16.mxu0 %v3313_v25  ;;  %v40_v52 = vld [vmem:[%s5057_s0] sm:$0xff]  ;;  %v3389_v25 = vld [vmem:[%s5058_s1 + $0x4c] ss:$16 sps:$4 sm:$0xff]  }
  0x1a   :  { %v51_v54 = vrot.slane %v40_v52, %v4022_v49  ;;  %v44_v55 = vcombine.high %v40_v52, %v40_v52  ;;  %v3347_v57 = vld [vmem:[%s5058_s1 + $0x184] ss:$16 sps:$4 sm:$0xff]   ;;  %v3351_v61 = vld [vmem:[%s5058_s1 + $0x180] ss:$16 sps:$4 sm:$0xff]  }
  0x1b   :  { %1665 = vmatpush1.bf16.msra.mxu1 %v3315_v26  ;;  %v3349_v58 = vld [vmem:[%s5058_s1 + $0x384] ss:$16 sps:$4 sm:$0xff]   ;;  %v3352_v0 = vld [vmem:[%s5058_s1 + $0x380] ss:$16 sps:$4 sm:$0xff]  }
  0x1c   :  { %1706 = vmatpush1.bf16.msra.mxu0 %v3316_v27  ;;  %1666 = vmatprep.subr.bf16.mxu1 %v3317_v28  ;;  %v59_v59 = vcombine.high %v51_v54, %v51_v54  ;;  %v58_v60 = vrot.slane %v44_v55, %v4022_v49  ;;  %v3353_v1 = vld [vmem:[%s5058_s1 + $0x1a4] ss:$16 sps:$4 sm:$0xff]   ;;  %v3357_v4 = vld [vmem:[%s5058_s1 + $0x1a0] ss:$16 sps:$4 sm:$0xff]   ;;  %v4098_v16 = vpack.c.bf16 %v51_v54, %v51_v54  ;;  %v3387_v27 = vld [vmem:[%s5058_s1 + $0x48] ss:$16 sps:$4 sm:$0xff]  }
  0x1d   :  { %1707 = vmatprep.subr.bf16.mxu0 %v3319_v29  ;;  %v3355_v2 = vld [vmem:[%s5058_s1 + $0x3a4] ss:$16 sps:$4 sm:$0xff]   ;;  %v3358_v5 = vld [vmem:[%s5058_s1 + $0x3a0] ss:$16 sps:$4 sm:$0xff]   ;;  %v3395_v29 = vld [vmem:[%s5058_s1 + $0x6c] ss:$16 sps:$4 sm:$0xff]  }
  0x1e   :  { %v87_v62 = vpack.c.bf16 %v59_v59, %v59_v59  ;;  %v60_v63 = vcombine.high %v58_v60, %v58_v60  ;;  %v3359_v6 = vld [vmem:[%s5058_s1 + $0x1c4] ss:$16 sps:$4 sm:$0xff]   ;;  %v3363_v8 = vld [vmem:[%s5058_s1 + $0x1c0] ss:$16 sps:$4 sm:$0xff]   ;;  %v4103_v18 = vpack.c.bf16 %v58_v60, %v58_v60  ;;  %v3425_v55 = vld [vmem:[%s5058_s1 + $0x10c] ss:$16 sps:$4 sm:$0xff]  }
  0x1f   :  { %1667 = vmatpush1.bf16.msra.mxu1 %v3321_v30  ;;  %v3361_v7 = vld [vmem:[%s5058_s1 + $0x3c4] ss:$16 sps:$4 sm:$0xff]   ;;  %v3364_v9 = vld [vmem:[%s5058_s1 + $0x3c0] ss:$16 sps:$4 sm:$0xff]   ;;  %v3431_v59 = vld [vmem:[%s5058_s1 + $0x12c] ss:$16 sps:$4 sm:$0xff]  }
  0x20   :  { %1708 = vmatpush1.bf16.msra.mxu0 %v3322_v31  ;;  %1668 = vmatprep.subr.bf16.mxu1 %v3323_v32  ;;  %v4059_v3 = vpack.c.bf16 %v60_v63, %v60_v63  ;;  %v3365_v10 = vld [vmem:[%s5058_s1 + $0x1e4] ss:$16 sps:$4 sm:$0xff]   ;;  %v3369_v12 = vld [vmem:[%s5058_s1 + $0x1e0] ss:$16 sps:$4 sm:$0xff]   ;;  %v3393_v31 = vld [vmem:[%s5058_s1 + $0x68] ss:$16 sps:$4 sm:$0xff]  }
  0x21   :  { %1709 = vmatprep.subr.bf16.mxu0 %v3325_v33  ;;  %1684 = vmatprep.mubr.bf16.mxu1 %v87_v62  ;;  %v3367_v11 = vld [vmem:[%s5058_s1 + $0x3e4] ss:$16 sps:$4 sm:$0xff]   ;;  %v3370_v13 = vld [vmem:[%s5058_s1 + $0x3e0] ss:$16 sps:$4 sm:$0xff]   ;;  %v3401_v33 = vld [vmem:[%s5058_s1 + $0x8c] ss:$16 sps:$4 sm:$0xff]  }
  0x22   :  { %1725 = vmatprep.mubr.bf16.mxu0 %v4059_v3  ;;  %v3374_v14 = vld [vmem:[%s5058_s1 + $0x404] ss:$16 sps:$4 sm:$0xff]   ;;  %v3372_v17 = vld [vmem:[%s5058_s1 + $0x400] ss:$16 sps:$4 sm:$0xff]   ;;  %v3437_v63 = vld [vmem:[%s5058_s1 + $0x14c] ss:$16 sps:$4 sm:$0xff]  }
  0x23   :  { %1669 = vmatpush1.bf16.msra.mxu1 %v3327_v34  ;;  %v3380_v20 = vld [vmem:[%s5058_s1 + $0x424] ss:$16 sps:$4 sm:$0xff]   ;;  %v3378_v22 = vld [vmem:[%s5058_s1 + $0x420] ss:$16 sps:$4 sm:$0xff]  }
  0x24   :  { %1710 = vmatpush1.bf16.msra.mxu0 %v3328_v35  ;;  %1670 = vmatprep.subr.bf16.mxu1 %v3329_v39  ;;  %v3386_v24 = vld [vmem:[%s5058_s1 + $0x444] ss:$16 sps:$4 sm:$0xff]   ;;  %v3384_v26 = vld [vmem:[%s5058_s1 + $0x440] ss:$16 sps:$4 sm:$0xff]   ;;  %v3399_v35 = vld [vmem:[%s5058_s1 + $0x88] ss:$16 sps:$4 sm:$0xff]  }
  0x25   :  { %1711 = vmatprep.subr.bf16.mxu0 %v3331_v40  ;;  %v3392_v28 = vld [vmem:[%s5058_s1 + $0x464] ss:$16 sps:$4 sm:$0xff]   ;;  %v3390_v30 = vld [vmem:[%s5058_s1 + $0x460] ss:$16 sps:$4 sm:$0xff]   ;;  %v3405_v39 = vld [vmem:[%s5058_s1 + $0xa8] ss:$16 sps:$4 sm:$0xff]  }
  0x26   :  { %v3398_v32 = vld [vmem:[%s5058_s1 + $0x484] ss:$16 sps:$4 sm:$0xff]   ;;  %v3396_v34 = vld [vmem:[%s5058_s1 + $0x480] ss:$16 sps:$4 sm:$0xff]  }
  0x27   :  { %1671 = vmatpush1.bf16.msra.mxu1 %v3333_v41  ;;  %v3404_v36 = vld [vmem:[%s5058_s1 + $0x4a4] ss:$16 sps:$4 sm:$0xff]   ;;  %v3402_v38 = vld [vmem:[%s5058_s1 + $0x4a0] ss:$16 sps:$4 sm:$0xff]   ;;  %v3413_v41 = vld [vmem:[%s5058_s1 + $0xcc] ss:$16 sps:$4 sm:$0xff]  }
  0x28   :  { %1712 = vmatpush1.bf16.msra.mxu0 %v3334_v44  ;;  %1672 = vmatprep.subr.bf16.mxu1 %v3335_v45  ;;  %v3410_v40 = vld [vmem:[%s5058_s1 + $0x4c4] ss:$16 sps:$4 sm:$0xff]   ;;  %v4183_v44 = vrot.slane %v4179_v42, %v4022_v49  ;;  %v3408_v45 = vld [vmem:[%s5058_s1 + $0x4c0] ss:$16 sps:$4 sm:$0xff]  }
  0x29   :  { %1713 = vmatprep.subr.bf16.mxu0 %v3337_v46  ;;  %v3411_v46 = vld [vmem:[%s5058_s1 + $0xc8] ss:$16 sps:$4 sm:$0xff]   ;;  %v3414_v52 = vld [vmem:[%s5058_s1 + $0x4e0] ss:$16 sps:$4 sm:$0xff]   ;;  %v3422_v54 = vld [vmem:[%s5058_s1 + $0x504] ss:$16 sps:$4 sm:$0xff]  }
  0x2a   :  { %v3426_v60 = vld [vmem:[%s5058_s1 + $0x520] ss:$16 sps:$4 sm:$0xff]  }
  0x2b   :  { %1673 = vmatpush1.bf16.msra.mxu1 %v3339_v47  ;;  %v76_v47 = vcombine.high %v4183_v44, %v4183_v44 }
  0x2c   :  { %1714 = vmatpush1.bf16.msra.mxu0 %v3340_v48  ;;  %1674 = vmatprep.subr.bf16.mxu1 %v3341_v50  ;;  %v3416_v48 = vld [vmem:[%s5058_s1 + $0x4e4] ss:$16 sps:$4 sm:$0xff]   ;;  %v3419_v50 = vld [vmem:[%s5058_s1 + $0xec] ss:$16 sps:$4 sm:$0xff]  }
  0x2d   :  { %1715 = vmatprep.subr.bf16.mxu0 %v3343_v51  ;;  %v4199_v51 = vpack.c.bf16 %v76_v47, %v76_v47  ;;  %v3495_v47 = vld [vmem:[%s5058_s1 + $0x288] ss:$16 sps:$4 sm:$0xff]  }
  0x2f   :  { %1675 = vmatpush1.bf16.msra.mxu1 %v3345_v53  ;;  %v3417_v53 = vld [vmem:[%s5058_s1 + $0xe8] ss:$16 sps:$4 sm:$0xff]  }
  0x30   :  { %1716 = vmatpush1.bf16.msra.mxu0 %v3346_v56  ;;  %1676 = vmatprep.subr.bf16.mxu1 %v3347_v57  ;;  %v3420_v56 = vld [vmem:[%s5058_s1 + $0x500] ss:$16 sps:$4 sm:$0xff]   ;;  %v3423_v57 = vld [vmem:[%s5058_s1 + $0x108] ss:$16 sps:$4 sm:$0xff]  }
  0x31   :  { %1717 = vmatprep.subr.bf16.mxu0 %v3349_v58  ;;  %v3428_v58 = vld [vmem:[%s5058_s1 + $0x524] ss:$16 sps:$4 sm:$0xff]  }
  0x33   :  { %1677 = vmatpush1.bf16.msra.mxu1 %v3351_v61  ;;  %v3429_v61 = vld [vmem:[%s5058_s1 + $0x128] ss:$16 sps:$4 sm:$0xff]  }
  0x34   :  { %1718 = vmatpush1.bf16.msra.mxu0 %v3352_v0  ;;  %1678 = vmatprep.subr.bf16.mxu1 %v3353_v1  ;;  %v3432_v0 = vld [vmem:[%s5058_s1 + $0x540] ss:$16 sps:$4 sm:$0xff]   ;;  %v3435_v1 = vld [vmem:[%s5058_s1 + $0x148] ss:$16 sps:$4 sm:$0xff]  }
  0x35   :  { %1719 = vmatprep.subr.bf16.mxu0 %v3355_v2  ;;  %v3440_v2 = vld [vmem:[%s5058_s1 + $0x564] ss:$16 sps:$4 sm:$0xff]  }
  0x37   :  { %1679 = vmatpush1.bf16.msra.mxu1 %v3357_v4  ;;  %v3443_v4 = vld [vmem:[%s5058_s1 + $0x16c] ss:$16 sps:$4 sm:$0xff]  }
  0x38   :  { %1720 = vmatpush1.bf16.msra.mxu0 %v3358_v5  ;;  %1680 = vmatprep.subr.bf16.mxu1 %v3359_v6  ;;  %v3438_v5 = vld [vmem:[%s5058_s1 + $0x560] ss:$16 sps:$4 sm:$0xff]   ;;  %v3441_v6 = vld [vmem:[%s5058_s1 + $0x168] ss:$16 sps:$4 sm:$0xff]  }
  0x39   :  { %1721 = vmatprep.subr.bf16.mxu0 %v3361_v7  ;;  %v3446_v7 = vld [vmem:[%s5058_s1 + $0x584] ss:$16 sps:$4 sm:$0xff]  }
  0x3b   :  { %1681 = vmatpush1.bf16.msra.mxu1 %v3363_v8  ;;  %v3449_v8 = vld [vmem:[%s5058_s1 + $0x18c] ss:$16 sps:$4 sm:$0xff]  }
  0x3c   :  { %1722 = vmatpush1.bf16.msra.mxu0 %v3364_v9  ;;  %1682 = vmatprep.subr.bf16.mxu1 %v3365_v10  ;;  %v3444_v9 = vld [vmem:[%s5058_s1 + $0x580] ss:$16 sps:$4 sm:$0xff]   ;;  %v3447_v10 = vld [vmem:[%s5058_s1 + $0x188] ss:$16 sps:$4 sm:$0xff]  }
  0x3d   :  { %1723 = vmatprep.subr.bf16.mxu0 %v3367_v11  ;;  %v3452_v11 = vld [vmem:[%s5058_s1 + $0x5a4] ss:$16 sps:$4 sm:$0xff]  }
  0x3f   :  { %1683 = vmatpush1.bf16.msra.mxu1 %v3369_v12  ;;  %v3455_v12 = vld [vmem:[%s5058_s1 + $0x1ac] ss:$16 sps:$4 sm:$0xff]  }
  0x40   :  { %1724 = vmatpush1.bf16.msra.mxu0 %v3370_v13  ;;  %1816 = vmatprep.subr.bf16.mxu1 %v3377_v15  ;;  %v3450_v13 = vld [vmem:[%s5058_s1 + $0x5a0] ss:$16 sps:$4 sm:$0xff]   ;;  %v3458_v15 = vld [vmem:[%s5058_s1 + $0x5c4] ss:$16 sps:$4 sm:$0xff]  }
  0x41   :  { %1734 = vmatprep.subr.bf16.mxu0 %v3374_v14  ;;  %v3453_v14 = vld [vmem:[%s5058_s1 + $0x1a8] ss:$16 sps:$4 sm:$0xff]  }
  0x42   :  { %1685 = vmatmul.mubr.bf16.vlgmr.msra.gmra.mrb[0].mxu1 %v4098_v16 }
  0x43   :  { %1726 = vmatmul.mubr.bf16.vlgmr.msra.gmra.mrb[0].mxu0 %v4103_v18  ;;  %1817 = vmatpush1.bf16.msra.mxu1 %v3375_v19  ;;  %v61_v19 = vcombine.high %v4179_v42, %v4179_v42  ;;  %v3489_v42 = vld [vmem:[%s5058_s1 + $0x268] ss:$16 sps:$4 sm:$0xff]  }
  0x44   :  { %1735 = vmatpush1.bf16.msra.mxu0 %v3372_v17  ;;  %1818 = vmatprep.subr.bf16.mxu1 %v3383_v21  ;;  %v3461_v17 = vld [vmem:[%s5058_s1 + $0x1cc] ss:$16 sps:$4 sm:$0xff]   ;;  %v3459_v21 = vld [vmem:[%s5058_s1 + $0x1c8] ss:$16 sps:$4 sm:$0xff]  }
  0x45   :  { %1736 = vmatprep.subr.bf16.mxu0 %v3380_v20  ;;  %1848 = vmatprep.mubr.bf16.mxu1 %v87_v62  ;;  %v3434_v62 = vld [vmem:[%s5058_s1 + $0x544] ss:$16 sps:$4 sm:$0xff]   ;;  %v3456_v20 = vld [vmem:[%s5058_s1 + $0x5c0] ss:$16 sps:$4 sm:$0xff]  }
  0x46   :  { %1766 = vmatprep.mubr.bf16.mxu0 %v4199_v51 }
  0x47   :  { %1819 = vmatpush1.bf16.msra.mxu1 %v3381_v23  ;;  %v3467_v23 = vld [vmem:[%s5058_s1 + $0x1ec] ss:$16 sps:$4 sm:$0xff]  }
  0x48   :  { %1737 = vmatpush1.bf16.msra.mxu0 %v3378_v22  ;;  %1820 = vmatprep.subr.bf16.mxu1 %v3389_v25  ;;  %v3464_v22 = vld [vmem:[%s5058_s1 + $0x5e4] ss:$16 sps:$4 sm:$0xff]   ;;  %v3462_v25 = vld [vmem:[%s5058_s1 + $0x5e0] ss:$16 sps:$4 sm:$0xff]  }
  0x49   :  { %1738 = vmatprep.subr.bf16.mxu0 %v3386_v24  ;;  %v4301_v24 = vrot.slane %v61_v19, %v4022_v49  ;;  %v3473_v49 = vld [vmem:[%s5058_s1 + $0x20c] ss:$16 sps:$4 sm:$0xff]   ;;  %v3540_v19 = vld [vmem:[%s5058_s1 + $0x780] ss:$16 sps:$4 sm:$0xff]  }
  0x4b   :  { %1821 = vmatpush1.bf16.msra.mxu1 %v3387_v27  ;;  %v3470_v27 = vld [vmem:[%s5058_s1 + $0x604] ss:$16 sps:$4 sm:$0xff]  }
  0x4c   :  { %1739 = vmatpush1.bf16.msra.mxu0 %v3384_v26  ;;  %1822 = vmatprep.subr.bf16.mxu1 %v3395_v29  ;;  %v3465_v26 = vld [vmem:[%s5058_s1 + $0x1e8] ss:$16 sps:$4 sm:$0xff]   ;;  %v4319_v29 = vpack.c.bf16 %v4183_v44, %v4183_v44  ;;  %v3494_v44 = vld [vmem:[%s5058_s1 + $0x684] ss:$16 sps:$4 sm:$0xff]  }
  0x4d   :  { %1740 = vmatprep.subr.bf16.mxu0 %v3392_v28  ;;  %v77_v28 = vcombine.high %v4301_v24, %v4301_v24 }
  0x4f   :  { %1823 = vmatpush1.bf16.msra.mxu1 %v3393_v31  ;;  %v3471_v31 = vld [vmem:[%s5058_s1 + $0x208] ss:$16 sps:$4 sm:$0xff]  }
  0x50   :  { %1741 = vmatpush1.bf16.msra.mxu0 %v3390_v30  ;;  %1824 = vmatprep.subr.bf16.mxu1 %v3401_v33  ;;  %v3468_v30 = vld [vmem:[%s5058_s1 + $0x600] ss:$16 sps:$4 sm:$0xff]   ;;  %v3479_v33 = vld [vmem:[%s5058_s1 + $0x22c] ss:$16 sps:$4 sm:$0xff]  }
  0x51   :  { %1742 = vmatprep.subr.bf16.mxu0 %v3398_v32  ;;  %v3476_v32 = vld [vmem:[%s5058_s1 + $0x624] ss:$16 sps:$4 sm:$0xff]  }
  0x53   :  { %1825 = vmatpush1.bf16.msra.mxu1 %v3399_v35  ;;  %v3474_v35 = vld [vmem:[%s5058_s1 + $0x620] ss:$16 sps:$4 sm:$0xff]  }
  0x54   :  { %1743 = vmatpush1.bf16.msra.mxu0 %v3396_v34  ;;  %1826 = vmatprep.subr.bf16.mxu1 %v3407_v37  ;;  %v4333_v34 = vpack.c.bf16 %v77_v28, %v77_v28  ;;  %v3482_v37 = vld [vmem:[%s5058_s1 + $0x644] ss:$16 sps:$4 sm:$0xff]   ;;  %v3555_v28 = vld [vmem:[%s5058_s1 + $0x3c8] ss:$16 sps:$4 sm:$0xff]  }
  0x55   :  { %1744 = vmatprep.subr.bf16.mxu0 %v3404_v36  ;;  %v3477_v36 = vld [vmem:[%s5058_s1 + $0x228] ss:$16 sps:$4 sm:$0xff]  }
  0x57   :  { %1827 = vmatpush1.bf16.msra.mxu1 %v3405_v39  ;;  %v3483_v39 = vld [vmem:[%s5058_s1 + $0x248] ss:$16 sps:$4 sm:$0xff]  }
  0x58   :  { %1745 = vmatpush1.bf16.msra.mxu0 %v3402_v38  ;;  %1828 = vmatprep.subr.bf16.mxu1 %v3413_v41  ;;  %v3480_v38 = vld [vmem:[%s5058_s1 + $0x640] ss:$16 sps:$4 sm:$0xff]  }
  0x59   :  { %1746 = vmatprep.subr.bf16.mxu0 %v3410_v40  ;;  %v3488_v40 = vld [vmem:[%s5058_s1 + $0x664] ss:$16 sps:$4 sm:$0xff]   ;;  %v3486_v41 = vld [vmem:[%s5058_s1 + $0x660] ss:$16 sps:$4 sm:$0xff]  }
  0x5b   :  { %1829 = vmatpush1.bf16.msra.mxu1 %v3411_v46  ;;  %v3492_v46 = vld [vmem:[%s5058_s1 + $0x680] ss:$16 sps:$4 sm:$0xff]  }
  0x5c   :  { %1747 = vmatpush1.bf16.msra.mxu0 %v3408_v45  ;;  %1830 = vmatprep.subr.bf16.mxu1 %v3419_v50  ;;  %v3497_v45 = vld [vmem:[%s5058_s1 + $0x28c] ss:$16 sps:$4 sm:$0xff]  }
  0x5d   :  { %1748 = vmatprep.subr.bf16.mxu0 %v3416_v48  ;;  %v3500_v48 = vld [vmem:[%s5058_s1 + $0x6a4] ss:$16 sps:$4 sm:$0xff]   ;;  %v3503_v50 = vld [vmem:[%s5058_s1 + $0x2ac] ss:$16 sps:$4 sm:$0xff]  }
  0x5f   :  { %1831 = vmatpush1.bf16.msra.mxu1 %v3417_v53  ;;  %v3501_v53 = vld [vmem:[%s5058_s1 + $0x2a8] ss:$16 sps:$4 sm:$0xff]  }
  0x60   :  { %1749 = vmatpush1.bf16.msra.mxu0 %v3414_v52  ;;  %1832 = vmatprep.subr.bf16.mxu1 %v3425_v55  ;;  %v3498_v52 = vld [vmem:[%s5058_s1 + $0x6a0] ss:$16 sps:$4 sm:$0xff]   ;;  %v3509_v55 = vld [vmem:[%s5058_s1 + $0x2cc] ss:$16 sps:$4 sm:$0xff]  }
  0x61   :  { %1750 = vmatprep.subr.bf16.mxu0 %v3422_v54  ;;  %v3506_v54 = vld [vmem:[%s5058_s1 + $0x6c4] ss:$16 sps:$4 sm:$0xff]  }
  0x63   :  { %1833 = vmatpush1.bf16.msra.mxu1 %v3423_v57  ;;  %v3507_v57 = vld [vmem:[%s5058_s1 + $0x2c8] ss:$16 sps:$4 sm:$0xff]  }
  0x64   :  { %1751 = vmatpush1.bf16.msra.mxu0 %v3420_v56  ;;  %1834 = vmatprep.subr.bf16.mxu1 %v3431_v59  ;;  %v3504_v56 = vld [vmem:[%s5058_s1 + $0x6c0] ss:$16 sps:$4 sm:$0xff]   ;;  %v3515_v59 = vld [vmem:[%s5058_s1 + $0x2ec] ss:$16 sps:$4 sm:$0xff]  }
  0x65   :  { %1752 = vmatprep.subr.bf16.mxu0 %v3428_v58  ;;  %v3512_v58 = vld [vmem:[%s5058_s1 + $0x6e4] ss:$16 sps:$4 sm:$0xff]  }
  0x67   :  { %1835 = vmatpush1.bf16.msra.mxu1 %v3429_v61  ;;  %v3513_v61 = vld [vmem:[%s5058_s1 + $0x2e8] ss:$16 sps:$4 sm:$0xff]  }
  0x68   :  { %1753 = vmatpush1.bf16.msra.mxu0 %v3426_v60  ;;  %1836 = vmatprep.subr.bf16.mxu1 %v3437_v63  ;;  %v3510_v60 = vld [vmem:[%s5058_s1 + $0x6e0] ss:$16 sps:$4 sm:$0xff]   ;;  %v3521_v63 = vld [vmem:[%s5058_s1 + $0x30c] ss:$16 sps:$4 sm:$0xff]  }
  0x69   :  { %1754 = vmatprep.subr.bf16.mxu0 %v3434_v62  ;;  %v3518_v62 = vld [vmem:[%s5058_s1 + $0x704] ss:$16 sps:$4 sm:$0xff]  }
  0x6b   :  { %1837 = vmatpush1.bf16.msra.mxu1 %v3435_v1  ;;  %v3519_v1 = vld [vmem:[%s5058_s1 + $0x308] ss:$16 sps:$4 sm:$0xff]  }
  0x6c   :  { %1755 = vmatpush1.bf16.msra.mxu0 %v3432_v0  ;;  %1838 = vmatprep.subr.bf16.mxu1 %v3443_v4  ;;  %v3516_v0 = vld [vmem:[%s5058_s1 + $0x700] ss:$16 sps:$4 sm:$0xff]   ;;  %v3527_v4 = vld [vmem:[%s5058_s1 + $0x32c] ss:$16 sps:$4 sm:$0xff]  }
  0x6d   :  { %1756 = vmatprep.subr.bf16.mxu0 %v3440_v2  ;;  %v3524_v2 = vld [vmem:[%s5058_s1 + $0x724] ss:$16 sps:$4 sm:$0xff]  }
  0x6f   :  { %1839 = vmatpush1.bf16.msra.mxu1 %v3441_v6  ;;  %v3525_v6 = vld [vmem:[%s5058_s1 + $0x328] ss:$16 sps:$4 sm:$0xff]  }
  0x70   :  { %1757 = vmatpush1.bf16.msra.mxu0 %v3438_v5  ;;  %1840 = vmatprep.subr.bf16.mxu1 %v3449_v8  ;;  %v3522_v5 = vld [vmem:[%s5058_s1 + $0x720] ss:$16 sps:$4 sm:$0xff]   ;;  %v3533_v8 = vld [vmem:[%s5058_s1 + $0x34c] ss:$16 sps:$4 sm:$0xff]  }
  0x71   :  { %1758 = vmatprep.subr.bf16.mxu0 %v3446_v7  ;;  %v3530_v7 = vld [vmem:[%s5058_s1 + $0x744] ss:$16 sps:$4 sm:$0xff]  }
  0x73   :  { %1841 = vmatpush1.bf16.msra.mxu1 %v3447_v10  ;;  %v3531_v10 = vld [vmem:[%s5058_s1 + $0x348] ss:$16 sps:$4 sm:$0xff]  }
  0x74   :  { %1759 = vmatpush1.bf16.msra.mxu0 %v3444_v9  ;;  %1842 = vmatprep.subr.bf16.mxu1 %v3455_v12  ;;  %v3528_v9 = vld [vmem:[%s5058_s1 + $0x740] ss:$16 sps:$4 sm:$0xff]   ;;  %v3539_v12 = vld [vmem:[%s5058_s1 + $0x36c] ss:$16 sps:$4 sm:$0xff]  }
  0x75   :  { %1760 = vmatprep.subr.bf16.mxu0 %v3452_v11  ;;  %v3536_v11 = vld [vmem:[%s5058_s1 + $0x764] ss:$16 sps:$4 sm:$0xff]  }
  0x77   :  { %1843 = vmatpush1.bf16.msra.mxu1 %v3453_v14  ;;  %v3537_v14 = vld [vmem:[%s5058_s1 + $0x368] ss:$16 sps:$4 sm:$0xff]  }
  0x78   :  { %1761 = vmatpush1.bf16.msra.mxu0 %v3450_v13  ;;  %1844 = vmatprep.subr.bf16.mxu1 %v3461_v17  ;;  %v3534_v13 = vld [vmem:[%s5058_s1 + $0x760] ss:$16 sps:$4 sm:$0xff]   ;;  %v3545_v17 = vld [vmem:[%s5058_s1 + $0x38c] ss:$16 sps:$4 sm:$0xff]  }
  0x79   :  { %1762 = vmatprep.subr.bf16.mxu0 %v3458_v15  ;;  %v3542_v15 = vld [vmem:[%s5058_s1 + $0x784] ss:$16 sps:$4 sm:$0xff]  }
  0x7b   :  { %1845 = vmatpush1.bf16.msra.mxu1 %v3459_v21  ;;  %v3548_v21 = vld [vmem:[%s5058_s1 + $0x7a4] ss:$16 sps:$4 sm:$0xff]  }
  0x7c   :  { %1763 = vmatpush1.bf16.msra.mxu0 %v3456_v20  ;;  %1846 = vmatprep.subr.bf16.mxu1 %v3467_v23  ;;  %v3543_v20 = vld [vmem:[%s5058_s1 + $0x388] ss:$16 sps:$4 sm:$0xff]   ;;  %v3546_v23 = vld [vmem:[%s5058_s1 + $0x7a0] ss:$16 sps:$4 sm:$0xff]  }
  0x7d   :  { %1764 = vmatprep.subr.bf16.mxu0 %v3464_v22  ;;  %v3551_v22 = vld [vmem:[%s5058_s1 + $0x3ac] ss:$16 sps:$4 sm:$0xff]  }
  0x7f   :  { %1847 = vmatpush1.bf16.msra.mxu1 %v3465_v26  ;;  %v3554_v26 = vld [vmem:[%s5058_s1 + $0x7c4] ss:$16 sps:$4 sm:$0xff]  }
  0x80   :  { %1765 = vmatpush1.bf16.msra.mxu0 %v3462_v25  ;;  %1857 = vmatprep.subr.bf16.mxu1 %v3473_v49  ;;  %v3549_v25 = vld [vmem:[%s5058_s1 + $0x3a8] ss:$16 sps:$4 sm:$0xff]   ;;  %v3552_v49 = vld [vmem:[%s5058_s1 + $0x7c0] ss:$16 sps:$4 sm:$0xff]  }
  0x81   :  { %1775 = vmatprep.subr.bf16.mxu0 %v3470_v27  ;;  %v3557_v27 = vld [vmem:[%s5058_s1 + $0x3cc] ss:$16 sps:$4 sm:$0xff]  }
  0x82   :  { %1849 = vmatmul.mubr.bf16.vlgmr.msra.gmra.mrb[4].mxu1 %v4098_v16  ;;  %v3485_v16 = vld [vmem:[%s5058_s1 + $0x24c] ss:$16 sps:$4 sm:$0xff]  }
  0x83   :  { %1767 = vmatmul.mubr.bf16.vlgmr.msra.gmra.mrb[0].mxu0 %v4319_v29  ;;  %1858 = vmatpush1.bf16.msra.mxu1 %v3471_v31  ;;  %v3563_v31 = vld [vmem:[%s5058_s1 + $0x3ec] ss:$16 sps:$4 sm:$0xff]  }
  0x84   :  { %1776 = vmatpush1.bf16.msra.mxu0 %v3468_v30  ;;  %1859 = vmatprep.subr.bf16.mxu1 %v3479_v33  ;;  %v3560_v30 = vld [vmem:[%s5058_s1 + $0x7e4] ss:$16 sps:$4 sm:$0xff]   ;;  %v3561_v33 = vld [vmem:[%s5058_s1 + $0x3e8] ss:$16 sps:$4 sm:$0xff]  }
  0x85   :  { %1777 = vmatprep.subr.bf16.mxu0 %v3476_v32  ;;  %1807 = vmatprep.mubr.bf16.mxu0 %v4333_v34  ;;  %v3558_v32 = vld [vmem:[%s5058_s1 + $0x7e0] ss:$16 sps:$4 sm:$0xff]  }
  0x86   :  { %1889 = vmatprep.mubr.bf16.mxu1 %v4059_v3  ;;  %v3491_v3 = vld [vmem:[%s5058_s1 + $0x26c] ss:$16 sps:$4 sm:$0xff]  }
  0x87   :  { %1860 = vmatpush1.bf16.msra.mxu1 %v3477_v36  ;;  %v3565_v36 = vld [vmem:[%s5058_s1 + $0x408] ss:$16 sps:$4 sm:$0xff]  }
  0x88   :  { %1778 = vmatpush1.bf16.msra.mxu0 %v3474_v35  ;;  %1861 = vmatprep.subr.bf16.mxu1 %v3485_v16  ;;  %v3567_v35 = vld [vmem:[%s5058_s1 + $0x40c] ss:$16 sps:$4 sm:$0xff]  }
  0x89   :  { %1779 = vmatprep.subr.bf16.mxu0 %v3482_v37  ;;  %v4521_v37 = vpack.c.bf16 %v4301_v24, %v4301_v24  ;;  %v3570_v16 = vld [vmem:[%s5058_s1 + $0x42c] ss:$16 sps:$4 sm:$0xff]  }
  0x8a   :  { %v3573_v24 = vld [vmem:[%s5058_s1 + $0x44c] ss:$16 sps:$4 sm:$0xff]  }
  0x8b   :  { %1862 = vmatpush1.bf16.msra.mxu1 %v3483_v39  ;;  %v3571_v39 = vld [vmem:[%s5058_s1 + $0x448] ss:$16 sps:$4 sm:$0xff]  }
  0x8c   :  { %1780 = vmatpush1.bf16.msra.mxu0 %v3480_v38  ;;  %1863 = vmatprep.subr.bf16.mxu1 %v3491_v3  ;;  %v3568_v38 = vld [vmem:[%s5058_s1 + $0x428] ss:$16 sps:$4 sm:$0xff]  }
  0x8d   :  { %1781 = vmatprep.subr.bf16.mxu0 %v3488_v40  ;;  %v3576_v40 = vld [vmem:[%s5058_s1 + $0x46c] ss:$16 sps:$4 sm:$0xff]  }
  0x8f   :  { %1864 = vmatpush1.bf16.msra.mxu1 %v3489_v42 }
  0x90   :  { %1782 = vmatpush1.bf16.msra.mxu0 %v3486_v41  ;;  %1865 = vmatprep.subr.bf16.mxu1 %v3497_v45 }
  0x91   :  { %1783 = vmatprep.subr.bf16.mxu0 %v3494_v44 }
  0x93   :  { %1866 = vmatpush1.bf16.msra.mxu1 %v3495_v47 }
  0x94   :  { %1784 = vmatpush1.bf16.msra.mxu0 %v3492_v46  ;;  %1867 = vmatprep.subr.bf16.mxu1 %v3503_v50 }
  0x95   :  { %1785 = vmatprep.subr.bf16.mxu0 %v3500_v48 }
  0x97   :  { %1868 = vmatpush1.bf16.msra.mxu1 %v3501_v53 }
  0x98   :  { %1786 = vmatpush1.bf16.msra.mxu0 %v3498_v52  ;;  %1869 = vmatprep.subr.bf16.mxu1 %v3509_v55 }
  0x99   :  { %1787 = vmatprep.subr.bf16.mxu0 %v3506_v54 }
  0x9b   :  { %1870 = vmatpush1.bf16.msra.mxu1 %v3507_v57 }
  0x9c   :  { %1788 = vmatpush1.bf16.msra.mxu0 %v3504_v56  ;;  %1871 = vmatprep.subr.bf16.mxu1 %v3515_v59 }
  0x9d   :  { %1789 = vmatprep.subr.bf16.mxu0 %v3512_v58 }
  0x9f   :  { %1872 = vmatpush1.bf16.msra.mxu1 %v3513_v61 }
  0xa0   :  { %1790 = vmatpush1.bf16.msra.mxu0 %v3510_v60  ;;  %1873 = vmatprep.subr.bf16.mxu1 %v3521_v63 }
  0xa1   :  { %1791 = vmatprep.subr.bf16.mxu0 %v3518_v62 }
  0xa3   :  { %1874 = vmatpush1.bf16.msra.mxu1 %v3519_v1 }
  0xa4   :  { %1792 = vmatpush1.bf16.msra.mxu0 %v3516_v0  ;;  %1875 = vmatprep.subr.bf16.mxu1 %v3527_v4 }
  0xa5   :  { %1793 = vmatprep.subr.bf16.mxu0 %v3524_v2 }
  0xa7   :  { %1876 = vmatpush1.bf16.msra.mxu1 %v3525_v6 }
  0xa8   :  { %1794 = vmatpush1.bf16.msra.mxu0 %v3522_v5  ;;  %1877 = vmatprep.subr.bf16.mxu1 %v3533_v8 }
  0xa9   :  { %1795 = vmatprep.subr.bf16.mxu0 %v3530_v7 }
  0xab   :  { %1878 = vmatpush1.bf16.msra.mxu1 %v3531_v10 }
  0xac   :  { %1796 = vmatpush1.bf16.msra.mxu0 %v3528_v9  ;;  %1879 = vmatprep.subr.bf16.mxu1 %v3539_v12 }
  0xad   :  { %1797 = vmatprep.subr.bf16.mxu0 %v3536_v11 }
  0xaf   :  { %1880 = vmatpush1.bf16.msra.mxu1 %v3537_v14 }
  0xb0   :  { %1798 = vmatpush1.bf16.msra.mxu0 %v3534_v13  ;;  %1881 = vmatprep.subr.bf16.mxu1 %v3545_v17 }
  0xb1   :  { %1799 = vmatprep.subr.bf16.mxu0 %v3542_v15 }
  0xb3   :  { %1882 = vmatpush1.bf16.msra.mxu1 %v3543_v20 }
  0xb4   :  { %1800 = vmatpush1.bf16.msra.mxu0 %v3540_v19  ;;  %1883 = vmatprep.subr.bf16.mxu1 %v3551_v22 }
  0xb5   :  { %1801 = vmatprep.subr.bf16.mxu0 %v3548_v21 }
  0xb7   :  { %1884 = vmatpush1.bf16.msra.mxu1 %v3549_v25 }
  0xb8   :  { %1802 = vmatpush1.bf16.msra.mxu0 %v3546_v23  ;;  %1885 = vmatprep.subr.bf16.mxu1 %v3557_v27 }
  0xb9   :  { %1803 = vmatprep.subr.bf16.mxu0 %v3554_v26 }
  0xbb   :  { %1886 = vmatpush1.bf16.msra.mxu1 %v3555_v28 }
  0xbc   :  { %1804 = vmatpush1.bf16.msra.mxu0 %v3552_v49  ;;  %1887 = vmatprep.subr.bf16.mxu1 %v3563_v31 }
  0xbd   :  { %1805 = vmatprep.subr.bf16.mxu0 %v3560_v30 }
  0xbf   :  { %1888 = vmatpush1.bf16.msra.mxu1 %v3561_v33 }
  0xc0   :  { %1806 = vmatpush1.bf16.msra.mxu0 %v3558_v32  ;;  %1898 = vmatprep.subr.bf16.mxu1 %v3567_v35 }
  0xc2   :  { %1890 = vmatmul.mubr.bf16.vlgmr.msra.gmra.mrb[4].mxu1 %v4103_v18 }
  0xc3   :  { %1808 = vmatmul.mubr.bf16.vlgmr.msra.gmra.mrb[0].mxu0 %v4521_v37  ;;  %1899 = vmatpush1.bf16.msra.mxu1 %v3565_v36 }
  0xc4   :  { %1930 = vmatprep.mubr.bf16.mxu1 %v4199_v51  ;;  %1900 = vmatprep.subr.bf16.mxu1 %v3570_v16 }
  0xc7   :  { %1901 = vmatpush1.bf16.msra.mxu1 %v3568_v38 }
  0xc8   :  { %1902 = vmatprep.subr.bf16.mxu1 %v3573_v24 }
  0xc9   :  { %16 = vsyncpa [#allocation3], 0  ;;  %v3574_v18 = vld [vmem:[%s5058_s1 + $0x468] ss:$16 sps:$4 sm:$0xff]   ;;  %v3579_v51 = vld [vmem:[%s5058_s1 + $0x48c] ss:$16 sps:$4 sm:$0xff]  }
  0xca   :  { %v3577_v3 = vld [vmem:[%s5058_s1 + $0x488] ss:$16 sps:$4 sm:$0xff]   ;;  %v3582_v41 = vld [vmem:[%s5058_s1 + $0x4ac] ss:$16 sps:$4 sm:$0xff]   ;;  %vm1982_vm0 = vcmask 1041408   ;;  %vm2853_vm1 = vcmask 9216  }
  0xcb   :  { %1903 = vmatpush1.bf16.msra.mxu1 %v3571_v39  ;;  %v3580_v42 = vld [vmem:[%s5058_s1 + $0x4a8] ss:$16 sps:$4 sm:$0xff]   ;;  %v3585_v44 = vld [vmem:[%s5058_s1 + $0x4cc] ss:$16 sps:$4 sm:$0xff]  }
  0xcc   :  { %1904 = vmatprep.subr.bf16.mxu1 %v3576_v40  ;;  %v3583_v45 = vld [vmem:[%s5058_s1 + $0x4c8] ss:$16 sps:$4 sm:$0xff]   ;;  %v3588_v46 = vld [vmem:[%s5058_s1 + $0x4ec] ss:$16 sps:$4 sm:$0xff]  }
  0xcd   :  { %v3586_v47 = vld [vmem:[%s5058_s1 + $0x4e8] ss:$16 sps:$4 sm:$0xff]   ;;  %v3591_v48 = vld [vmem:[%s5058_s1 + $0x50c] ss:$16 sps:$4 sm:$0xff]  }
  0xce   :  { %v3589_v50 = vld [vmem:[%s5058_s1 + $0x508] ss:$16 sps:$4 sm:$0xff]   ;;  %v3594_v52 = vld [vmem:[%s5058_s1 + $0x52c] ss:$16 sps:$4 sm:$0xff]  }
  0xcf   :  { %1905 = vmatpush1.bf16.msra.mxu1 %v3574_v18  ;;  %v3592_v53 = vld [vmem:[%s5058_s1 + $0x528] ss:$16 sps:$4 sm:$0xff]   ;;  %v3597_v54 = vld [vmem:[%s5058_s1 + $0x54c] ss:$16 sps:$4 sm:$0xff]  }
  0xd0   :  { %1906 = vmatprep.subr.bf16.mxu1 %v3579_v51  ;;  %v3595_v55 = vld [vmem:[%s5058_s1 + $0x548] ss:$16 sps:$4 sm:$0xff]   ;;  %v3600_v56 = vld [vmem:[%s5058_s1 + $0x56c] ss:$16 sps:$4 sm:$0xff]  }
  0xd1   :  { %v3598_v57 = vld [vmem:[%s5058_s1 + $0x568] ss:$16 sps:$4 sm:$0xff]   ;;  %v3603_v58 = vld [vmem:[%s5058_s1 + $0x58c] ss:$16 sps:$4 sm:$0xff]  }
  0xd2   :  { %v3601_v59 = vld [vmem:[%s5058_s1 + $0x588] ss:$16 sps:$4 sm:$0xff]   ;;  %v3606_v60 = vld [vmem:[%s5058_s1 + $0x5ac] ss:$16 sps:$4 sm:$0xff]  }
  0xd3   :  { %1907 = vmatpush1.bf16.msra.mxu1 %v3577_v3  ;;  %v3604_v61 = vld [vmem:[%s5058_s1 + $0x5a8] ss:$16 sps:$4 sm:$0xff]   ;;  %v3609_v62 = vld [vmem:[%s5058_s1 + $0x5cc] ss:$16 sps:$4 sm:$0xff]  }
  0xd4   :  { %1908 = vmatprep.subr.bf16.mxu1 %v3582_v41  ;;  %v3607_v63 = vld [vmem:[%s5058_s1 + $0x5c8] ss:$16 sps:$4 sm:$0xff]   ;;  %v3612_v0 = vld [vmem:[%s5058_s1 + $0x5ec] ss:$16 sps:$4 sm:$0xff]  }
  0xd5   :  { %v3610_v1 = vld [vmem:[%s5058_s1 + $0x5e8] ss:$16 sps:$4 sm:$0xff]   ;;  %v3615_v2 = vld [vmem:[%s5058_s1 + $0x60c] ss:$16 sps:$4 sm:$0xff]  }
  0xd6   :  { %v3613_v4 = vld [vmem:[%s5058_s1 + $0x608] ss:$16 sps:$4 sm:$0xff]   ;;  %v3618_v5 = vld [vmem:[%s5058_s1 + $0x62c] ss:$16 sps:$4 sm:$0xff]  }
  0xd7   :  { %1909 = vmatpush1.bf16.msra.mxu1 %v3580_v42  ;;  %v3616_v6 = vld [vmem:[%s5058_s1 + $0x628] ss:$16 sps:$4 sm:$0xff]   ;;  %v3621_v7 = vld [vmem:[%s5058_s1 + $0x64c] ss:$16 sps:$4 sm:$0xff]  }
  0xd8   :  { %1910 = vmatprep.subr.bf16.mxu1 %v3585_v44  ;;  %v3619_v8 = vld [vmem:[%s5058_s1 + $0x648] ss:$16 sps:$4 sm:$0xff]   ;;  %v3627_v9 = vld [vmem:[%s5058_s1 + $0x68c] ss:$16 sps:$4 sm:$0xff]  }
  0xd9   :  { %v3625_v10 = vld [vmem:[%s5058_s1 + $0x688] ss:$16 sps:$4 sm:$0xff]   ;;  %v3630_v11 = vld [vmem:[%s5058_s1 + $0x6ac] ss:$16 sps:$4 sm:$0xff]  }
  0xda   :  { %v3628_v12 = vld [vmem:[%s5058_s1 + $0x6a8] ss:$16 sps:$4 sm:$0xff]   ;;  %v3633_v13 = vld [vmem:[%s5058_s1 + $0x6cc] ss:$16 sps:$4 sm:$0xff]  }
  0xdb   :  { %1911 = vmatpush1.bf16.msra.mxu1 %v3583_v45  ;;  %v3631_v19 = vld [vmem:[%s5058_s1 + $0x6c8] ss:$16 sps:$4 sm:$0xff]   ;;  %v3636_v21 = vld [vmem:[%s5058_s1 + $0x6ec] ss:$16 sps:$4 sm:$0xff]  }
  0xdc   :  { %1912 = vmatprep.subr.bf16.mxu1 %v3588_v46  ;;  %v3663_v22 = vld [vmem:[%s5062_s5 + $0x4] ss:$8 sps:$4 sm:$0xff]   ;;  %v3634_v23 = vld [vmem:[%s5058_s1 + $0x6e8] ss:$16 sps:$4 sm:$0xff]   ;;  %v3666_v27 = vld [vmem:[%s5062_s5 + $0x14] ss:$8 sps:$4 sm:$0xff]  }
  0xdd   :  { %v3661_v25 = vld [vmem:[%s5062_s5] ss:$8 sps:$4 sm:$0xff]   ;;  %v3639_v26 = vld [vmem:[%s5058_s1 + $0x70c] ss:$16 sps:$4 sm:$0xff]   ;;  %2522 = vmatprep.subr.bf16.mxu0 %v3663_v22  ;;  %v3664_v28 = vld [vmem:[%s5062_s5 + $0x10] ss:$8 sps:$4 sm:$0xff]  }
  0xde   :  { %2523 = vmatpush1.bf16.msra.mxu0 %v3661_v25  ;;  %v3637_v49 = vld [vmem:[%s5058_s1 + $0x708] ss:$16 sps:$4 sm:$0xff]   ;;  %v3642_v30 = vld [vmem:[%s5058_s1 + $0x72c] ss:$16 sps:$4 sm:$0xff]  }
  0xdf   :  { %1913 = vmatpush1.bf16.msra.mxu1 %v3586_v47  ;;  %2524 = vmatprep.subr.bf16.mxu0 %v3666_v27  ;;  %v3669_v31 = vld [vmem:[%s5062_s5 + $0x24] ss:$8 sps:$4 sm:$0xff]   ;;  %v3640_v32 = vld [vmem:[%s5058_s1 + $0x728] ss:$16 sps:$4 sm:$0xff]   ;;  %v3672_v36 = vld [vmem:[%s5062_s5 + $0x34] ss:$8 sps:$4 sm:$0xff]  }
  0xe0   :  { %1914 = vmatprep.subr.bf16.mxu1 %v3591_v48  ;;  %v3667_v33 = vld [vmem:[%s5062_s5 + $0x20] ss:$8 sps:$4 sm:$0xff]   ;;  %v3645_v35 = vld [vmem:[%s5058_s1 + $0x74c] ss:$16 sps:$4 sm:$0xff]   ;;  %v3670_v38 = vld [vmem:[%s5062_s5 + $0x30] ss:$8 sps:$4 sm:$0xff]  }
  0xe1   :  { %v3643_v16 = vld [vmem:[%s5058_s1 + $0x748] ss:$16 sps:$4 sm:$0xff]   ;;  %v3648_v24 = vld [vmem:[%s5058_s1 + $0x76c] ss:$16 sps:$4 sm:$0xff]  }
  0xe2   :  { %2525 = vmatpush1.bf16.msra.mxu0 %v3664_v28  ;;  %v3675_v39 = vld [vmem:[%s5062_s5 + $0x44] ss:$8 sps:$4 sm:$0xff]   ;;  %v3646_v40 = vld [vmem:[%s5058_s1 + $0x768] ss:$16 sps:$4 sm:$0xff]   ;;  %v3678_v3 = vld [vmem:[%s5062_s5 + $0x54] ss:$8 sps:$4 sm:$0xff]  }
  0xe3   :  { %1915 = vmatpush1.bf16.msra.mxu1 %v3589_v50  ;;  %2526 = vmatprep.subr.bf16.mxu0 %v3669_v31  ;;  %v3673_v18 = vld [vmem:[%s5062_s5 + $0x40] ss:$8 sps:$4 sm:$0xff]   ;;  %v3651_v51 = vld [vmem:[%s5058_s1 + $0x78c] ss:$16 sps:$4 sm:$0xff]   ;;  %v3676_v42 = vld [vmem:[%s5062_s5 + $0x50] ss:$8 sps:$4 sm:$0xff]  }
  0xe4   :  { %1916 = vmatprep.subr.bf16.mxu1 %v3594_v52  ;;  %v3649_v41 = vld [vmem:[%s5058_s1 + $0x788] ss:$16 sps:$4 sm:$0xff]   ;;  %v3654_v44 = vld [vmem:[%s5058_s1 + $0x7ac] ss:$16 sps:$4 sm:$0xff]  }
  0xe5   :  { %v3681_v45 = vld [vmem:[%s5062_s5 + $0x64] ss:$8 sps:$4 sm:$0xff]   ;;  %v3652_v46 = vld [vmem:[%s5058_s1 + $0x7a8] ss:$16 sps:$4 sm:$0xff]   ;;  %v3684_v50 = vld [vmem:[%s5062_s5 + $0x74] ss:$8 sps:$4 sm:$0xff]  }
  0xe6   :  { %2527 = vmatpush1.bf16.msra.mxu0 %v3667_v33  ;;  %v3679_v47 = vld [vmem:[%s5062_s5 + $0x60] ss:$8 sps:$4 sm:$0xff]   ;;  %v3657_v48 = vld [vmem:[%s5058_s1 + $0x7cc] ss:$16 sps:$4 sm:$0xff]  }
  0xe7   :  { %1917 = vmatpush1.bf16.msra.mxu1 %v3592_v53  ;;  %2528 = vmatprep.subr.bf16.mxu0 %v3672_v36  ;;  %v3655_v52 = vld [vmem:[%s5058_s1 + $0x7c8] ss:$16 sps:$4 sm:$0xff]  }
  0xe8   :  { %1918 = vmatprep.subr.bf16.mxu1 %v3597_v54  ;;  %v3682_v53 = vld [vmem:[%s5062_s5 + $0x70] ss:$8 sps:$4 sm:$0xff]   ;;  %v3660_v54 = vld [vmem:[%s5058_s1 + $0x7ec] ss:$16 sps:$4 sm:$0xff]  }
  0xea   :  { %2529 = vmatpush1.bf16.msra.mxu0 %v3670_v38 }
  0xeb   :  { %1919 = vmatpush1.bf16.msra.mxu1 %v3595_v55  ;;  %2530 = vmatprep.subr.bf16.mxu0 %v3675_v39  ;;  %v3687_v55 = vld [vmem:[%s5062_s5 + $0x84] ss:$8 sps:$4 sm:$0xff]  }
  0xec   :  { %1920 = vmatprep.subr.bf16.mxu1 %v3600_v56  ;;  %v3658_v56 = vld [vmem:[%s5058_s1 + $0x7e8] ss:$16 sps:$4 sm:$0xff]  }
  0xee   :  { %2531 = vmatpush1.bf16.msra.mxu0 %v3673_v18 }
  0xef   :  { %1921 = vmatpush1.bf16.msra.mxu1 %v3598_v57  ;;  %2532 = vmatprep.subr.bf16.mxu0 %v3678_v3  ;;  %v3685_v57 = vld [vmem:[%s5062_s5 + $0x80] ss:$8 sps:$4 sm:$0xff]  }
  0xf0   :  { %1922 = vmatprep.subr.bf16.mxu1 %v3603_v58  ;;  %v3690_v58 = vld [vmem:[%s5062_s5 + $0x94] ss:$8 sps:$4 sm:$0xff]  }
  0xf2   :  { %2533 = vmatpush1.bf16.msra.mxu0 %v3676_v42 }
  0xf3   :  { %1923 = vmatpush1.bf16.msra.mxu1 %v3601_v59  ;;  %2534 = vmatprep.subr.bf16.mxu0 %v3681_v45  ;;  %v3688_v59 = vld [vmem:[%s5062_s5 + $0x90] ss:$8 sps:$4 sm:$0xff]  }
  0xf4   :  { %1924 = vmatprep.subr.bf16.mxu1 %v3606_v60  ;;  %v3693_v60 = vld [vmem:[%s5062_s5 + $0xa4] ss:$8 sps:$4 sm:$0xff]  }
  0xf6   :  { %2535 = vmatpush1.bf16.msra.mxu0 %v3679_v47 }
  0xf7   :  { %1925 = vmatpush1.bf16.msra.mxu1 %v3604_v61  ;;  %2536 = vmatprep.subr.bf16.mxu0 %v3684_v50  ;;  %v3691_v61 = vld [vmem:[%s5062_s5 + $0xa0] ss:$8 sps:$4 sm:$0xff]  }
  0xf8   :  { %1926 = vmatprep.subr.bf16.mxu1 %v3609_v62  ;;  %v3696_v62 = vld [vmem:[%s5062_s5 + $0xb4] ss:$8 sps:$4 sm:$0xff]  }
  0xfa   :  { %2537 = vmatpush1.bf16.msra.mxu0 %v3682_v53 }
  0xfb   :  { %1927 = vmatpush1.bf16.msra.mxu1 %v3607_v63  ;;  %2538 = vmatprep.subr.bf16.mxu0 %v3687_v55  ;;  %v3694_v63 = vld [vmem:[%s5062_s5 + $0xb0] ss:$8 sps:$4 sm:$0xff]  }
  0xfc   :  { %1928 = vmatprep.subr.bf16.mxu1 %v3612_v0  ;;  %v3697_v0 = vld [vmem:[%s5062_s5 + $0xc0] ss:$8 sps:$4 sm:$0xff]  }
  0xfe   :  { %2539 = vmatpush1.bf16.msra.mxu0 %v3685_v57 }
  0xff   :  { %1929 = vmatpush1.bf16.msra.mxu1 %v3610_v1  ;;  %2540 = vmatprep.subr.bf16.mxu0 %v3690_v58  ;;  %v3700_v1 = vld [vmem:[%s5062_s5 + $0xd0] ss:$8 sps:$4 sm:$0xff]  }
 0x100   :  { %1939 = vmatprep.subr.bf16.mxu1 %v3615_v2  ;;  %v3702_v2 = vld [vmem:[%s5062_s5 + $0xd4] ss:$8 sps:$4 sm:$0xff]  }
 0x102   :  { %1931 = vmatmul.mubr.bf16.vlgmr.msra.gmra.mrb[4].mxu1 %v4319_v29  ;;  %v3624_v29 = vld [vmem:[%s5058_s1 + $0x66c] ss:$16 sps:$4 sm:$0xff]   ;;  %2541 = vmatpush1.bf16.msra.mxu0 %v3688_v59 }
 0x103   :  { %1940 = vmatpush1.bf16.msra.mxu1 %v3613_v4  ;;  %1971 = vmatprep.mubr.bf16.mxu1 %v4333_v34  ;;  %v3622_v34 = vld [vmem:[%s5058_s1 + $0x668] ss:$16 sps:$4 sm:$0xff]   ;;  %v3705_v4 = vld [vmem:[%s5062_s5 + $0xe4] ss:$8 sps:$4 sm:$0xff]  }
 0x104   :  { %1941 = vmatprep.subr.bf16.mxu1 %v3618_v5  ;;  %2542 = vmatprep.subr.bf16.mxu0 %v3693_v60  ;;  %v3703_v5 = vld [vmem:[%s5062_s5 + $0xe0] ss:$8 sps:$4 sm:$0xff]  }
 0x106   :  { %2543 = vmatpush1.bf16.msra.mxu0 %v3691_v61  ;;  %v4842_v61 = vld [vmem:[%s5060_s3] sm:$0xf] }
 0x107   :  { %1942 = vmatpush1.bf16.msra.mxu1 %v3616_v6  ;;  %2544 = vmatprep.subr.bf16.mxu0 %v3696_v62  ;;  %v3708_v6 = vld [vmem:[%s5062_s5 + $0xf4] ss:$8 sps:$4 sm:$0xff]   ;;  %v4847_v62 = vld [vmem:[%s5061_s4] sm:$0xf] }
 0x108   :  { %1943 = vmatprep.subr.bf16.mxu1 %v3621_v7  ;;  %v3706_v7 = vld [vmem:[%s5062_s5 + $0xf0] ss:$8 sps:$4 sm:$0xff]  }
 0x10a   :  { %2545 = vmatpush1.bf16.msra.mxu0 %v3694_v63 }
 0x10b   :  { %1944 = vmatpush1.bf16.msra.mxu1 %v3619_v8  ;;  %v4816_v8 = vsub.s32 0, %v4004_v43 }
 0x10c   :  { %1945 = vmatprep.subr.bf16.mxu1 %v3624_v29  ;;  %v4821_v29 = vld [vmem:[%s5059_s2] sm:$0xf] }
 0x10d   :  { %v2072_v63 = vrot.slane %v4842_v61, %v4816_v8 }
 0x10f   :  { %1946 = vmatpush1.bf16.msra.mxu1 %v3622_v34  ;;  %v4824_v34 = vsub.s32 1, %v4004_v43 }
 0x110   :  { %1947 = vmatprep.subr.bf16.mxu1 %v3627_v9  ;;  %v355_v9 = vrot.slane %v4821_v29, %v4816_v8 }
 0x113   :  { %1948 = vmatpush1.bf16.msra.mxu1 %v3625_v10  ;;  %v359_v10 = vrot.slane %v4821_v29, %v4824_v34 }
 0x114   :  { %1949 = vmatprep.subr.bf16.mxu1 %v3630_v11 }
 0x115   :  { %v4657_v14 = vpop.f32.mrb[0].mxu1 }
 0x116   :  { %v4659_v15 = vpop.f32.mrb[1].mxu1  ;;  %v1687_v11 = vadd.f32 %v4657_v14, %v355_v9 }
 0x117   :  { %v1690_v17 = vpop.f32.mrb[2].mxu1  ;;  %1950 = vmatpush1.bf16.msra.mxu1 %v3628_v12  ;;  %v1689_v12 = vadd.f32 %v4659_v15, %v359_v10 }
 0x118   :  { %v1691_v20 = vpop.f32.mrb[3].mxu1  ;;  %1951 = vmatprep.subr.bf16.mxu1 %v3633_v13 }
 0x11b   :  { %1952 = vmatpush1.bf16.msra.mxu1 %v3631_v19 }
 0x11c   :  { %1953 = vmatprep.subr.bf16.mxu1 %v3636_v21 }
 0x11f   :  { %1954 = vmatpush1.bf16.msra.mxu1 %v3634_v23 }
 0x120   :  { %1955 = vmatprep.subr.bf16.mxu1 %v3639_v26 }
 0x123   :  { %1956 = vmatpush1.bf16.msra.mxu1 %v3637_v49  ;;  %v3711_v49 = vld [vmem:[%s5062_s5 + $0x104] ss:$8 sps:$4 sm:$0xff]  }
 0x124   :  { %1957 = vmatprep.subr.bf16.mxu1 %v3642_v30 }
 0x127   :  { %1958 = vmatpush1.bf16.msra.mxu1 %v3640_v32 }
 0x128   :  { %1959 = vmatprep.subr.bf16.mxu1 %v3645_v35 }
 0x12b   :  { %1960 = vmatpush1.bf16.msra.mxu1 %v3643_v16 }
 0x12c   :  { %1961 = vmatprep.subr.bf16.mxu1 %v3648_v24 }
 0x12f   :  { %1962 = vmatpush1.bf16.msra.mxu1 %v3646_v40 }
 0x130   :  { %1963 = vmatprep.subr.bf16.mxu1 %v3651_v51 }
 0x133   :  { %1964 = vmatpush1.bf16.msra.mxu1 %v3649_v41 }
 0x134   :  { %1965 = vmatprep.subr.bf16.mxu1 %v3654_v44 }
 0x137   :  { %1966 = vmatpush1.bf16.msra.mxu1 %v3652_v46 }
 0x138   :  { %1967 = vmatprep.subr.bf16.mxu1 %v3657_v48 }
 0x13b   :  { %1968 = vmatpush1.bf16.msra.mxu1 %v3655_v52 }
 0x13c   :  { %1969 = vmatprep.subr.bf16.mxu1 %v3660_v54 }
 0x13f   :  { %1970 = vmatpush1.bf16.msra.mxu1 %v3658_v56 }
 0x142   :  { %1972 = vmatmul.mubr.bf16.vlgmr.msra.gmra.mrb[4].mxu1 %v4521_v37  ;;  %v3699_v37 = vld [vmem:[%s5062_s5 + $0xc4] ss:$8 sps:$4 sm:$0xff]  }
 0x143   :  { %2546 = vmatprep.subr.bf16.mxu0 %v3699_v37 }
 0x144   :  { %2547 = vmatpush1.bf16.msra.mxu0 %v3697_v0  ;;  %v2076_v0 = vrot.slane %v4842_v61, %v4824_v34 }
 0x145   :  { %2548 = vmatprep.subr.bf16.mxu0 %v3702_v2 }
 0x148   :  { %2549 = vmatpush1.bf16.msra.mxu0 %v3700_v1 }
 0x149   :  { %2550 = vmatprep.subr.bf16.mxu0 %v3705_v4  ;;  %v2097_v4 = vrot.slane %v4847_v62, %v4816_v8 }
 0x14c   :  { %2551 = vmatpush1.bf16.msra.mxu0 %v3703_v5 }
 0x14d   :  { %2552 = vmatprep.subr.bf16.mxu0 %v3708_v6  ;;  %v2101_v6 = vrot.slane %v4847_v62, %v4824_v34 }
 0x150   :  { %2553 = vmatpush1.bf16.msra.mxu0 %v3706_v7 }
 0x151   :  { %2563 = vmatprep.subr.bf16.mxu0 %v3711_v49  ;;  %v3723_v49 = vld [vmem:[%s5062_s5 + $0x144] ss:$8 sps:$4 sm:$0xff]  }
 0x196   :  { %v1809_v13 = vpop.f32.mrb[0].mxu0 }
 0x197   :  { %v3242_v17 = vadd.f32 %v1809_v13, %v1687_v11  ;;  %v1811_v19 = vpop.f32.mrb[1].mxu0 }
 0x198   :  { %v3244_v20 = vadd.f32 %v1811_v19, %v1689_v12  ;;  %v1813_v21 = vpop.f32.mrb[2].mxu0  ;;  %v3709_v19 = vld [vmem:[%s5062_s5 + $0x100] ss:$8 sps:$4 sm:$0xff]  }
 0x199   :  { %v1983_v22 = vsel %vm1982_vm0, %v3242_v17, 0.0  ;;  %v1814_v23 = vpop.f32.mrb[3].mxu0  ;;  %v3714_v21 = vld [vmem:[%s5062_s5 + $0x114] ss:$8 sps:$4 sm:$0xff]  }
 0x19a   :  { %v1984_v25 = vrot.slane %v1983_v22, 4  ;;  %v1990_v26 = vsel %vm1982_vm0, %v3244_v20, 0.0  ;;  %v3717_v23 = vld [vmem:[%s5062_s5 + $0x124] ss:$8 sps:$4 sm:$0xff]  }
 0x19b   :  { %v1991_v27 = vrot.slane %v1990_v26, 4 }
 0x19c   :  { %v1985_v14 = vadd.f32 %v1984_v25, %v1983_v22  ;;  %v3712_v22 = vld [vmem:[%s5062_s5 + $0x110] ss:$8 sps:$4 sm:$0xff]   ;;  %v3715_v25 = vld [vmem:[%s5062_s5 + $0x120] ss:$8 sps:$4 sm:$0xff]  }
 0x19d   :  { %v1992_v28 = vadd.f32 %v1991_v27, %v1990_v26  ;;  %v3720_v26 = vld [vmem:[%s5062_s5 + $0x134] ss:$8 sps:$4 sm:$0xff]   ;;  %v3718_v27 = vld [vmem:[%s5062_s5 + $0x130] ss:$8 sps:$4 sm:$0xff]  }
 0x19e   :  { %v1986_v15 = vrot.slane %v1985_v14, 2 }
 0x19f   :  { %v1993_v30 = vrot.slane %v1992_v28, 2 }
 0x1a0   :  { %v1987_v31 = vadd.f32 %v1986_v15, %v1985_v14  ;;  %v3721_v14 = vld [vmem:[%s5062_s5 + $0x140] ss:$8 sps:$4 sm:$0xff]   ;;  %v3724_v15 = vld [vmem:[%s5062_s5 + $0x150] ss:$8 sps:$4 sm:$0xff]  }
 0x1a1   :  { %v1994_v32 = vadd.f32 %v1993_v30, %v1992_v28  ;;  %v3726_v28 = vld [vmem:[%s5062_s5 + $0x154] ss:$8 sps:$4 sm:$0xff]   ;;  %v3729_v30 = vld [vmem:[%s5062_s5 + $0x164] ss:$8 sps:$4 sm:$0xff]  }
 0x1a2   :  { %v1988_v33 = vrot.slane %v1987_v31, 1 }
 0x1a3   :  { %v1995_v35 = vrot.slane %v1994_v32, 1 }
 0x1a4   :  { %v1989_v36 = vadd.f32 %v1988_v33, %v1987_v31  ;;  %v3727_v31 = vld [vmem:[%s5062_s5 + $0x160] ss:$8 sps:$4 sm:$0xff]   ;;  %v3730_v33 = vld [vmem:[%s5062_s5 + $0x170] ss:$8 sps:$4 sm:$0xff]  }
 0x1a5   :  { %v1996_v16 = vadd.f32 %v1995_v35, %v1994_v32  ;;  %v3732_v32 = vld [vmem:[%s5062_s5 + $0x174] ss:$8 sps:$4 sm:$0xff]   ;;  %v3735_v35 = vld [vmem:[%s5062_s5 + $0x184] ss:$8 sps:$4 sm:$0xff]  }
 0x1a6   :  { %v2012_v38 = vmul.f32 0.5, %v1989_v36  ;;  %v3733_v36 = vld [vmem:[%s5062_s5 + $0x180] ss:$8 sps:$4 sm:$0xff]  }
 0x1a7   :  { %v2013_v24 = vmul.f32 0.5, %v1996_v16  ;;  %v3738_v16 = vld [vmem:[%s5062_s5 + $0x194] ss:$8 sps:$4 sm:$0xff]  }
 0x1a8   :  { %v2016_v39 = vsub.f32 %v3242_v17, %v2012_v38  ;;  %v3736_v38 = vld [vmem:[%s5062_s5 + $0x190] ss:$8 sps:$4 sm:$0xff]  }
 0x1a9   :  { %v2017_v40 = vsub.f32 %v3244_v20, %v2013_v24  ;;  %v3741_v24 = vld [vmem:[%s5062_s5 + $0x1a4] ss:$8 sps:$4 sm:$0xff]  }
 0x1aa   :  { %v2020_v18 = vmul.f32 %v2016_v39, %v2016_v39 }
 0x1ab   :  { %v2021_v51 = vmul.f32 %v2017_v40, %v2017_v40 }
 0x1ac   :  { %v2024_v3 = vsel %vm1982_vm0, %v2020_v18, 0.0  ;;  %v3742_v18 = vld [vmem:[%s5062_s5 + $0x1b0] ss:$8 sps:$4 sm:$0xff]  }
 0x1ad   :  { %v2025_v41 = vrot.slane %v2024_v3, 4  ;;  %v2031_v42 = vsel %vm1982_vm0, %v2021_v51, 0.0  ;;  %v3747_v51 = vld [vmem:[%s5062_s5 + $0x1c4] ss:$8 sps:$4 sm:$0xff]  }
 0x1ae   :  { %v2032_v44 = vrot.slane %v2031_v42, 4 }
 0x1af   :  { %v2026_v45 = vadd.f32 %v2025_v41, %v2024_v3  ;;  %v3745_v3 = vld [vmem:[%s5062_s5 + $0x1c0] ss:$8 sps:$4 sm:$0xff]   ;;  %v3750_v41 = vld [vmem:[%s5062_s5 + $0x1d4] ss:$8 sps:$4 sm:$0xff]  }
 0x1b0   :  { %v2033_v46 = vadd.f32 %v2032_v44, %v2031_v42  ;;  %v3748_v42 = vld [vmem:[%s5062_s5 + $0x1d0] ss:$8 sps:$4 sm:$0xff]   ;;  %v4939_v44 = vsub.s32 2, %v4004_v43 }
 0x1b1   :  { %v2027_v47 = vrot.slane %v2026_v45, 2 }
 0x1b2   :  { %v2034_v48 = vrot.slane %v2033_v46, 2 }
 0x1b3   :  { %v2028_v50 = vadd.f32 %v2027_v47, %v2026_v45  ;;  %v3753_v45 = vld [vmem:[%s5062_s5 + $0x1e4] ss:$8 sps:$4 sm:$0xff]   ;;  %v3751_v47 = vld [vmem:[%s5062_s5 + $0x1e0] ss:$8 sps:$4 sm:$0xff]  }
 0x1b4   :  { %v2035_v52 = vadd.f32 %v2034_v48, %v2033_v46  ;;  %v4945_v46 = vsub.s32 3, %v4004_v43  ;;  %v363_v48 = vrot.slane %v4821_v29, %v4939_v44  ;;  %v3754_v43 = vld [vmem:[%s5062_s5 + $0x1f0] ss:$8 sps:$4 sm:$0xff]  }
 0x1b5   :  { %v2029_v53 = vrot.slane %v2028_v50, 1 }
 0x1b6   :  { %v2036_v54 = vrot.slane %v2035_v52, 1 }
 0x1b7   :  { %v2030_v55 = vadd.f32 %v2029_v53, %v2028_v50  ;;  %v3756_v50 = vld [vmem:[%s5062_s5 + $0x1f4] ss:$8 sps:$4 sm:$0xff]  }
 0x1b8   :  { %v2037_v56 = vadd.f32 %v2036_v54, %v2035_v52  ;;  %v367_v52 = vrot.slane %v4821_v29, %v4945_v46 }
 0x1b9   :  { %v2052_v57 = vmul.f32 0.5, %v2030_v55 }
 0x1ba   :  { %v2053_v58 = vmul.f32 0.5, %v2037_v56 }
 0x1bb   :  { %v2056_v59 = vadd.f32 1e-05, %v2052_v57 }
 0x1bc   :  { %v2057_v60 = vadd.f32 1e-05, %v2053_v58 }
 0x1bd   :  { %3773 = vrsqrt.f32 %v2056_v59 }
 0x1be   :  { %3775 = vrsqrt.f32 %v2057_v60 }
 0x1c7   :  { %v3774_v37 = vpop.eup %3773 }
 0x1c8   :  { %v3776_v1 = vpop.eup %3775  ;;  %v2064_v2 = vmul.f32 %v3774_v37, %v2016_v39  ;;  %v3739_v39 = vld [vmem:[%s5062_s5 + $0x1a0] ss:$8 sps:$4 sm:$0xff]  }
 0x1c9   :  { %v2065_v5 = vmul.f32 %v3776_v1, %v2017_v40  ;;  %v3744_v40 = vld [vmem:[%s5062_s5 + $0x1b4] ss:$8 sps:$4 sm:$0xff]  }
 0x1ca   :  { %v2089_v7 = vmul.f32 %v2072_v63, %v2064_v2 }
 0x1cb   :  { %v2090_v9 = vmul.f32 %v2076_v0, %v2065_v5 }
 0x1cc   :  { %v2114_v10 = vadd.f32 %v2097_v4, %v2089_v7 }
 0x1cd   :  { %v2115_v11 = vadd.f32 %v2101_v6, %v2090_v9 }
 0x1ce   :  { %3777 = vtanh.f32 %v2114_v10 }
 0x1cf   :  { %3779 = vtanh.f32 %v2115_v11 }
 0x1d8   :  { %v3778_v12 = vpop.eup %3777 }
 0x1d9   :  { %v3780_v13 = vpop.eup %3779  ;;  %v2122_v20 = vpack.c.bf16 %v3778_v12, %v3778_v12 }
 0x1da   :  { %v2123_v17 = vpack.c.bf16 %v3780_v13, %v3780_v13 }
 0x1dc   :  { %2554 = vmatprep.mubr.bf16.mxu0 %v2123_v17 }
 0x1dd   :  { %2555 = vmatmul.mubr.bf16.vlgmr.msra.gmra.mrb[4].mxu0 %v2122_v20 }
 0x1de   :  { %2564 = vmatpush1.bf16.msra.mxu0 %v3709_v19 }
 0x1df   :  { %2565 = vmatprep.subr.bf16.mxu0 %v3714_v21 }
 0x1e2   :  { %2566 = vmatpush1.bf16.msra.mxu0 %v3712_v22 }
 0x1e3   :  { %2567 = vmatprep.subr.bf16.mxu0 %v3717_v23 }
 0x1e6   :  { %2568 = vmatpush1.bf16.msra.mxu0 %v3715_v25 }
 0x1e7   :  { %2569 = vmatprep.subr.bf16.mxu0 %v3720_v26 }
 0x1ea   :  { %2570 = vmatpush1.bf16.msra.mxu0 %v3718_v27 }
 0x1eb   :  { %2571 = vmatprep.subr.bf16.mxu0 %v3723_v49 }
 0x1ee   :  { %2572 = vmatpush1.bf16.msra.mxu0 %v3721_v14 }
 0x1ef   :  { %2573 = vmatprep.subr.bf16.mxu0 %v3726_v28 }
 0x1f2   :  { %2574 = vmatpush1.bf16.msra.mxu0 %v3724_v15 }
 0x1f3   :  { %2575 = vmatprep.subr.bf16.mxu0 %v3729_v30 }
 0x1f6   :  { %2576 = vmatpush1.bf16.msra.mxu0 %v3727_v31 }
 0x1f7   :  { %2577 = vmatprep.subr.bf16.mxu0 %v3732_v32 }
 0x1fa   :  { %2578 = vmatpush1.bf16.msra.mxu0 %v3730_v33 }
 0x1fb   :  { %2579 = vmatprep.subr.bf16.mxu0 %v3735_v35 }
 0x1fe   :  { %2580 = vmatpush1.bf16.msra.mxu0 %v3733_v36 }
 0x1ff   :  { %2581 = vmatprep.subr.bf16.mxu0 %v3738_v16 }
 0x202   :  { %2582 = vmatpush1.bf16.msra.mxu0 %v3736_v38 }
 0x203   :  { %2583 = vmatprep.subr.bf16.mxu0 %v3741_v24  ;;  %v2080_v24 = vrot.slane %v4842_v61, %v4939_v44 }
 0x206   :  { %2584 = vmatpush1.bf16.msra.mxu0 %v3739_v39 }
 0x207   :  { %2585 = vmatprep.subr.bf16.mxu0 %v3744_v40  ;;  %v2084_v40 = vrot.slane %v4842_v61, %v4945_v46  ;;  %v3757_v61 = vld [vmem:[%s5066_s9 + $0x40] sm:$0xff]  }
 0x208   :  { %3219 = vmatprep.subr.bf16.mxu1 %v3757_v61 }
 0x20a   :  { %2586 = vmatpush1.bf16.msra.mxu0 %v3742_v18 }
 0x20b   :  { %2587 = vmatprep.subr.bf16.mxu0 %v3747_v51 }
 0x20e   :  { %2588 = vmatpush1.bf16.msra.mxu0 %v3745_v3  ;;  %v2105_v3 = vrot.slane %v4847_v62, %v4939_v44  ;;  %v3759_v44 = vld [vmem:[%s5066_s9 + $0x48] sm:$0xff]  }
 0x20f   :  { %2589 = vmatprep.subr.bf16.mxu0 %v3750_v41 }
 0x212   :  { %2590 = vmatpush1.bf16.msra.mxu0 %v3748_v42  ;;  %v2109_v42 = vrot.slane %v4847_v62, %v4945_v46  ;;  %v3758_v62 = vld [vmem:[%s5066_s9] sm:$0xff]   ;;  %v3760_v46 = vld [vmem:[%s5066_s9 + $0x8] sm:$0xff]  }
 0x213   :  { %2591 = vmatprep.subr.bf16.mxu0 %v3753_v45  ;;  %3220 = vmatpush3.bf16.msra.mxu1 %v3758_v62  ;;  %v2604_v62 = vld [vmem:[%s5064_s7] sm:$0x3] }
 0x214   :  { %3221 = vmatprep.subr.bf16.mxu1 %v3759_v44  ;;  %v2605_v44 = vld [vmem:[%s5065_s8] sm:$0x3] }
 0x215   :  { %v1973_v53 = vpop.f32.mrb[4].mxu1 }
 0x216   :  { %2592 = vmatpush1.bf16.msra.mxu0 %v3751_v47  ;;  %v3245_v54 = vadd.f32 %v1973_v53, %v363_v48  ;;  %v1975_v55 = vpop.f32.mrb[5].mxu1 }
 0x217   :  { %2593 = vmatprep.subr.bf16.mxu0 %v3756_v50  ;;  %v3246_v56 = vadd.f32 %v1975_v55, %v367_v52  ;;  %v1977_v57 = vpop.f32.mrb[6].mxu1  ;;  %3222 = vmatpush3.bf16.msra.mxu1 %v3760_v46  ;;  %v3761_v55 = vld [vmem:[%s5066_s9 + $0x50] sm:$0xff]   ;;  %v2652_v46 = vrot.slane %v2604_v62, %v4816_v8 }
 0x218   :  { %v1997_v58 = vsel %vm1982_vm0, %v3245_v54, 0.0  ;;  %v1978_v59 = vpop.f32.mrb[7].mxu1  ;;  %3223 = vmatprep.subr.bf16.mxu1 %v3761_v55  ;;  %v3763_v57 = vld [vmem:[%s5066_s9 + $0x58] sm:$0xff]  }
 0x219   :  { %v1998_v60 = vrot.slane %v1997_v58, 4  ;;  %v2004_v63 = vsel %vm1982_vm0, %v3246_v56, 0.0  ;;  %v3765_v59 = vld [vmem:[%s5066_s9 + $0x60] sm:$0xff]  }
 0x21a   :  { %2594 = vmatpush1.bf16.msra.mxu0 %v3754_v43  ;;  %v2005_v37 = vrot.slane %v2004_v63, 4 }
 0x21b   :  { %v1999_v29 = vadd.f32 %v1998_v60, %v1997_v58  ;;  %v3764_v58 = vld [vmem:[%s5066_s9 + $0x18] sm:$0xff]   ;;  %v3766_v60 = vld [vmem:[%s5066_s9 + $0x20] sm:$0xff]  }
 0x21c   :  { %v2006_v0 = vadd.f32 %v2005_v37, %v2004_v63  ;;  %v3767_v63 = vld [vmem:[%s5066_s9 + $0x68] sm:$0xff]  }
 0x21d   :  { %v2000_v1 = vrot.slane %v1999_v29, 2  ;;  %v3768_v37 = vld [vmem:[%s5066_s9 + $0x28] sm:$0xff]  }
 0x21e   :  { %v2007_v2 = vrot.slane %v2006_v0, 2 }
 0x21f   :  { %v2001_v4 = vadd.f32 %v2000_v1, %v1999_v29  ;;  %v3769_v29 = vld [vmem:[%s5066_s9 + $0x70] sm:$0xff]   ;;  %v3771_v1 = vld [vmem:[%s5066_s9 + $0x78] sm:$0xff]  }
 0x220   :  { %v2008_v5 = vadd.f32 %v2007_v2, %v2006_v0  ;;  %v3770_v0 = vld [vmem:[%s5066_s9 + $0x30] sm:$0xff]   ;;  %v3772_v2 = vld [vmem:[%s5066_s9 + $0x38] sm:$0xff]  }
 0x221   :  { %v2002_v6 = vrot.slane %v2001_v4, 1 }
 0x222   :  { %v2009_v7 = vrot.slane %v2008_v5, 1 }
 0x223   :  { %v2003_v9 = vadd.f32 %v2002_v6, %v2001_v4  ;;  %v2190_v4 = vld [vmem:[%s5063_s6] sm:$0x3] }
 0x224   :  { %v2010_v10 = vadd.f32 %v2009_v7, %v2008_v5  ;;  %v2195_v5 = vrot.slane %v2190_v4, %v4816_v8  ;;  %v2199_v6 = vrot.slane %v2190_v4, %v4824_v34 }
 0x225   :  { %v2014_v11 = vmul.f32 0.5, %v2003_v9 }
 0x226   :  { %v2015_v12 = vmul.f32 0.5, %v2010_v10 }
 0x227   :  { %v2018_v13 = vsub.f32 %v3245_v54, %v2014_v11 }
 0x228   :  { %v2019_v17 = vsub.f32 %v3246_v56, %v2015_v12  ;;  %v3762_v56 = vld [vmem:[%s5066_s9 + $0x10] sm:$0xff]  }
 0x229   :  { %v2022_v19 = vmul.f32 %v2018_v13, %v2018_v13  ;;  %3224 = vmatpush3.bf16.msra.mxu1 %v3762_v56  ;;  %v2656_v56 = vrot.slane %v2604_v62, %v4824_v34 }
 0x22a   :  { %v2023_v20 = vmul.f32 %v2019_v17, %v2019_v17  ;;  %3225 = vmatprep.subr.bf16.mxu1 %v3763_v57 }
 0x22b   :  { %v2038_v21 = vsel %vm1982_vm0, %v2022_v19, 0.0 }
 0x22c   :  { %v2039_v22 = vrot.slane %v2038_v21, 4  ;;  %v2045_v23 = vsel %vm1982_vm0, %v2023_v20, 0.0 }
 0x22d   :  { %v2046_v25 = vrot.slane %v2045_v23, 4  ;;  %3226 = vmatpush3.bf16.msra.mxu1 %v3764_v58 }
 0x22e   :  { %v2040_v26 = vadd.f32 %v2039_v22, %v2038_v21  ;;  %3227 = vmatprep.subr.bf16.mxu1 %v3765_v59  ;;  %v2665_v59 = vrot.slane %v2605_v44, %v4816_v8  ;;  %v3202_v8 = vld [vmem:[%s5067_s10] ss:$0 sm:$0xff]  ;;  %s3826_s10 = smov [#allocation2]  }
 0x22f   :  { %v2047_v27 = vadd.f32 %v2046_v25, %v2045_v23  ;;  %s2874_s3 = sshll.u32 %s3826_s10, 4  ;;  %s2875_s3 = int_to_ptr.vmem [resolvable:$true] %s2874_s3 }
 0x230   :  { %v2041_v49 = vrot.slane %v2040_v26, 2  ;;  %s3801_s4 = scalar_lea.vmem %s2875_s3, 32  ;;  %p3806_p1 = scmp.lt.s32.totalorder %s2875_s3, %s2875_s3 }
 0x231   :  { %v2048_v14 = vrot.slane %v2047_v27, 2  ;;  %3228 = vmatpush3.bf16.msra.mxu1 %v3766_v60  ;;  %p3802_p0 = scmp.ne.s32.totalorder %s2875_s3, %s3801_s4  ;;  %p3807_p2 = scmp.lt.s32.totalorder %s3801_s4, %s3801_s4 }
 0x232   :  { %v2042_v28 = vadd.f32 %v2041_v49, %v2040_v26  ;;  %3229 = vmatprep.subr.bf16.mxu1 %v3767_v63  ;;  %v2669_v63 = vrot.slane %v2605_v44, %v4824_v34 }
 0x233   :  { %v2049_v15 = vadd.f32 %v2048_v14, %v2047_v27  ;;  %p3808_p3 = por %p3807_p2, %p3806_p1 }
 0x234   :  { %v2043_v30 = vrot.slane %v2042_v28, 1 }
 0x235   :  { %v2050_v31 = vrot.slane %v2049_v15, 1  ;;  %3230 = vmatpush3.bf16.msra.mxu1 %v3768_v37  ;;  %p3809_p4 = pnand %p3808_p3, %p3802_p0 }
 0x236   :  { %v2044_v32 = vadd.f32 %v2043_v30, %v2042_v28  ;;  %3231 = vmatprep.subr.bf16.mxu1 %v3769_v29 }
 0x237   :  { %v2051_v33 = vadd.f32 %v2050_v31, %v2049_v15 }
 0x238   :  { %v2054_v35 = vmul.f32 0.5, %v2044_v32 }
 0x239   :  { %v2055_v36 = vmul.f32 0.5, %v2051_v33  ;;  %3232 = vmatpush3.bf16.msra.mxu1 %v3770_v0 }
 0x23a   :  { %v2058_v16 = vadd.f32 1e-05, %v2054_v35  ;;  %3233 = vmatprep.subr.bf16.mxu1 %v3771_v1 }
 0x23b   :  { %v2059_v38 = vadd.f32 1e-05, %v2055_v36 }
 0x23c   :  { %3781 = vrsqrt.f32 %v2058_v16 }
 0x23d   :  { %3783 = vrsqrt.f32 %v2059_v38  ;;  %3234 = vmatpush3.bf16.msra.mxu1 %v3772_v2 }
 0x246   :  { %v3782_v39 = vpop.eup %3781 }
 0x247   :  { %v3784_v18 = vpop.eup %3783  ;;  %v2066_v51 = vmul.f32 %v3782_v39, %v2018_v13 }
 0x248   :  { %v2067_v41 = vmul.f32 %v3784_v18, %v2019_v17 }
 0x249   :  { %v2091_v45 = vmul.f32 %v2080_v24, %v2066_v51 }
 0x24a   :  { %v2092_v47 = vmul.f32 %v2084_v40, %v2067_v41 }
 0x24b   :  { %v2116_v48 = vadd.f32 %v2105_v3, %v2091_v45 }
 0x24c   :  { %v2117_v50 = vadd.f32 %v2109_v42, %v2092_v47 }
 0x24d   :  { %3785 = vtanh.f32 %v2116_v48 }
 0x24e   :  { %3787 = vtanh.f32 %v2117_v50 }
 0x257   :  { %v3786_v52 = vpop.eup %3785 }
 0x258   :  { %v3788_v53 = vpop.eup %3787  ;;  %v2124_v54 = vpack.c.bf16 %v3786_v52, %v3786_v52 }
 0x259   :  { %v2125_v43 = vpack.c.bf16 %v3788_v53, %v3788_v53 }
 0x25b   :  { %2595 = vmatprep.mubr.bf16.mxu0 %v2125_v43 }
 0x25c   :  { %2596 = vmatmul.mubr.bf16.vlgmr.msra.gmra.mrb[4].mxu0 %v2124_v54 }
 0x32f   :  { %v2597_v7 = vpop.f32.mrb[4].mxu0 }
 0x330   :  { %v3247_v9 = vadd.f32 %v2597_v7, %v2195_v5  ;;  %v2599_v10 = vpop.f32.mrb[5].mxu0 }
 0x331   :  { %v3248_v11 = vadd.f32 %v2599_v10, %v2199_v6  ;;  %v2601_v12 = vpop.f32.mrb[6].mxu0 }
 0x332   :  { %v2606_v13 = vsel %vm1982_vm0, %v3247_v9, 0.0  ;;  %v2602_v17 = vpop.f32.mrb[7].mxu0 }
 0x333   :  { %v2607_v19 = vrot.slane %v2606_v13, 4  ;;  %v2613_v20 = vsel %vm1982_vm0, %v3248_v11, 0.0 }
 0x334   :  { %v2614_v21 = vrot.slane %v2613_v20, 4 }
 0x335   :  { %v2608_v22 = vadd.f32 %v2607_v19, %v2606_v13 }
 0x336   :  { %v2615_v23 = vadd.f32 %v2614_v21, %v2613_v20 }
 0x337   :  { %v2609_v25 = vrot.slane %v2608_v22, 2 }
 0x338   :  { %v2616_v26 = vrot.slane %v2615_v23, 2 }
 0x339   :  { %v2610_v27 = vadd.f32 %v2609_v25, %v2608_v22 }
 0x33a   :  { %v2617_v49 = vadd.f32 %v2616_v26, %v2615_v23 }
 0x33b   :  { %v2611_v14 = vrot.slane %v2610_v27, 1 }
 0x33c   :  { %v2618_v28 = vrot.slane %v2617_v49, 1 }
 0x33d   :  { %v2612_v15 = vadd.f32 %v2611_v14, %v2610_v27 }
 0x33e   :  { %v2619_v30 = vadd.f32 %v2618_v28, %v2617_v49 }
 0x33f   :  { %v2620_v31 = vmul.f32 0.5, %v2612_v15 }
 0x340   :  { %v2621_v32 = vmul.f32 0.5, %v2619_v30 }
 0x341   :  { %v2622_v33 = vsub.f32 %v3247_v9, %v2620_v31 }
 0x342   :  { %v2623_v35 = vsub.f32 %v3248_v11, %v2621_v32 }
 0x343   :  { %v2624_v36 = vmul.f32 %v2622_v33, %v2622_v33 }
 0x344   :  { %v2625_v16 = vmul.f32 %v2623_v35, %v2623_v35 }
 0x345   :  { %v2626_v38 = vsel %vm1982_vm0, %v2624_v36, 0.0 }
 0x346   :  { %v2627_v24 = vrot.slane %v2626_v38, 4  ;;  %v2633_v39 = vsel %vm1982_vm0, %v2625_v16, 0.0 }
 0x347   :  { %v2634_v40 = vrot.slane %v2633_v39, 4 }
 0x348   :  { %v2628_v18 = vadd.f32 %v2627_v24, %v2626_v38 }
 0x349   :  { %v2635_v51 = vadd.f32 %v2634_v40, %v2633_v39 }
 0x34a   :  { %v2629_v3 = vrot.slane %v2628_v18, 2 }
 0x34b   :  { %v2636_v41 = vrot.slane %v2635_v51, 2 }
 0x34c   :  { %v2630_v42 = vadd.f32 %v2629_v3, %v2628_v18 }
 0x34d   :  { %v2637_v45 = vadd.f32 %v2636_v41, %v2635_v51 }
 0x34e   :  { %v2631_v47 = vrot.slane %v2630_v42, 1 }
 0x34f   :  { %v2638_v48 = vrot.slane %v2637_v45, 1 }
 0x350   :  { %v2632_v50 = vadd.f32 %v2631_v47, %v2630_v42 }
 0x351   :  { %v2639_v52 = vadd.f32 %v2638_v48, %v2637_v45 }
 0x352   :  { %v2640_v53 = vmul.f32 0.5, %v2632_v50 }
 0x353   :  { %v2641_v43 = vmul.f32 0.5, %v2639_v52 }
 0x354   :  { %v2642_v54 = vadd.f32 1e-05, %v2640_v53 }
 0x355   :  { %v2643_v61 = vadd.f32 1e-05, %v2641_v43 }
 0x356   :  { %3789 = vrsqrt.f32 %v2642_v54 }
 0x357   :  { %3791 = vrsqrt.f32 %v2643_v61 }
 0x360   :  { %v3790_v55 = vpop.eup %3789 }
 0x361   :  { %v3792_v57 = vpop.eup %3791  ;;  %v2646_v58 = vmul.f32 %v3790_v55, %v2622_v33 }
 0x362   :  { %v2647_v60 = vmul.f32 %v3792_v57, %v2623_v35 }
 0x363   :  { %v2659_v37 = vmul.f32 %v2652_v46, %v2646_v58 }
 0x364   :  { %v2660_v29 = vmul.f32 %v2656_v56, %v2647_v60 }
 0x365   :  { %v2672_v0 = vadd.f32 %v2665_v59, %v2659_v37 }
 0x366   :  { %v2673_v1 = vadd.f32 %v2669_v63, %v2660_v29 }
 0x367   :  { %3793 = vtanh.f32 %v2672_v0 }
 0x368   :  { %3795 = vtanh.f32 %v2673_v1 }
 0x371   :  { %v3794_v2 = vpop.eup %3793 }
 0x372   :  { %v3796_v4 = vpop.eup %3795  ;;  %v2676_v6 = vpack.c.bf16 %v3794_v2, %v3794_v2 }
 0x373   :  { %v2677_v5 = vpack.c.bf16 %v3796_v4, %v3796_v4 }
 0x375   :  { %2845 = vmatprep.mubr.bf16.mxu1 %v2677_v5 }
 0x376   :  { %2846 = vmatmul.mubr.bf16.vlgmr.msra.gmra.mrb[8].mxu1 %v2676_v6 }
 0x449   :  { %v3235_v7 = vpop.f32.mrb[8].mxu1 }
 0x44a   :  { %v3236_v9 = vpop.f32.mrb[9].mxu1 }
 0x44b   :  { %v3237_v10 = vadd.f32 %v3236_v9, %v3235_v7  ;;  %v3238_v34 = vpop.f32.mrb[10].mxu1 }
 0x44c   :  { %v3239_v11 = vpop.f32.mrb[11].mxu1 }
 0x44d   :  { %v2848_v12 = vadd.f32 %v3237_v10, %v3202_v8 }
 0x44f   :  { %v2854_v13 = vsel %vm2853_vm1, %v2848_v12, -inf }
 0x450   :  { %2855 = vmax.xlane.f32.xlu0 %v2854_v13 }
 0x4dd   :  { %v2856_v17 = vpop.xlane.xlu0 %2855 }
 0x4de   :  { %v2857_v19 = vsub.f32 %v2848_v12, %v2856_v17 }
 0x4e0   :  { %v2858_v20 = vmul.f32 1.442695, %v2857_v19 }
 0x4e2   :  { %3797 = vpow2.f32 %v2858_v20 }
 0x4ec   :  { %v3798_v21 = vpop.eup %3797 }
 0x4ed   :  { %v2860_v22 = vsel %vm2853_vm1, %v3798_v21, 0.0 }
 0x4ee   :  { %2861 = vadd.xlane.f32.xlu0 %v2860_v22 }
 0x57b   :  { %v2862_v23 = vpop.xlane.xlu0 %2861 }
 0x57c   :  { %3799 = vlog2.f32 %v2862_v23 }
 0x586   :  { %v3800_v25 = vpop.eup %3799 }
 0x587   :  { %v2864_v26 = vmul.f32 0.6931472, %v3800_v25 }
 0x589   :  { %v2865_v27 = vadd.f32 %v2864_v26, %v2856_v17 }
 0x58b   :  { %v2866_v49 = vsub.f32 %v2848_v12, %v2865_v27 }
 0x58d   :  { %2867 = vst.msk [vmem:[#allocation2] sm:$0x3] %vm2853_vm1, %v2866_v49 }
 0x58e   :  { %3812 = shalt.err (!%p3809_p4)
}
 0x58f   :  { %s3813_s14 = scalar_lea.hbm %s5068_s11, 32 }
 0x590   :  { %p3814_p5 = scmp.ne.s32.totalorder %s5068_s11, %s3813_s14  ;;  %p3817_p6 = scmp.lt.u32.totalorder %s3813_s14, %s5068_s11 }
 0x592   :  { %p3819_p7 = pnand %p3817_p6, %p3814_p5 }
 0x594   :  { %3822 = shalt.err (!%p3819_p7)
}
 0x595   :  { %2877 = dma.vmem_to_hbm [thread:$0]  %s2875_s3, 32, %s5068_s11, [#allocation3]  }
 0x596   :  { %3823 = dma.done.wait [#allocation3], 32  }
 0x597   :  { %3824 = vsyncadd [#allocation3], 4294967264 }
 0x598   :  { %2881 = vsyncpa [#allocation3], 1 }

</bundles_post_ra>
